<compile_context>
chip_gen: v7x
topology: tpu7x:2x2x1
jax: 0.10.0
libtpu: 0.0.40
codegen_flags: <defaults>
</compile_context>

<pallas_src>
import math

import jax
import jax.numpy as jnp
from jax import lax
from jax.experimental import pallas as pl
from jax.experimental.pallas import tpu as pltpu


# ---------------------------------------------------------------------------
# helpers
# ---------------------------------------------------------------------------
def _round_up(x, m):
    return (x + m - 1) // m * m


def _block_diag(a, b):
    a = a.astype(jnp.float32)
    b = b.astype(jnp.float32)
    m, n = a.shape
    p, q = b.shape
    top = jnp.concatenate([a, jnp.zeros((m, q), jnp.float32)], axis=1)
    bot = jnp.concatenate([jnp.zeros((p, n), jnp.float32), b], axis=1)
    return jnp.concatenate([top, bot], axis=0)


# ---------------------------------------------------------------------------
# Pallas kernel
# ---------------------------------------------------------------------------
def frontier_kernel(h_sca_ref, hvec_ref, pos_ref, temb_ref, bidc_ref, bidr_ref,
                    w1v_ref, w1s_ref, w1v2_ref, w1g_ref, b1g_ref, w1d_ref,
                    w2v_ref, w2s_ref, w2v2_ref, w2g_ref, b2g_ref,
                    out_ref, m_scr, d_scr, acc_scr):
    f32 = jnp.float32
    bf16 = jnp.bfloat16
    T, S = h_sca_ref.shape
    V = hvec_ref.shape[2]
    B = out_ref.shape[0]
    step = pl.program_id(0)
    nsteps = pl.num_programs(0)

    @pl.when(step == 0)
    def _init():
        m_scr[...] = jnp.full_like(m_scr, -1e30)
        d_scr[...] = jnp.zeros_like(d_scr)
        acc_scr[...] = jnp.zeros_like(acc_scr)

    def mm(a, w):                       # bf16 MXU matmul, f32 accumulation
        return jnp.dot(a.astype(bf16), w, preferred_element_type=f32)

    def mmf(a, w):                      # f32 matmul (softmax bookkeeping / scatter)
        return jnp.dot(a, w, preferred_element_type=f32)

    # ------------- stage 1: att & net GVPerceptronVN, branch-fused -------------
    # xyz stacked along sublanes -> one matmul per VN weight.
    vst = jnp.concatenate([hvec_ref[0], hvec_ref[1], hvec_ref[2]], axis=0)     # (3T, V)
    i1 = mm(vst, w1v_ref[...])                                                 # (3T, 2dh)
    ix, iy, iz = i1[:T], i1[T:2 * T], i1[2 * T:]
    norm1 = jnp.sqrt(ix * ix + iy * iy + iz * iz)                              # (T, 2dh)
    sca_in = h_sca_ref[...].astype(f32) + temb_ref[...].astype(f32)            # (T, S)
    s1 = mm(jnp.concatenate([norm1, sca_in], axis=1), w1s_ref[...])            # (T, 2HS)
    o1 = mm(i1, w1v2_ref[...])                                                 # (3T, 2HV)
    gate1 = jax.nn.sigmoid(mm(s1, w1g_ref[...]) + b1g_ref[...])                # (T, 2HV)
    vg = o1 * jnp.concatenate([gate1, gate1, gate1], axis=0)                   # (3T, 2HV)

    # VN leaky-relu (slope 0.2), both branches at once (block-diag dir map)
    d1 = mm(vg, w1d_ref[...])                                                  # (3T, 2HV)
    dx, dy, dz = d1[:T], d1[T:2 * T], d1[2 * T:]
    gx, gy, gz = vg[:T], vg[T:2 * T], vg[2 * T:]
    dot = gx * dx + gy * dy + gz * dz
    dsq = dx * dx + dy * dy + dz * dz
    coef = dot * pl.reciprocal(dsq + 1e-6, approx=True)
    adj = jnp.where(dot >= 0.0, 0.0, coef) * 0.8                               # (1 - slope)
    vact = vg - jnp.concatenate([adj, adj, adj], axis=0) * d1                  # (3T, 2HV)
    s1a = jnp.where(s1 >= 0.0, s1, 0.01 * s1)                                  # scalar LeakyReLU

    # ------------- stage 2: final GVLinears (att scalar head + net), fused -----
    i2 = mm(vact, w2v_ref[...])                                                # (3T, dhf+dhg)
    jx, jy, jz = i2[:T], i2[T:2 * T], i2[2 * T:]
    norm2 = jnp.sqrt(jx * jx + jy * jy + jz * jz)                              # (T, dhf+dhg)
    fin_s = mm(jnp.concatenate([norm2, s1a], axis=1), w2s_ref[...])            # (T, S+1)=[out_s|logit]
    ov = mm(i2, w2v2_ref[...])                                                 # (3T, V)
    gate2 = jax.nn.sigmoid(mm(fin_s, w2g_ref[...]) + b2g_ref[...])             # (T, V)
    ov = ov * jnp.concatenate([gate2, gate2, gate2], axis=0)                   # gated out vectors
    logit = fin_s[:, S:S + 1]                                                  # (T, 1)

    # ------------- streaming segment softmax + fused scatter sums --------------
    bid_c = bidc_ref[...]                                                      # (T, 1) int32
    bid_r = bidr_ref[...]                                                      # (1, T) int32
    mask = (bid_c == lax.broadcasted_iota(jnp.int32, (T, B), 1)).astype(f32)   # (T, B)
    maskT = (lax.broadcasted_iota(jnp.int32, (B, T), 0) == bid_r).astype(f32)  # (B, T)
    valid = bid_c < B                                                          # padded rows -> False

    masked = jnp.where(mask > 0.0, logit, -1e30)                               # (T, B)
    tmax_row = jnp.max(masked, axis=0, keepdims=True)                          # (1, B)
    # row -> column (B,1) via identity-select (avoids a tiny transpose lowering)
    ii = lax.broadcasted_iota(jnp.int32, (B, B), 0)
    jj = lax.broadcasted_iota(jnp.int32, (B, B), 1)
    tmax_col = jnp.max(jnp.where(ii == jj, jnp.broadcast_to(tmax_row, (B, B)), -3e38),
                       axis=1, keepdims=True)                                  # (B, 1)

    m_old = m_scr[...]                                                         # (B, 1)
    m_new = jnp.maximum(m_old, tmax_col)
    rescale = jnp.exp(m_old - m_new)                                           # (B, 1)
    node_max = mmf(mask, m_new)                                                # (T, 1); 0 for padded rows
    e = jnp.where(valid, jnp.exp(logit - node_max), 0.0)                       # (T, 1)

    x_cat = jnp.concatenate([fin_s, pos_ref[...].astype(f32),
                             ov[:T], ov[T:2 * T], ov[2 * T:]], axis=1)         # (T, S+1+3+3V)
    acc_scr[...] = acc_scr[...] * rescale + mmf(maskT, e * x_cat)              # (B, D)
    d_scr[...] = d_scr[...] * rescale + mmf(maskT, e)                          # (B, 1)
    m_scr[...] = m_new

    @pl.when(step == nsteps - 1)
    def _finalize():
        denom = jnp.where(d_scr[...] > 0.0, d_scr[...], 1.0)                   # guard empty segments
        out_ref[...] = acc_scr[...] * pl.reciprocal(denom, approx=True)


# ---------------------------------------------------------------------------
# host-side weight fusion (att + net branches concatenated / block-diagonal)
# ---------------------------------------------------------------------------
def _fuse_weights(params):
    f32, bf16 = jnp.float32, jnp.bfloat16
    ap, af, npc, nf = params['att_p'], params['att_f'], params['net_p'], params['net_f']
    S, HS = ap['Wss'].shape                 # in_sca, hidden_sca
    V, dh = ap['Wv1'].shape                 # in_vec, max(in_vec, hidden_vec)
    dhf = af['Wv1'].shape[1]                # att-final inner vec dim
    dhg = nf['Wv1'].shape[1]                # net-final inner vec dim
    z = lambda m, n: jnp.zeros((m, n), f32)

    # stage 1 (shared-input perceptrons of both branches)
    w1v = jnp.concatenate([ap['Wv1'], npc['Wv1']], axis=1)                      # (V, 2dh)
    w1s = jnp.concatenate([
        jnp.concatenate([ap['Wsn'], z(dh, HS)], axis=1),
        jnp.concatenate([z(dh, HS), npc['Wsn']], axis=1),
        jnp.concatenate([ap['Wss'], npc['Wss']], axis=1)], axis=0)              # (2dh+S, 2HS)
    w1v2 = _block_diag(ap['Wv2'], npc['Wv2'])                                   # (2dh, 2HV)
    w1g = _block_diag(ap['Wg'], npc['Wg'])                                      # (2HS, 2HV)
    b1g = jnp.concatenate([ap['bg'], npc['bg']], axis=1).astype(f32)            # (1, 2HV)
    w1d = _block_diag(ap['Wdir'], npc['Wdir'])                                  # (2HV, 2HV)

    # stage 2 (att-final scalar head + net-final GVLinear)
    w2v = _block_diag(af['Wv1'], nf['Wv1'])                                     # (2HV, dhf+dhg)
    w2s = jnp.concatenate([
        jnp.concatenate([z(dhf, S), af['Wsn']], axis=1),
        jnp.concatenate([nf['Wsn'], z(dhg, 1)], axis=1),
        jnp.concatenate([z(HS, S), af['Wss']], axis=1),
        jnp.concatenate([nf['Wss'], z(HS, 1)], axis=1)], axis=0)                # (dhf+dhg+2HS, S+1)
    w2v2 = jnp.concatenate([z(dhf, V), nf['Wv2']], axis=0)                      # (dhf+dhg, V)
    w2g = jnp.concatenate([nf['Wg'], z(1, V)], axis=0)                          # (S+1, V)
    b2g = nf['bg'].astype(f32)                                                  # (1, V)

    # MXU operands in bf16; gate biases stay f32 (added post-matmul on the VPU)
    return [w1v.astype(bf16), w1s.astype(bf16), w1v2.astype(bf16), w1g.astype(bf16),
            b1g, w1d.astype(bf16), w2v.astype(bf16), w2s.astype(bf16),
            w2v2.astype(bf16), w2g.astype(bf16), b2g]


# ---------------------------------------------------------------------------
# wrapper
# ---------------------------------------------------------------------------
def frontier_layer_vn(params, h_sca, h_vec, pos, t, batch_id, num_batches, *, block_n=512):
    assert block_n % 128 == 0, "block_n must be a multiple of 128"
    N, S = h_sca.shape
    V = h_vec.shape[1]
    B = int(num_batches)
    d_out = S + 1 + 3 + 3 * V            # [out_s | att*logit (dropped) | pos | vec_x | vec_y | vec_z]

    tile = min(block_n, _round_up(N, 8))
    npad = _round_up(N, tile)
    ntiles = npad // tile
    pad = npad - N

    f32, bf16 = jnp.float32, jnp.bfloat16
    h_sca_p = jnp.pad(h_sca.astype(bf16), ((0, pad), (0, 0)))
    hvec3_p = jnp.pad(jnp.transpose(h_vec, (2, 0, 1)).astype(bf16),
                      ((0, 0), (0, pad), (0, 0)))                               # (3, Npad, V)
    pos_p = jnp.pad(pos.astype(f32), ((0, pad), (0, 0)))
    bid_p = jnp.pad(batch_id.astype(jnp.int32), (0, pad), constant_values=B)    # pad -> invalid seg
    bid_col = bid_p[:, None]                                                    # (Npad, 1)
    bid_row = bid_p[None, :]                                                    # (1, Npad)
    temb = params['time_embed'][t][None, :].astype(bf16)                        # (1, S)

    weights = _fuse_weights(params)

    def wspec(w):
        return pl.BlockSpec(w.shape, lambda i: (0, 0))

    in_specs = [
        pl.BlockSpec((tile, S), lambda i: (i, 0)),          # h_sca
        pl.BlockSpec((3, tile, V), lambda i: (0, i, 0)),    # h_vec, xyz leading
        pl.BlockSpec((tile, 3), lambda i: (i, 0)),          # pos
        pl.BlockSpec((1, S), lambda i: (0, 0)),             # time embedding
        pl.BlockSpec((tile, 1), lambda i: (i, 0)),          # batch id (column form)
        pl.BlockSpec((1, tile), lambda i: (0, i)),          # batch id (row form)
    ] + [wspec(w) for w in weights]

    out = pl.pallas_call(
        frontier_kernel,
        out_shape=jax.ShapeDtypeStruct((B, d_out), f32),
        grid_spec=pltpu.PrefetchScalarGridSpec(
            num_scalar_prefetch=0,
            grid=(ntiles,),
            in_specs=in_specs,
            out_specs=pl.BlockSpec((B, d_out), lambda i: (0, 0)),
            scratch_shapes=[pltpu.VMEM((B, 1), f32),        # running segment max
                            pltpu.VMEM((B, 1), f32),        # running segment sum-exp
                            pltpu.VMEM((B, d_out), f32)]),  # running weighted sums
        compiler_params=pltpu.CompilerParams(
            dimension_semantics=("arbitrary",),
            vmem_limit_bytes=32 * 1024 * 1024),
    )(h_sca_p, hvec3_p, pos_p, temb, bid_col, bid_row, *weights)

    feat = out[:, :S]
    posf = out[:, S + 1:S + 4]
    vx = out[:, S + 4:S + 4 + V]
    vy = out[:, S + 4 + V:S + 4 + 2 * V]
    vz = out[:, S + 4 + 2 * V:]
    vecf = jnp.stack([vx, vy, vz], axis=-1)                 # (B, V, 3)
    return (feat, vecf), posf


# ---------------------------------------------------------------------------
# deterministic parameter init (shapes follow the module __init__)
# ---------------------------------------------------------------------------
def init_params(key, S, V, HS, HV):
    keys = iter(jax.random.split(key, 64))

    def u(shape):
        k = next(keys)
        bound = 1.0 / math.sqrt(shape[0])
        return jax.random.uniform(k, shape, jnp.float32, -bound, bound)

    def gvlin(in_s, in_v, out_s, out_v, scalar_only=False):
        dh = max(in_v, out_v)
        p = {'Wv1': u((in_v, dh)),        # VNLinear(in_v -> dh)
             'Wsn': u((dh, out_s)),       # lin_scalar, norm part
             'Wss': u((in_s, out_s))}     # lin_scalar, scalar part
        if not scalar_only:
            p['Wv2'] = u((dh, out_v))     # VNLinear(dh -> out_v)
            p['Wg'] = u((out_s, out_v))   # scalar_to_vector_gates
            p['bg'] = jnp.zeros((1, out_v), jnp.float32)
        return p

    att_p = gvlin(S, V, HS, HV)
    att_p['Wdir'] = u((HV, HV))           # VNLeakyReLU map_to_dir
    net_p = gvlin(S, V, HS, HV)
    net_p['Wdir'] = u((HV, HV))

    return {
        'time_embed': jax.random.normal(next(keys), (100, S), jnp.float32),
        'att_p': att_p,
        'att_f': gvlin(HS, HV, 1, 1, scalar_only=True),
        'net_p': net_p,
        'net_f': gvlin(HS, HV, S, V),
    }


# ---------------------------------------------------------------------------
# pure-JAX f32 reference (for correctness check)
# ---------------------------------------------------------------------------
def ref_forward(params, h_sca, h_vec, pos, t, batch_id, B):
    temb = params['time_embed'][t]
    s = h_sca + temb[None, :]
    v = h_vec                                                     # (N, V, 3)

    def gvlinear(s, v, p, scalar_only=False):
        vi = jnp.einsum('ncd,ch->nhd', v, p['Wv1'])
        norm = jnp.sqrt(jnp.sum(vi * vi, axis=-1))
        out_s = norm @ p['Wsn'] + s @ p['Wss']
        if scalar_only:
            return out_s, None
        out_v = jnp.einsum('nhd,ho->nod', vi, p['Wv2'])
        gate = jax.nn.sigmoid(out_s @ p['Wg'] + p['bg'])
        return out_s, gate[:, :, None] * out_v

    def vn_lrelu(v, Wd, slope=0.2, eps=1e-6):
        d = jnp.einsum('ncd,co->nod', v, Wd)
        dot = jnp.sum(v * d, axis=-1, keepdims=True)
        dsq = jnp.sum(d * d, axis=-1, keepdims=True)
        r = jnp.where(dot >= 0, v, v - (dot / (dsq + eps)) * d)
        return slope * v + (1.0 - slope) * r

    lrelu = lambda x: jnp.where(x >= 0, x, 0.01 * x)

    s1, v1 = gvlinear(s, v, params['att_p'])
    v1 = vn_lrelu(v1, params['att_p']['Wdir'])
    s1 = lrelu(s1)
    att_logit, _ = gvlinear(s1, v1, params['att_f'], scalar_only=True)    # (N, 1)

    s2, v2 = gvlinear(s, v, params['net_p'])
    v2 = vn_lrelu(v2, params['net_p']['Wdir'])
    s2 = lrelu(s2)
    out_s, out_v = gvlinear(s2, v2, params['net_f'])

    seg_max = jax.ops.segment_max(att_logit, batch_id, num_segments=B)
    e = jnp.exp(att_logit - seg_max[batch_id])
    seg_sum = jax.ops.segment_sum(e, batch_id, num_segments=B)
    att = e / seg_sum[batch_id]

    feat = jax.ops.segment_sum(att * out_s, batch_id, num_segments=B)
    posf = jax.ops.segment_sum(att * pos, batch_id, num_segments=B)
    vecf = jax.ops.segment_sum(att[:, :, None] * out_v, batch_id, num_segments=B)
    return (feat, vecf), posf


# ---------------------------------------------------------------------------
if __name__ == "__main__":
    S, V, HS, HV = 16, 8, 32, 16     # in_sca, in_vec, hidden_dim_sca, hidden_dim_vec
    N, B = 1000, 3                   # nodes, batch segments
    t = 7

    key = jax.random.PRNGKey(0)
    kp, kh, kv, kpos = jax.random.split(key, 4)
    params = init_params(kp, S, V, HS, HV)

    h_sca = jax.random.normal(kh, (N, S), jnp.float32)
    h_vec = jax.random.normal(kv, (N, V, 3), jnp.float32)
    pos = jax.random.normal(kpos, (N, 3), jnp.float32)
    batch_id = jnp.minimum(jnp.arange(N, dtype=jnp.int32) * B // N, B - 1)

    # block_n=256 -> 4-step grid at N=1000 (exercises the streaming segment softmax)
    (feat, vecf), posf = frontier_layer_vn(params, h_sca, h_vec, pos, t, batch_id, B,
                                           block_n=256)
    jax.block_until_ready((feat, vecf, posf))

    (rfeat, rvecf), rposf = ref_forward(params, h_sca, h_vec, pos, t, batch_id, B)

    def rel_err(a, b):
        a = jnp.asarray(a, jnp.float32).ravel()
        b = jnp.asarray(b, jnp.float32).ravel()
        return float(jnp.linalg.norm(a - b) / (jnp.linalg.norm(b) + 1e-8))

    assert feat.shape == (B, S) and vecf.shape == (B, V, 3) and posf.shape == (B, 3)
    # bf16 MXU operands -> compare with an aggregate relative-error criterion
    for name, got, want in (("feat", feat, rfeat), ("vec", vecf, rvecf), ("pos", posf, rposf)):
        err = rel_err(got, want)
        assert err < 5e-2, f"{name} relative error too large: {err}"

    print("KERNEL_OK")
</pallas_src>

<mosaic_0001>
module attributes {stable_mosaic.version = 11 : i64} {
  func.func @frontier_kernel(%arg0: i32, %arg1: memref<256x16xbf16, #tpu.memory_space<vmem>>, %arg2: memref<3x256x8xbf16, #tpu.memory_space<vmem>>, %arg3: memref<256x3xf32, #tpu.memory_space<vmem>>, %arg4: memref<1x16xbf16, #tpu.memory_space<vmem>>, %arg5: memref<256x1xi32, #tpu.memory_space<vmem>>, %arg6: memref<1x256xi32, #tpu.memory_space<vmem>>, %arg7: memref<8x32xbf16, #tpu.memory_space<vmem>>, %arg8: memref<48x64xbf16, #tpu.memory_space<vmem>>, %arg9: memref<32x32xbf16, #tpu.memory_space<vmem>>, %arg10: memref<64x32xbf16, #tpu.memory_space<vmem>>, %arg11: memref<1x32xf32, #tpu.memory_space<vmem>>, %arg12: memref<32x32xbf16, #tpu.memory_space<vmem>>, %arg13: memref<32x32xbf16, #tpu.memory_space<vmem>>, %arg14: memref<96x17xbf16, #tpu.memory_space<vmem>>, %arg15: memref<32x8xbf16, #tpu.memory_space<vmem>>, %arg16: memref<17x8xbf16, #tpu.memory_space<vmem>>, %arg17: memref<1x8xf32, #tpu.memory_space<vmem>>, %arg18: memref<3x44xf32, #tpu.memory_space<vmem>>, %arg19: memref<3x1xf32, #tpu.memory_space<vmem>>, %arg20: memref<3x1xf32, #tpu.memory_space<vmem>>, %arg21: memref<3x44xf32, #tpu.memory_space<vmem>>) attributes {dimension_semantics = [#tpu.dimension_semantics<arbitrary>], iteration_bounds = array<i64: 4>, scalar_prefetch = 0 : i64, scratch_operands = 3 : i64, tpu.core_type = #tpu.core_type<tc>, window_params = [{transform_indices = @transform_0, window_bounds = array<i64: 256, 16>}, {transform_indices = @transform_1, window_bounds = array<i64: 3, 256, 8>}, {transform_indices = @transform_2, window_bounds = array<i64: 256, 3>}, {pipeline_mode = #tpu.pipeline_mode<synchronous>, transform_indices = @transform_3, window_bounds = array<i64: 1, 16>}, {transform_indices = @transform_4, window_bounds = array<i64: 256, 1>}, {transform_indices = @transform_5, window_bounds = array<i64: 1, 256>}, {pipeline_mode = #tpu.pipeline_mode<synchronous>, transform_indices = @transform_6, window_bounds = array<i64: 8, 32>}, {pipeline_mode = #tpu.pipeline_mode<synchronous>, transform_indices = @transform_7, window_bounds = array<i64: 48, 64>}, {pipeline_mode = #tpu.pipeline_mode<synchronous>, transform_indices = @transform_8, window_bounds = array<i64: 32, 32>}, {pipeline_mode = #tpu.pipeline_mode<synchronous>, transform_indices = @transform_9, window_bounds = array<i64: 64, 32>}, {pipeline_mode = #tpu.pipeline_mode<synchronous>, transform_indices = @transform_10, window_bounds = array<i64: 1, 32>}, {pipeline_mode = #tpu.pipeline_mode<synchronous>, transform_indices = @transform_11, window_bounds = array<i64: 32, 32>}, {pipeline_mode = #tpu.pipeline_mode<synchronous>, transform_indices = @transform_12, window_bounds = array<i64: 32, 32>}, {pipeline_mode = #tpu.pipeline_mode<synchronous>, transform_indices = @transform_13, window_bounds = array<i64: 96, 17>}, {pipeline_mode = #tpu.pipeline_mode<synchronous>, transform_indices = @transform_14, window_bounds = array<i64: 32, 8>}, {pipeline_mode = #tpu.pipeline_mode<synchronous>, transform_indices = @transform_15, window_bounds = array<i64: 17, 8>}, {pipeline_mode = #tpu.pipeline_mode<synchronous>, transform_indices = @transform_16, window_bounds = array<i64: 1, 8>}, {pipeline_mode = #tpu.pipeline_mode<synchronous>, transform_indices = @transform_17, window_bounds = array<i64: 3, 44>}]} {
    %c0_i32 = arith.constant 0 : i32
    %0 = arith.cmpi eq, %arg0, %c0_i32 : i32
    %1 = arith.extui %0 : i1 to i32
    %c0_i32_0 = arith.constant 0 : i32
    %2 = arith.cmpi ne, %1, %c0_i32_0 : i32
    scf.if %2 {
      %cst_78 = arith.constant -1.000000e+30 : f32
      %179 = vector.broadcast %cst_78 : f32 to vector<3x1xf32>
      %c0_79 = arith.constant 0 : index
      %c0_80 = arith.constant 0 : index
      %180 = vector.load %arg19[%c0_79, %c0_80] : memref<3x1xf32, #tpu.memory_space<vmem>>, vector<3x1xf32>
      tpu.vector_store %arg19[%c0_79, %c0_80], %179 {strides = array<i32>} : memref<3x1xf32, #tpu.memory_space<vmem>>, vector<3x1xf32>,
      %cst_81 = arith.constant 0.000000e+00 : f32
      %181 = vector.broadcast %cst_81 : f32 to vector<3x1xf32>
      %c0_82 = arith.constant 0 : index
      %c0_83 = arith.constant 0 : index
      %182 = vector.load %arg20[%c0_82, %c0_83] : memref<3x1xf32, #tpu.memory_space<vmem>>, vector<3x1xf32>
      tpu.vector_store %arg20[%c0_82, %c0_83], %181 {strides = array<i32>} : memref<3x1xf32, #tpu.memory_space<vmem>>, vector<3x1xf32>,
      %cst_84 = arith.constant 0.000000e+00 : f32
      %183 = vector.broadcast %cst_84 : f32 to vector<3x44xf32>
      %c0_85 = arith.constant 0 : index
      %c0_86 = arith.constant 0 : index
      %184 = vector.load %arg21[%c0_85, %c0_86] : memref<3x44xf32, #tpu.memory_space<vmem>>, vector<3x44xf32>
      tpu.vector_store %arg21[%c0_85, %c0_86], %183 {strides = array<i32>} : memref<3x44xf32, #tpu.memory_space<vmem>>, vector<3x44xf32>,
    } else {
    }
    %c0 = arith.constant 0 : index
    %c0_1 = arith.constant 0 : index
    %c0_2 = arith.constant 0 : index
    %3 = vector.load %arg2[%c0, %c0_1, %c0_2] : memref<3x256x8xbf16, #tpu.memory_space<vmem>>, vector<1x256x8xbf16>
    %4 = vector.shape_cast %3 : vector<1x256x8xbf16> to vector<256x8xbf16>
    %c1 = arith.constant 1 : index
    %c0_3 = arith.constant 0 : index
    %c0_4 = arith.constant 0 : index
    %5 = vector.load %arg2[%c1, %c0_3, %c0_4] : memref<3x256x8xbf16, #tpu.memory_space<vmem>>, vector<1x256x8xbf16>
    %6 = vector.shape_cast %5 : vector<1x256x8xbf16> to vector<256x8xbf16>
    %c2 = arith.constant 2 : index
    %c0_5 = arith.constant 0 : index
    %c0_6 = arith.constant 0 : index
    %7 = vector.load %arg2[%c2, %c0_5, %c0_6] : memref<3x256x8xbf16, #tpu.memory_space<vmem>>, vector<1x256x8xbf16>
    %8 = vector.shape_cast %7 : vector<1x256x8xbf16> to vector<256x8xbf16>
    %9 = tpu.concatenate %4, %6, %8 in 0 : vector<256x8xbf16>, vector<256x8xbf16>, vector<256x8xbf16> -> vector<768x8xbf16>
    %c0_7 = arith.constant 0 : index
    %c0_8 = arith.constant 0 : index
    %10 = vector.load %arg7[%c0_7, %c0_8] : memref<8x32xbf16, #tpu.memory_space<vmem>>, vector<8x32xbf16>
    %cst = arith.constant dense<0.000000e+00> : vector<768x32xf32>
    %11 = tpu.matmul %9, %10, %cst {dimension_numbers = #tpu.dot_dimension_numbers<[1], [0], [0], [1], [0, 0, 1, 1], [], []>} : vector<768x8xbf16>, vector<8x32xbf16>, vector<768x32xf32> -> vector<768x32xf32>
    %12 = vector.extract_strided_slice %11 {offsets = [0, 0], sizes = [256, 32], strides = [1, 1]} : vector<768x32xf32> to vector<256x32xf32>
    %13 = vector.extract_strided_slice %11 {offsets = [256, 0], sizes = [256, 32], strides = [1, 1]} : vector<768x32xf32> to vector<256x32xf32>
    %14 = vector.extract_strided_slice %11 {offsets = [512, 0], sizes = [256, 32], strides = [1, 1]} : vector<768x32xf32> to vector<256x32xf32>
    %15 = arith.mulf %12, %12 : vector<256x32xf32>
    %16 = arith.mulf %13, %13 : vector<256x32xf32>
    %17 = arith.addf %15, %16 : vector<256x32xf32>
    %18 = arith.mulf %14, %14 : vector<256x32xf32>
    %19 = arith.addf %17, %18 : vector<256x32xf32>
    %20 = math.sqrt %19 : vector<256x32xf32>
    %c0_9 = arith.constant 0 : index
    %c0_10 = arith.constant 0 : index
    %21 = vector.load %arg1[%c0_9, %c0_10] : memref<256x16xbf16, #tpu.memory_space<vmem>>, vector<256x16xbf16>
    %22 = arith.extf %21 : vector<256x16xbf16> to vector<256x16xf32>
    %c0_11 = arith.constant 0 : index
    %c0_12 = arith.constant 0 : index
    %23 = vector.load %arg4[%c0_11, %c0_12] : memref<1x16xbf16, #tpu.memory_space<vmem>>, vector<1x16xbf16>
    %24 = arith.extf %23 : vector<1x16xbf16> to vector<1x16xf32>
    %25 = vector.broadcast %24 : vector<1x16xf32> to vector<256x16xf32>
    %26 = arith.addf %22, %25 : vector<256x16xf32>
    %27 = tpu.concatenate %20, %26 in 1 : vector<256x32xf32>, vector<256x16xf32> -> vector<256x48xf32>
    %c0_13 = arith.constant 0 : index
    %c0_14 = arith.constant 0 : index
    %28 = vector.load %arg8[%c0_13, %c0_14] : memref<48x64xbf16, #tpu.memory_space<vmem>>, vector<48x64xbf16>
    %29 = arith.truncf %27 : vector<256x48xf32> to vector<256x48xbf16>
    %cst_15 = arith.constant dense<0.000000e+00> : vector<256x64xf32>
    %30 = tpu.matmul %29, %28, %cst_15 {dimension_numbers = #tpu.dot_dimension_numbers<[1], [0], [0], [1], [0, 0, 1, 1], [], []>} : vector<256x48xbf16>, vector<48x64xbf16>, vector<256x64xf32> -> vector<256x64xf32>
    %c0_16 = arith.constant 0 : index
    %c0_17 = arith.constant 0 : index
    %31 = vector.load %arg9[%c0_16, %c0_17] : memref<32x32xbf16, #tpu.memory_space<vmem>>, vector<32x32xbf16>
    %32 = arith.truncf %11 : vector<768x32xf32> to vector<768x32xbf16>
    %cst_18 = arith.constant dense<0.000000e+00> : vector<768x32xf32>
    %33 = tpu.matmul %32, %31, %cst_18 {dimension_numbers = #tpu.dot_dimension_numbers<[1], [0], [0], [1], [0, 0, 1, 1], [], []>} : vector<768x32xbf16>, vector<32x32xbf16>, vector<768x32xf32> -> vector<768x32xf32>
    %c0_19 = arith.constant 0 : index
    %c0_20 = arith.constant 0 : index
    %34 = vector.load %arg10[%c0_19, %c0_20] : memref<64x32xbf16, #tpu.memory_space<vmem>>, vector<64x32xbf16>
    %35 = arith.truncf %30 : vector<256x64xf32> to vector<256x64xbf16>
    %cst_21 = arith.constant dense<0.000000e+00> : vector<256x32xf32>
    %36 = tpu.matmul %35, %34, %cst_21 {dimension_numbers = #tpu.dot_dimension_numbers<[1], [0], [0], [1], [0, 0, 1, 1], [], []>} : vector<256x64xbf16>, vector<64x32xbf16>, vector<256x32xf32> -> vector<256x32xf32>
    %c0_22 = arith.constant 0 : index
    %c0_23 = arith.constant 0 : index
    %37 = vector.load %arg11[%c0_22, %c0_23] : memref<1x32xf32, #tpu.memory_space<vmem>>, vector<1x32xf32>
    %38 = vector.broadcast %37 : vector<1x32xf32> to vector<256x32xf32>
    %39 = arith.addf %36, %38 : vector<256x32xf32>
    %40 = arith.negf %39 : vector<256x32xf32>
    %41 = math.exp %40 : vector<256x32xf32>
    %cst_24 = arith.constant 1.000000e+00 : f32
    %42 = vector.broadcast %cst_24 : f32 to vector<256x32xf32>
    %43 = arith.addf %42, %41 : vector<256x32xf32>
    %44 = arith.divf %42, %43 : vector<256x32xf32>
    %45 = tpu.concatenate %44, %44, %44 in 0 : vector<256x32xf32>, vector<256x32xf32>, vector<256x32xf32> -> vector<768x32xf32>
    %46 = arith.mulf %33, %45 : vector<768x32xf32>
    %c0_25 = arith.constant 0 : index
    %c0_26 = arith.constant 0 : index
    %47 = vector.load %arg12[%c0_25, %c0_26] : memref<32x32xbf16, #tpu.memory_space<vmem>>, vector<32x32xbf16>
    %48 = arith.truncf %46 : vector<768x32xf32> to vector<768x32xbf16>
    %cst_27 = arith.constant dense<0.000000e+00> : vector<768x32xf32>
    %49 = tpu.matmul %48, %47, %cst_27 {dimension_numbers = #tpu.dot_dimension_numbers<[1], [0], [0], [1], [0, 0, 1, 1], [], []>} : vector<768x32xbf16>, vector<32x32xbf16>, vector<768x32xf32> -> vector<768x32xf32>
    %50 = vector.extract_strided_slice %49 {offsets = [0, 0], sizes = [256, 32], strides = [1, 1]} : vector<768x32xf32> to vector<256x32xf32>
    %51 = vector.extract_strided_slice %49 {offsets = [256, 0], sizes = [256, 32], strides = [1, 1]} : vector<768x32xf32> to vector<256x32xf32>
    %52 = vector.extract_strided_slice %49 {offsets = [512, 0], sizes = [256, 32], strides = [1, 1]} : vector<768x32xf32> to vector<256x32xf32>
    %53 = vector.extract_strided_slice %46 {offsets = [0, 0], sizes = [256, 32], strides = [1, 1]} : vector<768x32xf32> to vector<256x32xf32>
    %54 = vector.extract_strided_slice %46 {offsets = [256, 0], sizes = [256, 32], strides = [1, 1]} : vector<768x32xf32> to vector<256x32xf32>
    %55 = vector.extract_strided_slice %46 {offsets = [512, 0], sizes = [256, 32], strides = [1, 1]} : vector<768x32xf32> to vector<256x32xf32>
    %56 = arith.mulf %53, %50 : vector<256x32xf32>
    %57 = arith.mulf %54, %51 : vector<256x32xf32>
    %58 = arith.addf %56, %57 : vector<256x32xf32>
    %59 = arith.mulf %55, %52 : vector<256x32xf32>
    %60 = arith.addf %58, %59 : vector<256x32xf32>
    %61 = arith.mulf %50, %50 : vector<256x32xf32>
    %62 = arith.mulf %51, %51 : vector<256x32xf32>
    %63 = arith.addf %61, %62 : vector<256x32xf32>
    %64 = arith.mulf %52, %52 : vector<256x32xf32>
    %65 = arith.addf %63, %64 : vector<256x32xf32>
    %cst_28 = arith.constant 9.99999997E-7 : f32
    %66 = vector.broadcast %cst_28 : f32 to vector<256x32xf32>
    %67 = arith.addf %65, %66 : vector<256x32xf32>
    %68 = tpu.reciprocal %67 {approx = true} : vector<256x32xf32> -> vector<256x32xf32>
    %69 = arith.mulf %60, %68 : vector<256x32xf32>
    %cst_29 = arith.constant 0.000000e+00 : f32
    %70 = vector.broadcast %cst_29 : f32 to vector<256x32xf32>
    %71 = arith.cmpf oge, %60, %70 : vector<256x32xf32>
    %cst_30 = arith.constant 0.000000e+00 : f32
    %72 = vector.broadcast %cst_30 : f32 to vector<256x32xf32>
    %73 = arith.select %71, %72, %69 : vector<256x32xi1>, vector<256x32xf32>
    %cst_31 = arith.constant 8.000000e-01 : f32
    %74 = vector.broadcast %cst_31 : f32 to vector<256x32xf32>
    %75 = arith.mulf %73, %74 : vector<256x32xf32>
    %76 = tpu.concatenate %75, %75, %75 in 0 : vector<256x32xf32>, vector<256x32xf32>, vector<256x32xf32> -> vector<768x32xf32>
    %77 = arith.mulf %76, %49 : vector<768x32xf32>
    %78 = arith.subf %46, %77 : vector<768x32xf32>
    %cst_32 = arith.constant 0.000000e+00 : f32
    %79 = vector.broadcast %cst_32 : f32 to vector<256x64xf32>
    %80 = arith.cmpf oge, %30, %79 : vector<256x64xf32>
    %cst_33 = arith.constant 0.00999999977 : f32
    %81 = vector.broadcast %cst_33 : f32 to vector<256x64xf32>
    %82 = arith.mulf %81, %30 : vector<256x64xf32>
    %83 = arith.select %80, %30, %82 : vector<256x64xi1>, vector<256x64xf32>
    %c0_34 = arith.constant 0 : index
    %c0_35 = arith.constant 0 : index
    %84 = vector.load %arg13[%c0_34, %c0_35] : memref<32x32xbf16, #tpu.memory_space<vmem>>, vector<32x32xbf16>
    %85 = arith.truncf %78 : vector<768x32xf32> to vector<768x32xbf16>
    %cst_36 = arith.constant dense<0.000000e+00> : vector<768x32xf32>
    %86 = tpu.matmul %85, %84, %cst_36 {dimension_numbers = #tpu.dot_dimension_numbers<[1], [0], [0], [1], [0, 0, 1, 1], [], []>} : vector<768x32xbf16>, vector<32x32xbf16>, vector<768x32xf32> -> vector<768x32xf32>
    %87 = vector.extract_strided_slice %86 {offsets = [0, 0], sizes = [256, 32], strides = [1, 1]} : vector<768x32xf32> to vector<256x32xf32>
    %88 = vector.extract_strided_slice %86 {offsets = [256, 0], sizes = [256, 32], strides = [1, 1]} : vector<768x32xf32> to vector<256x32xf32>
    %89 = vector.extract_strided_slice %86 {offsets = [512, 0], sizes = [256, 32], strides = [1, 1]} : vector<768x32xf32> to vector<256x32xf32>
    %90 = arith.mulf %87, %87 : vector<256x32xf32>
    %91 = arith.mulf %88, %88 : vector<256x32xf32>
    %92 = arith.addf %90, %91 : vector<256x32xf32>
    %93 = arith.mulf %89, %89 : vector<256x32xf32>
    %94 = arith.addf %92, %93 : vector<256x32xf32>
    %95 = math.sqrt %94 : vector<256x32xf32>
    %96 = tpu.concatenate %95, %83 in 1 : vector<256x32xf32>, vector<256x64xf32> -> vector<256x96xf32>
    %c0_37 = arith.constant 0 : index
    %c0_38 = arith.constant 0 : index
    %97 = vector.load %arg14[%c0_37, %c0_38] : memref<96x17xbf16, #tpu.memory_space<vmem>>, vector<96x17xbf16>
    %98 = arith.truncf %96 : vector<256x96xf32> to vector<256x96xbf16>
    %cst_39 = arith.constant dense<0.000000e+00> : vector<256x17xf32>
    %99 = tpu.matmul %98, %97, %cst_39 {dimension_numbers = #tpu.dot_dimension_numbers<[1], [0], [0], [1], [0, 0, 1, 1], [], []>} : vector<256x96xbf16>, vector<96x17xbf16>, vector<256x17xf32> -> vector<256x17xf32>
    %c0_40 = arith.constant 0 : index
    %c0_41 = arith.constant 0 : index
    %100 = vector.load %arg15[%c0_40, %c0_41] : memref<32x8xbf16, #tpu.memory_space<vmem>>, vector<32x8xbf16>
    %101 = arith.truncf %86 : vector<768x32xf32> to vector<768x32xbf16>
    %cst_42 = arith.constant dense<0.000000e+00> : vector<768x8xf32>
    %102 = tpu.matmul %101, %100, %cst_42 {dimension_numbers = #tpu.dot_dimension_numbers<[1], [0], [0], [1], [0, 0, 1, 1], [], []>} : vector<768x32xbf16>, vector<32x8xbf16>, vector<768x8xf32> -> vector<768x8xf32>
    %c0_43 = arith.constant 0 : index
    %c0_44 = arith.constant 0 : index
    %103 = vector.load %arg16[%c0_43, %c0_44] : memref<17x8xbf16, #tpu.memory_space<vmem>>, vector<17x8xbf16>
    %104 = arith.truncf %99 : vector<256x17xf32> to vector<256x17xbf16>
    %cst_45 = arith.constant dense<0.000000e+00> : vector<256x8xf32>
    %105 = tpu.matmul %104, %103, %cst_45 {dimension_numbers = #tpu.dot_dimension_numbers<[1], [0], [0], [1], [0, 0, 1, 1], [], []>} : vector<256x17xbf16>, vector<17x8xbf16>, vector<256x8xf32> -> vector<256x8xf32>
    %c0_46 = arith.constant 0 : index
    %c0_47 = arith.constant 0 : index
    %106 = vector.load %arg17[%c0_46, %c0_47] : memref<1x8xf32, #tpu.memory_space<vmem>>, vector<1x8xf32>
    %107 = vector.broadcast %106 : vector<1x8xf32> to vector<256x8xf32>
    %108 = arith.addf %105, %107 : vector<256x8xf32>
    %109 = arith.negf %108 : vector<256x8xf32>
    %110 = math.exp %109 : vector<256x8xf32>
    %cst_48 = arith.constant 1.000000e+00 : f32
    %111 = vector.broadcast %cst_48 : f32 to vector<256x8xf32>
    %112 = arith.addf %111, %110 : vector<256x8xf32>
    %113 = arith.divf %111, %112 : vector<256x8xf32>
    %114 = tpu.concatenate %113, %113, %113 in 0 : vector<256x8xf32>, vector<256x8xf32>, vector<256x8xf32> -> vector<768x8xf32>
    %115 = arith.mulf %102, %114 : vector<768x8xf32>
    %116 = vector.extract_strided_slice %99 {offsets = [0, 16], sizes = [256, 1], strides = [1, 1]} : vector<256x17xf32> to vector<256x1xf32>
    %c0_49 = arith.constant 0 : index
    %c0_50 = arith.constant 0 : index
    %117 = vector.load %arg5[%c0_49, %c0_50] : memref<256x1xi32, #tpu.memory_space<vmem>>, vector<256x1xi32>
    %c0_51 = arith.constant 0 : index
    %c0_52 = arith.constant 0 : index
    %118 = vector.load %arg6[%c0_51, %c0_52] : memref<1x256xi32, #tpu.memory_space<vmem>>, vector<1x256xi32>
    %119 = tpu.iota {dimensions = array<i32: 1>} : vector<256x3xi32>
    %120 = vector.broadcast %117 : vector<256x1xi32> to vector<256x3xi32>
    %121 = arith.cmpi eq, %120, %119 : vector<256x3xi32>
    %122 = arith.extui %121 : vector<256x3xi1> to vector<256x3xi32>
    %123 = arith.sitofp %122 : vector<256x3xi32> to vector<256x3xf32>
    %124 = tpu.iota {dimensions = array<i32: 0>} : vector<3x256xi32>
    %125 = vector.broadcast %118 : vector<1x256xi32> to vector<3x256xi32>
    %126 = arith.cmpi eq, %124, %125 : vector<3x256xi32>
    %127 = arith.extui %126 : vector<3x256xi1> to vector<3x256xi32>
    %128 = arith.sitofp %127 : vector<3x256xi32> to vector<3x256xf32>
    %c3_i32 = arith.constant 3 : i32
    %129 = vector.broadcast %c3_i32 : i32 to vector<256x1xi32>
    %130 = arith.cmpi slt, %117, %129 : vector<256x1xi32>
    %cst_53 = arith.constant 0.000000e+00 : f32
    %131 = vector.broadcast %cst_53 : f32 to vector<256x3xf32>
    %132 = arith.cmpf ogt, %123, %131 : vector<256x3xf32>
    %cst_54 = arith.constant -1.000000e+30 : f32
    %133 = vector.shape_cast %116 : vector<256x1xf32> to vector<256x1xf32>
    %134 = vector.broadcast %133 : vector<256x1xf32> to vector<256x3xf32>
    %135 = vector.broadcast %cst_54 : f32 to vector<256x3xf32>
    %136 = arith.select %132, %134, %135 : vector<256x3xi1>, vector<256x3xf32>
    %cst_55 = arith.constant dense<0xFF800000> : vector<3xf32>
    %137 = vector.multi_reduction <maximumf>, %136, %cst_55 [0] : vector<256x3xf32> to vector<3xf32>
    %138 = vector.shape_cast %137 : vector<3xf32> to vector<1x3xf32>
    %139 = tpu.iota {dimensions = array<i32: 0>} : vector<3x3xi32>
    %140 = tpu.iota {dimensions = array<i32: 1>} : vector<3x3xi32>
    %141 = arith.cmpi eq, %139, %140 : vector<3x3xi32>
    %142 = vector.shape_cast %138 : vector<1x3xf32> to vector<1x3xf32>
    %143 = vector.broadcast %142 : vector<1x3xf32> to vector<3x3xf32>
    %cst_56 = arith.constant -3.000000e+38 : f32
    %144 = vector.broadcast %cst_56 : f32 to vector<3x3xf32>
    %145 = arith.select %141, %143, %144 : vector<3x3xi1>, vector<3x3xf32>
    %cst_57 = arith.constant dense<0xFF800000> : vector<3xf32>
    %146 = vector.multi_reduction <maximumf>, %145, %cst_57 [1] : vector<3x3xf32> to vector<3xf32>
    %147 = vector.shape_cast %146 : vector<3xf32> to vector<3x1xf32>
    %c0_58 = arith.constant 0 : index
    %c0_59 = arith.constant 0 : index
    %148 = vector.load %arg19[%c0_58, %c0_59] : memref<3x1xf32, #tpu.memory_space<vmem>>, vector<3x1xf32>
    %149 = arith.maximumf %148, %147 : vector<3x1xf32>
    %150 = arith.subf %148, %149 : vector<3x1xf32>
    %151 = math.exp %150 : vector<3x1xf32>
    %cst_60 = arith.constant dense<0.000000e+00> : vector<256x1xf32>
    %152 = tpu.matmul %123, %149, %cst_60 {dimension_numbers = #tpu.dot_dimension_numbers<[1], [0], [0], [1], [0, 0, 1, 1], [], []>} : vector<256x3xf32>, vector<3x1xf32>, vector<256x1xf32> -> vector<256x1xf32>
    %153 = arith.subf %116, %152 : vector<256x1xf32>
    %154 = math.exp %153 : vector<256x1xf32>
    %cst_61 = arith.constant 0.000000e+00 : f32
    %155 = vector.broadcast %cst_61 : f32 to vector<256x1xf32>
    %156 = arith.select %130, %154, %155 : vector<256x1xi1>, vector<256x1xf32>
    %c0_62 = arith.constant 0 : index
    %c0_63 = arith.constant 0 : index
    %157 = vector.load %arg3[%c0_62, %c0_63] : memref<256x3xf32, #tpu.memory_space<vmem>>, vector<256x3xf32>
    %158 = vector.extract_strided_slice %115 {offsets = [0, 0], sizes = [256, 8], strides = [1, 1]} : vector<768x8xf32> to vector<256x8xf32>
    %159 = vector.extract_strided_slice %115 {offsets = [256, 0], sizes = [256, 8], strides = [1, 1]} : vector<768x8xf32> to vector<256x8xf32>
    %160 = vector.extract_strided_slice %115 {offsets = [512, 0], sizes = [256, 8], strides = [1, 1]} : vector<768x8xf32> to vector<256x8xf32>
    %161 = tpu.concatenate %99, %157, %158, %159, %160 in 1 : vector<256x17xf32>, vector<256x3xf32>, vector<256x8xf32>, vector<256x8xf32>, vector<256x8xf32> -> vector<256x44xf32>
    %c0_64 = arith.constant 0 : index
    %c0_65 = arith.constant 0 : index
    %162 = vector.load %arg21[%c0_64, %c0_65] : memref<3x44xf32, #tpu.memory_space<vmem>>, vector<3x44xf32>
    %163 = vector.broadcast %151 : vector<3x1xf32> to vector<3x44xf32>
    %164 = arith.mulf %162, %163 : vector<3x44xf32>
    %165 = vector.broadcast %156 : vector<256x1xf32> to vector<256x44xf32>
    %166 = arith.mulf %165, %161 : vector<256x44xf32>
    %cst_66 = arith.constant dense<0.000000e+00> : vector<3x44xf32>
    %167 = tpu.matmul %128, %166, %cst_66 {dimension_numbers = #tpu.dot_dimension_numbers<[1], [0], [0], [1], [0, 0, 1, 1], [], []>} : vector<3x256xf32>, vector<256x44xf32>, vector<3x44xf32> -> vector<3x44xf32>
    %168 = arith.addf %164, %167 : vector<3x44xf32>
    %c0_67 = arith.constant 0 : index
    %c0_68 = arith.constant 0 : index
    %169 = vector.load %arg21[%c0_67, %c0_68] : memref<3x44xf32, #tpu.memory_space<vmem>>, vector<3x44xf32>
    tpu.vector_store %arg21[%c0_67, %c0_68], %168 {strides = array<i32>} : memref<3x44xf32, #tpu.memory_space<vmem>>, vector<3x44xf32>,
    %c0_69 = arith.constant 0 : index
    %c0_70 = arith.constant 0 : index
    %170 = vector.load %arg20[%c0_69, %c0_70] : memref<3x1xf32, #tpu.memory_space<vmem>>, vector<3x1xf32>
    %171 = arith.mulf %170, %151 : vector<3x1xf32>
    %cst_71 = arith.constant dense<0.000000e+00> : vector<3x1xf32>
    %172 = tpu.matmul %128, %156, %cst_71 {dimension_numbers = #tpu.dot_dimension_numbers<[1], [0], [0], [1], [0, 0, 1, 1], [], []>} : vector<3x256xf32>, vector<256x1xf32>, vector<3x1xf32> -> vector<3x1xf32>
    %173 = arith.addf %171, %172 : vector<3x1xf32>
    %c0_72 = arith.constant 0 : index
    %c0_73 = arith.constant 0 : index
    %174 = vector.load %arg20[%c0_72, %c0_73] : memref<3x1xf32, #tpu.memory_space<vmem>>, vector<3x1xf32>
    tpu.vector_store %arg20[%c0_72, %c0_73], %173 {strides = array<i32>} : memref<3x1xf32, #tpu.memory_space<vmem>>, vector<3x1xf32>,
    %c0_74 = arith.constant 0 : index
    %c0_75 = arith.constant 0 : index
    %175 = vector.load %arg19[%c0_74, %c0_75] : memref<3x1xf32, #tpu.memory_space<vmem>>, vector<3x1xf32>
    tpu.vector_store %arg19[%c0_74, %c0_75], %149 {strides = array<i32>} : memref<3x1xf32, #tpu.memory_space<vmem>>, vector<3x1xf32>,
    %c3_i32_76 = arith.constant 3 : i32
    %176 = arith.cmpi eq, %arg0, %c3_i32_76 : i32
    %177 = arith.extui %176 : i1 to i32
    %c0_i32_77 = arith.constant 0 : i32
    %178 = arith.cmpi ne, %177, %c0_i32_77 : i32
    scf.if %178 {
      %c0_78 = arith.constant 0 : index
      %c0_79 = arith.constant 0 : index
      %179 = vector.load %arg20[%c0_78, %c0_79] : memref<3x1xf32, #tpu.memory_space<vmem>>, vector<3x1xf32>
      %cst_80 = arith.constant 0.000000e+00 : f32
      %180 = vector.broadcast %cst_80 : f32 to vector<3x1xf32>
      %181 = arith.cmpf ogt, %179, %180 : vector<3x1xf32>
      %c0_81 = arith.constant 0 : index
      %c0_82 = arith.constant 0 : index
      %182 = vector.load %arg20[%c0_81, %c0_82] : memref<3x1xf32, #tpu.memory_space<vmem>>, vector<3x1xf32>
      %cst_83 = arith.constant 1.000000e+00 : f32
      %183 = vector.broadcast %cst_83 : f32 to vector<3x1xf32>
      %184 = arith.select %181, %182, %183 : vector<3x1xi1>, vector<3x1xf32>
      %c0_84 = arith.constant 0 : index
      %c0_85 = arith.constant 0 : index
      %185 = vector.load %arg21[%c0_84, %c0_85] : memref<3x44xf32, #tpu.memory_space<vmem>>, vector<3x44xf32>
      %186 = tpu.reciprocal %184 {approx = true} : vector<3x1xf32> -> vector<3x1xf32>
      %187 = vector.broadcast %186 : vector<3x1xf32> to vector<3x44xf32>
      %188 = arith.mulf %185, %187 : vector<3x44xf32>
      %c0_86 = arith.constant 0 : index
      %c0_87 = arith.constant 0 : index
      %189 = vector.load %arg18[%c0_86, %c0_87] : memref<3x44xf32, #tpu.memory_space<vmem>>, vector<3x44xf32>
      tpu.vector_store %arg18[%c0_86, %c0_87], %188 {strides = array<i32>} : memref<3x44xf32, #tpu.memory_space<vmem>>, vector<3x44xf32>,
    } else {
    }
    return
  }
  func.func @transform_0(%arg0: i32) -> (i32, i32) {
    %c0_i32 = arith.constant 0 : i32
    %c0_i32_0 = arith.constant 0 : i32
    return %arg0, %c0_i32 : i32, i32
  }
  func.func @transform_1(%arg0: i32) -> (i32, i32, i32) {
    %c0_i32 = arith.constant 0 : i32
    %c0_i32_0 = arith.constant 0 : i32
    %c0_i32_1 = arith.constant 0 : i32
    return %c0_i32, %arg0, %c0_i32_0 : i32, i32, i32
  }
  func.func @transform_2(%arg0: i32) -> (i32, i32) {
    %c0_i32 = arith.constant 0 : i32
    %c0_i32_0 = arith.constant 0 : i32
    return %arg0, %c0_i32 : i32, i32
  }
  func.func @transform_3(%arg0: i32) -> (i32, i32) {
    %c0_i32 = arith.constant 0 : i32
    %c0_i32_0 = arith.constant 0 : i32
    %c0_i32_1 = arith.constant 0 : i32
    return %c0_i32, %c0_i32_0 : i32, i32
  }
  func.func @transform_4(%arg0: i32) -> (i32, i32) {
    %c0_i32 = arith.constant 0 : i32
    %c0_i32_0 = arith.constant 0 : i32
    return %arg0, %c0_i32 : i32, i32
  }
  func.func @transform_5(%arg0: i32) -> (i32, i32) {
    %c0_i32 = arith.constant 0 : i32
    %c0_i32_0 = arith.constant 0 : i32
    return %c0_i32, %arg0 : i32, i32
  }
  func.func @transform_6(%arg0: i32) -> (i32, i32) {
    %c0_i32 = arith.constant 0 : i32
    %c0_i32_0 = arith.constant 0 : i32
    %c0_i32_1 = arith.constant 0 : i32
    return %c0_i32, %c0_i32_0 : i32, i32
  }
  func.func @transform_7(%arg0: i32) -> (i32, i32) {
    %c0_i32 = arith.constant 0 : i32
    %c0_i32_0 = arith.constant 0 : i32
    %c0_i32_1 = arith.constant 0 : i32
    return %c0_i32, %c0_i32_0 : i32, i32
  }
  func.func @transform_8(%arg0: i32) -> (i32, i32) {
    %c0_i32 = arith.constant 0 : i32
    %c0_i32_0 = arith.constant 0 : i32
    %c0_i32_1 = arith.constant 0 : i32
    return %c0_i32, %c0_i32_0 : i32, i32
  }
  func.func @transform_9(%arg0: i32) -> (i32, i32) {
    %c0_i32 = arith.constant 0 : i32
    %c0_i32_0 = arith.constant 0 : i32
    %c0_i32_1 = arith.constant 0 : i32
    return %c0_i32, %c0_i32_0 : i32, i32
  }
  func.func @transform_10(%arg0: i32) -> (i32, i32) {
    %c0_i32 = arith.constant 0 : i32
    %c0_i32_0 = arith.constant 0 : i32
    %c0_i32_1 = arith.constant 0 : i32
    return %c0_i32, %c0_i32_0 : i32, i32
  }
  func.func @transform_11(%arg0: i32) -> (i32, i32) {
    %c0_i32 = arith.constant 0 : i32
    %c0_i32_0 = arith.constant 0 : i32
    %c0_i32_1 = arith.constant 0 : i32
    return %c0_i32, %c0_i32_0 : i32, i32
  }
  func.func @transform_12(%arg0: i32) -> (i32, i32) {
    %c0_i32 = arith.constant 0 : i32
    %c0_i32_0 = arith.constant 0 : i32
    %c0_i32_1 = arith.constant 0 : i32
    return %c0_i32, %c0_i32_0 : i32, i32
  }
  func.func @transform_13(%arg0: i32) -> (i32, i32) {
    %c0_i32 = arith.constant 0 : i32
    %c0_i32_0 = arith.constant 0 : i32
    %c0_i32_1 = arith.constant 0 : i32
    return %c0_i32, %c0_i32_0 : i32, i32
  }
  func.func @transform_14(%arg0: i32) -> (i32, i32) {
    %c0_i32 = arith.constant 0 : i32
    %c0_i32_0 = arith.constant 0 : i32
    %c0_i32_1 = arith.constant 0 : i32
    return %c0_i32, %c0_i32_0 : i32, i32
  }
  func.func @transform_15(%arg0: i32) -> (i32, i32) {
    %c0_i32 = arith.constant 0 : i32
    %c0_i32_0 = arith.constant 0 : i32
    %c0_i32_1 = arith.constant 0 : i32
    return %c0_i32, %c0_i32_0 : i32, i32
  }
  func.func @transform_16(%arg0: i32) -> (i32, i32) {
    %c0_i32 = arith.constant 0 : i32
    %c0_i32_0 = arith.constant 0 : i32
    %c0_i32_1 = arith.constant 0 : i32
    return %c0_i32, %c0_i32_0 : i32, i32
  }
  func.func @transform_17(%arg0: i32) -> (i32, i32) {
    %c0_i32 = arith.constant 0 : i32
    %c0_i32_0 = arith.constant 0 : i32
    %c0_i32_1 = arith.constant 0 : i32
    return %c0_i32, %c0_i32_0 : i32, i32
  }
}

</mosaic_0001>

<bundles_post_ra>
// kernel: tpu_custom_call.1
= control target key start
LH: loop header
LB: loop body
LE: loop exit
PB: predicated region body
PF: predicated region fallthrough
CT: control target
= control target key end

     0   :  { %s20603_s0 = inlined_call_operand.vmem [shape: bf16[1024,16], index: 0, kind: input, shape index: {}]   ;;  %s20604_s1 = inlined_call_operand.vmem [shape: bf16[3,1024,8], index: 1, kind: input, shape index: {}]   ;;  %s20605_s2 = inlined_call_operand.vmem [shape: f32[1024,3], index: 2, kind: input, shape index: {}]   ;;  %s20606_s3 = inlined_call_operand.vmem [shape: bf16[1,16], index: 3, kind: input, shape index: {}]   ;;  %s20607_s4 = inlined_call_operand.vmem [shape: s32[1024,1], index: 4, kind: input, shape index: {}]   ;;  %s20608_s5 = inlined_call_operand.vmem [shape: s32[1,1024], index: 5, kind: input, shape index: {}]   ;;  %s20609_s6 = inlined_call_operand.vmem [shape: bf16[8,32], index: 6, kind: input, shape index: {}]   ;;  %s20610_s7 = inlined_call_operand.vmem [shape: bf16[48,64], index: 7, kind: input, shape index: {}]   ;;  %s20611_s8 = inlined_call_operand.vmem [shape: bf16[32,32], index: 8, kind: input, shape index: {}]   ;;  %s20612_s9 = inlined_call_operand.vmem [shape: bf16[64,32], index: 9, kind: input, shape index: {}]   ;;  %s20613_s10 = inlined_call_operand.vmem [shape: f32[1,32], index: 10, kind: input, shape index: {}]   ;;  %s20614_s11 = inlined_call_operand.vmem [shape: bf16[32,32], index: 11, kind: input, shape index: {}]   ;;  %s20615_s12 = inlined_call_operand.vmem [shape: bf16[32,32], index: 12, kind: input, shape index: {}]   ;;  %s20616_s13 = inlined_call_operand.vmem [shape: bf16[96,17], index: 13, kind: input, shape index: {}]   ;;  %s20617_s14 = inlined_call_operand.vmem [shape: bf16[32,8], index: 14, kind: input, shape index: {}]   ;;  %s20618_s15 = inlined_call_operand.vmem [shape: bf16[17,8], index: 15, kind: input, shape index: {}]   ;;  %s20619_s16 = inlined_call_operand.vmem [shape: f32[1,8], index: 16, kind: input, shape index: {}]   ;;  %s20620_s17 = inlined_call_operand.hbm [shape: f32[3,44], index: 17, kind: output, shape index: {}]  }
   0x1   :  { %21109 = sst [smem:[#allocation213_spill]] %s20603_s0 }
   0x2   :  { %21110 = sst [smem:[#allocation214_spill]] %s20604_s1 }
   0x3   :  { %21111 = sst [smem:[#allocation215_spill]] %s20616_s13 }
   0x4   :  { %21112 = sst [smem:[#allocation216_spill]] %s20618_s15 }
   0x5   :  { %21113 = sst [smem:[#allocation217_spill]] %s20619_s16 }
   0x6   :  { %21114 = sst [smem:[#allocation218_spill]] %s20620_s17 }
   0x7   :  { %22 = vsyncpa [#allocation7], 0  ;;  %s13407_s24 = smov 0   ;;  %s13409_s25 = smov 0  }
   0x8   :  { %s13411_s26 = smov 0  }
   0x9 LB: > { %21115 = sst [smem:[#allocation9_spill]] %s13296_s25  ;;  %s13423_s27 = sadd.s32 4294967295, %s13300_s26   ;;  %s13300_s26 = sphi %s13411_s26, %s22739_s26   ;;  %s13296_s25 = sphi %s13409_s25, %s22741_s25   ;;  %s13292_s24 = sphi %s13407_s24, %s22740_s24  }
   0xa   : > { %s13426_s28 = sadd.s32 1, %s13300_s26   ;;  %s61_s0 = sadd.s32 1, %s13296_s25 }
   0xb   : > { %21116 = sst [smem:[#allocation10_spill]] %s13426_s28  ;;  %s58_s29 = ssub.s32 %s13300_s26, %s13426_s28 }
   0xc   : > { %p59_p0 = scmp.eq.s32.totalorder %s58_s29, 0  ;;  %p68_p1 = scmp.ne.s32.totalorder %s13296_s25, %s13292_s24 }
   0xd   : > { %p69_p2 = scmp.eq.s32.totalorder %s13300_s26, 0  ;;  %p10492_p4 = scmp.ge.s32.totalorder %s13300_s26, 4 }
   0xe   : > { %s13435_s30 = scalar_select %p59_p0, %s13296_s25, %s61_s0  }
   0xf   : > { %p70_p3 = por %p69_p2, %p68_p1  ;;  %481 = sbr.rel (%p10492_p4) target bundleno = 57 (0x39), region = 64 }
  0x10   : > { %21117 = sst [smem:[#allocation11_spill]] %s13435_s30 }
  0x16   : > { %493 = sbr.rel (!%p70_p3) target bundleno = 57 (0x39), region = 72  ;;  %s495_s18 = sand.u32 (%p70_p3), 1, %s13296_s25  }
  0x17   : > { %s11117_s19 = sshll.u32 (%p70_p3), %s13300_s26, 7  ;;  %s12415_s1 = smul.u32 (%p70_p3), 384, %s495_s18 }
  0x18   : > { %s21118_s22 = sld [smem:[#allocation214_spill]] (%p70_p3) }
  0x19   : > { %s13451_s29 = scalar_lea.vmem (%p70_p3), [#allocation5], %s12415_s1 }
  0x1e   : > { %s13443_s23 = scalar_lea.vmem %s21118_s22, %s11117_s19 }
  0x1f   : > { %v516_v0 = vld [vmem:[%s13443_s23] sm:$0xff]   ;;  %v520_v1 = vld [vmem:[%s13443_s23 + $0x8] sm:$0xff]   ;;  %v524_v2 = vld [vmem:[%s13443_s23 + $0x10] sm:$0xff]  }
  0x20   : > { %v528_v3 = vld [vmem:[%s13443_s23 + $0x18] sm:$0xff]   ;;  %v532_v4 = vld [vmem:[%s13443_s23 + $0x20] sm:$0xff]   ;;  %v536_v5 = vld [vmem:[%s13443_s23 + $0x28] sm:$0xff]   ;;  %517 = vst [vmem:[%s13451_s29] sm:$0xff] %v516_v0  }
  0x21   : > { %521 = vst [vmem:[%s13451_s29 + $0x8] sm:$0xff] %v520_v1   ;;  %525 = vst [vmem:[%s13451_s29 + $0x10] sm:$0xff] %v524_v2   ;;  %v540_v6 = vld [vmem:[%s13443_s23 + $0x30] sm:$0xff]   ;;  %v544_v7 = vld [vmem:[%s13443_s23 + $0x38] sm:$0xff]  }
  0x22   : > { %529 = vst [vmem:[%s13451_s29 + $0x18] sm:$0xff] %v528_v3   ;;  %533 = vst [vmem:[%s13451_s29 + $0x20] sm:$0xff] %v532_v4   ;;  %v548_v8 = vld [vmem:[%s13443_s23 + $0x40] sm:$0xff]   ;;  %v552_v9 = vld [vmem:[%s13443_s23 + $0x48] sm:$0xff]  }
  0x23   : > { %537 = vst [vmem:[%s13451_s29 + $0x28] sm:$0xff] %v536_v5   ;;  %541 = vst [vmem:[%s13451_s29 + $0x30] sm:$0xff] %v540_v6   ;;  %v556_v10 = vld [vmem:[%s13443_s23 + $0x50] sm:$0xff]   ;;  %v560_v11 = vld [vmem:[%s13443_s23 + $0x58] sm:$0xff]  }
  0x24   : > { %545 = vst [vmem:[%s13451_s29 + $0x38] sm:$0xff] %v544_v7   ;;  %549 = vst [vmem:[%s13451_s29 + $0x40] sm:$0xff] %v548_v8   ;;  %v564_v12 = vld [vmem:[%s13443_s23 + $0x60] sm:$0xff]   ;;  %v568_v13 = vld [vmem:[%s13443_s23 + $0x68] sm:$0xff]  }
  0x25   : > { %553 = vst [vmem:[%s13451_s29 + $0x48] sm:$0xff] %v552_v9   ;;  %557 = vst [vmem:[%s13451_s29 + $0x50] sm:$0xff] %v556_v10   ;;  %v572_v14 = vld [vmem:[%s13443_s23 + $0x70] sm:$0xff]   ;;  %v576_v15 = vld [vmem:[%s13443_s23 + $0x78] sm:$0xff]  }
  0x26   : > { %561 = vst [vmem:[%s13451_s29 + $0x58] sm:$0xff] %v560_v11   ;;  %565 = vst [vmem:[%s13451_s29 + $0x60] sm:$0xff] %v564_v12   ;;  %v580_v16 = vld [vmem:[%s13443_s23 + $0x200] sm:$0xff]   ;;  %v584_v17 = vld [vmem:[%s13443_s23 + $0x208] sm:$0xff]  }
  0x27   : > { %569 = vst [vmem:[%s13451_s29 + $0x68] sm:$0xff] %v568_v13   ;;  %573 = vst [vmem:[%s13451_s29 + $0x70] sm:$0xff] %v572_v14   ;;  %v588_v18 = vld [vmem:[%s13443_s23 + $0x210] sm:$0xff]   ;;  %v592_v19 = vld [vmem:[%s13443_s23 + $0x218] sm:$0xff]  }
  0x28   : > { %577 = vst [vmem:[%s13451_s29 + $0x78] sm:$0xff] %v576_v15   ;;  %581 = vst [vmem:[%s13451_s29 + $0x80] sm:$0xff] %v580_v16   ;;  %v596_v20 = vld [vmem:[%s13443_s23 + $0x220] sm:$0xff]   ;;  %v600_v21 = vld [vmem:[%s13443_s23 + $0x228] sm:$0xff]  }
  0x29   : > { %585 = vst [vmem:[%s13451_s29 + $0x88] sm:$0xff] %v584_v17   ;;  %589 = vst [vmem:[%s13451_s29 + $0x90] sm:$0xff] %v588_v18   ;;  %v604_v22 = vld [vmem:[%s13443_s23 + $0x230] sm:$0xff]   ;;  %v608_v23 = vld [vmem:[%s13443_s23 + $0x238] sm:$0xff]  }
  0x2a   : > { %593 = vst [vmem:[%s13451_s29 + $0x98] sm:$0xff] %v592_v19   ;;  %597 = vst [vmem:[%s13451_s29 + $0xa0] sm:$0xff] %v596_v20   ;;  %v612_v24 = vld [vmem:[%s13443_s23 + $0x240] sm:$0xff]   ;;  %v616_v25 = vld [vmem:[%s13443_s23 + $0x248] sm:$0xff]  }
  0x2b   : > { %601 = vst [vmem:[%s13451_s29 + $0xa8] sm:$0xff] %v600_v21   ;;  %605 = vst [vmem:[%s13451_s29 + $0xb0] sm:$0xff] %v604_v22   ;;  %v620_v26 = vld [vmem:[%s13443_s23 + $0x250] sm:$0xff]   ;;  %v624_v27 = vld [vmem:[%s13443_s23 + $0x258] sm:$0xff]  }
  0x2c   : > { %609 = vst [vmem:[%s13451_s29 + $0xb8] sm:$0xff] %v608_v23   ;;  %613 = vst [vmem:[%s13451_s29 + $0xc0] sm:$0xff] %v612_v24   ;;  %v628_v28 = vld [vmem:[%s13443_s23 + $0x260] sm:$0xff]   ;;  %v632_v29 = vld [vmem:[%s13443_s23 + $0x268] sm:$0xff]  }
  0x2d   : > { %617 = vst [vmem:[%s13451_s29 + $0xc8] sm:$0xff] %v616_v25   ;;  %621 = vst [vmem:[%s13451_s29 + $0xd0] sm:$0xff] %v620_v26   ;;  %v636_v30 = vld [vmem:[%s13443_s23 + $0x270] sm:$0xff]   ;;  %v640_v31 = vld [vmem:[%s13443_s23 + $0x278] sm:$0xff]  }
  0x2e   : > { %625 = vst [vmem:[%s13451_s29 + $0xd8] sm:$0xff] %v624_v27   ;;  %629 = vst [vmem:[%s13451_s29 + $0xe0] sm:$0xff] %v628_v28   ;;  %v644_v32 = vld [vmem:[%s13443_s23 + $0x400] sm:$0xff]   ;;  %v648_v33 = vld [vmem:[%s13443_s23 + $0x408] sm:$0xff]  }
  0x2f   : > { %633 = vst [vmem:[%s13451_s29 + $0xe8] sm:$0xff] %v632_v29   ;;  %637 = vst [vmem:[%s13451_s29 + $0xf0] sm:$0xff] %v636_v30   ;;  %v652_v34 = vld [vmem:[%s13443_s23 + $0x410] sm:$0xff]   ;;  %v656_v35 = vld [vmem:[%s13443_s23 + $0x418] sm:$0xff]  }
  0x30   : > { %641 = vst [vmem:[%s13451_s29 + $0xf8] sm:$0xff] %v640_v31   ;;  %645 = vst [vmem:[%s13451_s29 + $0x100] sm:$0xff] %v644_v32   ;;  %v660_v36 = vld [vmem:[%s13443_s23 + $0x420] sm:$0xff]   ;;  %v664_v37 = vld [vmem:[%s13443_s23 + $0x428] sm:$0xff]  }
  0x31   : > { %649 = vst [vmem:[%s13451_s29 + $0x108] sm:$0xff] %v648_v33   ;;  %653 = vst [vmem:[%s13451_s29 + $0x110] sm:$0xff] %v652_v34   ;;  %v668_v38 = vld [vmem:[%s13443_s23 + $0x430] sm:$0xff]   ;;  %v672_v39 = vld [vmem:[%s13443_s23 + $0x438] sm:$0xff]  }
  0x32   : > { %657 = vst [vmem:[%s13451_s29 + $0x118] sm:$0xff] %v656_v35   ;;  %661 = vst [vmem:[%s13451_s29 + $0x120] sm:$0xff] %v660_v36   ;;  %v676_v40 = vld [vmem:[%s13443_s23 + $0x440] sm:$0xff]   ;;  %v680_v41 = vld [vmem:[%s13443_s23 + $0x448] sm:$0xff]  }
  0x33   : > { %665 = vst [vmem:[%s13451_s29 + $0x128] sm:$0xff] %v664_v37   ;;  %669 = vst [vmem:[%s13451_s29 + $0x130] sm:$0xff] %v668_v38   ;;  %v684_v42 = vld [vmem:[%s13443_s23 + $0x450] sm:$0xff]   ;;  %v688_v43 = vld [vmem:[%s13443_s23 + $0x458] sm:$0xff]  }
  0x34   : > { %673 = vst [vmem:[%s13451_s29 + $0x138] sm:$0xff] %v672_v39   ;;  %677 = vst [vmem:[%s13451_s29 + $0x140] sm:$0xff] %v676_v40   ;;  %v692_v44 = vld [vmem:[%s13443_s23 + $0x460] sm:$0xff]   ;;  %v696_v45 = vld [vmem:[%s13443_s23 + $0x468] sm:$0xff]  }
  0x35   : > { %681 = vst [vmem:[%s13451_s29 + $0x148] sm:$0xff] %v680_v41   ;;  %685 = vst [vmem:[%s13451_s29 + $0x150] sm:$0xff] %v684_v42   ;;  %v700_v46 = vld [vmem:[%s13443_s23 + $0x470] sm:$0xff]   ;;  %v704_v47 = vld [vmem:[%s13443_s23 + $0x478] sm:$0xff]  }
  0x36   : > { %689 = vst [vmem:[%s13451_s29 + $0x158] sm:$0xff] %v688_v43   ;;  %693 = vst [vmem:[%s13451_s29 + $0x160] sm:$0xff] %v692_v44  }
  0x37   : > { %697 = vst [vmem:[%s13451_s29 + $0x168] sm:$0xff] %v696_v45   ;;  %701 = vst [vmem:[%s13451_s29 + $0x170] sm:$0xff] %v700_v46  }
  0x38   : > { %705 = vst [vmem:[%s13451_s29 + $0x178] sm:$0xff] %v704_v47  }
  0x39 PF: > { %p10495_p5 = scmp.ge.s32.totalorder %s13300_s26, 1  ;;  %p947_p6 = scmp.lt.s32.totalorder %s13300_s26, 5 }
  0x3b   : > { %p948_p7 = pnand %p10495_p5, %p947_p6 }
  0x3d   : > { %951 = sbr.rel (%p948_p7) target bundleno = 3277 (0xccd), region = 125 }
  0x44   : > { %s954_s0 = sand.u32 1, %s13292_s24   ;;  %s10496_s18 = sshll.u32 %s13423_s27, 5 }
  0x45   : > { %s12416_s19 = smul.u32 384, %s954_s0  ;;  %p1020_p8 = scmp.lt.s32.totalorder %s10496_s18, 127 }
  0x46   : > { %s10502_s1 = sshll.u32 %s13423_s27, 1  ;;  %s21119_s26 = sld [smem:[#allocation213_spill]] }
  0x47   : > { %p1039_p9 = scmp.lt.s32.totalorder %s10502_s1, 7  ;;  %s22743_s18 = smov (!%p1020_p8, %s10496_s18), 127 }
  0x48   : > { %s10497_s20 = sshll.u32 %s22743_s18, 2  ;;  %s10499_s21 = sshll.u32 %s22743_s18, 3 }
  0x49   : > { %s22745_s1 = smov (!%p1039_p9, %s10502_s1), 7  ;;  %s13558_s24 = scalar_lea.vmem %s20605_s2, %s10499_s21 }
  0x4a   : > { %s13563_s17 = scalar_lea.vmem %s20607_s4, %s10499_s21  ;;  %s1041_s13 = scalar_lea.vmem %s20608_s5, %s22745_s1 }
  0x4b   : > { %s13569_s18 = scalar_lea.vmem [#allocation5], %s12416_s19  ;;  %p10503_p10 = scmp.ne.s32.totalorder %s13423_s27, 0 }
  0x4c   : > { %s13553_s29 = scalar_lea.vmem %s21119_s26, %s10497_s20  ;;  %vm1048_vm0 = vcmask (!%p10503_p10), 2048   ;;  %vm1051_vm1 = vcmask (!%p10503_p10), 354304   ;;  %v13302_v48 = vmov (!%p10503_p10), -1e+30   ;;  %v13303_v49 = vmov (!%p10503_p10), 0.0  }
  0x4d   : > { %1047 = sbr.rel (%p10503_p10) target bundleno = 84 (0x54), region = 133  ;;  %1049 = vst.msk [vmem:[#allocation2] sm:$0x7] (!%p10503_p10), %vm1048_vm0, %v13302_v48  ;;  %1050 = vst.msk [vmem:[#allocation3] sm:$0x7] (!%p10503_p10), %vm1048_vm0, %v13303_v49 }
  0x4e   : > { %1052 = vst.msk [vmem:[#allocation4] sm:$0x7] (!%p10503_p10), %vm1051_vm1, %v13303_v49 }
  0x54 PF: > { %v1391_v50 = vld [vmem:[%s20609_s6] sm:$0xf]  ;;  %vm1537_vm2 = vcmask 1043456   ;;  %v12628_v51 = vld [vmem:[%s13569_s18] sm:$0xff]   ;;  %vm1392_vm3 = vcmask 64512   ;;  %v12629_v53 = vld [vmem:[%s13569_s18 + $0x8] sm:$0xff]   ;;  %v20628_v15 = vlaneseq }
  0x55   : > { %12414 = vmatprep.subr.msk.bf16.mxu0 %vm1537_vm2, %v1391_v50  ;;  %v1539_v52 = vsel %vm1537_vm2, %v1391_v50, 0  ;;  %11630 = vmatprep.mubr.msk.bf16.mxu0 %vm1392_vm3, %v12628_v51  ;;  %v12630_v54 = vld [vmem:[%s13569_s18 + $0x10] sm:$0xff]   ;;  %v12631_v55 = vld [vmem:[%s13569_s18 + $0x18] sm:$0xff]   ;;  %v12632_v56 = vld [vmem:[%s13569_s18 + $0x20] sm:$0xff]   ;;  %s13304_s30 = smov 32   ;;  %vm2572_vm4 = vcmask 261120  }
  0x56   : > { %11629 = vmatpush3.bf16.msra.mxu0 %v1539_v52  ;;  %v12633_v57 = vld [vmem:[%s13569_s18 + $0x28] sm:$0xff]   ;;  %v12634_v58 = vld [vmem:[%s13569_s18 + $0x30] sm:$0xff]   ;;  %v12635_v59 = vld [vmem:[%s13569_s18 + $0x38] sm:$0xff]   ;;  %v13631_v17 = vshrl.u32 %v20628_v15, 7  ;;  %s22054_s26 = sld [smem:[#allocation216_spill]]  ;;  %s13308_s28 = smov 17  }
  0x57   : > { %v12636_v60 = vld [vmem:[%s13569_s18 + $0x40] sm:$0xff]   ;;  %v12637_v61 = vld [vmem:[%s13569_s18 + $0x48] sm:$0xff]   ;;  %v12638_v62 = vld [vmem:[%s13569_s18 + $0x50] sm:$0xff]   ;;  %s22199_s19 = sld [smem:[#allocation217_spill]]  ;;  %s13309_s20 = smov 20  }
  0x58   : > { %v12639_v63 = vld [vmem:[%s13569_s18 + $0x58] sm:$0xff]   ;;  %v12640_v0 = vld [vmem:[%s13569_s18 + $0x60] sm:$0xff]   ;;  %v12641_v1 = vld [vmem:[%s13569_s18 + $0x68] sm:$0xff]   ;;  %21120 = vst [vmem:[#allocation12_spill] sm:$0xff] %v13631_v17  ;;  %v20627_v21 = vsub.s32 0, %v13631_v17  ;;  %s13310_s21 = smov 28  }
  0x59   : > { %11631 = vmatmul.mubr.msk.bf16.vlgmr.msra.gmra.mrb[0].mxu0 %vm1392_vm3, %v12629_v53  ;;  %v12642_v2 = vld [vmem:[%s13569_s18 + $0x70] sm:$0xff]   ;;  %v12643_v3 = vld [vmem:[%s13569_s18 + $0x78] sm:$0xff]   ;;  %v12644_v4 = vld [vmem:[%s13569_s18 + $0x80] sm:$0xff]   ;;  %s13311_s22 = smov 36   ;;  %s13313_s23 = smov 112  }
  0x5a   : > { %11634 = vmatprep.mubr.msk.bf16.mxu0 %vm1392_vm3, %v12630_v54  ;;  %v12645_v5 = vld [vmem:[%s13569_s18 + $0x88] sm:$0xff]   ;;  %v12646_v6 = vld [vmem:[%s13569_s18 + $0x90] sm:$0xff]   ;;  %v12647_v7 = vld [vmem:[%s13569_s18 + $0x98] sm:$0xff]   ;;  %p11112_p11 = scmp.ne.s32.totalorder %s13423_s27, 3 }
  0x5b   : > { %v12648_v8 = vld [vmem:[%s13569_s18 + $0xa0] sm:$0xff]   ;;  %v12649_v9 = vld [vmem:[%s13569_s18 + $0xa8] sm:$0xff]   ;;  %v12650_v10 = vld [vmem:[%s13569_s18 + $0xb0] sm:$0xff]  }
  0x5c   : > { %v12651_v11 = vld [vmem:[%s13569_s18 + $0xb8] sm:$0xff]   ;;  %v12652_v12 = vld [vmem:[%s13569_s18 + $0xc0] sm:$0xff]   ;;  %v12653_v13 = vld [vmem:[%s13569_s18 + $0xc8] sm:$0xff]   ;;  %s22055_s0 = smov %s22054_s26 }
  0x5d   : > { %v12654_v14 = vld [vmem:[%s13569_s18 + $0xd0] sm:$0xff]   ;;  %v12655_v16 = vld [vmem:[%s13569_s18 + $0xd8] sm:$0xff]   ;;  %v12656_v18 = vld [vmem:[%s13569_s18 + $0xe0] sm:$0xff]  }
  0x5e   : > { %v2406_v19 = vld [vmem:[%s20606_s3] sm:$0x1]  ;;  %v11182_v28 = vld [vmem:[%s13553_s29 + $0x8] sm:$0xff]   ;;  %v12657_v29 = vld [vmem:[%s13569_s18 + $0xe8] sm:$0xff]  }
  0x5f   : > { %v2407_v20 = vunpack.c.l.bf16 %v2406_v19  ;;  %v11119_v22 = vld [vmem:[%s13553_s29] sm:$0xff]   ;;  %v11124_v31 = vunpack.c.l.bf16 %v11182_v28  ;;  %v11125_v32 = vunpack.c.h.bf16 %v11182_v28  ;;  %v11183_v36 = vld [vmem:[%s13553_s29 + $0x10] sm:$0xff]   ;;  %v11184_v42 = vld [vmem:[%s13553_s29 + $0x18] sm:$0xff]  }
  0x60   : > { %v11120_v23 = vunpack.c.l.bf16 %v11119_v22  ;;  %v11121_v24 = vunpack.c.h.bf16 %v11119_v22  ;;  %v12658_v33 = vld [vmem:[%s13569_s18 + $0xf0] sm:$0xff]   ;;  %v11128_v38 = vunpack.c.l.bf16 %v11183_v36  ;;  %v11129_v39 = vunpack.c.h.bf16 %v11183_v36  ;;  %v12659_v43 = vld [vmem:[%s13569_s18 + $0xf8] sm:$0xff]   ;;  %v12660_v47 = vld [vmem:[%s13569_s18 + $0x100] sm:$0xff]  }
  0x61   : > { %11635 = vmatmul.mubr.msk.bf16.gmra.mrb[4].mxu0 %vm1392_vm3, %v12631_v55  ;;  %v13642_v25 = vrot.slane %v2407_v20, %v20627_v21  ;;  %v11132_v45 = vunpack.c.l.bf16 %v11184_v42  ;;  %v11133_v46 = vunpack.c.h.bf16 %v11184_v42  ;;  %v11186_v51 = vld [vmem:[%s13553_s29 + $0x28] sm:$0xff]   ;;  %v12661_v52 = vld [vmem:[%s13569_s18 + $0x108] sm:$0xff]   ;;  %v11185_v55 = vld [vmem:[%s13553_s29 + $0x20] sm:$0xff]  }
  0x62   : > { %11638 = vmatprep.mubr.msk.bf16.mxu0 %vm1392_vm3, %v12632_v56  ;;  %v11140_v53 = vunpack.c.l.bf16 %v11186_v51  ;;  %v11141_v54 = vunpack.c.h.bf16 %v11186_v51  ;;  %v12662_v56 = vld [vmem:[%s13569_s18 + $0x110] sm:$0xff]  }
  0x63   : > { %v2412_v26 = vadd.f32 %v11120_v23, %v13642_v25  ;;  %v2413_v27 = vadd.f32 %v11121_v24, %v13642_v25  ;;  %v2414_v34 = vadd.f32 %v11124_v31, %v13642_v25  ;;  %v2415_v35 = vadd.f32 %v11125_v32, %v13642_v25  ;;  %v11189_v22 = vld [vmem:[%s13553_s29 + $0x40] sm:$0xff]  }
  0x64   : > { %v2416_v40 = vadd.f32 %v11128_v38, %v13642_v25  ;;  %v2417_v41 = vadd.f32 %v11129_v39, %v13642_v25  ;;  %v2418_v48 = vadd.f32 %v11132_v45, %v13642_v25  ;;  %v2419_v49 = vadd.f32 %v11133_v46, %v13642_v25  ;;  %v12666_v23 = vld [vmem:[%s13569_s18 + $0x130] sm:$0xff]   ;;  %v12668_v38 = vld [vmem:[%s13569_s18 + $0x140] sm:$0xff]  }
  0x65   : > { %v12462_v30 = vpack.i.bf16 %v2413_v27, %v2412_v26  ;;  %v12467_v37 = vpack.i.bf16 %v2415_v35, %v2414_v34  ;;  %v11152_v24 = vunpack.c.l.bf16 %v11189_v22  ;;  %v11153_v26 = vunpack.c.h.bf16 %v11189_v22  ;;  %v12667_v34 = vld [vmem:[%s13569_s18 + $0x138] sm:$0xff]  }
  0x66   : > { %v12472_v44 = vpack.i.bf16 %v2417_v41, %v2416_v40  ;;  %v12477_v50 = vpack.i.bf16 %v2419_v49, %v2418_v48  ;;  %v12669_v48 = vld [vmem:[%s13569_s18 + $0x148] sm:$0xff]   ;;  %v11193_v51 = vld [vmem:[%s13553_s29 + $0x60] sm:$0xff]  }
  0x67   : > { %12463 = vrot.lane.b32.xlu0 %v12462_v30, %s13304_s30  ;;  %v2429_v30 = vadd.f32 %v11153_v26, %v13642_v25 }
  0x68   : > { %12473 = vrot.lane.b32.xlu1 %v12472_v44, %s13304_s30 }
  0x69   : > { %11639 = vmatmul.mubr.msk.bf16.gmra.mrb[8].mxu0 %vm1392_vm3, %v12633_v57  ;;  %v11136_v57 = vunpack.c.l.bf16 %v11185_v55 }
  0x6a   : > { %11642 = vmatprep.mubr.msk.bf16.mxu0 %vm1392_vm3, %v12634_v58  ;;  %v11137_v58 = vunpack.c.h.bf16 %v11185_v55 }
  0x6b   : > { %12468 = vrot.lane.b32.xlu0 %v12467_v37, %s13304_s30  ;;  %v11191_v37 = vld [vmem:[%s13553_s29 + $0x50] sm:$0xff]  }
  0x6c   : > { %12478 = vrot.lane.b32.xlu1 %v12477_v50, %s13304_s30  ;;  %v11160_v39 = vunpack.c.l.bf16 %v11191_v37  ;;  %v11161_v40 = vunpack.c.h.bf16 %v11191_v37  ;;  %v12678_v37 = vld [vmem:[%s20610_s7 + $0x10] sm:$0xff]  }
  0x6e   : > { %v2433_v44 = vadd.f32 %v11161_v40, %v13642_v25 }
  0x71   : > { %11643 = vmatmul.mubr.msk.bf16.gmra.mrb[12].mxu0 %vm1392_vm3, %v12635_v59  ;;  %v2422_v59 = vadd.f32 %v11140_v53, %v13642_v25  ;;  %v11168_v53 = vunpack.c.l.bf16 %v11193_v51 }
  0x72   : > { %11646 = vmatprep.mubr.msk.bf16.mxu0 %vm1392_vm3, %v12636_v60  ;;  %v2423_v60 = vadd.f32 %v11141_v54, %v13642_v25  ;;  %v11169_v54 = vunpack.c.h.bf16 %v11193_v51 }
  0x79   : > { %11647 = vmatmul.mubr.msk.bf16.gmra.mrb[16].mxu0 %vm1392_vm3, %v12637_v61  ;;  %v2420_v61 = vadd.f32 %v11136_v57, %v13642_v25  ;;  %v2436_v57 = vadd.f32 %v11168_v53, %v13642_v25 }
  0x7a   : > { %11650 = vmatprep.mubr.msk.bf16.mxu0 %vm1392_vm3, %v12638_v62  ;;  %v2421_v62 = vadd.f32 %v11137_v58, %v13642_v25  ;;  %v2437_v58 = vadd.f32 %v11169_v54, %v13642_v25 }
  0x81   : > { %11651 = vmatmul.mubr.msk.bf16.gmra.mrb[20].mxu0 %vm1392_vm3, %v12639_v63  ;;  %v12487_v63 = vpack.i.bf16 %v2423_v60, %v2422_v59  ;;  %v12522_v60 = vpack.i.bf16 %v2437_v58, %v2436_v57 }
  0x82   : > { %11654 = vmatprep.mubr.msk.bf16.mxu0 %vm1392_vm3, %v12640_v0  ;;  %v12482_v0 = vpack.i.bf16 %v2421_v62, %v2420_v61  ;;  %v11196_v61 = vld [vmem:[%s13553_s29 + $0x78] sm:$0xff]   ;;  %v12671_v62 = vld [vmem:[%s13569_s18 + $0x158] sm:$0xff]  }
  0x83   : > { %12488 = vrot.lane.b32.xlu1 %v12487_v63, %s13304_s30  ;;  %v11180_v63 = vunpack.c.l.bf16 %v11196_v61 }
  0x84   : > { %12483 = vrot.lane.b32.xlu0 %v12482_v0, %s13304_s30  ;;  %v11181_v0 = vunpack.c.h.bf16 %v11196_v61 }
  0x89   : > { %11655 = vmatmul.mubr.msk.bf16.gmra.mrb[24].mxu0 %vm1392_vm3, %v12641_v1  ;;  %v11188_v1 = vld [vmem:[%s13553_s29 + $0x38] sm:$0xff]  }
  0x8a   : > { %11658 = vmatprep.mubr.msk.bf16.mxu0 %vm1392_vm3, %v12642_v2  ;;  %v12663_v2 = vld [vmem:[%s13569_s18 + $0x118] sm:$0xff]  }
  0x91   : > { %11659 = vmatmul.mubr.msk.bf16.gmra.mrb[28].mxu0 %vm1392_vm3, %v12643_v3  ;;  %v11148_v3 = vunpack.c.l.bf16 %v11188_v1 }
  0x92   : > { %11662 = vmatprep.mubr.msk.bf16.mxu0 %vm1392_vm3, %v12644_v4  ;;  %v11149_v4 = vunpack.c.h.bf16 %v11188_v1  ;;  %v11195_v1 = vld [vmem:[%s13553_s29 + $0x70] sm:$0xff]  }
  0x99   : > { %11663 = vmatmul.mubr.msk.bf16.gmra.mrb[32].mxu0 %vm1392_vm3, %v12645_v5  ;;  %v11187_v5 = vld [vmem:[%s13553_s29 + $0x30] sm:$0xff]  }
  0x9a   : > { %11666 = vmatprep.mubr.msk.bf16.mxu0 %vm1392_vm3, %v12646_v6  ;;  %v12664_v6 = vld [vmem:[%s13569_s18 + $0x120] sm:$0xff]  }
  0xa1   : > { %11667 = vmatmul.mubr.msk.bf16.gmra.mrb[36].mxu0 %vm1392_vm3, %v12647_v7  ;;  %v11144_v7 = vunpack.c.l.bf16 %v11187_v5 }
  0xa2   : > { %11670 = vmatprep.mubr.msk.bf16.mxu0 %vm1392_vm3, %v12648_v8  ;;  %v11145_v8 = vunpack.c.h.bf16 %v11187_v5  ;;  %v2442_v5 = vadd.f32 %v11180_v63, %v13642_v25 }
  0xa9   : > { %11671 = vmatmul.mubr.msk.bf16.gmra.mrb[40].mxu0 %vm1392_vm3, %v12649_v9  ;;  %v2426_v9 = vadd.f32 %v11148_v3, %v13642_v25  ;;  %v11176_v3 = vunpack.c.l.bf16 %v11195_v1 }
  0xaa   : > { %11674 = vmatprep.mubr.msk.bf16.mxu0 %vm1392_vm3, %v12650_v10  ;;  %v2427_v10 = vadd.f32 %v11149_v4, %v13642_v25  ;;  %v11177_v4 = vunpack.c.h.bf16 %v11195_v1 }
  0xb1   : > { %11675 = vmatmul.mubr.msk.bf16.gmra.mrb[44].mxu0 %vm1392_vm3, %v12651_v11  ;;  %v2424_v11 = vadd.f32 %v11144_v7, %v13642_v25  ;;  %v2440_v7 = vadd.f32 %v11176_v3, %v13642_v25 }
  0xb2   : > { %11678 = vmatprep.mubr.msk.bf16.mxu0 %vm1392_vm3, %v12652_v12  ;;  %v2425_v12 = vadd.f32 %v11145_v8, %v13642_v25  ;;  %v2441_v8 = vadd.f32 %v11177_v4, %v13642_v25 }
  0xb9   : > { %11679 = vmatmul.mubr.msk.bf16.gmra.mrb[48].mxu0 %vm1392_vm3, %v12653_v13  ;;  %v12497_v13 = vpack.i.bf16 %v2427_v10, %v2426_v9  ;;  %v12532_v10 = vpack.i.bf16 %v2441_v8, %v2440_v7 }
  0xba   : > { %11682 = vmatprep.mubr.msk.bf16.mxu0 %vm1392_vm3, %v12654_v14  ;;  %v12492_v14 = vpack.i.bf16 %v2425_v12, %v2424_v11  ;;  %v12673_v11 = vld [vmem:[%s13569_s18 + $0x168] sm:$0xff]   ;;  %v12674_v12 = vld [vmem:[%s13569_s18 + $0x170] sm:$0xff]  }
  0xbb   : > { %12498 = vrot.lane.b32.xlu1 %v12497_v13, %s13304_s30  ;;  %v12675_v13 = vld [vmem:[%s13569_s18 + $0x178] sm:$0xff]  }
  0xbc   : > { %12493 = vrot.lane.b32.xlu0 %v12492_v14, %s13304_s30 }
  0xc1   : > { %11683 = vmatmul.mubr.msk.bf16.gmra.mrb[52].mxu0 %vm1392_vm3, %v12655_v16  ;;  %v11190_v16 = vld [vmem:[%s13553_s29 + $0x48] sm:$0xff]  }
  0xc2   : > { %11686 = vmatprep.mubr.msk.bf16.mxu0 %vm1392_vm3, %v12656_v18  ;;  %v12665_v18 = vld [vmem:[%s13569_s18 + $0x128] sm:$0xff]   ;;  %v11156_v19 = vunpack.c.l.bf16 %v11190_v16  ;;  %v11157_v20 = vunpack.c.h.bf16 %v11190_v16 }
  0xc4   : > { %v2430_v27 = vadd.f32 %v11156_v19, %v13642_v25  ;;  %v2431_v28 = vadd.f32 %v11157_v20, %v13642_v25 }
  0xc6   : > { %v12507_v31 = vpack.i.bf16 %v2431_v28, %v2430_v27 }
  0xc8   : > { %12508 = vrot.lane.b32.xlu1 %v12507_v31, %s13304_s30 }
  0xc9   : > { %11687 = vmatmul.mubr.msk.bf16.gmra.mrb[56].mxu0 %vm1392_vm3, %v12657_v29  ;;  %v2428_v29 = vadd.f32 %v11152_v24, %v13642_v25 }
  0xca   : > { %11690 = vmatprep.mubr.msk.bf16.mxu0 %vm1392_vm3, %v12658_v33  ;;  %v11192_v33 = vld [vmem:[%s13553_s29 + $0x58] sm:$0xff]  }
  0xcb   : > { %v12502_v32 = vpack.i.bf16 %v2429_v30, %v2428_v29  ;;  %v11164_v35 = vunpack.c.l.bf16 %v11192_v33  ;;  %v11165_v36 = vunpack.c.h.bf16 %v11192_v33  ;;  %v12676_v29 = vld [vmem:[%s20610_s7] sm:$0xff]   ;;  %v12677_v33 = vld [vmem:[%s20610_s7 + $0x8] sm:$0xff]  }
  0xcc   : > { %11726 = vmatprep.subr.bf16.mxu1 %v12676_v29 }
  0xcd   : > { %12503 = vrot.lane.b32.xlu0 %v12502_v32, %s13304_s30  ;;  %v2434_v41 = vadd.f32 %v11164_v35, %v13642_v25  ;;  %v2435_v42 = vadd.f32 %v11165_v36, %v13642_v25  ;;  %11727 = vmatpush3.bf16.msra.mxu1 %v12676_v29 }
  0xce   : > { %11728 = vmatprep.subr.bf16.mxu1 %v12677_v33 }
  0xcf   : > { %v12517_v45 = vpack.i.bf16 %v2435_v42, %v2434_v41 }
  0xd1   : > { %11691 = vmatmul.mubr.msk.bf16.gmra.mrb[60].mxu0 %vm1392_vm3, %v12659_v43  ;;  %v2432_v43 = vadd.f32 %v11160_v39, %v13642_v25  ;;  %12518 = vrot.lane.b32.xlu1 %v12517_v45, %s13304_s30 }
  0xd2   : > { %11694 = vmatprep.mubr.msk.bf16.mxu0 %vm1392_vm3, %v12660_v47  ;;  %v11194_v47 = vld [vmem:[%s13553_s29 + $0x68] sm:$0xff]   ;;  %11729 = vmatpush3.bf16.msra.mxu1 %v12677_v33  ;;  %s21998_s29 = sld [smem:[#allocation215_spill]] }
  0xd3   : > { %v12512_v46 = vpack.i.bf16 %v2433_v44, %v2432_v43  ;;  %v11172_v49 = vunpack.c.l.bf16 %v11194_v47  ;;  %v11173_v50 = vunpack.c.h.bf16 %v11194_v47  ;;  %11730 = vmatprep.subr.bf16.mxu1 %v12678_v37 }
  0xd5   : > { %12513 = vrot.lane.b32.xlu0 %v12512_v46, %s13304_s30  ;;  %v2438_v55 = vadd.f32 %v11172_v49, %v13642_v25 }
  0xd6   : > { %11731 = vmatpush3.bf16.msra.mxu1 %v12678_v37 }
  0xd9   : > { %11695 = vmatmul.mubr.msk.bf16.gmra.mrb[64].mxu0 %vm1392_vm3, %v12661_v52  ;;  %v12670_v52 = vld [vmem:[%s13569_s18 + $0x150] sm:$0xff]   ;;  %12523 = vrot.lane.b32.xlu0 %v12522_v60, %s13304_s30 }
  0xda   : > { %11698 = vmatprep.mubr.msk.bf16.mxu0 %vm1392_vm3, %v12662_v56  ;;  %v2439_v56 = vadd.f32 %v11173_v50, %v13642_v25 }
  0xdc   : > { %v12527_v59 = vpack.i.bf16 %v2439_v56, %v2438_v55 }
  0xdd   : > { %12533 = vrot.lane.b32.xlu0 %v12532_v10, %s13304_s30 }
  0xde   : > { %12528 = vrot.lane.b32.xlu1 %v12527_v59, %s13304_s30 }
  0xe1   : > { %11699 = vmatmul.mubr.msk.bf16.gmra.mrb[68].mxu0 %vm1392_vm3, %v12663_v2  ;;  %v12672_v2 = vld [vmem:[%s13569_s18 + $0x160] sm:$0xff]  }
  0xe2   : > { %11702 = vmatprep.mubr.msk.bf16.mxu0 %vm1392_vm3, %v12664_v6  ;;  %v2443_v6 = vadd.f32 %v11181_v0, %v13642_v25 }
  0xe4   : > { %v12537_v9 = vpack.i.bf16 %v2443_v6, %v2442_v5 }
  0xe6   : > { %12538 = vrot.lane.b32.xlu1 %v12537_v9, %s13304_s30 }
  0xe9   : > { %11703 = vmatmul.mubr.msk.bf16.gmra.mrb[72].mxu0 %vm1392_vm3, %v12665_v18 }
  0xea   : > { %11706 = vmatprep.mubr.msk.bf16.mxu0 %vm1392_vm3, %v12666_v23 }
  0xf1   : > { %11707 = vmatmul.mubr.msk.bf16.gmra.mrb[76].mxu0 %vm1392_vm3, %v12667_v34 }
  0xf2   : > { %11710 = vmatprep.mubr.msk.bf16.mxu0 %vm1392_vm3, %v12668_v38 }
  0xf9   : > { %11711 = vmatmul.mubr.msk.bf16.gmra.mrb[80].mxu0 %vm1392_vm3, %v12669_v48 }
  0xfa   : > { %11714 = vmatprep.mubr.msk.bf16.mxu0 %vm1392_vm3, %v12670_v52 }
 0x101   : > { %11715 = vmatmul.mubr.msk.bf16.gmra.mrb[84].mxu0 %vm1392_vm3, %v12671_v62 }
 0x102   : > { %11718 = vmatprep.mubr.msk.bf16.mxu0 %vm1392_vm3, %v12672_v2 }
 0x109   : > { %11719 = vmatmul.mubr.msk.bf16.gmra.mrb[88].mxu0 %vm1392_vm3, %v12673_v11 }
 0x10a   : > { %11722 = vmatprep.mubr.msk.bf16.mxu0 %vm1392_vm3, %v12674_v12 }
 0x111   : > { %11723 = vmatmul.mubr.msk.bf16.gmra.mrb[92].mxu0 %vm1392_vm3, %v12675_v13 }
 0x12c   : > { %v13746_v25 = vpop.f32.mrb[0].mxu0 }
 0x12d   : > { %21121 = vst [vmem:[#allocation13_spill] sm:$0xff] %v13746_v25  ;;  %v13748_v14 = vpop.f32.mrb[1].mxu0  ;;  %v1960_v5 = vmul.f32 %v13746_v25, %v13746_v25 }
 0x12e   : > { %21122 = vst [vmem:[#allocation14_spill] sm:$0xff] %v13748_v14  ;;  %v13750_v16 = vpop.f32.mrb[2].mxu0  ;;  %v1958_v8 = vmul.f32 %v13748_v14, %v13748_v14 }
 0x12f   : > { %21123 = vst [vmem:[#allocation15_spill] sm:$0xff] %v13750_v16  ;;  %v13754_v19 = vpop.f32.mrb[3].mxu0  ;;  %v1961_v11 = vmul.f32 %v13750_v16, %v13750_v16 }
 0x130   : > { %21124 = vst [vmem:[#allocation16_spill] sm:$0xff] %v13754_v19  ;;  %v1959_v37 = vmul.f32 %v13754_v19, %v13754_v19 }
 0x134   : > { %v13758_v22 = vpop.f32.mrb[4].mxu0 }
 0x135   : > { %21125 = vst [vmem:[#allocation17_spill] sm:$0xff] %v13758_v22  ;;  %v13760_v23 = vpop.f32.mrb[5].mxu0  ;;  %v1964_v29 = vmul.f32 %v13758_v22, %v13758_v22 }
 0x136   : > { %21126 = vst [vmem:[#allocation18_spill] sm:$0xff] %v13760_v23  ;;  %v13762_v24 = vpop.f32.mrb[6].mxu0 }
 0x137   : > { %21127 = vst [vmem:[#allocation19_spill] sm:$0xff] %v13762_v24  ;;  %v13766_v27 = vpop.f32.mrb[7].mxu0 }
 0x138   : > { %21128 = vst [vmem:[#allocation20_spill] sm:$0xff] %v13766_v27  ;;  %v1963_v55 = vmul.f32 %v13766_v27, %v13766_v27 }
 0x13c   : > { %v13773_v30 = vpop.f32.mrb[8].mxu0 }
 0x13d   : > { %21129 = vst [vmem:[#allocation21_spill] sm:$0xff] %v13773_v30  ;;  %v13775_v31 = vpop.f32.mrb[9].mxu0 }
 0x13e   : > { %21130 = vst [vmem:[#allocation22_spill] sm:$0xff] %v13775_v31  ;;  %v13777_v32 = vpop.f32.mrb[10].mxu0  ;;  %v1966_v26 = vmul.f32 %v13775_v31, %v13775_v31 }
 0x13f   : > { %21131 = vst [vmem:[#allocation23_spill] sm:$0xff] %v13777_v32  ;;  %v13784_v35 = vpop.f32.mrb[11].mxu0 }
 0x140   : > { %21132 = vst [vmem:[#allocation24_spill] sm:$0xff] %v13784_v35  ;;  %v1967_v28 = vmul.f32 %v13784_v35, %v13784_v35 }
 0x144   : > { %v13791_v38 = vpop.f32.mrb[12].mxu0 }
 0x145   : > { %21133 = vst [vmem:[#allocation25_spill] sm:$0xff] %v13791_v38  ;;  %v13793_v39 = vpop.f32.mrb[13].mxu0 }
 0x146   : > { %21134 = vst [vmem:[#allocation26_spill] sm:$0xff] %v13793_v39  ;;  %v13795_v40 = vpop.f32.mrb[14].mxu0 }
 0x147   : > { %21135 = vst [vmem:[#allocation27_spill] sm:$0xff] %v13795_v40  ;;  %v13799_v42 = vpop.f32.mrb[15].mxu0 }
 0x148   : > { %21136 = vst [vmem:[#allocation28_spill] sm:$0xff] %v13799_v42 }
 0x14c   : > { %v13803_v44 = vpop.f32.mrb[16].mxu0 }
 0x14d   : > { %21137 = vst [vmem:[#allocation29_spill] sm:$0xff] %v13803_v44  ;;  %v13805_v45 = vpop.f32.mrb[17].mxu0 }
 0x14e   : > { %21138 = vst [vmem:[#allocation30_spill] sm:$0xff] %v13805_v45  ;;  %v13807_v46 = vpop.f32.mrb[18].mxu0 }
 0x14f   : > { %21139 = vst [vmem:[#allocation31_spill] sm:$0xff] %v13807_v46  ;;  %v13811_v48 = vpop.f32.mrb[19].mxu0 }
 0x150   : > { %21140 = vst [vmem:[#allocation32_spill] sm:$0xff] %v13811_v48 }
 0x154   : > { %v13815_v50 = vpop.f32.mrb[20].mxu0 }
 0x155   : > { %21141 = vst [vmem:[#allocation33_spill] sm:$0xff] %v13815_v50  ;;  %v13817_v51 = vpop.f32.mrb[21].mxu0 }
 0x156   : > { %21142 = vst [vmem:[#allocation34_spill] sm:$0xff] %v13817_v51  ;;  %v13819_v52 = vpop.f32.mrb[22].mxu0 }
 0x157   : > { %21143 = vst [vmem:[#allocation35_spill] sm:$0xff] %v13819_v52  ;;  %v13823_v54 = vpop.f32.mrb[23].mxu0 }
 0x158   : > { %21144 = vst [vmem:[#allocation36_spill] sm:$0xff] %v13823_v54 }
 0x15c   : > { %v13827_v56 = vpop.f32.mrb[24].mxu0 }
 0x15d   : > { %21145 = vst [vmem:[#allocation37_spill] sm:$0xff] %v13827_v56  ;;  %v13829_v57 = vpop.f32.mrb[25].mxu0 }
 0x15e   : > { %21146 = vst [vmem:[#allocation38_spill] sm:$0xff] %v13829_v57  ;;  %v13831_v58 = vpop.f32.mrb[26].mxu0 }
 0x15f   : > { %21147 = vst [vmem:[#allocation39_spill] sm:$0xff] %v13831_v58  ;;  %v13835_v60 = vpop.f32.mrb[27].mxu0 }
 0x160   : > { %21148 = vst [vmem:[#allocation40_spill] sm:$0xff] %v13835_v60 }
 0x164   : > { %v13839_v62 = vpop.f32.mrb[28].mxu0 }
 0x165   : > { %21149 = vst [vmem:[#allocation41_spill] sm:$0xff] %v13839_v62  ;;  %v13841_v63 = vpop.f32.mrb[29].mxu0 }
 0x166   : > { %21150 = vst [vmem:[#allocation42_spill] sm:$0xff] %v13841_v63  ;;  %v13843_v0 = vpop.f32.mrb[30].mxu0 }
 0x167   : > { %21151 = vst [vmem:[#allocation43_spill] sm:$0xff] %v13843_v0  ;;  %v13847_v2 = vpop.f32.mrb[31].mxu0 }
 0x168   : > { %21152 = vst [vmem:[#allocation44_spill] sm:$0xff] %v13847_v2 }
 0x16c   : > { %v13851_v4 = vpop.f32.mrb[32].mxu0 }
 0x16d   : > { %21153 = vst [vmem:[#allocation45_spill] sm:$0xff] %v13851_v4  ;;  %v1992_v6 = vmul.f32 %v13851_v4, %v13851_v4  ;;  %v13857_v7 = vpop.f32.mrb[33].mxu0 }
 0x16e   : > { %21154 = vst [vmem:[#allocation46_spill] sm:$0xff] %v13857_v7  ;;  %v1990_v9 = vmul.f32 %v13857_v7, %v13857_v7  ;;  %v13863_v10 = vpop.f32.mrb[34].mxu0 }
 0x16f   : > { %21155 = vst [vmem:[#allocation47_spill] sm:$0xff] %v13863_v10  ;;  %v13867_v12 = vadd.f32 %v1992_v6, %v1960_v5  ;;  %v1993_v13 = vmul.f32 %v13863_v10, %v13863_v10  ;;  %v13873_v33 = vpop.f32.mrb[35].mxu0 }
 0x170   : > { %21156 = vst [vmem:[#allocation48_spill] sm:$0xff] %v13873_v33  ;;  %v13877_v21 = vadd.f32 %v1990_v9, %v1958_v8  ;;  %v1991_v15 = vmul.f32 %v13873_v33, %v13873_v33  ;;  %v1962_v9 = vmul.f32 %v13760_v23, %v13760_v23 }
 0x171   : > { %v13883_v6 = vadd.f32 %v1993_v13, %v1961_v11 }
 0x172   : > { %v13885_v1 = vadd.f32 %v1991_v15, %v1959_v37  ;;  %v1965_v15 = vmul.f32 %v13762_v24, %v13762_v24 }
 0x174   : > { %v13887_v3 = vpop.f32.mrb[36].mxu0 }
 0x175   : > { %21157 = vst [vmem:[#allocation49_spill] sm:$0xff] %v13887_v3  ;;  %v1996_v59 = vmul.f32 %v13887_v3, %v13887_v3  ;;  %v13893_v8 = vpop.f32.mrb[37].mxu0 }
 0x176   : > { %21158 = vst [vmem:[#allocation50_spill] sm:$0xff] %v13893_v8  ;;  %v1994_v5 = vmul.f32 %v13893_v8, %v13893_v8  ;;  %v13899_v11 = vpop.f32.mrb[38].mxu0 }
 0x177   : > { %21159 = vst [vmem:[#allocation51_spill] sm:$0xff] %v13899_v11  ;;  %v1997_v13 = vmul.f32 %v13899_v11, %v13899_v11  ;;  %v13907_v61 = vpop.f32.mrb[39].mxu0  ;;  %v13909_v53 = vadd.f32 %v1996_v59, %v1964_v29  ;;  %v1968_v59 = vmul.f32 %v13773_v30, %v13773_v30 }
 0x178   : > { %21160 = vst [vmem:[#allocation52_spill] sm:$0xff] %v13907_v61  ;;  %v1995_v47 = vmul.f32 %v13907_v61, %v13907_v61  ;;  %v13917_v41 = vadd.f32 %v1994_v5, %v1962_v9 }
 0x179   : > { %v13919_v43 = vadd.f32 %v1997_v13, %v1965_v15 }
 0x17a   : > { %v13921_v34 = vadd.f32 %v1995_v47, %v1963_v55  ;;  %v1969_v47 = vmul.f32 %v13777_v32, %v13777_v32 }
 0x17c   : > { %v13923_v37 = vpop.f32.mrb[40].mxu0 }
 0x17d   : > { %21161 = vst [vmem:[#allocation53_spill] sm:$0xff] %v13923_v37  ;;  %v2000_v29 = vmul.f32 %v13923_v37, %v13923_v37  ;;  %v13929_v36 = vpop.f32.mrb[41].mxu0 }
 0x17e   : > { %21162 = vst [vmem:[#allocation54_spill] sm:$0xff] %v13929_v36  ;;  %v1998_v5 = vmul.f32 %v13929_v36, %v13929_v36  ;;  %v13935_v9 = vpop.f32.mrb[42].mxu0  ;;  %v1971_v36 = vmul.f32 %v13799_v42, %v13799_v42 }
 0x17f   : > { %21163 = vst [vmem:[#allocation55_spill] sm:$0xff] %v13935_v9  ;;  %v2001_v55 = vmul.f32 %v13935_v9, %v13935_v9  ;;  %v13943_v13 = vpop.f32.mrb[43].mxu0  ;;  %v13945_v49 = vadd.f32 %v2000_v29, %v1968_v59  ;;  %v1972_v59 = vmul.f32 %v13791_v38, %v13791_v38  ;;  %v1970_v9 = vmul.f32 %v13793_v39, %v13793_v39 }
 0x180   : > { %21164 = vst [vmem:[#allocation56_spill] sm:$0xff] %v13943_v13  ;;  %v1999_v18 = vmul.f32 %v13943_v13, %v13943_v13  ;;  %v13953_v17 = vadd.f32 %v1998_v5, %v1966_v26 }
 0x181   : > { %v13955_v3 = vadd.f32 %v2001_v55, %v1969_v47 }
 0x182   : > { %v13957_v11 = vadd.f32 %v1999_v18, %v1967_v28  ;;  %v1973_v18 = vmul.f32 %v13795_v40, %v13795_v40 }
 0x184   : > { %v13959_v15 = vpop.f32.mrb[44].mxu0 }
 0x185   : > { %21165 = vst [vmem:[#allocation57_spill] sm:$0xff] %v13959_v15  ;;  %v2004_v29 = vmul.f32 %v13959_v15, %v13959_v15  ;;  %v13965_v37 = vpop.f32.mrb[45].mxu0 }
 0x186   : > { %21166 = vst [vmem:[#allocation58_spill] sm:$0xff] %v13965_v37  ;;  %v2002_v26 = vmul.f32 %v13965_v37, %v13965_v37  ;;  %v13971_v5 = vpop.f32.mrb[46].mxu0  ;;  %v1975_v37 = vmul.f32 %v13811_v48, %v13811_v48  ;;  %v14071_v48 = vpop.permute.xlu0 %12463 }
 0x187   : > { %21167 = vst [vmem:[#allocation59_spill] sm:$0xff] %v13971_v5  ;;  %v2005_v28 = vmul.f32 %v13971_v5, %v13971_v5  ;;  %v13979_v55 = vpop.f32.mrb[47].mxu0  ;;  %v13981_v20 = vadd.f32 %v2004_v29, %v1972_v59  ;;  %v1976_v59 = vmul.f32 %v13803_v44, %v13803_v44  ;;  %v1974_v5 = vmul.f32 %v13805_v45, %v13805_v45 }
 0x188   : > { %21168 = vst [vmem:[#allocation60_spill] sm:$0xff] %v13979_v55  ;;  %v2003_v13 = vmul.f32 %v13979_v55, %v13979_v55  ;;  %v13989_v61 = vadd.f32 %v2002_v26, %v1970_v9 }
 0x189   : > { %v13991_v4 = vadd.f32 %v2005_v28, %v1973_v18  ;;  %v1980_v18 = vmul.f32 %v13815_v50, %v13815_v50 }
 0x18a   : > { %v13993_v10 = vadd.f32 %v2003_v13, %v1971_v36  ;;  %v1977_v36 = vmul.f32 %v13807_v46, %v13807_v46 }
 0x18c   : > { %v13995_v47 = vpop.f32.mrb[48].mxu0 }
 0x18d   : > { %21169 = vst [vmem:[#allocation61_spill] sm:$0xff] %v13995_v47  ;;  %v2008_v29 = vmul.f32 %v13995_v47, %v13995_v47  ;;  %v14001_v15 = vpop.f32.mrb[49].mxu0 }
 0x18e   : > { %21170 = vst [vmem:[#allocation62_spill] sm:$0xff] %v14001_v15  ;;  %v2006_v9 = vmul.f32 %v14001_v15, %v14001_v15  ;;  %v14007_v26 = vpop.f32.mrb[50].mxu0 }
 0x18f   : > { %21171 = vst [vmem:[#allocation63_spill] sm:$0xff] %v14007_v26  ;;  %v2009_v13 = vmul.f32 %v14007_v26, %v14007_v26  ;;  %v14015_v28 = vpop.f32.mrb[51].mxu0  ;;  %v14017_v8 = vadd.f32 %v2008_v29, %v1976_v59  ;;  %v14034_v59 = vld [vmem:[%s20611_s8] sm:$0xff]  }
 0x190   : > { %21172 = vst [vmem:[#allocation64_spill] sm:$0xff] %v14015_v28  ;;  %v2007_v55 = vmul.f32 %v14015_v28, %v14015_v28  ;;  %v14025_v33 = vadd.f32 %v2006_v9, %v1974_v5  ;;  %11764 = vmatprep.subr.bf16.mxu1 %v14034_v59  ;;  %v1979_v28 = vmul.f32 %v13823_v54, %v13823_v54 }
 0x191   : > { %v14027_v44 = vadd.f32 %v2009_v13, %v1977_v36  ;;  %v1981_v13 = vmul.f32 %v13819_v52, %v13819_v52  ;;  %v14067_v52 = vpop.permute.xlu1 %12473 }
 0x192   : > { %v14029_v46 = vadd.f32 %v2007_v55, %v1975_v37  ;;  %v1978_v37 = vmul.f32 %v13817_v51, %v13817_v51 }
 0x194   : > { %v14036_v29 = vpop.f32.mrb[52].mxu0 }
 0x195   : > { %21173 = vst [vmem:[#allocation65_spill] sm:$0xff] %v14036_v29  ;;  %v2012_v5 = vmul.f32 %v14036_v29, %v14036_v29  ;;  %v14043_v9 = vpop.f32.mrb[53].mxu0 }
 0x196   : > { %21174 = vst [vmem:[#allocation66_spill] sm:$0xff] %v14043_v9  ;;  %v2010_v55 = vmul.f32 %v14043_v9, %v14043_v9  ;;  %v14049_v36 = vpop.f32.mrb[54].mxu0 }
 0x197   : > { %21175 = vst [vmem:[#allocation67_spill] sm:$0xff] %v14049_v36  ;;  %v2013_v7 = vmul.f32 %v14049_v36, %v14049_v36  ;;  %v14057_v26 = vpop.f32.mrb[55].mxu0  ;;  %v14059_v15 = vadd.f32 %v2012_v5, %v1980_v18  ;;  %v1984_v5 = vmul.f32 %v13827_v56, %v13827_v56 }
 0x198   : > { %21176 = vst [vmem:[#allocation68_spill] sm:$0xff] %v14057_v26  ;;  %v2011_v50 = vmul.f32 %v14057_v26, %v14057_v26  ;;  %v14069_v45 = vadd.f32 %v2010_v55, %v1978_v37  ;;  %v1982_v37 = vmul.f32 %v13829_v57, %v13829_v57  ;;  %v14101_v26 = vpop.permute.xlu0 %12468  ;;  %v1983_v57 = vmul.f32 %v13835_v60, %v13835_v60 }
 0x199   : > { %v14073_v47 = vadd.f32 %v2013_v7, %v1981_v13 }
 0x19a   : > { %v14075_v29 = vadd.f32 %v2011_v50, %v1979_v28  ;;  %v14091_v50 = vpop.permute.xlu1 %12478  ;;  %v1985_v28 = vmul.f32 %v13831_v58, %v13831_v58 }
 0x19c   : > { %v14077_v18 = vpop.f32.mrb[56].mxu0 }
 0x19d   : > { %21177 = vst [vmem:[#allocation69_spill] sm:$0xff] %v14077_v18  ;;  %v2016_v36 = vmul.f32 %v14077_v18, %v14077_v18  ;;  %v14083_v54 = vpop.f32.mrb[57].mxu0 }
 0x19e   : > { %21178 = vst [vmem:[#allocation70_spill] sm:$0xff] %v14083_v54  ;;  %v2014_v55 = vmul.f32 %v14083_v54, %v14083_v54  ;;  %v14089_v7 = vpop.f32.mrb[58].mxu0  ;;  %v14115_v51 = vpop.permute.xlu1 %12488 }
 0x19f   : > { %21179 = vst [vmem:[#allocation71_spill] sm:$0xff] %v14089_v7  ;;  %v2017_v13 = vmul.f32 %v14089_v7, %v14089_v7  ;;  %v14099_v9 = vpop.f32.mrb[59].mxu0  ;;  %v14103_v56 = vadd.f32 %v2016_v36, %v1984_v5  ;;  %v14119_v7 = vpop.permute.xlu0 %12483  ;;  %v1988_v5 = vmul.f32 %v13839_v62, %v13839_v62 }
 0x1a0   : > { %21180 = vst [vmem:[#allocation72_spill] sm:$0xff] %v14099_v9  ;;  %v2015_v38 = vmul.f32 %v14099_v9, %v14099_v9  ;;  %v14111_v40 = vadd.f32 %v2014_v55, %v1982_v37  ;;  %v1986_v37 = vmul.f32 %v13841_v63, %v13841_v63  ;;  %v1987_v63 = vmul.f32 %v13847_v2, %v13847_v2 }
 0x1a1   : > { %v14113_v39 = vadd.f32 %v2017_v13, %v1985_v28  ;;  %v1989_v28 = vmul.f32 %v13843_v0, %v13843_v0 }
 0x1a2   : > { %v14117_v18 = vadd.f32 %v2015_v38, %v1983_v57  ;;  %v14135_v57 = vpop.permute.xlu1 %12498 }
 0x1a3   : > { %v14145_v9 = vpop.permute.xlu0 %12493 }
 0x1a4   : > { %v14121_v36 = vpop.f32.mrb[60].mxu0 }
 0x1a5   : > { %21181 = vst [vmem:[#allocation73_spill] sm:$0xff] %v14121_v36  ;;  %v2020_v60 = vmul.f32 %v14121_v36, %v14121_v36  ;;  %v14127_v42 = vpop.f32.mrb[61].mxu0 }
 0x1a6   : > { %21182 = vst [vmem:[#allocation74_spill] sm:$0xff] %v14127_v42  ;;  %v2018_v55 = vmul.f32 %v14127_v42, %v14127_v42  ;;  %v14133_v38 = vpop.f32.mrb[62].mxu0  ;;  %v14159_v58 = vpop.permute.xlu1 %12508 }
 0x1a7   : > { %21183 = vst [vmem:[#allocation75_spill] sm:$0xff] %v14133_v38  ;;  %v2021_v13 = vmul.f32 %v14133_v38, %v14133_v38  ;;  %v14143_v54 = vpop.f32.mrb[63].mxu0  ;;  %v14147_v62 = vadd.f32 %v2020_v60, %v1988_v5  ;;  %v14163_v38 = vpop.permute.xlu0 %12503 }
 0x1a8   : > { %21184 = vst [vmem:[#allocation76_spill] sm:$0xff] %v14143_v54  ;;  %v2019_v30 = vmul.f32 %v14143_v54, %v14143_v54  ;;  %v14155_v32 = vadd.f32 %v2018_v55, %v1986_v37 }
 0x1a9   : > { %v14157_v31 = vadd.f32 %v2021_v13, %v1989_v28 }
 0x1aa   : > { %v14161_v36 = vadd.f32 %v2019_v30, %v1987_v63  ;;  %v14185_v42 = vpop.permute.xlu1 %12518 }
 0x1ab   : > { %v14197_v2 = vpop.permute.xlu0 %12513 }
 0x1ac   : > { %21185 = vst [vmem:[#allocation77_spill] sm:$0xff] %v14161_v36  ;;  %v14165_v60 = vpop.f32.mrb[64].mxu0 }
 0x1ad   : > { %21186 = vst [vmem:[#allocation78_spill] sm:$0xff] %v14165_v60  ;;  %v2056_v37 = vmul.f32 %v14165_v60, %v14165_v60  ;;  %v14173_v55 = vpop.f32.mrb[65].mxu0 }
 0x1ae   : > { %21187 = vst [vmem:[#allocation79_spill] sm:$0xff] %v14173_v55  ;;  %v2054_v13 = vmul.f32 %v14173_v55, %v14173_v55  ;;  %v14180_v5 = vpop.f32.mrb[66].mxu0 }
 0x1af   : > { %21188 = vst [vmem:[#allocation80_spill] sm:$0xff] %v14180_v5  ;;  %v14188_v54 = vadd.f32 %v2056_v37, %v13867_v12  ;;  %v2057_v30 = vmul.f32 %v14180_v5, %v14180_v5  ;;  %v14194_v28 = vpop.f32.mrb[67].mxu0  ;;  %v14219_v5 = vpop.permute.xlu1 %12528 }
 0x1b0   : > { %21189 = vst [vmem:[#allocation81_spill] sm:$0xff] %v14194_v28  ;;  %v14200_v35 = vadd.f32 %v2054_v13, %v13877_v21  ;;  %v2055_v0 = vmul.f32 %v14194_v28, %v14194_v28  ;;  %21190 = vst [vmem:[#allocation82_spill] sm:$0xff] %v14219_v5 }
 0x1b1   : > { %12699 = vrsqrt.f32 %v14188_v54  ;;  %v14209_v63 = vadd.f32 %v2057_v30, %v13883_v6  ;;  %v12681_v6 = vld [vmem:[%s20612_s9] sm:$0xff]   ;;  %vm2134_vm5 = vcmp.eq.f32.partialorder %v14188_v54, inf  ;;  %vm2136_vm6 = vcmp.eq.f32.partialorder %v14188_v54, 0.0 }
 0x1b2   : > { %v14214_v21 = vadd.f32 %v2055_v0, %v13885_v1  ;;  %12701 = vrsqrt.f32 %v14200_v35  ;;  %v14228_v1 = vpop.permute.xlu0 %12523  ;;  %11864 = vmatprep.subr.bf16.mxu0 %v12681_v6  ;;  %vm2120_vm7 = vcmp.eq.f32.partialorder %v14200_v35, inf  ;;  %vm2122_vm10 = vcmp.eq.f32.partialorder %v14200_v35, 0.0 }
 0x1b3   : > { %12703 = vrsqrt.f32 %v14209_v63  ;;  %21191 = vst [vmem:[#allocation83_spill] sm:$0xff] %v14228_v1  ;;  %11865 = vmatpush3.bf16.msra.mxu0 %v12681_v6  ;;  %v2137_v6 = vand.u32 2147483648, %v14188_v54  ;;  %vm2141_vm8 = vcmp.eq.f32.partialorder %v14209_v63, inf  ;;  %vm2143_vm9 = vcmp.eq.f32.partialorder %v14209_v63, 0.0 }
 0x1b4   : > { %v14230_v60 = vpop.f32.mrb[68].mxu0  ;;  %12705 = vrsqrt.f32 %v14214_v21  ;;  %vm2127_vm11 = vcmp.eq.f32.partialorder %v14214_v21, inf  ;;  %vm2129_vm1 = vcmp.eq.f32.partialorder %v14214_v21, 0.0 }
 0x1b5   : > { %21192 = vst [vmem:[#allocation84_spill] sm:$0xff] %v14230_v60  ;;  %v2060_v30 = vmul.f32 %v14230_v60, %v14230_v60  ;;  %v14238_v28 = vpop.f32.mrb[69].mxu0 }
 0x1b6   : > { %21193 = vst [vmem:[#allocation85_spill] sm:$0xff] %v14238_v28  ;;  %v2058_v12 = vmul.f32 %v14238_v28, %v14238_v28  ;;  %v14246_v55 = vpop.f32.mrb[70].mxu0 }
 0x1b7   : > { %21194 = vst [vmem:[#allocation86_spill] sm:$0xff] %v14246_v55  ;;  %v14251_v23 = vadd.f32 %v2060_v30, %v13909_v53  ;;  %v2061_v22 = vmul.f32 %v14246_v55, %v14246_v55  ;;  %v14257_v24 = vpop.f32.mrb[71].mxu0  ;;  %v2144_v53 = vand.u32 2147483648, %v14209_v63 }
 0x1b8   : > { %21195 = vst [vmem:[#allocation87_spill] sm:$0xff] %v14257_v24  ;;  %v14261_v0 = vadd.f32 %v2058_v12, %v13917_v41  ;;  %v2059_v37 = vmul.f32 %v14257_v24, %v14257_v24 }
 0x1b9   : > { %12707 = vrsqrt.f32 %v14251_v23  ;;  %v14270_v30 = vadd.f32 %v2061_v22, %v13919_v43  ;;  %v2123_v22 = vand.u32 2147483648, %v14200_v35  ;;  %vm2162_vm12 = vcmp.eq.f32.partialorder %v14251_v23, inf }
 0x1ba   : > { %12709 = vrsqrt.f32 %v14261_v0  ;;  %v14276_v41 = vadd.f32 %v2059_v37, %v13921_v34  ;;  %v2165_v27 = vand.u32 2147483648, %v14251_v23  ;;  %vm2148_vm13 = vcmp.eq.f32.partialorder %v14261_v0, inf }
 0x1bb   : > { %v12700_v12 = vpop.eup %12699  ;;  %12711 = vrsqrt.f32 %v14270_v30  ;;  %vm2164_vm14 = vcmp.eq.f32.partialorder %v14251_v23, 0.0  ;;  %vm2150_vm15 = vcmp.eq.f32.partialorder %v14261_v0, 0.0  ;;  %vm2169_vm0 = vcmp.eq.f32.partialorder %v14270_v30, inf }
 0x1bc   : > { %v12702_v43 = vpop.eup %12701  ;;  %12713 = vrsqrt.f32 %v14276_v41  ;;  %v14285_v13 = vpop.f32.mrb[72].mxu0  ;;  %v2133_v34 = vmul.f32 %v12700_v12, %v14188_v54  ;;  %vm2155_vm2 = vcmp.eq.f32.partialorder %v14276_v41, inf  ;;  %vm2157_vm3 = vcmp.eq.f32.partialorder %v14276_v41, 0.0 }
 0x1bd   : > { %21196 = vst [vmem:[#allocation88_spill] sm:$0xff] %v14285_v13  ;;  %v12704_v60 = vpop.eup %12703  ;;  %v2064_v55 = vmul.f32 %v14285_v13, %v14285_v13  ;;  %v14292_v28 = vpop.f32.mrb[73].mxu0  ;;  %v2119_v24 = vmul.f32 %v12702_v43, %v14200_v35  ;;  %v21202_v13 = vunpack.i.l.bf16 %v14071_v48  ;;  %v21203_v5 = vand.u32 2147483648, %v14261_v0 }
 0x1be   : > { %21197 = vst [vmem:[#allocation89_spill] sm:$0xff] %v14292_v28  ;;  %v2135_v12 = vsel %vm2134_vm5, %v14188_v54, %v2133_v34  ;;  %v2140_v25 = vmul.f32 %v12704_v60, %v14209_v63  ;;  %v2062_v37 = vmul.f32 %v14292_v28, %v14292_v28  ;;  %v14303_v16 = vpop.f32.mrb[74].mxu0  ;;  %v12706_v43 = vpop.eup %12705  ;;  %v21200_v54 = vunpack.i.l.bf16 %v14101_v26 }
 0x1bf   : > { %21198 = vst [vmem:[#allocation90_spill] sm:$0xff] %v14303_v16  ;;  %v14309_v14 = vadd.f32 %v2064_v55, %v13945_v49  ;;  %v2138_v19 = vsel %vm2136_vm6, %v2137_v6, %v2135_v12  ;;  %v2065_v60 = vmul.f32 %v14303_v16, %v14303_v16  ;;  %v14317_v1 = vpop.f32.mrb[75].mxu0  ;;  %vm2645_vm5 = vcmask 392192  }
 0x1c0   : > { %21199 = vst [vmem:[#allocation91_spill] sm:$0xff] %v14317_v1  ;;  %v2142_v49 = vsel %vm2141_vm8, %v14209_v63, %v2140_v25  ;;  %v14328_v55 = vsel %vm2572_vm4, %v2138_v19, %v21200_v54  ;;  %v14331_v6 = vadd.f32 %v2062_v37, %v13953_v17  ;;  %v2063_v12 = vmul.f32 %v14317_v1, %v14317_v1 }
 0x1c1   : > { %12715 = vrsqrt.f32 %v14309_v14  ;;  %v2145_v34 = vsel %vm2143_vm9, %v2144_v53, %v2142_v49  ;;  %v14340_v25 = vadd.f32 %v2065_v60, %v13955_v3  ;;  %v21201_v54 = vunpack.i.h.bf16 %v14101_v26 }
 0x1c2   : > { %12717 = vrsqrt.f32 %v14331_v6  ;;  %v14351_v37 = vadd.f32 %v2063_v12, %v13957_v11  ;;  %v2121_v3 = vsel %vm2120_vm7, %v14200_v35, %v2119_v24  ;;  %v2126_v53 = vmul.f32 %v12706_v43, %v14214_v21 }
 0x1c3   : > { %v14347_v17 = vsel %vm2572_vm4, %v2145_v34, %v21201_v54  ;;  %v12708_v63 = vpop.eup %12707  ;;  %12719 = vrsqrt.f32 %v14340_v25  ;;  %v2124_v26 = vsel %vm2122_vm10, %v2123_v22, %v2121_v3  ;;  %v2158_v34 = vand.u32 2147483648, %v14276_v41 }
 0x1c4   : > { %v2612_v60 = vpack.c.bf16 %v14347_v17, %v14328_v55  ;;  %v12710_v11 = vpop.eup %12709  ;;  %v14364_v49 = vpop.f32.mrb[76].mxu0  ;;  %v2161_v12 = vmul.f32 %v12708_v63, %v14251_v23  ;;  %vm2171_vm6 = vcmp.eq.f32.partialorder %v14270_v30, 0.0  ;;  %v2172_v24 = vand.u32 2147483648, %v14270_v30 }
 0x1c5   : > { %v12712_v54 = vpop.eup %12711  ;;  %12721 = vrsqrt.f32 %v14351_v37  ;;  %v2147_v35 = vmul.f32 %v12710_v11, %v14261_v0  ;;  %v2068_v22 = vmul.f32 %v14364_v49, %v14364_v49  ;;  %v14373_v43 = vpop.f32.mrb[77].mxu0  ;;  %v2128_v55 = vsel %vm2127_vm11, %v14214_v21, %v2126_v53 }
 0x1c6   : > { %v12714_v17 = vpop.eup %12713  ;;  %v2163_v3 = vsel %vm2162_vm12, %v14251_v23, %v2161_v12  ;;  %v2168_v63 = vmul.f32 %v12712_v54, %v14270_v30  ;;  %v2066_v19 = vmul.f32 %v14373_v43, %v14373_v43  ;;  %v14384_v11 = vpop.f32.mrb[78].mxu0  ;;  %v2573_v16 = vsel %vm2572_vm4, %v2124_v26, %v21202_v13 }
 0x1c7   : > { %v2149_v53 = vsel %vm2148_vm13, %v14261_v0, %v2147_v35  ;;  %v2154_v28 = vmul.f32 %v12714_v17, %v14276_v41  ;;  %v14394_v1 = vadd.f32 %v2068_v22, %v13981_v20  ;;  %v2166_v12 = vsel %vm2164_vm14, %v2165_v27, %v2163_v3  ;;  %v14398_v54 = vpop.f32.mrb[79].mxu0 }
 0x1c8   : > { %v2152_v36 = vsel %vm2150_vm15, %v21203_v5, %v2149_v53  ;;  %v2170_v13 = vsel %vm2169_vm0, %v14270_v30, %v2168_v63  ;;  %v14408_v26 = vadd.f32 %v2066_v19, %v13989_v61  ;;  %v21204_v20 = vand.u32 2147483648, %v14214_v21 }
 0x1c9   : > { %v2156_v27 = vsel %vm2155_vm2, %v14276_v41, %v2154_v28  ;;  %v21205_v35 = vunpack.i.l.bf16 %v14091_v50  ;;  %vm2190_vm7 = vcmp.eq.f32.partialorder %v14309_v14, inf  ;;  %vm2192_vm8 = vcmp.eq.f32.partialorder %v14309_v14, 0.0 }
 0x1ca   : > { %v2131_v23 = vsel %vm2129_vm1, %v21204_v20, %v2128_v55  ;;  %v21206_v61 = vunpack.i.l.bf16 %v14067_v52  ;;  %12723 = vrsqrt.f32 %v14394_v1  ;;  %v2173_v21 = vsel %vm2171_vm6, %v2172_v24, %v2170_v13 }
 0x1cb   : > { %v14420_v5 = vsel %vm2572_vm4, %v2166_v12, %v21205_v35  ;;  %v2069_v28 = vmul.f32 %v14384_v11, %v14384_v11  ;;  %v12716_v19 = vpop.eup %12715  ;;  %v2159_v22 = vsel %vm2157_vm3, %v2158_v34, %v2156_v27  ;;  %v2898_v55 = vpack.c.bf16 %v14384_v11, %v14364_v49 }
 0x1cc   : > { %v14427_v0 = vsel %vm2572_vm4, %v2152_v36, %v21206_v61  ;;  %v21207_v17 = vunpack.i.h.bf16 %v14071_v48  ;;  %v2067_v3 = vmul.f32 %v14398_v54, %v14398_v54  ;;  %v12718_v63 = vpop.eup %12717  ;;  %v2897_v53 = vpack.c.bf16 %v14398_v54, %v14373_v43  ;;  %v14448_v41 = vpop.f32.mrb[80].mxu0 }
 0x1cd   : > { %v14444_v30 = vadd.f32 %v2069_v28, %v13991_v4  ;;  %v2189_v34 = vmul.f32 %v12716_v19, %v14309_v14  ;;  %v12720_v12 = vpop.eup %12719  ;;  %12725 = vrsqrt.f32 %v14408_v26  ;;  %v2072_v13 = vmul.f32 %v14448_v41, %v14448_v41  ;;  %v14458_v20 = vpop.f32.mrb[81].mxu0 }
 0x1ce   : > { %v2574_v36 = vsel %vm2572_vm4, %v2131_v23, %v21207_v17  ;;  %v14453_v48 = vadd.f32 %v2067_v3, %v13993_v10  ;;  %v2193_v4 = vand.u32 2147483648, %v14309_v14  ;;  %v2196_v23 = vmul.f32 %v12720_v12, %v14340_v25  ;;  %v14470_v27 = vpop.f32.mrb[82].mxu0 }
 0x1cf   : > { %v2611_v24 = vpack.c.bf16 %v2574_v36, %v2573_v16  ;;  %v12680_v16 = vld [vmem:[%s20611_s8 + $0x8] sm:$0xff]   ;;  %12727 = vrsqrt.f32 %v14444_v30  ;;  %v2191_v10 = vsel %vm2190_vm7, %v14309_v14, %v2189_v34  ;;  %vm2197_vm9 = vcmp.eq.f32.partialorder %v14340_v25, inf  ;;  %v12722_v35 = vpop.eup %12721  ;;  %v14480_v17 = vpop.f32.mrb[83].mxu0 }
 0x1d0   : > { %v14474_v61 = vadd.f32 %v2072_v13, %v14017_v8  ;;  %v2194_v28 = vsel %vm2192_vm8, %v2193_v4, %v2191_v10  ;;  %vm2199_vm10 = vcmp.eq.f32.partialorder %v14340_v25, 0.0  ;;  %v2200_v19 = vand.u32 2147483648, %v14340_v25 }
 0x1d1   : > { %11732 = vmatprep.mubr.msk.bf16.mxu1 %vm2645_vm5, %v2611_v24  ;;  %12729 = vrsqrt.f32 %v14453_v48  ;;  %v2198_v36 = vsel %vm2197_vm9, %v14340_v25, %v2196_v23  ;;  %v2070_v3 = vmul.f32 %v14458_v20, %v14458_v20  ;;  %v21208_v14 = vunpack.i.h.bf16 %v14067_v52 }
 0x1d2   : > { %11733 = vmatmul.mubr.msk.bf16.vlgmr.msra.gmra.mrb[0].mxu1 %vm2645_vm5, %v2612_v60  ;;  %v2175_v60 = vmul.f32 %v12718_v63, %v14331_v6  ;;  %v21209_v24 = vunpack.i.h.bf16 %v14091_v50  ;;  %v2201_v12 = vsel %vm2199_vm10, %v2200_v19, %v2198_v36  ;;  %v21210_v13 = vunpack.i.l.bf16 %v14115_v51 }
 0x1d3   : > { %11765 = vmatpush3.bf16.msra.mxu1 %v14034_v59  ;;  %v2578_v8 = vsel %vm2572_vm4, %v2159_v22, %v21208_v14  ;;  %12731 = vrsqrt.f32 %v14474_v61  ;;  %v14501_v63 = vadd.f32 %v2070_v3, %v14025_v33  ;;  %vm2176_vm11 = vcmp.eq.f32.partialorder %v14331_v6, inf }
 0x1d4   : > { %v2580_v34 = vsel %vm2572_vm4, %v2173_v21, %v21209_v24  ;;  %v14497_v25 = vsel %vm2572_vm4, %v2194_v28, %v21210_v13  ;;  %11766 = vmatprep.subr.bf16.mxu1 %v12680_v16  ;;  %vm2178_vm12 = vcmp.eq.f32.partialorder %v14331_v6, 0.0  ;;  %v21211_v52 = vunpack.i.h.bf16 %v14115_v51  ;;  %v12724_v4 = vpop.eup %12723  ;;  %v14519_v10 = vpop.f32.mrb[84].mxu0 }
 0x1d5   : > { %v2177_v50 = vsel %vm2176_vm11, %v14331_v6, %v2175_v60  ;;  %v2179_v21 = vand.u32 2147483648, %v14331_v6  ;;  %v2182_v22 = vmul.f32 %v12722_v35, %v14351_v37  ;;  %vm2183_vm13 = vcmp.eq.f32.partialorder %v14351_v37, inf  ;;  %v14526_v36 = vpop.f32.mrb[85].mxu0 }
 0x1d6   : > { %v14508_v59 = vsel %vm2572_vm4, %v2201_v12, %v21211_v52  ;;  %vm2185_vm14 = vcmp.eq.f32.partialorder %v14351_v37, 0.0  ;;  %v2073_v33 = vmul.f32 %v14470_v27, %v14470_v27  ;;  %v2900_v51 = vpack.c.bf16 %v14470_v27, %v14448_v41  ;;  %v14535_v14 = vpop.f32.mrb[86].mxu0 }
 0x1d7   : > { %11767 = vmatpush3.bf16.msra.mxu1 %v12680_v16  ;;  %v2184_v23 = vsel %vm2183_vm13, %v14351_v37, %v2182_v22  ;;  %v2186_v28 = vand.u32 2147483648, %v14351_v37  ;;  %v2613_v35 = vpack.c.bf16 %v2578_v8, %v14427_v0  ;;  %v2071_v19 = vmul.f32 %v14480_v17, %v14480_v17  ;;  %v12726_v24 = vpop.eup %12725  ;;  %v14546_v13 = vpop.f32.mrb[87].mxu0 }
 0x1d8   : > { %12733 = vrsqrt.f32 %v14501_v63  ;;  %v14530_v3 = vadd.f32 %v2073_v33, %v14027_v44  ;;  %v2899_v60 = vpack.c.bf16 %v14480_v17, %v14458_v20  ;;  %v2614_v16 = vpack.c.bf16 %v2580_v34, %v14420_v5 }
 0x1d9   : > { %v2180_v0 = vsel %vm2178_vm12, %v2179_v21, %v2177_v50  ;;  %11736 = vmatprep.mubr.msk.bf16.mxu1 %vm2645_vm5, %v2613_v35  ;;  %v14541_v8 = vadd.f32 %v2071_v19, %v14029_v46  ;;  %v2076_v44 = vmul.f32 %v14519_v10, %v14519_v10  ;;  %v2217_v12 = vmul.f32 %v12724_v4, %v14394_v1  ;;  %v12728_v52 = vpop.eup %12727 }
 0x1da   : > { %v2187_v5 = vsel %vm2185_vm14, %v2186_v28, %v2184_v23  ;;  %12735 = vrsqrt.f32 %v14530_v3  ;;  %11737 = vmatmul.mubr.msk.bf16.gmra.mrb[4].mxu1 %vm2645_vm5, %v2614_v16  ;;  %vm2218_vm15 = vcmp.eq.f32.partialorder %v14394_v1, inf  ;;  %v2221_v46 = vand.u32 2147483648, %v14394_v1 }
 0x1db   : > { %v14555_v6 = vadd.f32 %v2076_v44, %v14059_v15  ;;  %v2219_v34 = vsel %vm2218_vm15, %v14394_v1, %v2217_v12  ;;  %vm2220_vm0 = vcmp.eq.f32.partialorder %v14394_v1, 0.0  ;;  %v2224_v50 = vmul.f32 %v12728_v52, %v14444_v30  ;;  %v12730_v21 = vpop.eup %12729 }
 0x1dc   : > { %v21212_v37 = vunpack.i.l.bf16 %v14119_v7  ;;  %v2222_v4 = vsel %vm2220_vm0, %v2221_v46, %v2219_v34  ;;  %vm2225_vm1 = vcmp.eq.f32.partialorder %v14444_v30, inf  ;;  %v2228_v33 = vand.u32 2147483648, %v14444_v30 }
 0x1dd   : > { %12737 = vrsqrt.f32 %v14541_v8  ;;  %v2226_v15 = vsel %vm2225_vm1, %v14444_v30, %v2224_v50  ;;  %vm2227_vm2 = vcmp.eq.f32.partialorder %v14444_v30, 0.0  ;;  %v2074_v1 = vmul.f32 %v14526_v36, %v14526_v36  ;;  %v12732_v23 = vpop.eup %12731 }
 0x1de   : > { %v2581_v22 = vsel %vm2572_vm4, %v2180_v0, %v21212_v37  ;;  %v21213_v28 = vunpack.i.h.bf16 %v14119_v7  ;;  %12739 = vrsqrt.f32 %v14555_v6  ;;  %v2229_v19 = vsel %vm2227_vm2, %v2228_v33, %v2226_v15  ;;  %v14575_v0 = vpop.f32.mrb[88].mxu0 }
 0x1df   : > { %v2203_v16 = vmul.f32 %v12726_v24, %v14408_v26  ;;  %v21214_v44 = vunpack.i.l.bf16 %v14135_v57  ;;  %v14583_v30 = vadd.f32 %v2074_v1, %v14069_v45  ;;  %vm2204_vm3 = vcmp.eq.f32.partialorder %v14408_v26, inf  ;;  %v14587_v52 = vpop.f32.mrb[89].mxu0 }
 0x1e0   : > { %v2582_v35 = vsel %vm2572_vm4, %v2187_v5, %v21213_v28  ;;  %v2210_v7 = vmul.f32 %v12730_v21, %v14453_v48  ;;  %v21215_v5 = vunpack.i.h.bf16 %v14135_v57  ;;  %vm2206_vm6 = vcmp.eq.f32.partialorder %v14408_v26, 0.0  ;;  %v14597_v34 = vpop.f32.mrb[90].mxu0 }
 0x1e1   : > { %v14580_v12 = vsel %vm2572_vm4, %v2222_v4, %v21214_v44  ;;  %v2205_v46 = vsel %vm2204_vm3, %v14408_v26, %v2203_v16  ;;  %vm2211_vm7 = vcmp.eq.f32.partialorder %v14453_v48, inf  ;;  %v2207_v45 = vand.u32 2147483648, %v14408_v26  ;;  %v14604_v21 = vpop.f32.mrb[91].mxu0 }
 0x1e2   : > { %v14592_v24 = vsel %vm2572_vm4, %v2229_v19, %v21215_v5  ;;  %v2212_v50 = vsel %vm2211_vm7, %v14453_v48, %v2210_v7  ;;  %vm2213_vm8 = vcmp.eq.f32.partialorder %v14453_v48, 0.0  ;;  %v2077_v57 = vmul.f32 %v14535_v14, %v14535_v14  ;;  %v12734_v37 = vpop.eup %12733 }
 0x1e3   : > { %12741 = vrsqrt.f32 %v14583_v30  ;;  %v2214_v4 = vand.u32 2147483648, %v14453_v48  ;;  %v2902_v33 = vpack.c.bf16 %v14535_v14, %v14519_v10  ;;  %v2615_v15 = vpack.c.bf16 %v2582_v35, %v2581_v22 }
 0x1e4   : > { %v2208_v1 = vsel %vm2206_vm6, %v2207_v45, %v2205_v46  ;;  %v14611_v26 = vadd.f32 %v2077_v57, %v14073_v47  ;;  %v2075_v28 = vmul.f32 %v14546_v13, %v14546_v13  ;;  %v2901_v19 = vpack.c.bf16 %v14546_v13, %v14526_v36  ;;  %v12736_v16 = vpop.eup %12735  ;;  %v12682_v47 = vld [vmem:[%s20612_s9 + $0x8] sm:$0xff]   ;;  %v14639_v46 = vpop.f32.mrb[92].mxu0 }
 0x1e5   : > { %v2215_v44 = vsel %vm2213_vm8, %v2214_v4, %v2212_v50  ;;  %11740 = vmatprep.mubr.msk.bf16.mxu1 %vm2645_vm5, %v2615_v15  ;;  %v2616_v48 = vpack.c.bf16 %v14508_v59, %v14497_v25  ;;  %v2080_v22 = vmul.f32 %v14575_v0, %v14575_v0  ;;  %v2245_v35 = vmul.f32 %v12732_v23, %v14474_v61  ;;  %v14646_v4 = vpop.f32.mrb[93].mxu0 }
 0x1e6   : > { %12743 = vrsqrt.f32 %v14611_v26  ;;  %v14628_v7 = vadd.f32 %v2075_v28, %v14075_v29  ;;  %vm2246_vm9 = vcmp.eq.f32.partialorder %v14474_v61, inf  ;;  %v2249_v5 = vand.u32 2147483648, %v14474_v61  ;;  %11866 = vmatprep.subr.bf16.mxu0 %v12682_v47 }
 0x1e7   : > { %11741 = vmatmul.mubr.msk.bf16.gmra.mrb[8].mxu1 %vm2645_vm5, %v2616_v48  ;;  %v14634_v25 = vadd.f32 %v2080_v22, %v14103_v56  ;;  %v2247_v59 = vsel %vm2246_vm9, %v14474_v61, %v2245_v35  ;;  %vm2248_vm10 = vcmp.eq.f32.partialorder %v14474_v61, 0.0  ;;  %v2252_v23 = vmul.f32 %v12736_v16, %v14530_v3  ;;  %v12738_v29 = vpop.eup %12737  ;;  %11867 = vmatpush3.bf16.msra.mxu0 %v12682_v47  ;;  %v14653_v16 = vpop.f32.mrb[94].mxu0 }
 0x1e8   : > { %v21216_v45 = vunpack.i.l.bf16 %v14145_v9  ;;  %v2250_v57 = vsel %vm2248_vm10, %v2249_v5, %v2247_v59  ;;  %vm2253_vm11 = vcmp.eq.f32.partialorder %v14530_v3, inf  ;;  %v2256_v56 = vand.u32 2147483648, %v14530_v3  ;;  %v12740_v15 = vpop.eup %12739  ;;  %v14660_v47 = vpop.f32.mrb[95].mxu0 }
 0x1e9   : > { %12745 = vrsqrt.f32 %v14628_v7  ;;  %v2254_v61 = vsel %vm2253_vm11, %v14530_v3, %v2252_v23  ;;  %vm2255_vm12 = vcmp.eq.f32.partialorder %v14530_v3, 0.0  ;;  %v2078_v28 = vmul.f32 %v14587_v52, %v14587_v52 }
 0x1ea   : > { %v2585_v50 = vsel %vm2572_vm4, %v2208_v1, %v21216_v45  ;;  %v21217_v1 = vunpack.i.h.bf16 %v14145_v9  ;;  %12747 = vrsqrt.f32 %v14634_v25  ;;  %v2257_v22 = vsel %vm2255_vm12, %v2256_v56, %v2254_v61 }
 0x1eb   : > { %v2231_v35 = vmul.f32 %v12734_v37, %v14501_v63  ;;  %v21218_v5 = vunpack.i.l.bf16 %v14159_v58  ;;  %v14668_v59 = vadd.f32 %v2078_v28, %v14111_v40  ;;  %vm2232_vm13 = vcmp.eq.f32.partialorder %v14501_v63, inf }
 0x1ec   : > { %v2586_v48 = vsel %vm2572_vm4, %v2215_v44, %v21217_v1  ;;  %v2238_v9 = vmul.f32 %v12738_v29, %v14541_v8  ;;  %v21219_v44 = vunpack.i.h.bf16 %v14159_v58  ;;  %vm2234_vm14 = vcmp.eq.f32.partialorder %v14501_v63, 0.0 }
 0x1ed   : > { %v14665_v3 = vsel %vm2572_vm4, %v2250_v57, %v21218_v5  ;;  %v2233_v37 = vsel %vm2232_vm13, %v14501_v63, %v2231_v35  ;;  %vm2239_vm15 = vcmp.eq.f32.partialorder %v14541_v8, inf  ;;  %v12742_v45 = vpop.eup %12741  ;;  %v2235_v57 = vand.u32 2147483648, %v14501_v63 }
 0x1ee   : > { %v14675_v23 = vsel %vm2572_vm4, %v2257_v22, %v21219_v44  ;;  %v2240_v40 = vsel %vm2239_vm15, %v14541_v8, %v2238_v9  ;;  %vm2241_vm0 = vcmp.eq.f32.partialorder %v14541_v8, 0.0  ;;  %v2081_v29 = vmul.f32 %v14597_v34, %v14597_v34 }
 0x1ef   : > { %12749 = vrsqrt.f32 %v14668_v59  ;;  %v2242_v58 = vand.u32 2147483648, %v14541_v8  ;;  %v2904_v56 = vpack.c.bf16 %v14597_v34, %v14575_v0  ;;  %v2617_v61 = vpack.c.bf16 %v2586_v48, %v2585_v50 }
 0x1f0   : > { %v2236_v28 = vsel %vm2234_vm14, %v2235_v57, %v2233_v37  ;;  %v14690_v1 = vadd.f32 %v2081_v29, %v14113_v39  ;;  %v2079_v63 = vmul.f32 %v14604_v21, %v14604_v21  ;;  %v2903_v22 = vpack.c.bf16 %v14604_v21, %v14587_v52  ;;  %v12744_v35 = vpop.eup %12743 }
 0x1f1   : > { %v2243_v5 = vsel %vm2241_vm0, %v2242_v58, %v2240_v40  ;;  %11744 = vmatprep.mubr.msk.bf16.mxu1 %vm2645_vm5, %v2617_v61  ;;  %v2618_v8 = vpack.c.bf16 %v14592_v24, %v14580_v12  ;;  %v2084_v50 = vmul.f32 %v14639_v46, %v14639_v46  ;;  %v2273_v48 = vmul.f32 %v12740_v15, %v14555_v6 }
 0x1f2   : > { %12751 = vrsqrt.f32 %v14690_v1  ;;  %v14704_v39 = vadd.f32 %v2079_v63, %v14117_v18  ;;  %vm2274_vm1 = vcmp.eq.f32.partialorder %v14555_v6, inf  ;;  %v2277_v9 = vand.u32 2147483648, %v14555_v6 }
 0x1f3   : > { %11745 = vmatmul.mubr.msk.bf16.gmra.mrb[12].mxu1 %vm2645_vm5, %v2618_v8  ;;  %v14710_v44 = vadd.f32 %v2084_v50, %v14147_v62  ;;  %v2275_v12 = vsel %vm2274_vm1, %v14555_v6, %v2273_v48  ;;  %vm2276_vm2 = vcmp.eq.f32.partialorder %v14555_v6, 0.0  ;;  %v2280_v24 = vmul.f32 %v12744_v35, %v14611_v26  ;;  %v12746_v15 = vpop.eup %12745 }
 0x1f4   : > { %v21220_v37 = vunpack.i.l.bf16 %v14163_v38  ;;  %12753 = vrsqrt.f32 %v14704_v39  ;;  %v2278_v57 = vsel %vm2276_vm2, %v2277_v9, %v2275_v12  ;;  %vm2281_vm3 = vcmp.eq.f32.partialorder %v14611_v26, inf  ;;  %v12748_v40 = vpop.eup %12747 }
 0x1f5   : > { %v21221_v62 = vunpack.i.h.bf16 %v14163_v38  ;;  %v2282_v58 = vsel %vm2281_vm3, %v14611_v26, %v2280_v24  ;;  %v2284_v6 = vand.u32 2147483648, %v14611_v26  ;;  %v2082_v61 = vmul.f32 %v14646_v4, %v14646_v4 }
 0x1f6   : > { %v2589_v18 = vsel %vm2572_vm4, %v2236_v28, %v21220_v37  ;;  %12755 = vrsqrt.f32 %v14710_v44  ;;  %vm2283_vm6 = vcmp.eq.f32.partialorder %v14611_v26, 0.0  ;;  %v21222_v28 = vunpack.i.l.bf16 %v14185_v42 }
 0x1f7   : > { %v2590_v29 = vsel %vm2572_vm4, %v2243_v5, %v21221_v62  ;;  %v2259_v38 = vmul.f32 %v12742_v45, %v14583_v30  ;;  %v2285_v35 = vsel %vm2283_vm6, %v2284_v6, %v2282_v58  ;;  %v14736_v5 = vadd.f32 %v2082_v61, %v14155_v32 }
 0x1f8   : > { %v14732_v63 = vsel %vm2572_vm4, %v2278_v57, %v21222_v28  ;;  %vm2260_vm7 = vcmp.eq.f32.partialorder %v14583_v30, inf  ;;  %v2266_v8 = vmul.f32 %v12746_v15, %v14628_v7  ;;  %vm2262_vm8 = vcmp.eq.f32.partialorder %v14583_v30, 0.0 }
 0x1f9   : > { %v2261_v50 = vsel %vm2260_vm7, %v14583_v30, %v2259_v38  ;;  %vm2267_vm9 = vcmp.eq.f32.partialorder %v14628_v7, inf  ;;  %v2270_v26 = vand.u32 2147483648, %v14628_v7  ;;  %v12750_v48 = vpop.eup %12749  ;;  %12757 = vrsqrt.f32 %v14736_v5 }
 0x1fa   : > { %v2268_v45 = vsel %vm2267_vm9, %v14628_v7, %v2266_v8  ;;  %vm2269_vm10 = vcmp.eq.f32.partialorder %v14628_v7, 0.0  ;;  %v2085_v32 = vmul.f32 %v14653_v16, %v14653_v16  ;;  %v2263_v9 = vand.u32 2147483648, %v14583_v30 }
 0x1fb   : > { %v2271_v12 = vsel %vm2269_vm10, %v2270_v26, %v2268_v45  ;;  %v2906_v24 = vpack.c.bf16 %v14653_v16, %v14639_v46  ;;  %v2619_v15 = vpack.c.bf16 %v2590_v29, %v2589_v18  ;;  %v21223_v37 = vunpack.i.h.bf16 %v14185_v42  ;;  %v21225_v29 = vld [vmem:[#allocation77_spill] sm:$0xff] }
 0x1fc   : > { %v14756_v62 = vadd.f32 %v2085_v32, %v14157_v31  ;;  %v2083_v7 = vmul.f32 %v14660_v47, %v14660_v47  ;;  %v2905_v58 = vpack.c.bf16 %v14660_v47, %v14646_v4  ;;  %v12752_v6 = vpop.eup %12751  ;;  %v2264_v61 = vsel %vm2262_vm8, %v2263_v9, %v2261_v50 }
 0x1fd   : > { %v2596_v57 = vsel %vm2572_vm4, %v2285_v35, %v21223_v37  ;;  %v21224_v28 = vunpack.i.h.bf16 %v14197_v2  ;;  %11748 = vmatprep.mubr.msk.bf16.mxu1 %vm2645_vm5, %v2619_v15  ;;  %v2620_v31 = vpack.c.bf16 %v14675_v23, %v14665_v3  ;;  %v2301_v42 = vmul.f32 %v12748_v40, %v14634_v25  ;;  %v12539_v37 = vpop.permute.xlu1 %12538 }
 0x1fe   : > { %12759 = vrsqrt.f32 %v14756_v62  ;;  %v14773_v38 = vadd.f32 %v2083_v7, %v21225_v29  ;;  %vm2302_vm11 = vcmp.eq.f32.partialorder %v14634_v25, inf  ;;  %v2308_v30 = vmul.f32 %v12752_v6, %v14690_v1  ;;  %v12754_v35 = vpop.eup %12753  ;;  %v12534_v6 = vpop.permute.xlu0 %12533 }
 0x1ff   : > { %v2594_v18 = vsel %vm2572_vm4, %v2271_v12, %v21224_v28  ;;  %11749 = vmatmul.mubr.msk.bf16.gmra.mrb[16].mxu1 %vm2645_vm5, %v2620_v31  ;;  %v2303_v8 = vsel %vm2302_vm11, %v14634_v25, %v2301_v42  ;;  %vm2304_vm12 = vcmp.eq.f32.partialorder %v14634_v25, 0.0  ;;  %v2305_v3 = vand.u32 2147483648, %v14634_v25 }
 0x200   : > { %vm2309_vm13 = vcmp.eq.f32.partialorder %v14690_v1, inf  ;;  %12761 = vrsqrt.f32 %v14773_v38  ;;  %v2312_v40 = vand.u32 2147483648, %v14690_v1  ;;  %v2287_v50 = vmul.f32 %v12750_v48, %v14668_v59  ;;  %v12756_v26 = vpop.eup %12755 }
 0x201   : > { %v2310_v23 = vsel %vm2309_vm13, %v14690_v1, %v2308_v30  ;;  %v21226_v45 = vunpack.i.l.bf16 %v14197_v2  ;;  %v2306_v9 = vsel %vm2304_vm12, %v2305_v3, %v2303_v8  ;;  %vm2311_vm14 = vcmp.eq.f32.partialorder %v14690_v1, 0.0 }
 0x202   : > { %vm2288_vm15 = vcmp.eq.f32.partialorder %v14668_v59, inf  ;;  %v2313_v25 = vsel %vm2311_vm14, %v2312_v40, %v2310_v23  ;;  %vm2290_vm0 = vcmp.eq.f32.partialorder %v14668_v59, 0.0  ;;  %v2294_v15 = vmul.f32 %v12754_v35, %v14704_v39  ;;  %v21227_v35 = vld [vmem:[#allocation82_spill] sm:$0xff] }
 0x203   : > { %v2593_v32 = vsel %vm2572_vm4, %v2264_v61, %v21226_v45  ;;  %v2289_v12 = vsel %vm2288_vm15, %v14668_v59, %v2287_v50  ;;  %v2291_v48 = vand.u32 2147483648, %v14668_v59  ;;  %vm2295_vm1 = vcmp.eq.f32.partialorder %v14704_v39, inf  ;;  %v12758_v61 = vpop.eup %12757 }
 0x204   : > { %v2298_v2 = vand.u32 2147483648, %v14704_v39  ;;  %v2621_v7 = vpack.c.bf16 %v2594_v18, %v2593_v32  ;;  %v2296_v1 = vsel %vm2295_vm1, %v14704_v39, %v2294_v15  ;;  %vm2297_vm2 = vcmp.eq.f32.partialorder %v14704_v39, 0.0 }
 0x205   : > { %v2622_v28 = vpack.c.bf16 %v2596_v57, %v14732_v63  ;;  %v2329_v31 = vmul.f32 %v12756_v26, %v14710_v44  ;;  %v2292_v42 = vsel %vm2290_vm0, %v2291_v48, %v2289_v12  ;;  %v12541_v59 = vunpack.i.h.bf16 %v12539_v37  ;;  %v21230_v57 = vld [vmem:[#allocation83_spill] sm:$0xff] }
 0x206   : > { %v2299_v29 = vsel %vm2297_vm2, %v2298_v2, %v2296_v1  ;;  %11752 = vmatprep.mubr.msk.bf16.mxu1 %vm2645_vm5, %v2621_v7  ;;  %v12540_v30 = vunpack.i.l.bf16 %v12539_v37  ;;  %v21228_v8 = vunpack.i.l.bf16 %v21227_v35  ;;  %vm2330_vm3 = vcmp.eq.f32.partialorder %v14710_v44, inf }
 0x207   : > { %v12536_v3 = vunpack.i.h.bf16 %v12534_v6  ;;  %v12535_v23 = vunpack.i.l.bf16 %v12534_v6  ;;  %v21229_v39 = vunpack.i.h.bf16 %v21227_v35  ;;  %v21231_v40 = vunpack.i.h.bf16 %v21230_v57  ;;  %11753 = vmatmul.mubr.msk.bf16.gmra.mrb[20].mxu1 %vm2645_vm5, %v2622_v28 }
 0x208   : > { %v2599_v18 = vsel %vm2572_vm4, %v2306_v9, %v21228_v8  ;;  %v2331_v26 = vsel %vm2330_vm3, %v14710_v44, %v2329_v31  ;;  %v2315_v45 = vmul.f32 %v12758_v61, %v14736_v5  ;;  %v12760_v32 = vpop.eup %12759  ;;  %v21232_v9 = vunpack.i.l.bf16 %v21230_v57 }
 0x209   : > { %v2600_v63 = vsel %vm2572_vm4, %v2313_v25, %v21229_v39  ;;  %v2598_v50 = vsel %vm2572_vm4, %v2299_v29, %v21231_v40  ;;  %vm2332_vm6 = vcmp.eq.f32.partialorder %v14710_v44, 0.0  ;;  %v2333_v15 = vand.u32 2147483648, %v14710_v44  ;;  %v21234_v40 = vld [vmem:[#allocation14_spill] sm:$0xff] }
 0x20a   : > { %v2597_v12 = vsel %vm2572_vm4, %v2292_v42, %v21232_v9  ;;  %vm2316_vm7 = vcmp.eq.f32.partialorder %v14736_v5, inf  ;;  %v2336_v25 = vmul.f32 %v12760_v32, %v14756_v62  ;;  %vm2337_vm8 = vcmp.eq.f32.partialorder %v14756_v62, inf  ;;  %v12762_v2 = vpop.eup %12761  ;;  %v21242_v9 = vld [vmem:[#allocation19_spill] sm:$0xff] }
 0x20b   : > { %v2340_v37 = vand.u32 2147483648, %v14756_v62  ;;  %v2317_v48 = vsel %vm2316_vm7, %v14736_v5, %v2315_v45  ;;  %v2334_v7 = vsel %vm2332_vm6, %v2333_v15, %v2331_v26  ;;  %v2319_v6 = vand.u32 2147483648, %v14736_v5  ;;  %v21239_v26 = vld [vmem:[#allocation20_spill] sm:$0xff]  ;;  %v21240_v45 = vld [vmem:[#allocation18_spill] sm:$0xff] }
 0x20c   : > { %v2623_v61 = vpack.c.bf16 %v2598_v50, %v2597_v12  ;;  %v2624_v1 = vpack.c.bf16 %v2600_v63, %v2599_v18  ;;  %v2338_v28 = vsel %vm2337_vm8, %v14756_v62, %v2336_v25  ;;  %vm2339_vm9 = vcmp.eq.f32.partialorder %v14756_v62, 0.0  ;;  %v21243_v12 = vld [vmem:[#allocation17_spill] sm:$0xff]  ;;  %v21245_v25 = vld [vmem:[#allocation24_spill] sm:$0xff] }
 0x20d   : > { %vm2318_vm10 = vcmp.eq.f32.partialorder %v14736_v5, 0.0  ;;  %v2322_v44 = vmul.f32 %v12762_v2, %v14773_v38  ;;  %v2341_v31 = vsel %vm2339_vm9, %v2340_v37, %v2338_v28  ;;  %vm2323_vm11 = vcmp.eq.f32.partialorder %v14773_v38, inf  ;;  %v21246_v37 = vld [vmem:[#allocation22_spill] sm:$0xff]  ;;  %v21248_v2 = vld [vmem:[#allocation23_spill] sm:$0xff] }
 0x20e   : > { %v2320_v42 = vsel %vm2318_vm10, %v2319_v6, %v2317_v48  ;;  %v2326_v29 = vand.u32 2147483648, %v14773_v38  ;;  %11756 = vmatprep.mubr.msk.bf16.mxu1 %vm2645_vm5, %v2623_v61  ;;  %v2603_v35 = vsel %vm2572_vm4, %v2334_v7, %v12540_v30  ;;  %v2604_v8 = vsel %vm2572_vm4, %v2341_v31, %v12541_v59  ;;  %v12683_v59 = vld [vmem:[%s20612_s9 + $0x10] sm:$0xff]   ;;  %v21249_v7 = vld [vmem:[#allocation21_spill] sm:$0xff]  ;;  %v21254_v31 = vld [vmem:[#allocation27_spill] sm:$0xff] }
 0x20f   : > { %v2324_v18 = vsel %vm2323_vm11, %v14773_v38, %v2322_v44  ;;  %vm2325_vm12 = vcmp.eq.f32.partialorder %v14773_v38, 0.0  ;;  %v2626_v5 = vpack.c.bf16 %v2604_v8, %v2603_v35  ;;  %v2601_v39 = vsel %vm2572_vm4, %v2320_v42, %v12535_v23  ;;  %11757 = vmatmul.mubr.msk.bf16.gmra.mrb[24].mxu1 %vm2645_vm5, %v2624_v1  ;;  %v21233_v30 = vld [vmem:[#allocation16_spill] sm:$0xff]  ;;  %11868 = vmatprep.subr.bf16.mxu0 %v12683_v59  ;;  %v21236_v23 = vld [vmem:[#allocation15_spill] sm:$0xff]  ;;  %v21252_v1 = vld [vmem:[#allocation26_spill] sm:$0xff] }
 0x210   : > { %v2327_v62 = vsel %vm2325_vm12, %v2326_v29, %v2324_v18  ;;  %v21235_v38 = vpack.c.bf16 %v21233_v30, %v21234_v40  ;;  %11869 = vmatpush3.bf16.msra.mxu0 %v12683_v59  ;;  %v21241_v32 = vpack.c.bf16 %v21239_v26, %v21240_v45  ;;  %v21244_v15 = vpack.c.bf16 %v21242_v9, %v21243_v12  ;;  %v21251_v61 = vld [vmem:[#allocation28_spill] sm:$0xff]  ;;  %v12684_v44 = vld [vmem:[%s20612_s9 + $0x18] sm:$0xff]   ;;  %v21258_v8 = vld [vmem:[#allocation30_spill] sm:$0xff] }
 0x211   : > { %v2602_v63 = vsel %vm2572_vm4, %v2327_v62, %v12536_v3  ;;  %v21237_v3 = vld [vmem:[#allocation13_spill] sm:$0xff]  ;;  %v21247_v48 = vpack.c.bf16 %v21245_v25, %v21246_v37  ;;  %v21250_v6 = vpack.c.bf16 %v21248_v2, %v21249_v7  ;;  %v21253_v28 = vpack.c.bf16 %v21251_v61, %v21252_v1  ;;  %11870 = vmatprep.subr.bf16.mxu0 %v12684_v44  ;;  %v21257_v35 = vld [vmem:[#allocation32_spill] sm:$0xff]  ;;  %v21260_v62 = vld [vmem:[#allocation31_spill] sm:$0xff] }
 0x212   : > { %v2625_v57 = vpack.c.bf16 %v2602_v63, %v2601_v39  ;;  %v21238_v50 = vpack.c.bf16 %v21236_v23, %v21237_v3  ;;  %v21255_v42 = vld [vmem:[#allocation25_spill] sm:$0xff]  ;;  %v21259_v18 = vpack.c.bf16 %v21257_v35, %v21258_v8  ;;  %v21263_v63 = vld [vmem:[#allocation36_spill] sm:$0xff]  ;;  %v21266_v30 = vld [vmem:[#allocation35_spill] sm:$0xff] }
 0x213   : > { %v21256_v29 = vpack.c.bf16 %v21254_v31, %v21255_v42  ;;  %v21267_v40 = vld [vmem:[#allocation33_spill] sm:$0xff]  ;;  %v21269_v23 = vld [vmem:[#allocation40_spill] sm:$0xff]  ;;  %v21270_v3 = vld [vmem:[#allocation38_spill] sm:$0xff] }
 0x214   : > { %11760 = vmatprep.mubr.msk.bf16.mxu1 %vm2645_vm5, %v2625_v57  ;;  %11871 = vmatpush3.bf16.msra.mxu0 %v12684_v44  ;;  %v21264_v57 = vld [vmem:[#allocation34_spill] sm:$0xff]  ;;  %v21272_v26 = vld [vmem:[#allocation39_spill] sm:$0xff]  ;;  %v21273_v45 = vld [vmem:[#allocation37_spill] sm:$0xff] }
 0x215   : > { %v21265_v59 = vpack.c.bf16 %v21263_v63, %v21264_v57  ;;  %v21275_v9 = vld [vmem:[#allocation44_spill] sm:$0xff]  ;;  %v21276_v12 = vld [vmem:[#allocation42_spill] sm:$0xff]  ;;  %v21278_v25 = vld [vmem:[#allocation43_spill] sm:$0xff] }
 0x216   : > { %v21279_v37 = vld [vmem:[#allocation41_spill] sm:$0xff]  ;;  %v21281_v2 = vld [vmem:[#allocation48_spill] sm:$0xff]  ;;  %v21282_v7 = vld [vmem:[#allocation46_spill] sm:$0xff] }
 0x217   : > { %11761 = vmatmul.mubr.msk.bf16.gmra.mrb[28].mxu1 %vm2645_vm5, %v2626_v5  ;;  %v21261_v5 = vld [vmem:[#allocation29_spill] sm:$0xff]  ;;  %v21284_v61 = vld [vmem:[#allocation47_spill] sm:$0xff]  ;;  %v21287_v44 = vld [vmem:[#allocation52_spill] sm:$0xff]  ;;  %vm3535_vm5 = vcmask 523264  }
 0x218   : > { %11768 = vmatprep.mubr.msk.bf16.mxu1 %vm2572_vm4, %v21235_v38  ;;  %v21262_v39 = vpack.c.bf16 %v21260_v62, %v21261_v5  ;;  %v21268_v38 = vpack.c.bf16 %v21266_v30, %v21267_v40  ;;  %v21285_v1 = vld [vmem:[#allocation45_spill] sm:$0xff]  ;;  %v21288_v31 = vld [vmem:[#allocation50_spill] sm:$0xff] }
 0x219   : > { %v21289_v42 = vpack.c.bf16 %v21287_v44, %v21288_v31  ;;  %v21291_v35 = vld [vmem:[#allocation49_spill] sm:$0xff]  ;;  %v21294_v62 = vld [vmem:[#allocation54_spill] sm:$0xff] }
 0x21a   : > { %v21297_v63 = vld [vmem:[#allocation53_spill] sm:$0xff]  ;;  %v21300_v30 = vld [vmem:[#allocation58_spill] sm:$0xff] }
 0x21b   : > { %v21321_v44 = vld [vmem:[#allocation69_spill] sm:$0xff] }
 0x21f   : > { %11769 = vmatmul.mubr.msk.bf16.vlgmr.msra.gmra.mrb[32].mxu1 %vm2572_vm4, %v21238_v50  ;;  %v21271_v50 = vpack.c.bf16 %v21269_v23, %v21270_v3  ;;  %v21303_v23 = vld [vmem:[#allocation57_spill] sm:$0xff] }
 0x220   : > { %11772 = vmatprep.mubr.msk.bf16.mxu1 %vm2572_vm4, %v21241_v32  ;;  %v21274_v32 = vpack.c.bf16 %v21272_v26, %v21273_v45  ;;  %v21306_v26 = vld [vmem:[#allocation62_spill] sm:$0xff] }
 0x227   : > { %11773 = vmatmul.mubr.msk.bf16.gmra.mrb[36].mxu1 %vm2572_vm4, %v21244_v15  ;;  %v21277_v15 = vpack.c.bf16 %v21275_v9, %v21276_v12  ;;  %v21309_v9 = vld [vmem:[#allocation61_spill] sm:$0xff] }
 0x228   : > { %11776 = vmatprep.mubr.msk.bf16.mxu1 %vm2572_vm4, %v21247_v48  ;;  %v21280_v48 = vpack.c.bf16 %v21278_v25, %v21279_v37  ;;  %v21312_v25 = vld [vmem:[#allocation66_spill] sm:$0xff] }
 0x22f   : > { %11777 = vmatmul.mubr.msk.bf16.gmra.mrb[40].mxu1 %vm2572_vm4, %v21250_v6  ;;  %v21283_v6 = vpack.c.bf16 %v21281_v2, %v21282_v7  ;;  %v21315_v2 = vld [vmem:[#allocation65_spill] sm:$0xff] }
 0x230   : > { %11780 = vmatprep.mubr.msk.bf16.mxu1 %vm2572_vm4, %v21253_v28  ;;  %v21286_v28 = vpack.c.bf16 %v21284_v61, %v21285_v1  ;;  %v21318_v61 = vld [vmem:[#allocation70_spill] sm:$0xff] }
 0x237   : > { %11781 = vmatmul.mubr.msk.bf16.gmra.mrb[44].mxu1 %vm2572_vm4, %v21256_v29  ;;  %v21290_v29 = vld [vmem:[#allocation51_spill] sm:$0xff] }
 0x238   : > { %11784 = vmatprep.mubr.msk.bf16.mxu1 %vm2572_vm4, %v21259_v18  ;;  %v21292_v8 = vpack.c.bf16 %v21290_v29, %v21291_v35  ;;  %v21293_v18 = vld [vmem:[#allocation56_spill] sm:$0xff]  ;;  %v21324_v29 = vld [vmem:[#allocation74_spill] sm:$0xff] }
 0x239   : > { %v21295_v5 = vpack.c.bf16 %v21293_v18, %v21294_v62  ;;  %v21327_v18 = vld [vmem:[#allocation73_spill] sm:$0xff] }
 0x23f   : > { %11785 = vmatmul.mubr.msk.bf16.gmra.mrb[48].mxu1 %vm2572_vm4, %v21262_v39  ;;  %v21296_v39 = vld [vmem:[#allocation55_spill] sm:$0xff] }
 0x240   : > { %11788 = vmatprep.mubr.msk.bf16.mxu1 %vm2572_vm4, %v21265_v59  ;;  %v21298_v57 = vpack.c.bf16 %v21296_v39, %v21297_v63  ;;  %v21299_v59 = vld [vmem:[#allocation60_spill] sm:$0xff]  ;;  %v21330_v39 = vld [vmem:[#allocation79_spill] sm:$0xff] }
 0x241   : > { %v21301_v40 = vpack.c.bf16 %v21299_v59, %v21300_v30  ;;  %v21333_v59 = vld [vmem:[#allocation78_spill] sm:$0xff] }
 0x247   : > { %11789 = vmatmul.mubr.msk.bf16.gmra.mrb[52].mxu1 %vm2572_vm4, %v21268_v38  ;;  %v21302_v38 = vld [vmem:[#allocation59_spill] sm:$0xff] }
 0x248   : > { %11792 = vmatprep.mubr.msk.bf16.mxu1 %vm2572_vm4, %v21271_v50  ;;  %v21304_v3 = vpack.c.bf16 %v21302_v38, %v21303_v23  ;;  %v21305_v50 = vld [vmem:[#allocation64_spill] sm:$0xff]  ;;  %v21336_v38 = vld [vmem:[#allocation85_spill] sm:$0xff] }
 0x249   : > { %v21307_v45 = vpack.c.bf16 %v21305_v50, %v21306_v26  ;;  %v21339_v50 = vld [vmem:[#allocation84_spill] sm:$0xff] }
 0x24f   : > { %11793 = vmatmul.mubr.msk.bf16.gmra.mrb[56].mxu1 %vm2572_vm4, %v21274_v32  ;;  %v21308_v32 = vld [vmem:[#allocation63_spill] sm:$0xff] }
 0x250   : > { %11796 = vmatprep.mubr.msk.bf16.mxu1 %vm2572_vm4, %v21277_v15  ;;  %v21310_v12 = vpack.c.bf16 %v21308_v32, %v21309_v9  ;;  %v21311_v15 = vld [vmem:[#allocation68_spill] sm:$0xff]  ;;  %v21341_v32 = vld [vmem:[#allocation91_spill] sm:$0xff]  ;;  %v21342_v9 = vld [vmem:[#allocation89_spill] sm:$0xff] }
 0x251   : > { %v21313_v37 = vpack.c.bf16 %v21311_v15, %v21312_v25 }
 0x257   : > { %11797 = vmatmul.mubr.msk.bf16.gmra.mrb[60].mxu1 %vm2572_vm4, %v21280_v48  ;;  %v21314_v48 = vld [vmem:[#allocation67_spill] sm:$0xff] }
 0x258   : > { %11800 = vmatprep.mubr.msk.bf16.mxu1 %vm2572_vm4, %v21283_v6  ;;  %v21316_v7 = vpack.c.bf16 %v21314_v48, %v21315_v2  ;;  %v21317_v6 = vld [vmem:[#allocation72_spill] sm:$0xff] }
 0x259   : > { %v21319_v1 = vpack.c.bf16 %v21317_v6, %v21318_v61 }
 0x25f   : > { %11801 = vmatmul.mubr.msk.bf16.gmra.mrb[64].mxu1 %vm2572_vm4, %v21286_v28  ;;  %v21320_v28 = vld [vmem:[#allocation71_spill] sm:$0xff] }
 0x260   : > { %11804 = vmatprep.mubr.msk.bf16.mxu1 %vm2572_vm4, %v21289_v42  ;;  %v21322_v31 = vpack.c.bf16 %v21320_v28, %v21321_v44  ;;  %v21323_v42 = vld [vmem:[#allocation76_spill] sm:$0xff] }
 0x261   : > { %v21325_v35 = vpack.c.bf16 %v21323_v42, %v21324_v29 }
 0x267   : > { %11805 = vmatmul.mubr.msk.bf16.gmra.mrb[68].mxu1 %vm2572_vm4, %v21292_v8  ;;  %v21326_v8 = vld [vmem:[#allocation75_spill] sm:$0xff] }
 0x268   : > { %11808 = vmatprep.mubr.msk.bf16.mxu1 %vm2572_vm4, %v21295_v5  ;;  %v21328_v62 = vpack.c.bf16 %v21326_v8, %v21327_v18  ;;  %v21329_v5 = vld [vmem:[#allocation81_spill] sm:$0xff]  ;;  %v21344_v8 = vld [vmem:[#allocation90_spill] sm:$0xff]  ;;  %v21345_v18 = vld [vmem:[#allocation88_spill] sm:$0xff] }
 0x269   : > { %v21331_v63 = vpack.c.bf16 %v21329_v5, %v21330_v39 }
 0x26f   : > { %11809 = vmatmul.mubr.msk.bf16.gmra.mrb[72].mxu1 %vm2572_vm4, %v21298_v57  ;;  %v21332_v57 = vld [vmem:[#allocation80_spill] sm:$0xff] }
 0x270   : > { %11812 = vmatprep.mubr.msk.bf16.mxu1 %vm2572_vm4, %v21301_v40  ;;  %v21334_v30 = vpack.c.bf16 %v21332_v57, %v21333_v59  ;;  %v21335_v40 = vld [vmem:[#allocation87_spill] sm:$0xff] }
 0x271   : > { %v21337_v23 = vpack.c.bf16 %v21335_v40, %v21336_v38 }
 0x277   : > { %11813 = vmatmul.mubr.msk.bf16.gmra.mrb[76].mxu1 %vm2572_vm4, %v21304_v3  ;;  %v21338_v3 = vld [vmem:[#allocation86_spill] sm:$0xff] }
 0x278   : > { %11816 = vmatprep.mubr.msk.bf16.mxu1 %vm2572_vm4, %v21307_v45  ;;  %v21340_v26 = vpack.c.bf16 %v21338_v3, %v21339_v50 }
 0x27f   : > { %11817 = vmatmul.mubr.msk.bf16.gmra.mrb[80].mxu1 %vm2572_vm4, %v21310_v12  ;;  %v21343_v12 = vpack.c.bf16 %v21341_v32, %v21342_v9 }
 0x280   : > { %11820 = vmatprep.mubr.msk.bf16.mxu1 %vm2572_vm4, %v21313_v37 }
 0x287   : > { %11821 = vmatmul.mubr.msk.bf16.gmra.mrb[84].mxu1 %vm2572_vm4, %v21316_v7 }
 0x288   : > { %11824 = vmatprep.mubr.msk.bf16.mxu1 %vm2572_vm4, %v21319_v1 }
 0x28f   : > { %11825 = vmatmul.mubr.msk.bf16.gmra.mrb[88].mxu1 %vm2572_vm4, %v21322_v31 }
 0x290   : > { %11828 = vmatprep.mubr.msk.bf16.mxu1 %vm2572_vm4, %v21325_v35 }
 0x297   : > { %11829 = vmatmul.mubr.msk.bf16.gmra.mrb[92].mxu1 %vm2572_vm4, %v21328_v62  ;;  %v21346_v62 = vpack.c.bf16 %v21344_v8, %v21345_v18 }
 0x298   : > { %11832 = vmatprep.mubr.msk.bf16.mxu1 %vm2572_vm4, %v21331_v63 }
 0x29f   : > { %11833 = vmatmul.mubr.msk.bf16.gmra.mrb[96].mxu1 %vm2572_vm4, %v21334_v30 }
 0x2a0   : > { %11836 = vmatprep.mubr.msk.bf16.mxu1 %vm2572_vm4, %v21337_v23 }
 0x2a5   : > { %v11734_v45 = vpop.f32.mrb[0].mxu1 }
 0x2a6   : > { %v2728_v15 = vpop.f32.mrb[1].mxu1  ;;  %v5396_v25 = vmul.f32 0.01, %v11734_v45  ;;  %vm5364_vm13 = vcmp.ge.f32.partialorder %v11734_v45, 0.0 }
 0x2a7   : > { %11837 = vmatmul.mubr.msk.bf16.gmra.mrb[100].mxu1 %vm2572_vm4, %v21340_v26  ;;  %v11735_v37 = vpop.f32.mrb[2].mxu1  ;;  %v5394_v48 = vmul.f32 0.01, %v2728_v15  ;;  %vm5362_vm15 = vcmp.ge.f32.partialorder %v2728_v15, 0.0 }
 0x2a8   : > { %11840 = vmatprep.mubr.msk.bf16.mxu1 %vm2572_vm4, %v21343_v12  ;;  %v3489_v2 = vpack.c.bf16 %v11735_v37, %v11734_v45  ;;  %v2731_v7 = vpop.f32.mrb[3].mxu1  ;;  %vm5365_vm14 = vcmp.ge.f32.partialorder %v11735_v37, 0.0  ;;  %v5397_v6 = vmul.f32 0.01, %v11735_v37  ;;  %v5428_v28 = vsel %vm5364_vm13, %v11734_v45, %v5396_v25 }
 0x2a9   : > { %v3488_v61 = vpack.c.bf16 %v2731_v7, %v2728_v15  ;;  %vm5363_vm0 = vcmp.ge.f32.partialorder %v2731_v7, 0.0  ;;  %v5395_v1 = vmul.f32 0.01, %v2731_v7  ;;  %v5426_v42 = vsel %vm5362_vm15, %v2728_v15, %v5394_v48 }
 0x2aa   : > { %v5429_v44 = vsel %vm5365_vm14, %v11735_v37, %v5397_v6 }
 0x2ab   : > { %11872 = vmatprep.mubr.msk.bf16.mxu0 %vm3535_vm5, %v3488_v61  ;;  %v12547_v31 = vpack.i.bf16 %v5429_v44, %v5428_v28  ;;  %v5427_v29 = vsel %vm5363_vm0, %v2731_v7, %v5395_v1 }
 0x2ac   : > { %11873 = vmatmul.mubr.msk.bf16.vlgmr.msra.gmra.mrb[96].mxu0 %vm3535_vm5, %v3489_v2  ;;  %v12542_v35 = vpack.i.bf16 %v5427_v29, %v5426_v42 }
 0x2ad   : > { %12548 = vrot.lane.b32.xlu1 %v12547_v31, %s13304_s30  ;;  %v11738_v5 = vpop.f32.mrb[4].mxu1 }
 0x2ae   : > { %12543 = vrot.lane.b32.xlu0 %v12542_v35, %s13304_s30  ;;  %v2744_v39 = vpop.f32.mrb[5].mxu1  ;;  %v5400_v63 = vmul.f32 0.01, %v11738_v5  ;;  %vm5368_vm1 = vcmp.ge.f32.partialorder %v11738_v5, 0.0 }
 0x2af   : > { %11841 = vmatmul.mubr.msk.bf16.gmra.mrb[104].mxu1 %vm2572_vm4, %v21346_v62  ;;  %v11739_v57 = vpop.f32.mrb[6].mxu1  ;;  %v5398_v59 = vmul.f32 0.01, %v2744_v39  ;;  %vm5366_vm3 = vcmp.ge.f32.partialorder %v2744_v39, 0.0 }
 0x2b0   : > { %11844 = vmatprep.mubr.msk.bf16.mxu1 %vm2572_vm4, %v2897_v53  ;;  %v2747_v30 = vpop.f32.mrb[7].mxu1  ;;  %v3491_v40 = vpack.c.bf16 %v11739_v57, %v11738_v5  ;;  %vm5369_vm2 = vcmp.ge.f32.partialorder %v11739_v57, 0.0  ;;  %v5401_v38 = vmul.f32 0.01, %v11739_v57  ;;  %v5432_v50 = vsel %vm5368_vm1, %v11738_v5, %v5400_v63 }
 0x2b1   : > { %v3490_v23 = vpack.c.bf16 %v2747_v30, %v2744_v39  ;;  %vm5367_vm6 = vcmp.ge.f32.partialorder %v2747_v30, 0.0  ;;  %v5399_v3 = vmul.f32 0.01, %v2747_v30  ;;  %v5430_v53 = vsel %vm5366_vm3, %v2744_v39, %v5398_v59 }
 0x2b2   : > { %v5433_v43 = vsel %vm5369_vm2, %v11739_v57, %v5401_v38 }
 0x2b3   : > { %11876 = vmatprep.mubr.msk.bf16.mxu0 %vm3535_vm5, %v3490_v23  ;;  %v12557_v54 = vpack.i.bf16 %v5433_v43, %v5432_v50  ;;  %v5431_v26 = vsel %vm5367_vm6, %v2747_v30, %v5399_v3 }
 0x2b4   : > { %11877 = vmatmul.mubr.msk.bf16.gmra.mrb[100].mxu0 %vm3535_vm5, %v3491_v40  ;;  %v12552_v45 = vpack.i.bf16 %v5431_v26, %v5430_v53 }
 0x2b5   : > { %12558 = vrot.lane.b32.xlu1 %v12557_v54, %s13304_s30 }
 0x2b6   : > { %12553 = vrot.lane.b32.xlu0 %v12552_v45, %s13304_s30 }
 0x2b7   : > { %11845 = vmatmul.mubr.msk.bf16.gmra.mrb[108].mxu1 %vm2572_vm4, %v2898_v55 }
 0x2b8   : > { %11848 = vmatprep.mubr.msk.bf16.mxu1 %vm2572_vm4, %v2899_v60 }
 0x2ba   : > { %v11742_v32 = vpop.f32.mrb[8].mxu1 }
 0x2bb   : > { %v2760_v9 = vpop.f32.mrb[9].mxu1  ;;  %v5404_v12 = vmul.f32 0.01, %v11742_v32  ;;  %vm5372_vm7 = vcmp.ge.f32.partialorder %v11742_v32, 0.0 }
 0x2bc   : > { %v11743_v15 = vpop.f32.mrb[10].mxu1  ;;  %v5402_v49 = vmul.f32 0.01, %v2760_v9  ;;  %vm5370_vm9 = vcmp.ge.f32.partialorder %v2760_v9, 0.0 }
 0x2bd   : > { %v2763_v11 = vpop.f32.mrb[11].mxu1  ;;  %v3493_v55 = vpack.c.bf16 %v11743_v15, %v11742_v32  ;;  %vm5373_vm8 = vcmp.ge.f32.partialorder %v11743_v15, 0.0  ;;  %v5405_v20 = vmul.f32 0.01, %v11743_v15  ;;  %v5436_v25 = vsel %vm5372_vm7, %v11742_v32, %v5404_v12 }
 0x2be   : > { %v3492_v17 = vpack.c.bf16 %v2763_v11, %v2760_v9  ;;  %vm5371_vm10 = vcmp.ge.f32.partialorder %v2763_v11, 0.0  ;;  %v5403_v60 = vmul.f32 0.01, %v2763_v11  ;;  %v5434_v27 = vsel %vm5370_vm9, %v2760_v9, %v5402_v49 }
 0x2bf   : > { %11849 = vmatmul.mubr.msk.bf16.gmra.mrb[112].mxu1 %vm2572_vm4, %v2900_v51  ;;  %v5437_v37 = vsel %vm5373_vm8, %v11743_v15, %v5405_v20 }
 0x2c0   : > { %11852 = vmatprep.mubr.msk.bf16.mxu1 %vm2572_vm4, %v2901_v19  ;;  %11880 = vmatprep.mubr.msk.bf16.mxu0 %vm3535_vm5, %v3492_v17  ;;  %v12567_v41 = vpack.i.bf16 %v5437_v37, %v5436_v25  ;;  %v5435_v51 = vsel %vm5371_vm10, %v2763_v11, %v5403_v60 }
 0x2c1   : > { %11881 = vmatmul.mubr.msk.bf16.gmra.mrb[104].mxu0 %vm3535_vm5, %v3493_v55  ;;  %v12562_v48 = vpack.i.bf16 %v5435_v51, %v5434_v27 }
 0x2c2   : > { %12568 = vrot.lane.b32.xlu1 %v12567_v41, %s13304_s30 }
 0x2c3   : > { %12563 = vrot.lane.b32.xlu0 %v12562_v48, %s13304_s30 }
 0x2c6   : > { %v11746_v36 = vpop.f32.mrb[12].mxu1 }
 0x2c7   : > { %11853 = vmatmul.mubr.msk.bf16.gmra.mrb[116].mxu1 %vm2572_vm4, %v2902_v33  ;;  %v2776_v13 = vpop.f32.mrb[13].mxu1  ;;  %v5408_v19 = vmul.f32 0.01, %v11746_v36  ;;  %vm5376_vm11 = vcmp.ge.f32.partialorder %v11746_v36, 0.0 }
 0x2c8   : > { %11856 = vmatprep.mubr.msk.bf16.mxu1 %vm2572_vm4, %v2903_v22  ;;  %v11747_v2 = vpop.f32.mrb[14].mxu1  ;;  %v5406_v7 = vmul.f32 0.01, %v2776_v13  ;;  %vm5374_vm13 = vcmp.ge.f32.partialorder %v2776_v13, 0.0 }
 0x2c9   : > { %v2779_v6 = vpop.f32.mrb[15].mxu1  ;;  %v3495_v61 = vpack.c.bf16 %v11747_v2, %v11746_v36  ;;  %vm5377_vm12 = vcmp.ge.f32.partialorder %v11747_v2, 0.0  ;;  %v5409_v1 = vmul.f32 0.01, %v11747_v2  ;;  %v5440_v14 = vsel %vm5376_vm11, %v11746_v36, %v5408_v19 }
 0x2ca   : > { %v3494_v28 = vpack.c.bf16 %v2779_v6, %v2776_v13  ;;  %vm5375_vm14 = vcmp.ge.f32.partialorder %v2779_v6, 0.0  ;;  %v5407_v10 = vmul.f32 0.01, %v2779_v6  ;;  %v5438_v21 = vsel %vm5374_vm13, %v2776_v13, %v5406_v7 }
 0x2cb   : > { %v5441_v33 = vsel %vm5377_vm12, %v11747_v2, %v5409_v1 }
 0x2cc   : > { %11884 = vmatprep.mubr.msk.bf16.mxu0 %vm3535_vm5, %v3494_v28  ;;  %v12577_v52 = vpack.i.bf16 %v5441_v33, %v5440_v14  ;;  %v5439_v22 = vsel %vm5375_vm14, %v2779_v6, %v5407_v10 }
 0x2cd   : > { %11885 = vmatmul.mubr.msk.bf16.gmra.mrb[108].mxu0 %vm3535_vm5, %v3495_v61  ;;  %v12572_v44 = vpack.i.bf16 %v5439_v22, %v5438_v21 }
 0x2ce   : > { %12578 = vrot.lane.b32.xlu1 %v12577_v52, %s13304_s30 }
 0x2cf   : > { %11857 = vmatmul.mubr.msk.bf16.gmra.mrb[120].mxu1 %vm2572_vm4, %v2904_v56  ;;  %12573 = vrot.lane.b32.xlu0 %v12572_v44, %s13304_s30 }
 0x2d0   : > { %11860 = vmatprep.mubr.msk.bf16.mxu1 %vm2572_vm4, %v2905_v58 }
 0x2d2   : > { %v11750_v31 = vpop.f32.mrb[16].mxu1 }
 0x2d3   : > { %v2792_v42 = vpop.f32.mrb[17].mxu1  ;;  %v5412_v29 = vmul.f32 0.01, %v11750_v31  ;;  %vm5380_vm15 = vcmp.ge.f32.partialorder %v11750_v31, 0.0 }
 0x2d4   : > { %v11751_v35 = vpop.f32.mrb[18].mxu1  ;;  %v5410_v8 = vmul.f32 0.01, %v2792_v42  ;;  %vm5378_vm1 = vcmp.ge.f32.partialorder %v2792_v42, 0.0 }
 0x2d5   : > { %v2795_v18 = vpop.f32.mrb[19].mxu1  ;;  %v3497_v62 = vpack.c.bf16 %v11751_v35, %v11750_v31  ;;  %vm5381_vm0 = vcmp.ge.f32.partialorder %v11751_v35, 0.0  ;;  %v5413_v0 = vmul.f32 0.01, %v11751_v35  ;;  %v5444_v4 = vsel %vm5380_vm15, %v11750_v31, %v5412_v29 }
 0x2d6   : > { %v3496_v34 = vpack.c.bf16 %v2795_v18, %v2792_v42  ;;  %vm5379_vm2 = vcmp.ge.f32.partialorder %v2795_v18, 0.0  ;;  %v5411_v56 = vmul.f32 0.01, %v2795_v18  ;;  %v5442_v5 = vsel %vm5378_vm1, %v2792_v42, %v5410_v8 }
 0x2d7   : > { %11861 = vmatmul.mubr.msk.bf16.gmra.mrb[124].mxu1 %vm2572_vm4, %v2906_v24  ;;  %v5445_v47 = vsel %vm5381_vm0, %v11751_v35, %v5413_v0 }
 0x2d8   : > { %11888 = vmatprep.mubr.msk.bf16.mxu0 %vm3535_vm5, %v3496_v34  ;;  %v12587_v58 = vpack.i.bf16 %v5445_v47, %v5444_v4  ;;  %v5443_v39 = vsel %vm5379_vm2, %v2795_v18, %v5411_v56 }
 0x2d9   : > { %11889 = vmatmul.mubr.msk.bf16.gmra.mrb[112].mxu0 %vm3535_vm5, %v3497_v62  ;;  %v12582_v63 = vpack.i.bf16 %v5443_v39, %v5442_v5 }
 0x2da   : > { %12588 = vrot.lane.b32.xlu1 %v12587_v58, %s13304_s30  ;;  %v11754_v57 = vpop.f32.mrb[20].mxu1 }
 0x2db   : > { %12583 = vrot.lane.b32.xlu0 %v12582_v63, %s13304_s30  ;;  %v2808_v59 = vpop.f32.mrb[21].mxu1  ;;  %v5416_v30 = vmul.f32 0.01, %v11754_v57  ;;  %vm5384_vm3 = vcmp.ge.f32.partialorder %v11754_v57, 0.0 }
 0x2dc   : > { %v11755_v46 = vpop.f32.mrb[22].mxu1  ;;  %v5414_v16 = vmul.f32 0.01, %v2808_v59  ;;  %vm5382_vm7 = vcmp.ge.f32.partialorder %v2808_v59, 0.0 }
 0x2dd   : > { %v2811_v24 = vpop.f32.mrb[23].mxu1  ;;  %v3499_v40 = vpack.c.bf16 %v11755_v46, %v11754_v57  ;;  %vm5385_vm6 = vcmp.ge.f32.partialorder %v11755_v46, 0.0  ;;  %v5417_v38 = vmul.f32 0.01, %v11755_v46  ;;  %v5448_v50 = vsel %vm5384_vm3, %v11754_v57, %v5416_v30 }
 0x2de   : > { %v3498_v23 = vpack.c.bf16 %v2811_v24, %v2808_v59  ;;  %vm5383_vm8 = vcmp.ge.f32.partialorder %v2811_v24, 0.0  ;;  %v5415_v3 = vmul.f32 0.01, %v2811_v24  ;;  %v5446_v53 = vsel %vm5382_vm7, %v2808_v59, %v5414_v16 }
 0x2df   : > { %v5449_v43 = vsel %vm5385_vm6, %v11755_v46, %v5417_v38 }
 0x2e0   : > { %11892 = vmatprep.mubr.msk.bf16.mxu0 %vm3535_vm5, %v3498_v23  ;;  %v12597_v54 = vpack.i.bf16 %v5449_v43, %v5448_v50  ;;  %v5447_v26 = vsel %vm5383_vm8, %v2811_v24, %v5415_v3 }
 0x2e1   : > { %11893 = vmatmul.mubr.msk.bf16.gmra.mrb[116].mxu0 %vm3535_vm5, %v3499_v40  ;;  %v12592_v45 = vpack.i.bf16 %v5447_v26, %v5446_v53 }
 0x2e2   : > { %12598 = vrot.lane.b32.xlu1 %v12597_v54, %s13304_s30  ;;  %v11758_v32 = vpop.f32.mrb[24].mxu1 }
 0x2e3   : > { %12593 = vrot.lane.b32.xlu0 %v12592_v45, %s13304_s30  ;;  %v2824_v9 = vpop.f32.mrb[25].mxu1  ;;  %v5420_v12 = vmul.f32 0.01, %v11758_v32  ;;  %vm5388_vm9 = vcmp.ge.f32.partialorder %v11758_v32, 0.0 }
 0x2e4   : > { %v11759_v15 = vpop.f32.mrb[26].mxu1  ;;  %v5418_v49 = vmul.f32 0.01, %v2824_v9  ;;  %vm5386_vm11 = vcmp.ge.f32.partialorder %v2824_v9, 0.0 }
 0x2e5   : > { %v2827_v11 = vpop.f32.mrb[27].mxu1  ;;  %v3501_v55 = vpack.c.bf16 %v11759_v15, %v11758_v32  ;;  %vm5389_vm10 = vcmp.ge.f32.partialorder %v11759_v15, 0.0  ;;  %v5421_v20 = vmul.f32 0.01, %v11759_v15  ;;  %v5452_v25 = vsel %vm5388_vm9, %v11758_v32, %v5420_v12  ;;  %v12685_v32 = vld [vmem:[%s20614_s11] sm:$0xff]  }
 0x2e6   : > { %v3500_v17 = vpack.c.bf16 %v2827_v11, %v2824_v9  ;;  %vm5387_vm12 = vcmp.ge.f32.partialorder %v2827_v11, 0.0  ;;  %v5419_v60 = vmul.f32 0.01, %v2827_v11  ;;  %v5450_v27 = vsel %vm5386_vm11, %v2824_v9, %v5418_v49  ;;  %11904 = vmatprep.subr.bf16.mxu0 %v12685_v32 }
 0x2e7   : > { %v5453_v37 = vsel %vm5389_vm10, %v11759_v15, %v5421_v20  ;;  %11905 = vmatpush3.bf16.msra.mxu0 %v12685_v32  ;;  %v12686_v15 = vld [vmem:[%s20614_s11 + $0x8] sm:$0xff]  }
 0x2e8   : > { %11896 = vmatprep.mubr.msk.bf16.mxu0 %vm3535_vm5, %v3500_v17  ;;  %v12607_v41 = vpack.i.bf16 %v5453_v37, %v5452_v25  ;;  %v5451_v51 = vsel %vm5387_vm12, %v2827_v11, %v5419_v60  ;;  %11906 = vmatprep.subr.bf16.mxu0 %v12686_v15 }
 0x2e9   : > { %11897 = vmatmul.mubr.msk.bf16.gmra.mrb[120].mxu0 %vm3535_vm5, %v3501_v55  ;;  %v12602_v48 = vpack.i.bf16 %v5451_v51, %v5450_v27 }
 0x2ea   : > { %12608 = vrot.lane.b32.xlu1 %v12607_v41, %s13304_s30  ;;  %v11762_v36 = vpop.f32.mrb[28].mxu1 }
 0x2eb   : > { %12603 = vrot.lane.b32.xlu0 %v12602_v48, %s13304_s30  ;;  %v2840_v13 = vpop.f32.mrb[29].mxu1  ;;  %v5424_v19 = vmul.f32 0.01, %v11762_v36  ;;  %vm5392_vm13 = vcmp.ge.f32.partialorder %v11762_v36, 0.0  ;;  %11907 = vmatpush3.bf16.msra.mxu0 %v12686_v15 }
 0x2ec   : > { %v11763_v2 = vpop.f32.mrb[30].mxu1  ;;  %v5422_v7 = vmul.f32 0.01, %v2840_v13  ;;  %vm5390_vm15 = vcmp.ge.f32.partialorder %v2840_v13, 0.0 }
 0x2ed   : > { %v2843_v6 = vpop.f32.mrb[31].mxu1  ;;  %v3503_v61 = vpack.c.bf16 %v11763_v2, %v11762_v36  ;;  %vm5393_vm14 = vcmp.ge.f32.partialorder %v11763_v2, 0.0  ;;  %v5425_v1 = vmul.f32 0.01, %v11763_v2  ;;  %v5456_v14 = vsel %vm5392_vm13, %v11762_v36, %v5424_v19 }
 0x2ee   : > { %v3502_v28 = vpack.c.bf16 %v2843_v6, %v2840_v13  ;;  %vm5391_vm0 = vcmp.ge.f32.partialorder %v2843_v6, 0.0  ;;  %v5423_v10 = vmul.f32 0.01, %v2843_v6  ;;  %v5454_v21 = vsel %vm5390_vm15, %v2840_v13, %v5422_v7 }
 0x2ef   : > { %v5457_v33 = vsel %vm5393_vm14, %v11763_v2, %v5425_v1 }
 0x2f0   : > { %11900 = vmatprep.mubr.msk.bf16.mxu0 %vm3535_vm5, %v3502_v28  ;;  %v12617_v52 = vpack.i.bf16 %v5457_v33, %v5456_v14  ;;  %v5455_v22 = vsel %vm5391_vm0, %v2843_v6, %v5423_v10 }
 0x2f1   : > { %11901 = vmatmul.mubr.msk.bf16.gmra.mrb[124].mxu0 %vm3535_vm5, %v3503_v61  ;;  %v12612_v44 = vpack.i.bf16 %v5455_v22, %v5454_v21 }
 0x2f2   : > { %12618 = vrot.lane.b32.xlu1 %v12617_v52, %s13304_s30  ;;  %v15071_v31 = vpop.f32.mrb[32].mxu1 }
 0x2f3   : > { %12613 = vrot.lane.b32.xlu0 %v12612_v44, %s13304_s30  ;;  %v15074_v42 = vpop.f32.mrb[33].mxu1 }
 0x2f4   : > { %v15076_v29 = vpop.f32.mrb[34].mxu1 }
 0x2f5   : > { %v15078_v35 = vpop.f32.mrb[35].mxu1 }
 0x2fa   : > { %v15080_v8 = vpop.f32.mrb[36].mxu1 }
 0x2fb   : > { %v15082_v18 = vpop.f32.mrb[37].mxu1 }
 0x2fc   : > { %v15084_v62 = vpop.f32.mrb[38].mxu1 }
 0x2fd   : > { %v15086_v0 = vpop.f32.mrb[39].mxu1 }
 0x302   : > { %v15088_v34 = vpop.f32.mrb[40].mxu1 }
 0x303   : > { %v15090_v56 = vpop.f32.mrb[41].mxu1 }
 0x304   : > { %v15092_v4 = vpop.f32.mrb[42].mxu1 }
 0x305   : > { %v15094_v47 = vpop.f32.mrb[43].mxu1 }
 0x30a   : > { %v15096_v58 = vpop.f32.mrb[44].mxu1 }
 0x30b   : > { %v15098_v5 = vpop.f32.mrb[45].mxu1 }
 0x30c   : > { %v15100_v39 = vpop.f32.mrb[46].mxu1 }
 0x30d   : > { %v15102_v63 = vpop.f32.mrb[47].mxu1 }
 0x312   : > { %v15104_v57 = vpop.f32.mrb[48].mxu1 }
 0x313   : > { %21347 = vst [vmem:[#allocation77_spill] sm:$0xff] %v15104_v57  ;;  %v15106_v59 = vpop.f32.mrb[49].mxu1 }
 0x314   : > { %21348 = vst [vmem:[#allocation82_spill] sm:$0xff] %v15106_v59  ;;  %v15108_v30 = vpop.f32.mrb[50].mxu1 }
 0x315   : > { %21349 = vst [vmem:[#allocation83_spill] sm:$0xff] %v15108_v30  ;;  %v15110_v46 = vpop.f32.mrb[51].mxu1 }
 0x316   : > { %21350 = vst [vmem:[#allocation16_spill] sm:$0xff] %v15110_v46 }
 0x31a   : > { %v15112_v16 = vpop.f32.mrb[52].mxu1 }
 0x31b   : > { %21351 = vst [vmem:[#allocation14_spill] sm:$0xff] %v15112_v16  ;;  %v15114_v24 = vpop.f32.mrb[53].mxu1 }
 0x31c   : > { %21352 = vst [vmem:[#allocation15_spill] sm:$0xff] %v15114_v24  ;;  %v15116_v40 = vpop.f32.mrb[54].mxu1 }
 0x31d   : > { %21353 = vst [vmem:[#allocation13_spill] sm:$0xff] %v15116_v40  ;;  %v15118_v38 = vpop.f32.mrb[55].mxu1 }
 0x31e   : > { %21354 = vst [vmem:[#allocation20_spill] sm:$0xff] %v15118_v38 }
 0x322   : > { %v15120_v23 = vpop.f32.mrb[56].mxu1 }
 0x323   : > { %21355 = vst [vmem:[#allocation18_spill] sm:$0xff] %v15120_v23  ;;  %v15122_v3 = vpop.f32.mrb[57].mxu1 }
 0x324   : > { %21356 = vst [vmem:[#allocation19_spill] sm:$0xff] %v15122_v3  ;;  %v15124_v50 = vpop.f32.mrb[58].mxu1 }
 0x325   : > { %21357 = vst [vmem:[#allocation17_spill] sm:$0xff] %v15124_v50  ;;  %v15126_v43 = vpop.f32.mrb[59].mxu1 }
 0x326   : > { %21358 = vst [vmem:[#allocation24_spill] sm:$0xff] %v15126_v43 }
 0x32a   : > { %v15128_v54 = vpop.f32.mrb[60].mxu1 }
 0x32b   : > { %21359 = vst [vmem:[#allocation22_spill] sm:$0xff] %v15128_v54  ;;  %v15130_v53 = vpop.f32.mrb[61].mxu1 }
 0x32c   : > { %21360 = vst [vmem:[#allocation23_spill] sm:$0xff] %v15130_v53  ;;  %v15132_v26 = vpop.f32.mrb[62].mxu1 }
 0x32d   : > { %21361 = vst [vmem:[#allocation21_spill] sm:$0xff] %v15132_v26  ;;  %v15134_v45 = vpop.f32.mrb[63].mxu1 }
 0x32e   : > { %21362 = vst [vmem:[#allocation28_spill] sm:$0xff] %v15134_v45 }
 0x332   : > { %v15139_v9 = vpop.f32.mrb[64].mxu1 }
 0x333   : > { %v15141_v12 = vpop.f32.mrb[65].mxu1 }
 0x334   : > { %v15146_v49 = vpop.f32.mrb[66].mxu1 }
 0x335   : > { %v15148_v11 = vpop.f32.mrb[67].mxu1 }
 0x33a   : > { %v15150_v55 = vpop.f32.mrb[68].mxu1 }
 0x33b   : > { %v15152_v20 = vpop.f32.mrb[69].mxu1 }
 0x33c   : > { %v15154_v17 = vpop.f32.mrb[70].mxu1 }
 0x33d   : > { %v15156_v60 = vpop.f32.mrb[71].mxu1 }
 0x342   : > { %v15158_v25 = vpop.f32.mrb[72].mxu1 }
 0x343   : > { %v15160_v37 = vpop.f32.mrb[73].mxu1 }
 0x344   : > { %v15162_v41 = vpop.f32.mrb[74].mxu1 }
 0x345   : > { %v15164_v27 = vpop.f32.mrb[75].mxu1 }
 0x34a   : > { %v15166_v51 = vpop.f32.mrb[76].mxu1 }
 0x34b   : > { %v15168_v48 = vpop.f32.mrb[77].mxu1 }
 0x34c   : > { %v15170_v36 = vpop.f32.mrb[78].mxu1 }
 0x34d   : > { %v15172_v13 = vpop.f32.mrb[79].mxu1 }
 0x352   : > { %v15174_v19 = vpop.f32.mrb[80].mxu1 }
 0x353   : > { %21363 = vst [vmem:[#allocation26_spill] sm:$0xff] %v15174_v19  ;;  %v15176_v2 = vpop.f32.mrb[81].mxu1 }
 0x354   : > { %21364 = vst [vmem:[#allocation27_spill] sm:$0xff] %v15176_v2  ;;  %v15178_v7 = vpop.f32.mrb[82].mxu1 }
 0x355   : > { %21365 = vst [vmem:[#allocation25_spill] sm:$0xff] %v15178_v7  ;;  %v15180_v6 = vpop.f32.mrb[83].mxu1 }
 0x356   : > { %21366 = vst [vmem:[#allocation32_spill] sm:$0xff] %v15180_v6 }
 0x35a   : > { %v15182_v61 = vpop.f32.mrb[84].mxu1 }
 0x35b   : > { %21367 = vst [vmem:[#allocation30_spill] sm:$0xff] %v15182_v61  ;;  %v15184_v1 = vpop.f32.mrb[85].mxu1 }
 0x35c   : > { %21368 = vst [vmem:[#allocation31_spill] sm:$0xff] %v15184_v1  ;;  %v15186_v28 = vpop.f32.mrb[86].mxu1 }
 0x35d   : > { %21369 = vst [vmem:[#allocation29_spill] sm:$0xff] %v15186_v28  ;;  %v15188_v10 = vpop.f32.mrb[87].mxu1 }
 0x35e   : > { %21370 = vst [vmem:[#allocation36_spill] sm:$0xff] %v15188_v10 }
 0x362   : > { %v15190_v14 = vpop.f32.mrb[88].mxu1 }
 0x363   : > { %21371 = vst [vmem:[#allocation34_spill] sm:$0xff] %v15190_v14  ;;  %v15192_v33 = vpop.f32.mrb[89].mxu1 }
 0x364   : > { %21372 = vst [vmem:[#allocation35_spill] sm:$0xff] %v15192_v33  ;;  %v15194_v52 = vpop.f32.mrb[90].mxu1 }
 0x365   : > { %21373 = vst [vmem:[#allocation33_spill] sm:$0xff] %v15194_v52  ;;  %v15196_v21 = vpop.f32.mrb[91].mxu1 }
 0x366   : > { %21374 = vst [vmem:[#allocation40_spill] sm:$0xff] %v15196_v21 }
 0x36a   : > { %v15198_v22 = vpop.f32.mrb[92].mxu1 }
 0x36b   : > { %21375 = vst [vmem:[#allocation38_spill] sm:$0xff] %v15198_v22  ;;  %v15200_v44 = vpop.f32.mrb[93].mxu1 }
 0x36c   : > { %21376 = vst [vmem:[#allocation39_spill] sm:$0xff] %v15200_v44  ;;  %v15202_v32 = vpop.f32.mrb[94].mxu1 }
 0x36d   : > { %21377 = vst [vmem:[#allocation37_spill] sm:$0xff] %v15202_v32  ;;  %v15204_v15 = vpop.f32.mrb[95].mxu1 }
 0x36e   : > { %21378 = vst [vmem:[#allocation44_spill] sm:$0xff] %v15204_v15  ;;  %v15225_v15 = vld [vmem:[%s20613_s10] ss:$0 sm:$0xff] }
 0x372   : > { %v15206_v45 = vpop.f32.mrb[96].mxu1 }
 0x373   : > { %v15208_v26 = vpop.f32.mrb[97].mxu1 }
 0x374   : > { %v15210_v53 = vpop.f32.mrb[98].mxu1 }
 0x375   : > { %v15212_v54 = vpop.f32.mrb[99].mxu1 }
 0x37a   : > { %v15214_v43 = vpop.f32.mrb[100].mxu1 }
 0x37b   : > { %v15216_v52 = vpop.f32.mrb[101].mxu1 }
 0x37c   : > { %v15218_v21 = vpop.f32.mrb[102].mxu1 }
 0x37d   : > { %v15220_v22 = vpop.f32.mrb[103].mxu1 }
 0x37f   : > { %v11874_v32 = vpop.f32.mrb[96].mxu0 }
 0x380   : > { %v3627_v50 = vadd.f32 %v11874_v32, %v15225_v15  ;;  %v3618_v33 = vpop.f32.mrb[97].mxu0 }
 0x381   : > { %v3619_v14 = vadd.f32 %v15225_v15, %v3618_v33  ;;  %v11875_v23 = vpop.f32.mrb[98].mxu0 }
 0x382   : > { %v15227_v44 = vpop.f32.mrb[104].mxu1  ;;  %v10756_v38 = vmul.f32 -1.442695, %v3627_v50  ;;  %v3630_v28 = vadd.f32 %v11875_v23, %v15225_v15  ;;  %v3621_v40 = vpop.f32.mrb[99].mxu0 }
 0x383   : > { %v15230_v3 = vpop.f32.mrb[105].mxu1  ;;  %v10754_v24 = vmul.f32 -1.442695, %v3619_v14  ;;  %v3622_v61 = vadd.f32 %v15225_v15, %v3621_v40 }
 0x384   : > { %v15233_v10 = vpop.f32.mrb[106].mxu1  ;;  %12763 = vpow2.f32 %v10756_v38  ;;  %v10757_v16 = vmul.f32 -1.442695, %v3630_v28 }
 0x385   : > { %21379 = vst [vmem:[#allocation42_spill] sm:$0xff] %v15233_v10  ;;  %v15236_v1 = vpop.f32.mrb[107].mxu1  ;;  %12765 = vpow2.f32 %v10754_v24  ;;  %v10755_v32 = vmul.f32 -1.442695, %v3622_v61 }
 0x386   : > { %12767 = vpow2.f32 %v10757_v16 }
 0x387   : > { %12769 = vpow2.f32 %v10755_v32  ;;  %v11878_v33 = vpop.f32.mrb[100].mxu0 }
 0x388   : > { %v3643_v50 = vadd.f32 %v11878_v33, %v15225_v15  ;;  %v3634_v23 = vpop.f32.mrb[101].mxu0 }
 0x389   : > { %v3635_v14 = vadd.f32 %v15225_v15, %v3634_v23  ;;  %v11879_v30 = vpop.f32.mrb[102].mxu0 }
 0x38a   : > { %v15239_v6 = vpop.f32.mrb[108].mxu1  ;;  %v10760_v38 = vmul.f32 -1.442695, %v3643_v50  ;;  %v3646_v24 = vadd.f32 %v11879_v30, %v15225_v15  ;;  %v3637_v16 = vpop.f32.mrb[103].mxu0 }
 0x38b   : > { %21380 = vst [vmem:[#allocation43_spill] sm:$0xff] %v15239_v6  ;;  %v15241_v46 = vpop.f32.mrb[109].mxu1  ;;  %v10758_v61 = vmul.f32 -1.442695, %v3635_v14  ;;  %v3638_v28 = vadd.f32 %v15225_v15, %v3637_v16 }
 0x38c   : > { %21381 = vst [vmem:[#allocation41_spill] sm:$0xff] %v15241_v46  ;;  %v15244_v7 = vpop.f32.mrb[110].mxu1  ;;  %12771 = vpow2.f32 %v10760_v38  ;;  %v10761_v32 = vmul.f32 -1.442695, %v3646_v24 }
 0x38d   : > { %21382 = vst [vmem:[#allocation48_spill] sm:$0xff] %v15244_v7  ;;  %v15247_v40 = vpop.f32.mrb[111].mxu1  ;;  %12773 = vpow2.f32 %v10758_v61  ;;  %v10759_v33 = vmul.f32 -1.442695, %v3638_v28 }
 0x38e   : > { %21383 = vst [vmem:[#allocation46_spill] sm:$0xff] %v15247_v40  ;;  %v12764_v6 = vpop.eup %12763  ;;  %12775 = vpow2.f32 %v10761_v32 }
 0x38f   : > { %v12766_v46 = vpop.eup %12765  ;;  %v3843_v2 = vadd.f32 1.0, %v12764_v6  ;;  %12777 = vpow2.f32 %v10759_v33 }
 0x390   : > { %v12768_v7 = vpop.eup %12767  ;;  %v3841_v23 = vadd.f32 1.0, %v12766_v46 }
 0x391   : > { %v12770_v50 = vpop.eup %12769  ;;  %12779 = vrcp.f32 %v3843_v2  ;;  %v3844_v30 = vadd.f32 1.0, %v12768_v7 }
 0x392   : > { %v15251_v59 = vpop.f32.mrb[112].mxu1  ;;  %12781 = vrcp.f32 %v3841_v23  ;;  %v3842_v14 = vadd.f32 1.0, %v12770_v50 }
 0x393   : > { %21384 = vst [vmem:[#allocation47_spill] sm:$0xff] %v15251_v59  ;;  %v15253_v40 = vpop.f32.mrb[113].mxu1  ;;  %12783 = vrcp.f32 %v3844_v30 }
 0x394   : > { %21385 = vst [vmem:[#allocation45_spill] sm:$0xff] %v15253_v40  ;;  %v15255_v38 = vpop.f32.mrb[114].mxu1  ;;  %12785 = vrcp.f32 %v3842_v14  ;;  %v11882_v6 = vpop.f32.mrb[104].mxu0 }
 0x395   : > { %21386 = vst [vmem:[#allocation52_spill] sm:$0xff] %v15255_v38  ;;  %v15257_v24 = vpop.f32.mrb[115].mxu1  ;;  %v3659_v16 = vadd.f32 %v11882_v6, %v15225_v15  ;;  %v3650_v46 = vpop.f32.mrb[105].mxu0 }
 0x396   : > { %21387 = vst [vmem:[#allocation50_spill] sm:$0xff] %v15257_v24  ;;  %v3651_v61 = vadd.f32 %v15225_v15, %v3650_v46  ;;  %v11883_v28 = vpop.f32.mrb[106].mxu0  ;;  %v12772_v32 = vpop.eup %12771 }
 0x397   : > { %v10764_v2 = vmul.f32 -1.442695, %v3659_v16  ;;  %v3662_v7 = vadd.f32 %v11883_v28, %v15225_v15  ;;  %v3653_v33 = vpop.f32.mrb[107].mxu0  ;;  %v12774_v23 = vpop.eup %12773  ;;  %v3847_v50 = vadd.f32 1.0, %v12772_v32 }
 0x398   : > { %v3654_v30 = vadd.f32 %v15225_v15, %v3653_v33  ;;  %v12776_v38 = vpop.eup %12775  ;;  %v3845_v14 = vadd.f32 1.0, %v12774_v23  ;;  %v10762_v16 = vmul.f32 -1.442695, %v3651_v61 }
 0x399   : > { %12787 = vpow2.f32 %v10764_v2  ;;  %v12778_v6 = vpop.eup %12777  ;;  %v3848_v46 = vadd.f32 1.0, %v12776_v38  ;;  %v10765_v32 = vmul.f32 -1.442695, %v3662_v7 }
 0x39a   : > { %v15262_v59 = vpop.f32.mrb[116].mxu1  ;;  %12789 = vrcp.f32 %v3847_v50  ;;  %v3846_v28 = vadd.f32 1.0, %v12778_v6 }
 0x39b   : > { %21388 = vst [vmem:[#allocation51_spill] sm:$0xff] %v15262_v59  ;;  %v15265_v24 = vpop.f32.mrb[117].mxu1  ;;  %v12780_v19 = vpop.eup %12779  ;;  %12791 = vrcp.f32 %v3845_v14  ;;  %v10763_v59 = vmul.f32 -1.442695, %v3654_v30 }
 0x39c   : > { %v15267_v40 = vpop.f32.mrb[118].mxu1  ;;  %v12782_v10 = vpop.eup %12781  ;;  %12793 = vrcp.f32 %v3848_v46  ;;  %v15272_v33 = vmul.f32 %v12780_v19, %v15071_v31  ;;  %v15275_v2 = vmul.f32 %v12780_v19, %v15139_v9  ;;  %v15278_v38 = vmul.f32 %v12780_v19, %v15206_v45 }
 0x39d   : > { %v15269_v57 = vpop.f32.mrb[119].mxu1  ;;  %v12784_v23 = vpop.eup %12783  ;;  %12795 = vrcp.f32 %v3846_v28  ;;  %v15281_v61 = vmul.f32 %v12782_v10, %v15074_v42  ;;  %v15284_v50 = vmul.f32 %v12782_v10, %v15141_v12  ;;  %v15287_v7 = vmul.f32 %v12782_v10, %v15208_v26 }
 0x39e   : > { %21389 = vst [vmem:[#allocation49_spill] sm:$0xff] %v15272_v33  ;;  %21390 = vst [vmem:[#allocation56_spill] sm:$0xff] %v15275_v2  ;;  %v12786_v30 = vpop.eup %12785  ;;  %12797 = vpow2.f32 %v10762_v16  ;;  %v15290_v31 = vmul.f32 %v12784_v23, %v15076_v29  ;;  %v15293_v9 = vmul.f32 %v12784_v23, %v15146_v49  ;;  %v15296_v45 = vmul.f32 %v12784_v23, %v15210_v53 }
 0x39f   : > { %21391 = vst [vmem:[#allocation54_spill] sm:$0xff] %v15278_v38  ;;  %21392 = vst [vmem:[#allocation55_spill] sm:$0xff] %v15281_v61  ;;  %12799 = vpow2.f32 %v10765_v32  ;;  %v15299_v19 = vmul.f32 %v12786_v30, %v15078_v35  ;;  %v15302_v12 = vmul.f32 %v12786_v30, %v15148_v11  ;;  %v15305_v26 = vmul.f32 %v12786_v30, %v15212_v54 }
 0x3a0   : > { %21393 = vst [vmem:[#allocation53_spill] sm:$0xff] %v15284_v50  ;;  %21394 = vst [vmem:[#allocation60_spill] sm:$0xff] %v15287_v7  ;;  %v11886_v42 = vpop.f32.mrb[108].mxu0  ;;  %12801 = vpow2.f32 %v10763_v59  ;;  %v4038_v59 = vpack.c.bf16 %v15290_v31, %v15272_v33 }
 0x3a1   : > { %21395 = vst [vmem:[#allocation58_spill] sm:$0xff] %v15290_v31  ;;  %21396 = vst [vmem:[#allocation59_spill] sm:$0xff] %v15293_v9  ;;  %v3675_v49 = vadd.f32 %v11886_v42, %v15225_v15  ;;  %v3666_v10 = vpop.f32.mrb[109].mxu0  ;;  %v4037_v35 = vpack.c.bf16 %v15299_v19, %v15281_v61 }
 0x3a2   : > { %21397 = vst [vmem:[#allocation57_spill] sm:$0xff] %v15296_v45  ;;  %21398 = vst [vmem:[#allocation64_spill] sm:$0xff] %v15299_v19  ;;  %v15307_v29 = vpop.f32.mrb[120].mxu1  ;;  %v3667_v53 = vadd.f32 %v15225_v15, %v3666_v10  ;;  %v11887_v6 = vpop.f32.mrb[110].mxu0 }
 0x3a3   : > { %21399 = vst [vmem:[#allocation62_spill] sm:$0xff] %v15302_v12  ;;  %21400 = vst [vmem:[#allocation63_spill] sm:$0xff] %v15305_v26  ;;  %v15310_v14 = vpop.f32.mrb[121].mxu1  ;;  %v10768_v11 = vmul.f32 -1.442695, %v3675_v49  ;;  %v3678_v54 = vadd.f32 %v11887_v6, %v15225_v15  ;;  %v3669_v16 = vpop.f32.mrb[111].mxu0  ;;  %11908 = vmatprep.mubr.msk.bf16.mxu0 %vm2572_vm4, %v4037_v35 }
 0x3a4   : > { %v15315_v46 = vpop.f32.mrb[122].mxu1  ;;  %v12788_v28 = vpop.eup %12787  ;;  %v10766_v23 = vmul.f32 -1.442695, %v3667_v53  ;;  %v3670_v30 = vadd.f32 %v15225_v15, %v3669_v16  ;;  %11909 = vmatmul.mubr.msk.bf16.vlgmr.msra.gmra.mrb[128].mxu0 %vm2572_vm4, %v4038_v59 }
 0x3a5   : > { %v15320_v32 = vpop.f32.mrb[123].mxu1  ;;  %v12790_v42 = vpop.eup %12789  ;;  %v3851_v10 = vadd.f32 1.0, %v12788_v28  ;;  %12803 = vpow2.f32 %v10768_v11  ;;  %v10769_v19 = vmul.f32 -1.442695, %v3678_v54 }
 0x3a6   : > { %v12792_v49 = vpop.eup %12791  ;;  %12805 = vpow2.f32 %v10766_v23  ;;  %v10767_v6 = vmul.f32 -1.442695, %v3670_v30  ;;  %v15326_v61 = vmul.f32 %v12790_v42, %v15080_v8  ;;  %v15329_v31 = vmul.f32 %v12790_v42, %v15150_v55 }
 0x3a7   : > { %v12794_v53 = vpop.eup %12793  ;;  %12807 = vrcp.f32 %v3851_v10  ;;  %v15332_v16 = vmul.f32 %v12792_v49, %v15082_v18  ;;  %v15335_v35 = vmul.f32 %v12792_v49, %v15152_v20  ;;  %v15338_v11 = vmul.f32 %v12792_v49, %v15216_v52 }
 0x3a8   : > { %21401 = vst [vmem:[#allocation61_spill] sm:$0xff] %v15326_v61  ;;  %21402 = vst [vmem:[#allocation68_spill] sm:$0xff] %v15329_v31  ;;  %v12796_v54 = vpop.eup %12795  ;;  %12809 = vpow2.f32 %v10769_v19  ;;  %v15341_v59 = vmul.f32 %v12794_v53, %v15084_v62  ;;  %v15344_v8 = vmul.f32 %v12794_v53, %v15154_v17  ;;  %v15347_v55 = vmul.f32 %v12790_v42, %v15214_v43 }
 0x3a9   : > { %21403 = vst [vmem:[#allocation66_spill] sm:$0xff] %v15332_v16  ;;  %21404 = vst [vmem:[#allocation67_spill] sm:$0xff] %v15335_v35  ;;  %v12798_v28 = vpop.eup %12797  ;;  %12811 = vpow2.f32 %v10767_v6  ;;  %v15352_v20 = vmul.f32 %v12796_v54, %v15086_v0  ;;  %v15355_v52 = vmul.f32 %v12796_v54, %v15156_v60  ;;  %v15358_v19 = vmul.f32 %v12796_v54, %v15220_v22 }
 0x3aa   : > { %21405 = vst [vmem:[#allocation65_spill] sm:$0xff] %v15338_v11  ;;  %21406 = vst [vmem:[#allocation72_spill] sm:$0xff] %v15341_v59  ;;  %v15349_v18 = vpop.f32.mrb[124].mxu1  ;;  %v12800_v62 = vpop.eup %12799  ;;  %v3849_v23 = vadd.f32 1.0, %v12798_v28  ;;  %v15363_v43 = vmul.f32 %v12794_v53, %v15218_v21  ;;  %v4040_v28 = vpack.c.bf16 %v15341_v59, %v15326_v61 }
 0x3ab   : > { %21407 = vst [vmem:[#allocation70_spill] sm:$0xff] %v15344_v8  ;;  %21408 = vst [vmem:[#allocation71_spill] sm:$0xff] %v15347_v55  ;;  %v15360_v17 = vpop.f32.mrb[125].mxu1  ;;  %v12802_v30 = vpop.eup %12801  ;;  %v3852_v42 = vadd.f32 1.0, %v12800_v62  ;;  %v4039_v0 = vpack.c.bf16 %v15352_v20, %v15332_v16 }
 0x3ac   : > { %21409 = vst [vmem:[#allocation69_spill] sm:$0xff] %v15352_v20  ;;  %21410 = vst [vmem:[#allocation76_spill] sm:$0xff] %v15355_v52  ;;  %v15365_v10 = vpop.f32.mrb[126].mxu1  ;;  %v11890_v49 = vpop.f32.mrb[112].mxu0  ;;  %12813 = vrcp.f32 %v3849_v23  ;;  %v3850_v60 = vadd.f32 1.0, %v12802_v30 }
 0x3ad   : > { %21411 = vst [vmem:[#allocation74_spill] sm:$0xff] %v15358_v19  ;;  %21412 = vst [vmem:[#allocation75_spill] sm:$0xff] %v15363_v43  ;;  %v3691_v22 = vadd.f32 %v11890_v49, %v15225_v15  ;;  %v15370_v6 = vpop.f32.mrb[127].mxu1  ;;  %v3682_v54 = vpop.f32.mrb[113].mxu0  ;;  %12815 = vrcp.f32 %v3852_v42  ;;  %11912 = vmatprep.mubr.msk.bf16.mxu0 %vm2572_vm4, %v4039_v0 }
 0x3ae   : > { %v3683_v21 = vadd.f32 %v15225_v15, %v3682_v54  ;;  %v11891_v53 = vpop.f32.mrb[114].mxu0  ;;  %12817 = vrcp.f32 %v3850_v60  ;;  %11913 = vmatmul.mubr.msk.bf16.gmra.mrb[132].mxu0 %vm2572_vm4, %v4040_v28 }
 0x3af   : > { %v10772_v62 = vmul.f32 -1.442695, %v3691_v22  ;;  %v3694_v20 = vadd.f32 %v11891_v53, %v15225_v15  ;;  %v3685_v23 = vpop.f32.mrb[115].mxu0  ;;  %v12804_v30 = vpop.eup %12803 }
 0x3b0   : > { %v10770_v49 = vmul.f32 -1.442695, %v3683_v21  ;;  %v3686_v16 = vadd.f32 %v15225_v15, %v3685_v23  ;;  %v12806_v33 = vpop.eup %12805  ;;  %v3855_v43 = vadd.f32 1.0, %v12804_v30 }
 0x3b1   : > { %12819 = vpow2.f32 %v10772_v62  ;;  %v10773_v42 = vmul.f32 -1.442695, %v3694_v20  ;;  %v12808_v59 = vpop.eup %12807  ;;  %v3853_v54 = vadd.f32 1.0, %v12806_v33 }
 0x3b2   : > { %12821 = vpow2.f32 %v10770_v49  ;;  %v12810_v61 = vpop.eup %12809  ;;  %v15380_v0 = vmul.f32 %v12808_v59, %v15088_v34  ;;  %v15383_v60 = vmul.f32 %v12808_v59, %v15158_v25  ;;  %v15386_v22 = vmul.f32 %v12808_v59, %v15227_v44 }
 0x3b3   : > { %12823 = vrcp.f32 %v3855_v43  ;;  %v12812_v28 = vpop.eup %12811  ;;  %v3856_v21 = vadd.f32 1.0, %v12810_v61  ;;  %v10771_v53 = vmul.f32 -1.442695, %v3686_v16 }
 0x3b4   : > { %21413 = vst [vmem:[#allocation73_spill] sm:$0xff] %v15380_v0  ;;  %21414 = vst [vmem:[#allocation81_spill] sm:$0xff] %v15383_v60  ;;  %12825 = vrcp.f32 %v3853_v54  ;;  %v11894_v62 = vpop.f32.mrb[116].mxu0  ;;  %v3854_v20 = vadd.f32 1.0, %v12812_v28 }
 0x3b5   : > { %21415 = vst [vmem:[#allocation79_spill] sm:$0xff] %v15386_v22  ;;  %12827 = vpow2.f32 %v10773_v42  ;;  %v3707_v33 = vadd.f32 %v11894_v62, %v15225_v15  ;;  %v3698_v23 = vpop.f32.mrb[117].mxu0 }
 0x3b6   : > { %12829 = vrcp.f32 %v3856_v21  ;;  %v3699_v34 = vadd.f32 %v15225_v15, %v3698_v23  ;;  %v11895_v43 = vpop.f32.mrb[118].mxu0  ;;  %v12814_v30 = vpop.eup %12813 }
 0x3b7   : > { %12831 = vrcp.f32 %v3854_v20  ;;  %v10776_v25 = vmul.f32 -1.442695, %v3707_v33  ;;  %v3710_v44 = vadd.f32 %v11895_v43, %v15225_v15  ;;  %v3701_v59 = vpop.f32.mrb[119].mxu0  ;;  %v15391_v49 = vpop.eup %12815  ;;  %v15395_v42 = vmul.f32 %v12814_v30, %v15090_v56 }
 0x3b8   : > { %12833 = vpow2.f32 %v10771_v53  ;;  %v10774_v61 = vmul.f32 -1.442695, %v3699_v34  ;;  %v3702_v16 = vadd.f32 %v15225_v15, %v3701_v59  ;;  %v12818_v54 = vpop.eup %12817  ;;  %v15399_v21 = vmul.f32 %v15391_v49, %v15092_v4 }
 0x3b9   : > { %21416 = vst [vmem:[#allocation80_spill] sm:$0xff] %v15395_v42  ;;  %12835 = vpow2.f32 %v10776_v25  ;;  %v10777_v28 = vmul.f32 -1.442695, %v3710_v44  ;;  %v15402_v62 = vmul.f32 %v12814_v30, %v15160_v37  ;;  %v15405_v53 = vmul.f32 %v12818_v54, %v15094_v47 }
 0x3ba   : > { %21417 = vst [vmem:[#allocation78_spill] sm:$0xff] %v15399_v21  ;;  %12837 = vpow2.f32 %v10774_v61  ;;  %v10775_v20 = vmul.f32 -1.442695, %v3702_v16  ;;  %v15408_v33 = vmul.f32 %v12818_v54, %v15164_v27  ;;  %v15412_v23 = vmul.f32 %v15391_v49, %v15162_v41 }
 0x3bb   : > { %21418 = vst [vmem:[#allocation87_spill] sm:$0xff] %v15402_v62  ;;  %21419 = vst [vmem:[#allocation85_spill] sm:$0xff] %v15405_v53  ;;  %v12820_v56 = vpop.eup %12819  ;;  %12839 = vpow2.f32 %v10777_v28  ;;  %v15415_v4 = vmul.f32 %v12814_v30, %v15230_v3  ;;  %v4041_v47 = vpack.c.bf16 %v15405_v53, %v15395_v42  ;;  %v4042_v41 = vpack.c.bf16 %v15399_v21, %v15380_v0 }
 0x3bc   : > { %21420 = vst [vmem:[#allocation86_spill] sm:$0xff] %v15408_v33  ;;  %21421 = vst [vmem:[#allocation84_spill] sm:$0xff] %v15412_v23  ;;  %v12822_v34 = vpop.eup %12821  ;;  %v3859_v37 = vadd.f32 1.0, %v12820_v56  ;;  %12841 = vpow2.f32 %v10775_v20  ;;  %v11898_v43 = vpop.f32.mrb[120].mxu0  ;;  %v15425_v61 = vmul.f32 %v12818_v54, %v15236_v1 }
 0x3bd   : > { %21422 = vst [vmem:[#allocation91_spill] sm:$0xff] %v15415_v4  ;;  %v15419_v25 = vpop.eup %12823  ;;  %v3857_v27 = vadd.f32 1.0, %v12822_v34  ;;  %v3723_v44 = vadd.f32 %v11898_v43, %v15225_v15  ;;  %v3714_v59 = vpop.f32.mrb[121].mxu0  ;;  %11916 = vmatprep.mubr.msk.bf16.mxu0 %vm2572_vm4, %v4041_v47 }
 0x3be   : > { %21423 = vst [vmem:[#allocation89_spill] sm:$0xff] %v15425_v61  ;;  %v15427_v3 = vpop.eup %12825  ;;  %12843 = vrcp.f32 %v3859_v37  ;;  %v3715_v30 = vadd.f32 %v15225_v15, %v3714_v59  ;;  %v11899_v16 = vpop.f32.mrb[122].mxu0  ;;  %v15433_v28 = vmul.f32 %v15419_v25, %v15096_v58  ;;  %v15437_v20 = vmul.f32 %v15419_v25, %v15166_v51  ;;  %11917 = vmatmul.mubr.msk.bf16.gmra.mrb[136].mxu0 %vm2572_vm4, %v4042_v41 }
 0x3bf   : > { %v12828_v56 = vpop.eup %12827  ;;  %12845 = vrcp.f32 %v3857_v27  ;;  %v10780_v1 = vmul.f32 -1.442695, %v3723_v44  ;;  %v3726_v54 = vadd.f32 %v11899_v16, %v15225_v15  ;;  %v3717_v34 = vpop.f32.mrb[123].mxu0  ;;  %v15443_v37 = vmul.f32 %v15427_v3, %v15098_v5 }
 0x3c0   : > { %21424 = vst [vmem:[#allocation90_spill] sm:$0xff] %v15433_v28  ;;  %21425 = vst [vmem:[#allocation88_spill] sm:$0xff] %v15437_v20  ;;  %v15445_v43 = vpop.eup %12829  ;;  %v3860_v58 = vadd.f32 1.0, %v12828_v56  ;;  %v10778_v47 = vmul.f32 -1.442695, %v3715_v30  ;;  %v3718_v59 = vadd.f32 %v15225_v15, %v3717_v34  ;;  %v15450_v51 = vmul.f32 %v15427_v3, %v15168_v48 }
 0x3c1   : > { %21426 = vst [vmem:[#allocation92_spill] sm:$0xff] %v15443_v37  ;;  %v12832_v27 = vpop.eup %12831  ;;  %12847 = vpow2.f32 %v10780_v1  ;;  %v10781_v44 = vmul.f32 -1.442695, %v3726_v54  ;;  %v15454_v41 = vmul.f32 %v15445_v43, %v15100_v39  ;;  %v15458_v5 = vmul.f32 %v15445_v43, %v15170_v36 }
 0x3c2   : > { %21427 = vst [vmem:[#allocation93_spill] sm:$0xff] %v15450_v51  ;;  %v12834_v16 = vpop.eup %12833  ;;  %12849 = vrcp.f32 %v3860_v58  ;;  %v15461_v30 = vmul.f32 %v12832_v27, %v15102_v63  ;;  %v15464_v56 = vmul.f32 %v12832_v27, %v15172_v13  ;;  %v10779_v39 = vmul.f32 -1.442695, %v3718_v59  ;;  %v21432_v59 = vld [vmem:[#allocation42_spill] sm:$0xff] }
 0x3c3   : > { %21428 = vst [vmem:[#allocation94_spill] sm:$0xff] %v15454_v41  ;;  %21429 = vst [vmem:[#allocation95_spill] sm:$0xff] %v15458_v5  ;;  %v12836_v48 = vpop.eup %12835  ;;  %v3858_v34 = vadd.f32 1.0, %v12834_v16  ;;  %12851 = vpow2.f32 %v10778_v47  ;;  %v4044_v13 = vpack.c.bf16 %v15454_v41, %v15433_v28 }
 0x3c4   : > { %21430 = vst [vmem:[#allocation96_spill] sm:$0xff] %v15461_v30  ;;  %21431 = vst [vmem:[#allocation97_spill] sm:$0xff] %v15464_v56  ;;  %v12838_v1 = vpop.eup %12837  ;;  %v3863_v54 = vadd.f32 1.0, %v12836_v48  ;;  %12853 = vpow2.f32 %v10781_v44  ;;  %v11902_v53 = vpop.f32.mrb[124].mxu0  ;;  %v4043_v36 = vpack.c.bf16 %v15461_v30, %v15443_v37  ;;  %v15475_v48 = vmul.f32 %v15391_v49, %v21432_v59  ;;  %v21434_v37 = vld [vmem:[#allocation77_spill] sm:$0xff]  ;;  %v21436_v49 = vld [vmem:[#allocation26_spill] sm:$0xff] }
 0x3c5   : > { %v12840_v21 = vpop.eup %12839  ;;  %12855 = vrcp.f32 %v3858_v34  ;;  %v3861_v58 = vadd.f32 1.0, %v12838_v1  ;;  %v3739_v63 = vadd.f32 %v11902_v53, %v15225_v15  ;;  %v3730_v42 = vpop.f32.mrb[125].mxu0 }
 0x3c6   : > { %v12842_v0 = vpop.eup %12841  ;;  %12857 = vrcp.f32 %v3863_v54  ;;  %v3864_v47 = vadd.f32 1.0, %v12840_v21  ;;  %v3731_v16 = vadd.f32 %v15225_v15, %v3730_v42  ;;  %v11903_v44 = vpop.f32.mrb[126].mxu0  ;;  %11920 = vmatprep.mubr.msk.bf16.mxu0 %vm2572_vm4, %v4043_v36  ;;  %21433 = vst [vmem:[#allocation42_spill] sm:$0xff] %v15475_v48 }
 0x3c7   : > { %12859 = vrcp.f32 %v3861_v58  ;;  %v3862_v34 = vadd.f32 1.0, %v12842_v0  ;;  %v10784_v1 = vmul.f32 -1.442695, %v3739_v63  ;;  %v3742_v53 = vadd.f32 %v11903_v44, %v15225_v15  ;;  %v3733_v30 = vpop.f32.mrb[127].mxu0  ;;  %11921 = vmatmul.mubr.msk.bf16.gmra.mrb[140].mxu0 %vm2572_vm4, %v4044_v13  ;;  %v21438_v63 = vld [vmem:[#allocation82_spill] sm:$0xff]  ;;  %v21440_v13 = vld [vmem:[#allocation27_spill] sm:$0xff] }
 0x3c8   : > { %v12844_v41 = vpop.eup %12843  ;;  %12861 = vrcp.f32 %v3864_v47  ;;  %v10782_v21 = vmul.f32 -1.442695, %v3731_v16  ;;  %v3734_v42 = vadd.f32 %v15225_v15, %v3733_v30  ;;  %v21442_v15 = vld [vmem:[#allocation41_spill] sm:$0xff]  ;;  %v21444_v16 = vld [vmem:[#allocation46_spill] sm:$0xff] }
 0x3c9   : > { %v12846_v54 = vpop.eup %12845  ;;  %12863 = vrcp.f32 %v3862_v34  ;;  %v10785_v36 = vmul.f32 -1.442695, %v3742_v53  ;;  %v15481_v28 = vmul.f32 %v12844_v41, %v21434_v37  ;;  %v15484_v58 = vmul.f32 %v12844_v41, %v21436_v49  ;;  %v21446_v34 = vld [vmem:[#allocation43_spill] sm:$0xff]  ;;  %v21448_v49 = vld [vmem:[#allocation48_spill] sm:$0xff] }
 0x3ca   : > { %12865 = vpow2.f32 %v10779_v39  ;;  %v10783_v0 = vmul.f32 -1.442695, %v3734_v42  ;;  %v15487_v44 = vmul.f32 %v12846_v54, %v21438_v63  ;;  %v15490_v59 = vmul.f32 %v12846_v54, %v21440_v13  ;;  %v21450_v13 = vld [vmem:[#allocation45_spill] sm:$0xff] }
 0x3cb   : > { %21435 = vst [vmem:[#allocation77_spill] sm:$0xff] %v15481_v28  ;;  %21437 = vst [vmem:[#allocation26_spill] sm:$0xff] %v15484_v58  ;;  %v12848_v47 = vpop.eup %12847  ;;  %12867 = vpow2.f32 %v10784_v1  ;;  %v15494_v30 = vmul.f32 %v15427_v3, %v21442_v15  ;;  %v15497_v37 = vmul.f32 %v12832_v27, %v21444_v16  ;;  %v15501_v53 = vmul.f32 %v15419_v25, %v21446_v34  ;;  %v21452_v3 = vld [vmem:[#allocation83_spill] sm:$0xff]  ;;  %v21454_v27 = vld [vmem:[#allocation25_spill] sm:$0xff] }
 0x3cc   : > { %21439 = vst [vmem:[#allocation82_spill] sm:$0xff] %v15487_v44  ;;  %21441 = vst [vmem:[#allocation27_spill] sm:$0xff] %v15490_v59  ;;  %v12850_v39 = vpop.eup %12849  ;;  %v3867_v42 = vadd.f32 1.0, %v12848_v47  ;;  %12869 = vpow2.f32 %v10782_v21  ;;  %v15505_v63 = vmul.f32 %v15445_v43, %v21448_v49  ;;  %v15508_v1 = vmul.f32 %v12846_v54, %v21450_v13  ;;  %v21456_v47 = vld [vmem:[#allocation47_spill] sm:$0xff]  ;;  %v21458_v54 = vld [vmem:[#allocation16_spill] sm:$0xff] }
 0x3cd   : > { %21443 = vst [vmem:[#allocation41_spill] sm:$0xff] %v15494_v30  ;;  %21445 = vst [vmem:[#allocation46_spill] sm:$0xff] %v15497_v37  ;;  %v12852_v48 = vpop.eup %12851  ;;  %12871 = vpow2.f32 %v10785_v36  ;;  %v15511_v15 = vmul.f32 %v12850_v39, %v21452_v3  ;;  %v15514_v16 = vmul.f32 %v12850_v39, %v21454_v27  ;;  %v15517_v21 = vmul.f32 %v12844_v41, %v21456_v47  ;;  %v21460_v36 = vld [vmem:[#allocation32_spill] sm:$0xff]  ;;  %v21466_v41 = vld [vmem:[#allocation30_spill] sm:$0xff] }
 0x3ce   : > { %21447 = vst [vmem:[#allocation43_spill] sm:$0xff] %v15501_v53  ;;  %21449 = vst [vmem:[#allocation48_spill] sm:$0xff] %v15505_v63  ;;  %v12854_v25 = vpop.eup %12853  ;;  %12873 = vrcp.f32 %v3867_v42  ;;  %v3865_v34 = vadd.f32 1.0, %v12852_v48  ;;  %v21464_v48 = vld [vmem:[#allocation14_spill] sm:$0xff]  ;;  %v21476_v37 = vld [vmem:[#allocation29_spill] sm:$0xff] }
 0x3cf   : > { %21451 = vst [vmem:[#allocation45_spill] sm:$0xff] %v15508_v1  ;;  %21453 = vst [vmem:[#allocation83_spill] sm:$0xff] %v15511_v15  ;;  %v12856_v53 = vpop.eup %12855  ;;  %v3868_v43 = vadd.f32 1.0, %v12854_v25  ;;  %12875 = vpow2.f32 %v10783_v0  ;;  %v21462_v1 = vld [vmem:[#allocation50_spill] sm:$0xff]  ;;  %v21468_v0 = vld [vmem:[#allocation52_spill] sm:$0xff] }
 0x3d0   : > { %21455 = vst [vmem:[#allocation25_spill] sm:$0xff] %v15514_v16  ;;  %21457 = vst [vmem:[#allocation47_spill] sm:$0xff] %v15517_v21  ;;  %v12858_v49 = vpop.eup %12857  ;;  %12877 = vrcp.f32 %v3865_v34  ;;  %v15520_v13 = vmul.f32 %v12856_v53, %v21458_v54  ;;  %v15523_v3 = vmul.f32 %v12856_v53, %v21460_v36  ;;  %v15526_v27 = vmul.f32 %v12856_v53, %v21462_v1  ;;  %v21470_v36 = vld [vmem:[#allocation15_spill] sm:$0xff] }
 0x3d1   : > { %v12860_v63 = vpop.eup %12859  ;;  %12879 = vrcp.f32 %v3868_v43  ;;  %v15529_v42 = vmul.f32 %v12858_v49, %v21464_v48  ;;  %v15532_v47 = vmul.f32 %v12858_v49, %v21466_v41  ;;  %v15535_v25 = vmul.f32 %v12850_v39, %v21468_v0  ;;  %v21472_v53 = vld [vmem:[#allocation31_spill] sm:$0xff] }
 0x3d2   : > { %21459 = vst [vmem:[#allocation16_spill] sm:$0xff] %v15520_v13  ;;  %21461 = vst [vmem:[#allocation32_spill] sm:$0xff] %v15523_v3  ;;  %v12862_v34 = vpop.eup %12861  ;;  %v4045_v54 = vpack.c.bf16 %v15520_v13, %v15487_v44  ;;  %v15540_v21 = vmul.f32 %v12860_v63, %v21470_v36  ;;  %v15543_v1 = vmul.f32 %v12860_v63, %v21472_v53  ;;  %v21478_v13 = vld [vmem:[#allocation20_spill] sm:$0xff] }
 0x3d3   : > { %21463 = vst [vmem:[#allocation50_spill] sm:$0xff] %v15526_v27  ;;  %21465 = vst [vmem:[#allocation14_spill] sm:$0xff] %v15529_v42  ;;  %v12864_v43 = vpop.eup %12863  ;;  %v4046_v48 = vpack.c.bf16 %v15511_v15, %v15481_v28  ;;  %v21474_v27 = vld [vmem:[#allocation13_spill] sm:$0xff]  ;;  %v15551_v39 = vmul.f32 %v12862_v34, %v21476_v37  ;;  %v21480_v36 = vld [vmem:[#allocation36_spill] sm:$0xff]  ;;  %v15561_v53 = vmul.f32 %v12860_v63, %v15265_v24 }
 0x3d4   : > { %21467 = vst [vmem:[#allocation30_spill] sm:$0xff] %v15532_v47  ;;  %21469 = vst [vmem:[#allocation52_spill] sm:$0xff] %v15535_v25  ;;  %v15548_v41 = vmul.f32 %v12862_v34, %v21474_v27  ;;  %v12866_v0 = vpop.eup %12865  ;;  %11924 = vmatprep.mubr.msk.bf16.mxu0 %vm2572_vm4, %v4045_v54  ;;  %v15555_v44 = vmul.f32 %v12864_v43, %v21478_v13  ;;  %v15558_v25 = vmul.f32 %v12864_v43, %v21480_v36  ;;  %v21484_v37 = vld [vmem:[#allocation51_spill] sm:$0xff] }
 0x3d5   : > { %21471 = vst [vmem:[#allocation15_spill] sm:$0xff] %v15540_v21  ;;  %21473 = vst [vmem:[#allocation31_spill] sm:$0xff] %v15543_v1  ;;  %v15564_v15 = vmul.f32 %v12864_v43, %v15269_v57  ;;  %v12868_v27 = vpop.eup %12867  ;;  %v3866_v28 = vadd.f32 1.0, %v12866_v0  ;;  %11925 = vmatmul.mubr.msk.bf16.gmra.mrb[144].mxu0 %vm2572_vm4, %v4046_v48  ;;  %v15568_v30 = vmul.f32 %v12858_v49, %v21484_v37  ;;  %v21487_v49 = vld [vmem:[#allocation18_spill] sm:$0xff] }
 0x3d6   : > { %21475 = vst [vmem:[#allocation13_spill] sm:$0xff] %v15548_v41  ;;  %21477 = vst [vmem:[#allocation29_spill] sm:$0xff] %v15551_v39  ;;  %v12870_v54 = vpop.eup %12869  ;;  %v3871_v22 = vadd.f32 1.0, %v12868_v27  ;;  %v4047_v13 = vpack.c.bf16 %v15555_v44, %v15540_v21  ;;  %v15573_v24 = vmul.f32 %v12862_v34, %v15267_v40  ;;  %v21489_v0 = vld [vmem:[#allocation34_spill] sm:$0xff]  ;;  %v21492_v34 = vld [vmem:[#allocation19_spill] sm:$0xff] }
 0x3d7   : > { %21479 = vst [vmem:[#allocation20_spill] sm:$0xff] %v15555_v44  ;;  %21481 = vst [vmem:[#allocation36_spill] sm:$0xff] %v15558_v25  ;;  %v12872_v36 = vpop.eup %12871  ;;  %12881 = vrcp.f32 %v3866_v28  ;;  %v3869_v61 = vadd.f32 1.0, %v12870_v54  ;;  %v21504_v21 = vld [vmem:[#allocation40_spill] sm:$0xff] }
 0x3d8   : > { %21482 = vst [vmem:[#allocation98_spill] sm:$0xff] %v15561_v53  ;;  %21483 = vst [vmem:[#allocation99_spill] sm:$0xff] %v15564_v15  ;;  %v12874_v57 = vpop.eup %12873  ;;  %12883 = vrcp.f32 %v3871_v22  ;;  %v3872_v63 = vadd.f32 1.0, %v12872_v36  ;;  %11928 = vmatprep.mubr.msk.bf16.mxu0 %vm2572_vm4, %v4047_v13  ;;  %v4048_v22 = vpack.c.bf16 %v15548_v41, %v15529_v42  ;;  %v21502_v41 = vld [vmem:[#allocation24_spill] sm:$0xff]  ;;  %v21509_v42 = vld [vmem:[#allocation38_spill] sm:$0xff] }
 0x3d9   : > { %21485 = vst [vmem:[#allocation51_spill] sm:$0xff] %v15568_v30  ;;  %21486 = vst [vmem:[#allocation100_spill] sm:$0xff] %v15573_v24  ;;  %v12876_v43 = vpop.eup %12875  ;;  %12885 = vrcp.f32 %v3869_v61  ;;  %v15577_v48 = vmul.f32 %v12874_v57, %v21487_v49  ;;  %v15580_v27 = vmul.f32 %v12874_v57, %v21489_v0  ;;  %v15583_v54 = vmul.f32 %v12874_v57, %v15307_v29  ;;  %v21494_v61 = vld [vmem:[#allocation35_spill] sm:$0xff]  ;;  %v21497_v0 = vld [vmem:[#allocation17_spill] sm:$0xff] }
 0x3da   : > { %v12878_v37 = vpop.eup %12877  ;;  %12887 = vrcp.f32 %v3872_v63  ;;  %v3870_v28 = vadd.f32 1.0, %v12876_v43  ;;  %v21499_v43 = vld [vmem:[#allocation33_spill] sm:$0xff] }
 0x3db   : > { %21488 = vst [vmem:[#allocation18_spill] sm:$0xff] %v15577_v48  ;;  %21490 = vst [vmem:[#allocation34_spill] sm:$0xff] %v15580_v27  ;;  %v12880_v40 = vpop.eup %12879  ;;  %v15588_v13 = vmul.f32 %v12878_v37, %v21492_v34  ;;  %v15591_v36 = vmul.f32 %v12878_v37, %v21494_v61  ;;  %v15594_v49 = vmul.f32 %v12878_v37, %v15310_v14 }
 0x3dc   : > { %21491 = vst [vmem:[#allocation101_spill] sm:$0xff] %v15583_v54  ;;  %12889 = vrcp.f32 %v3870_v28  ;;  %v15597_v63 = vmul.f32 %v12880_v40, %v21497_v0  ;;  %v15600_v29 = vmul.f32 %v12880_v40, %v21499_v43  ;;  %v15603_v57 = vmul.f32 %v12880_v40, %v15315_v46  ;;  %v21507_v0 = vld [vmem:[#allocation22_spill] sm:$0xff]  ;;  %v21514_v54 = vld [vmem:[#allocation39_spill] sm:$0xff] }
 0x3dd   : > { %21493 = vst [vmem:[#allocation19_spill] sm:$0xff] %v15588_v13  ;;  %21495 = vst [vmem:[#allocation35_spill] sm:$0xff] %v15591_v36  ;;  %11929 = vmatmul.mubr.msk.bf16.gmra.mrb[148].mxu0 %vm2572_vm4, %v4048_v22 }
 0x3de   : > { %21496 = vst [vmem:[#allocation102_spill] sm:$0xff] %v15594_v49  ;;  %21498 = vst [vmem:[#allocation17_spill] sm:$0xff] %v15597_v63 }
 0x3df   : > { %21500 = vst [vmem:[#allocation33_spill] sm:$0xff] %v15600_v29  ;;  %21501 = vst [vmem:[#allocation103_spill] sm:$0xff] %v15603_v57  ;;  %v21512_v57 = vld [vmem:[#allocation23_spill] sm:$0xff] }
 0x3e1   : > { %v12882_v34 = vpop.eup %12881 }
 0x3e2   : > { %v12884_v44 = vpop.eup %12883  ;;  %v15607_v61 = vmul.f32 %v12882_v34, %v21502_v41  ;;  %v15610_v14 = vmul.f32 %v12882_v34, %v21504_v21  ;;  %v15613_v37 = vmul.f32 %v12882_v34, %v15320_v32  ;;  %v4050_v34 = vpack.c.bf16 %v15597_v63, %v15577_v48  ;;  %v21524_v63 = vld [vmem:[#allocation44_spill] sm:$0xff] }
 0x3e3   : > { %v12886_v28 = vpop.eup %12885  ;;  %v15616_v43 = vmul.f32 %v12884_v44, %v21507_v0  ;;  %v15619_v46 = vmul.f32 %v12884_v44, %v21509_v42  ;;  %v15622_v40 = vmul.f32 %v12884_v44, %v15349_v18  ;;  %v21516_v0 = vld [vmem:[#allocation21_spill] sm:$0xff] }
 0x3e4   : > { %21503 = vst [vmem:[#allocation24_spill] sm:$0xff] %v15607_v61  ;;  %21505 = vst [vmem:[#allocation40_spill] sm:$0xff] %v15610_v14  ;;  %v12888_v22 = vpop.eup %12887  ;;  %v4049_v41 = vpack.c.bf16 %v15607_v61, %v15588_v13  ;;  %v15627_v21 = vmul.f32 %v12886_v28, %v21512_v57  ;;  %v15630_v32 = vmul.f32 %v12886_v28, %v21514_v54  ;;  %v21518_v42 = vld [vmem:[#allocation37_spill] sm:$0xff]  ;;  %v21522_v54 = vld [vmem:[#allocation28_spill] sm:$0xff] }
 0x3e5   : > { %21506 = vst [vmem:[#allocation104_spill] sm:$0xff] %v15613_v37  ;;  %21508 = vst [vmem:[#allocation22_spill] sm:$0xff] %v15616_v43  ;;  %v15635_v37 = vmul.f32 %v12888_v22, %v21516_v0  ;;  %v15638_v49 = vmul.f32 %v12888_v22, %v21518_v42  ;;  %v15641_v18 = vmul.f32 %v12886_v28, %v15360_v17 }
 0x3e6   : > { %21510 = vst [vmem:[#allocation38_spill] sm:$0xff] %v15619_v46  ;;  %21511 = vst [vmem:[#allocation105_spill] sm:$0xff] %v15622_v40  ;;  %v12890_v44 = vpop.eup %12889  ;;  %11932 = vmatprep.mubr.msk.bf16.mxu0 %vm2572_vm4, %v4049_v41  ;;  %v15645_v57 = vmul.f32 %v12888_v22, %v15365_v10  ;;  %v4053_v28 = vpack.c.bf16 %v15302_v12, %v15284_v50  ;;  %v4056_v22 = vpack.c.bf16 %v15344_v8, %v15329_v31 }
 0x3e7   : > { %21513 = vst [vmem:[#allocation23_spill] sm:$0xff] %v15627_v21  ;;  %21515 = vst [vmem:[#allocation39_spill] sm:$0xff] %v15630_v32  ;;  %11933 = vmatmul.mubr.msk.bf16.gmra.mrb[152].mxu0 %vm2572_vm4, %v4050_v34  ;;  %v15649_v61 = vmul.f32 %v12890_v44, %v21522_v54  ;;  %v15652_v0 = vmul.f32 %v12890_v44, %v21524_v63  ;;  %v15655_v42 = vmul.f32 %v12890_v44, %v15370_v6 }
 0x3e8   : > { %21517 = vst [vmem:[#allocation21_spill] sm:$0xff] %v15635_v37  ;;  %21519 = vst [vmem:[#allocation37_spill] sm:$0xff] %v15638_v49  ;;  %v4052_v10 = vpack.c.bf16 %v15635_v37, %v15616_v43  ;;  %v4054_v63 = vpack.c.bf16 %v15293_v9, %v15275_v2  ;;  %v4055_v6 = vpack.c.bf16 %v15355_v52, %v15335_v35 }
 0x3e9   : > { %21520 = vst [vmem:[#allocation106_spill] sm:$0xff] %v15641_v18  ;;  %21521 = vst [vmem:[#allocation107_spill] sm:$0xff] %v15645_v57  ;;  %v4051_v17 = vpack.c.bf16 %v15649_v61, %v15627_v21  ;;  %v4057_v41 = vpack.c.bf16 %v15408_v33, %v15402_v62  ;;  %v4058_v34 = vpack.c.bf16 %v15412_v23, %v15383_v60  ;;  %v21575_v21 = vld [vmem:[#allocation49_spill] sm:$0xff] }
 0x3ea   : > { %21523 = vst [vmem:[#allocation28_spill] sm:$0xff] %v15649_v61  ;;  %21525 = vst [vmem:[#allocation44_spill] sm:$0xff] %v15652_v0  ;;  %v4059_v44 = vpack.c.bf16 %v15464_v56, %v15450_v51  ;;  %v4060_v54 = vpack.c.bf16 %v15458_v5, %v15437_v20 }
 0x3eb   : > { %21526 = vst [vmem:[#allocation108_spill] sm:$0xff] %v15655_v42  ;;  %11936 = vmatprep.mubr.msk.bf16.mxu0 %vm2572_vm4, %v4051_v17  ;;  %v4061_v17 = vpack.c.bf16 %v15523_v3, %v15490_v59 }
 0x3ef   : > { %11937 = vmatmul.mubr.msk.bf16.gmra.mrb[156].mxu0 %vm2572_vm4, %v4052_v10  ;;  %v4062_v10 = vpack.c.bf16 %v15514_v16, %v15484_v58 }
 0x3f0   : > { %11940 = vmatprep.mubr.msk.bf16.mxu0 %vm2572_vm4, %v4053_v28  ;;  %v4063_v28 = vpack.c.bf16 %v15558_v25, %v15543_v1 }
 0x3f7   : > { %11941 = vmatmul.mubr.msk.bf16.gmra.mrb[160].mxu0 %vm2572_vm4, %v4054_v63  ;;  %v4064_v63 = vpack.c.bf16 %v15551_v39, %v15532_v47 }
 0x3f8   : > { %11944 = vmatprep.mubr.msk.bf16.mxu0 %vm2572_vm4, %v4055_v6  ;;  %v4065_v6 = vpack.c.bf16 %v15610_v14, %v15591_v36 }
 0x3ff   : > { %11945 = vmatmul.mubr.msk.bf16.gmra.mrb[164].mxu0 %vm2572_vm4, %v4056_v22  ;;  %v12687_v22 = vld [vmem:[%s20615_s12] sm:$0xff]  }
 0x400   : > { %11948 = vmatprep.mubr.msk.bf16.mxu0 %vm2572_vm4, %v4057_v41  ;;  %12004 = vmatprep.subr.bf16.mxu1 %v12687_v22  ;;  %v4066_v41 = vpack.c.bf16 %v15600_v29, %v15580_v27  ;;  %v21576_v29 = vld [vmem:[#allocation55_spill] sm:$0xff] }
 0x401   : > { %12005 = vmatpush3.bf16.msra.mxu1 %v12687_v22 }
 0x407   : > { %11949 = vmatmul.mubr.msk.bf16.gmra.mrb[168].mxu0 %vm2572_vm4, %v4058_v34  ;;  %v4067_v34 = vpack.c.bf16 %v15652_v0, %v15630_v32 }
 0x408   : > { %11952 = vmatprep.mubr.msk.bf16.mxu0 %vm2572_vm4, %v4059_v44  ;;  %v4068_v44 = vpack.c.bf16 %v15638_v49, %v15619_v46 }
 0x40f   : > { %11953 = vmatmul.mubr.msk.bf16.gmra.mrb[172].mxu0 %vm2572_vm4, %v4060_v54  ;;  %v4069_v54 = vpack.c.bf16 %v15305_v26, %v15287_v7  ;;  %v21532_v26 = vld [vmem:[#allocation46_spill] sm:$0xff] }
 0x410   : > { %11956 = vmatprep.mubr.msk.bf16.mxu0 %vm2572_vm4, %v4061_v17  ;;  %v4070_v17 = vpack.c.bf16 %v15296_v45, %v15278_v38 }
 0x417   : > { %11957 = vmatmul.mubr.msk.bf16.gmra.mrb[176].mxu0 %vm2572_vm4, %v4062_v10  ;;  %v4071_v10 = vpack.c.bf16 %v15358_v19, %v15338_v11  ;;  %v21535_v11 = vld [vmem:[#allocation45_spill] sm:$0xff] }
 0x418   : > { %11960 = vmatprep.mubr.msk.bf16.mxu0 %vm2572_vm4, %v4063_v28  ;;  %v21527_v28 = vld [vmem:[#allocation75_spill] sm:$0xff] }
 0x41f   : > { %11961 = vmatmul.mubr.msk.bf16.gmra.mrb[180].mxu0 %vm2572_vm4, %v4064_v63  ;;  %v4072_v63 = vpack.c.bf16 %v21527_v28, %v15347_v55  ;;  %v21536_v55 = vld [vmem:[#allocation50_spill] sm:$0xff] }
 0x420   : > { %11964 = vmatprep.mubr.msk.bf16.mxu0 %vm2572_vm4, %v4065_v6  ;;  %v21528_v6 = vld [vmem:[#allocation89_spill] sm:$0xff] }
 0x421   : > { %v4073_v22 = vpack.c.bf16 %v21528_v6, %v15415_v4  ;;  %v4077_v6 = vpack.c.bf16 %v21536_v55, %v21535_v11 }
 0x427   : > { %11965 = vmatmul.mubr.msk.bf16.gmra.mrb[184].mxu0 %vm2572_vm4, %v4066_v41  ;;  %v21529_v41 = vld [vmem:[#allocation79_spill] sm:$0xff] }
 0x428   : > { %11968 = vmatprep.mubr.msk.bf16.mxu0 %vm2572_vm4, %v4067_v34  ;;  %v21530_v34 = vld [vmem:[#allocation42_spill] sm:$0xff] }
 0x42f   : > { %11969 = vmatmul.mubr.msk.bf16.gmra.mrb[188].mxu0 %vm2572_vm4, %v4068_v44  ;;  %v4074_v44 = vpack.c.bf16 %v21530_v34, %v21529_v41 }
 0x430   : > { %11972 = vmatprep.mubr.msk.bf16.mxu0 %vm2572_vm4, %v4069_v54  ;;  %v21531_v54 = vld [vmem:[#allocation41_spill] sm:$0xff] }
 0x431   : > { %v4075_v19 = vpack.c.bf16 %v21532_v26, %v21531_v54  ;;  %v4079_v26 = vpack.c.bf16 %v15564_v15, %v15561_v53  ;;  %v4083_v15 = vpack.c.bf16 %v15655_v42, %v15641_v18 }
 0x437   : > { %11973 = vmatmul.mubr.msk.bf16.gmra.mrb[192].mxu0 %vm2572_vm4, %v4070_v17  ;;  %v21533_v17 = vld [vmem:[#allocation43_spill] sm:$0xff] }
 0x438   : > { %11976 = vmatprep.mubr.msk.bf16.mxu0 %vm2572_vm4, %v4071_v10  ;;  %v21534_v10 = vld [vmem:[#allocation48_spill] sm:$0xff] }
 0x439   : > { %v4076_v28 = vpack.c.bf16 %v21534_v10, %v21533_v17  ;;  %v21540_v10 = vld [vmem:[#allocation104_spill] sm:$0xff] }
 0x43f   : > { %11977 = vmatmul.mubr.msk.bf16.gmra.mrb[196].mxu0 %vm2572_vm4, %v4072_v63  ;;  %v21537_v63 = vld [vmem:[#allocation47_spill] sm:$0xff] }
 0x440   : > { %11980 = vmatprep.mubr.msk.bf16.mxu0 %vm2572_vm4, %v4073_v22  ;;  %v21538_v22 = vld [vmem:[#allocation52_spill] sm:$0xff] }
 0x441   : > { %v4078_v34 = vpack.c.bf16 %v21538_v22, %v21537_v63 }
 0x447   : > { %11981 = vmatmul.mubr.msk.bf16.gmra.mrb[200].mxu0 %vm2572_vm4, %v4074_v44  ;;  %v21539_v44 = vld [vmem:[#allocation102_spill] sm:$0xff] }
 0x448   : > { %11984 = vmatprep.mubr.msk.bf16.mxu0 %vm2572_vm4, %v4075_v19  ;;  %v4080_v19 = vpack.c.bf16 %v15573_v24, %v15568_v30  ;;  %v4081_v55 = vpack.c.bf16 %v21540_v10, %v21539_v44 }
 0x44f   : > { %11985 = vmatmul.mubr.msk.bf16.gmra.mrb[204].mxu0 %vm2572_vm4, %v4076_v28  ;;  %v21541_v28 = vld [vmem:[#allocation101_spill] sm:$0xff] }
 0x450   : > { %11988 = vmatprep.mubr.msk.bf16.mxu0 %vm2572_vm4, %v4077_v6  ;;  %v21542_v6 = vld [vmem:[#allocation103_spill] sm:$0xff] }
 0x451   : > { %v4082_v22 = vpack.c.bf16 %v21542_v6, %v21541_v28 }
 0x457   : > { %11989 = vmatmul.mubr.msk.bf16.gmra.mrb[208].mxu0 %vm2572_vm4, %v4078_v34 }
 0x458   : > { %11992 = vmatprep.mubr.msk.bf16.mxu0 %vm2572_vm4, %v4079_v26  ;;  %v4084_v26 = vpack.c.bf16 %v15645_v57, %v15622_v40 }
 0x45f   : > { %11993 = vmatmul.mubr.msk.bf16.gmra.mrb[212].mxu0 %vm2572_vm4, %v4080_v19 }
 0x460   : > { %11996 = vmatprep.mubr.msk.bf16.mxu0 %vm2572_vm4, %v4081_v55 }
 0x467   : > { %11997 = vmatmul.mubr.msk.bf16.gmra.mrb[216].mxu0 %vm2572_vm4, %v4082_v22 }
 0x468   : > { %12000 = vmatprep.mubr.msk.bf16.mxu0 %vm2572_vm4, %v4083_v15 }
 0x46f   : > { %12001 = vmatmul.mubr.msk.bf16.gmra.mrb[220].mxu0 %vm2572_vm4, %v4084_v26  ;;  %v12688_v26 = vld [vmem:[%s20615_s12 + $0x8] sm:$0xff]  }
 0x470   : > { %12006 = vmatprep.subr.bf16.mxu1 %v12688_v26 }
 0x471   : > { %12007 = vmatpush3.bf16.msra.mxu1 %v12688_v26 }
 0x477   : > { %v15762_v34 = vpop.f32.mrb[128].mxu0 }
 0x478   : > { %21543 = vst [vmem:[#allocation109_spill] sm:$0xff] %v15762_v34  ;;  %v15764_v19 = vpop.f32.mrb[129].mxu0  ;;  %v4660_v43 = vmul.f32 %v15762_v34, %v21575_v21  ;;  %v4820_v14 = vmul.f32 %v15762_v34, %v15762_v34 }
 0x479   : > { %21544 = vst [vmem:[#allocation110_spill] sm:$0xff] %v15764_v19  ;;  %v15766_v55 = vpop.f32.mrb[130].mxu0  ;;  %v4658_v36 = vmul.f32 %v15764_v19, %v21576_v29  ;;  %v21580_v29 = vld [vmem:[#allocation64_spill] sm:$0xff] }
 0x47a   : > { %21545 = vst [vmem:[#allocation111_spill] sm:$0xff] %v15766_v55  ;;  %v15768_v10 = vpop.f32.mrb[131].mxu0 }
 0x47b   : > { %21546 = vst [vmem:[#allocation112_spill] sm:$0xff] %v15768_v10 }
 0x481   : > { %v15770_v6 = vpop.f32.mrb[132].mxu0 }
 0x482   : > { %21547 = vst [vmem:[#allocation113_spill] sm:$0xff] %v15770_v6  ;;  %v15772_v42 = vpop.f32.mrb[133].mxu0 }
 0x483   : > { %21548 = vst [vmem:[#allocation114_spill] sm:$0xff] %v15772_v42  ;;  %v15774_v22 = vpop.f32.mrb[134].mxu0 }
 0x484   : > { %21549 = vst [vmem:[#allocation115_spill] sm:$0xff] %v15774_v22  ;;  %v15776_v15 = vpop.f32.mrb[135].mxu0 }
 0x485   : > { %21550 = vst [vmem:[#allocation116_spill] sm:$0xff] %v15776_v15 }
 0x491   : > { %v15781_v57 = vpop.f32.mrb[136].mxu0 }
 0x492   : > { %21551 = vst [vmem:[#allocation117_spill] sm:$0xff] %v15781_v57  ;;  %v15783_v18 = vpop.f32.mrb[137].mxu0 }
 0x493   : > { %21552 = vst [vmem:[#allocation118_spill] sm:$0xff] %v15783_v18  ;;  %v15785_v40 = vpop.f32.mrb[138].mxu0 }
 0x494   : > { %21553 = vst [vmem:[#allocation119_spill] sm:$0xff] %v15785_v40  ;;  %v15787_v44 = vpop.f32.mrb[139].mxu0 }
 0x495   : > { %21554 = vst [vmem:[#allocation120_spill] sm:$0xff] %v15787_v44 }
 0x49a   : > { %v15789_v28 = vpop.f32.mrb[140].mxu0 }
 0x49b   : > { %21555 = vst [vmem:[#allocation121_spill] sm:$0xff] %v15789_v28  ;;  %v15791_v24 = vpop.f32.mrb[141].mxu0 }
 0x49c   : > { %21556 = vst [vmem:[#allocation122_spill] sm:$0xff] %v15791_v24  ;;  %v15793_v53 = vpop.f32.mrb[142].mxu0 }
 0x49d   : > { %21557 = vst [vmem:[#allocation123_spill] sm:$0xff] %v15793_v53  ;;  %v15795_v30 = vpop.f32.mrb[143].mxu0 }
 0x49e   : > { %21558 = vst [vmem:[#allocation124_spill] sm:$0xff] %v15795_v30 }
 0x4a8   : > { %v15797_v11 = vpop.f32.mrb[144].mxu0 }
 0x4a9   : > { %21559 = vst [vmem:[#allocation125_spill] sm:$0xff] %v15797_v11  ;;  %v15799_v63 = vpop.f32.mrb[145].mxu0 }
 0x4aa   : > { %21560 = vst [vmem:[#allocation126_spill] sm:$0xff] %v15799_v63  ;;  %v15801_v26 = vpop.f32.mrb[146].mxu0 }
 0x4ab   : > { %21561 = vst [vmem:[#allocation127_spill] sm:$0xff] %v15801_v26  ;;  %v15803_v54 = vpop.f32.mrb[147].mxu0 }
 0x4ac   : > { %21562 = vst [vmem:[#allocation128_spill] sm:$0xff] %v15803_v54 }
 0x4b0   : > { %v15805_v17 = vpop.f32.mrb[148].mxu0 }
 0x4b1   : > { %21563 = vst [vmem:[#allocation129_spill] sm:$0xff] %v15805_v17  ;;  %v15807_v4 = vpop.f32.mrb[149].mxu0 }
 0x4b2   : > { %21564 = vst [vmem:[#allocation130_spill] sm:$0xff] %v15807_v4  ;;  %v15809_v41 = vpop.f32.mrb[150].mxu0 }
 0x4b3   : > { %21565 = vst [vmem:[#allocation131_spill] sm:$0xff] %v15809_v41  ;;  %v15811_v45 = vpop.f32.mrb[151].mxu0 }
 0x4b4   : > { %21566 = vst [vmem:[#allocation132_spill] sm:$0xff] %v15811_v45 }
 0x4ba   : > { %v15813_v7 = vpop.f32.mrb[152].mxu0 }
 0x4bb   : > { %21567 = vst [vmem:[#allocation133_spill] sm:$0xff] %v15813_v7  ;;  %v15815_v38 = vpop.f32.mrb[153].mxu0 }
 0x4bc   : > { %21568 = vst [vmem:[#allocation134_spill] sm:$0xff] %v15815_v38  ;;  %v15817_v0 = vpop.f32.mrb[154].mxu0 }
 0x4bd   : > { %21569 = vst [vmem:[#allocation135_spill] sm:$0xff] %v15817_v0  ;;  %v15819_v49 = vpop.f32.mrb[155].mxu0  ;;  %v4659_v0 = vmul.f32 %v15768_v10, %v21580_v29 }
 0x4be   : > { %21570 = vst [vmem:[#allocation136_spill] sm:$0xff] %v15819_v49  ;;  %v4818_v49 = vmul.f32 %v15764_v19, %v15764_v19  ;;  %v4819_v19 = vmul.f32 %v15768_v10, %v15768_v10 }
 0x4c2   : > { %v15821_v32 = vpop.f32.mrb[156].mxu0 }
 0x4c3   : > { %21571 = vst [vmem:[#allocation137_spill] sm:$0xff] %v15821_v32  ;;  %v15823_v61 = vpop.f32.mrb[157].mxu0  ;;  %v21578_v32 = vld [vmem:[#allocation58_spill] sm:$0xff] }
 0x4c4   : > { %21572 = vst [vmem:[#allocation138_spill] sm:$0xff] %v15823_v61  ;;  %v15825_v46 = vpop.f32.mrb[158].mxu0  ;;  %v4661_v61 = vmul.f32 %v15766_v55, %v21578_v32 }
 0x4c5   : > { %21573 = vst [vmem:[#allocation139_spill] sm:$0xff] %v15825_v46  ;;  %v15827_v37 = vpop.f32.mrb[159].mxu0 }
 0x4c6   : > { %21574 = vst [vmem:[#allocation140_spill] sm:$0xff] %v15827_v37  ;;  %v4821_v37 = vmul.f32 %v15766_v55, %v15766_v55 }
 0x4ca   : > { %v15837_v27 = vpop.f32.mrb[160].mxu0 }
 0x4cb   : > { %21577 = vst [vmem:[#allocation141_spill] sm:$0xff] %v15837_v27  ;;  %v4692_v21 = vmul.f32 %v15837_v27, %v15275_v2  ;;  %v4852_v34 = vmul.f32 %v15837_v27, %v15837_v27  ;;  %v15847_v46 = vpop.f32.mrb[161].mxu0 }
 0x4cc   : > { %21579 = vst [vmem:[#allocation142_spill] sm:$0xff] %v15847_v46  ;;  %v4690_v32 = vmul.f32 %v15847_v46, %v15284_v50  ;;  %v4850_v55 = vmul.f32 %v15847_v46, %v15847_v46  ;;  %v15857_v38 = vpop.f32.mrb[162].mxu0 }
 0x4cd   : > { %21581 = vst [vmem:[#allocation143_spill] sm:$0xff] %v15857_v38  ;;  %v15859_v2 = vadd.f32 %v4692_v21, %v4660_v43  ;;  %v15861_v13 = vadd.f32 %v4852_v34, %v4820_v14  ;;  %v4693_v27 = vmul.f32 %v15857_v38, %v15293_v9  ;;  %v4853_v29 = vmul.f32 %v15857_v38, %v15857_v38  ;;  %v15867_v7 = vpop.f32.mrb[163].mxu0  ;;  %v21583_v38 = vld [vmem:[#allocation61_spill] sm:$0xff] }
 0x4ce   : > { %21582 = vst [vmem:[#allocation144_spill] sm:$0xff] %v15867_v7  ;;  %v15869_v10 = vadd.f32 %v4690_v32, %v4658_v36  ;;  %v15871_v50 = vadd.f32 %v4850_v55, %v4818_v49  ;;  %v4691_v46 = vmul.f32 %v15867_v7, %v15302_v12  ;;  %v4851_v43 = vmul.f32 %v15867_v7, %v15867_v7  ;;  %v21584_v32 = vld [vmem:[#allocation66_spill] sm:$0xff] }
 0x4cf   : > { %v15877_v14 = vadd.f32 %v4693_v27, %v4661_v61  ;;  %v15879_v21 = vadd.f32 %v4853_v29, %v4821_v37  ;;  %v4664_v36 = vmul.f32 %v15770_v6, %v21583_v38  ;;  %v4824_v49 = vmul.f32 %v15770_v6, %v15770_v6  ;;  %v21586_v29 = vld [vmem:[#allocation72_spill] sm:$0xff] }
 0x4d0   : > { %v15881_v34 = vadd.f32 %v4691_v46, %v4659_v0  ;;  %v15883_v9 = vadd.f32 %v4851_v43, %v4819_v19  ;;  %v4662_v55 = vmul.f32 %v15772_v42, %v21584_v32  ;;  %v4822_v12 = vmul.f32 %v15772_v42, %v15772_v42  ;;  %v21588_v43 = vld [vmem:[#allocation69_spill] sm:$0xff] }
 0x4d1   : > { %v4665_v61 = vmul.f32 %v15774_v22, %v21586_v29  ;;  %v4825_v37 = vmul.f32 %v15774_v22, %v15774_v22  ;;  %v4663_v7 = vmul.f32 %v15776_v15, %v21588_v43  ;;  %v4823_v38 = vmul.f32 %v15776_v15, %v15776_v15 }
 0x4d2   : > { %v15893_v27 = vpop.f32.mrb[164].mxu0 }
 0x4d3   : > { %21585 = vst [vmem:[#allocation145_spill] sm:$0xff] %v15893_v27  ;;  %v4696_v46 = vmul.f32 %v15893_v27, %v15329_v31  ;;  %v4856_v0 = vmul.f32 %v15893_v27, %v15893_v27  ;;  %v15903_v19 = vpop.f32.mrb[165].mxu0 }
 0x4d4   : > { %21587 = vst [vmem:[#allocation146_spill] sm:$0xff] %v15903_v19  ;;  %v4694_v29 = vmul.f32 %v15903_v19, %v15335_v35  ;;  %v4854_v22 = vmul.f32 %v15903_v19, %v15903_v19  ;;  %v15913_v6 = vpop.f32.mrb[166].mxu0 }
 0x4d5   : > { %21589 = vst [vmem:[#allocation147_spill] sm:$0xff] %v15913_v6  ;;  %v15915_v31 = vadd.f32 %v4696_v46, %v4664_v36  ;;  %v15917_v32 = vadd.f32 %v4856_v0, %v4824_v49  ;;  %v4697_v27 = vmul.f32 %v15913_v6, %v15344_v8  ;;  %v4857_v43 = vmul.f32 %v15913_v6, %v15913_v6  ;;  %v15923_v42 = vpop.f32.mrb[167].mxu0  ;;  %v21591_v6 = vld [vmem:[#allocation73_spill] sm:$0xff] }
 0x4d6   : > { %21590 = vst [vmem:[#allocation148_spill] sm:$0xff] %v15923_v42  ;;  %v15925_v15 = vadd.f32 %v4694_v29, %v4662_v55  ;;  %v15927_v35 = vadd.f32 %v4854_v22, %v4822_v12  ;;  %v4695_v19 = vmul.f32 %v15923_v42, %v15355_v52  ;;  %v4855_v36 = vmul.f32 %v15923_v42, %v15923_v42  ;;  %v21592_v22 = vld [vmem:[#allocation80_spill] sm:$0xff] }
 0x4d7   : > { %v15933_v49 = vadd.f32 %v4697_v27, %v4665_v61  ;;  %v15935_v46 = vadd.f32 %v4857_v43, %v4825_v37  ;;  %v4668_v55 = vmul.f32 %v15781_v57, %v21591_v6  ;;  %v4828_v12 = vmul.f32 %v15781_v57, %v15781_v57  ;;  %v21594_v61 = vld [vmem:[#allocation78_spill] sm:$0xff] }
 0x4d8   : > { %v15937_v0 = vadd.f32 %v4695_v19, %v4663_v7  ;;  %v15939_v8 = vadd.f32 %v4855_v36, %v4823_v38  ;;  %v4666_v29 = vmul.f32 %v15783_v18, %v21592_v22  ;;  %v4826_v52 = vmul.f32 %v15783_v18, %v15783_v18  ;;  %v21596_v36 = vld [vmem:[#allocation85_spill] sm:$0xff] }
 0x4d9   : > { %v4669_v7 = vmul.f32 %v15785_v40, %v21594_v61  ;;  %v4829_v38 = vmul.f32 %v15785_v40, %v15785_v40  ;;  %v4667_v42 = vmul.f32 %v15787_v44, %v21596_v36  ;;  %v4827_v6 = vmul.f32 %v15787_v44, %v15787_v44 }
 0x4da   : > { %v15949_v27 = vpop.f32.mrb[168].mxu0 }
 0x4db   : > { %21593 = vst [vmem:[#allocation149_spill] sm:$0xff] %v15949_v27  ;;  %v4700_v37 = vmul.f32 %v15949_v27, %v15383_v60  ;;  %v4860_v19 = vmul.f32 %v15949_v27, %v15949_v27  ;;  %v15959_v43 = vpop.f32.mrb[169].mxu0 }
 0x4dc   : > { %21595 = vst [vmem:[#allocation150_spill] sm:$0xff] %v15959_v43  ;;  %v4698_v61 = vmul.f32 %v15959_v43, %v15402_v62  ;;  %v4858_v40 = vmul.f32 %v15959_v43, %v15959_v43  ;;  %v15969_v57 = vpop.f32.mrb[170].mxu0 }
 0x4dd   : > { %21597 = vst [vmem:[#allocation151_spill] sm:$0xff] %v15969_v57  ;;  %v15971_v60 = vadd.f32 %v4700_v37, %v4668_v55  ;;  %v15973_v22 = vadd.f32 %v4860_v19, %v4828_v12  ;;  %v4701_v27 = vmul.f32 %v15969_v57, %v15412_v23  ;;  %v4861_v36 = vmul.f32 %v15969_v57, %v15969_v57  ;;  %v15979_v18 = vpop.f32.mrb[171].mxu0  ;;  %v21599_v57 = vld [vmem:[#allocation90_spill] sm:$0xff] }
 0x4de   : > { %21598 = vst [vmem:[#allocation152_spill] sm:$0xff] %v15979_v18  ;;  %v15981_v44 = vadd.f32 %v4698_v61, %v4666_v29  ;;  %v15983_v62 = vadd.f32 %v4858_v40, %v4826_v52  ;;  %v4699_v43 = vmul.f32 %v15979_v18, %v15408_v33  ;;  %v4859_v55 = vmul.f32 %v15979_v18, %v15979_v18  ;;  %v21600_v40 = vld [vmem:[#allocation92_spill] sm:$0xff] }
 0x4df   : > { %v15989_v12 = vadd.f32 %v4701_v27, %v4669_v7  ;;  %v15991_v37 = vadd.f32 %v4861_v36, %v4829_v38  ;;  %v4672_v29 = vmul.f32 %v15789_v28, %v21599_v57  ;;  %v4832_v52 = vmul.f32 %v15789_v28, %v15789_v28  ;;  %v21602_v7 = vld [vmem:[#allocation94_spill] sm:$0xff] }
 0x4e0   : > { %v15993_v19 = vadd.f32 %v4699_v43, %v4667_v42  ;;  %v15995_v23 = vadd.f32 %v4859_v55, %v4827_v6  ;;  %v4670_v61 = vmul.f32 %v15791_v24, %v21600_v40  ;;  %v4830_v33 = vmul.f32 %v15791_v24, %v15791_v24  ;;  %v21604_v55 = vld [vmem:[#allocation96_spill] sm:$0xff] }
 0x4e1   : > { %v4673_v42 = vmul.f32 %v15793_v53, %v21602_v7  ;;  %v4833_v6 = vmul.f32 %v15793_v53, %v15793_v53  ;;  %v4671_v18 = vmul.f32 %v15795_v30, %v21604_v55  ;;  %v4831_v57 = vmul.f32 %v15795_v30, %v15795_v30 }
 0x4e2   : > { %v16005_v27 = vpop.f32.mrb[172].mxu0 }
 0x4e3   : > { %21601 = vst [vmem:[#allocation153_spill] sm:$0xff] %v16005_v27  ;;  %v4704_v38 = vmul.f32 %v16005_v27, %v15437_v20  ;;  %v4864_v43 = vmul.f32 %v16005_v27, %v16005_v27  ;;  %v16015_v36 = vpop.f32.mrb[173].mxu0 }
 0x4e4   : > { %21603 = vst [vmem:[#allocation154_spill] sm:$0xff] %v16015_v36  ;;  %v4702_v7 = vmul.f32 %v16015_v36, %v15450_v51  ;;  %v4862_v53 = vmul.f32 %v16015_v36, %v16015_v36  ;;  %v16025_v28 = vpop.f32.mrb[174].mxu0 }
 0x4e5   : > { %21605 = vst [vmem:[#allocation155_spill] sm:$0xff] %v16025_v28  ;;  %v16027_v20 = vadd.f32 %v4704_v38, %v4672_v29  ;;  %v16029_v40 = vadd.f32 %v4864_v43, %v4832_v52  ;;  %v4705_v27 = vmul.f32 %v16025_v28, %v15458_v5  ;;  %v4865_v55 = vmul.f32 %v16025_v28, %v16025_v28  ;;  %v16035_v24 = vpop.f32.mrb[175].mxu0  ;;  %v21607_v28 = vld [vmem:[#allocation77_spill] sm:$0xff] }
 0x4e6   : > { %21606 = vst [vmem:[#allocation156_spill] sm:$0xff] %v16035_v24  ;;  %v16037_v30 = vadd.f32 %v4702_v7, %v4670_v61  ;;  %v16039_v51 = vadd.f32 %v4862_v53, %v4830_v33  ;;  %v4703_v36 = vmul.f32 %v16035_v24, %v15464_v56  ;;  %v4863_v29 = vmul.f32 %v16035_v24, %v16035_v24  ;;  %v21608_v53 = vld [vmem:[#allocation82_spill] sm:$0xff] }
 0x4e7   : > { %v16045_v52 = vadd.f32 %v4705_v27, %v4673_v42  ;;  %v16047_v38 = vadd.f32 %v4865_v55, %v4833_v6  ;;  %v4676_v61 = vmul.f32 %v15797_v11, %v21607_v28  ;;  %v4836_v33 = vmul.f32 %v15797_v11, %v15797_v11  ;;  %v21610_v42 = vld [vmem:[#allocation83_spill] sm:$0xff] }
 0x4e8   : > { %v16049_v43 = vadd.f32 %v4703_v36, %v4671_v18  ;;  %v16051_v5 = vadd.f32 %v4863_v29, %v4831_v57  ;;  %v4674_v7 = vmul.f32 %v15799_v63, %v21608_v53  ;;  %v4834_v56 = vmul.f32 %v15799_v63, %v15799_v63  ;;  %v21612_v29 = vld [vmem:[#allocation16_spill] sm:$0xff] }
 0x4e9   : > { %v4677_v18 = vmul.f32 %v15801_v26, %v21610_v42  ;;  %v4837_v57 = vmul.f32 %v15801_v26, %v15801_v26  ;;  %v4675_v24 = vmul.f32 %v15803_v54, %v21612_v29  ;;  %v4835_v28 = vmul.f32 %v15803_v54, %v15803_v54 }
 0x4ea   : > { %v16061_v27 = vpop.f32.mrb[176].mxu0 }
 0x4eb   : > { %21609 = vst [vmem:[#allocation157_spill] sm:$0xff] %v16061_v27  ;;  %v4708_v6 = vmul.f32 %v16061_v27, %v15484_v58  ;;  %v4868_v36 = vmul.f32 %v16061_v27, %v16061_v27  ;;  %v16071_v55 = vpop.f32.mrb[177].mxu0 }
 0x4ec   : > { %21611 = vst [vmem:[#allocation158_spill] sm:$0xff] %v16071_v55  ;;  %v4706_v42 = vmul.f32 %v16071_v55, %v15490_v59  ;;  %v4866_v26 = vmul.f32 %v16071_v55, %v16071_v55  ;;  %v16081_v11 = vpop.f32.mrb[178].mxu0 }
 0x4ed   : > { %21613 = vst [vmem:[#allocation159_spill] sm:$0xff] %v16081_v11  ;;  %v16083_v58 = vadd.f32 %v4708_v6, %v4676_v61  ;;  %v16085_v53 = vadd.f32 %v4868_v36, %v4836_v33  ;;  %v4709_v27 = vmul.f32 %v16081_v11, %v15514_v16  ;;  %v4869_v29 = vmul.f32 %v16081_v11, %v16081_v11  ;;  %v16091_v63 = vpop.f32.mrb[179].mxu0  ;;  %v21620_v11 = vld [vmem:[#allocation14_spill] sm:$0xff] }
 0x4ee   : > { %21614 = vst [vmem:[#allocation160_spill] sm:$0xff] %v16091_v63  ;;  %v16093_v54 = vadd.f32 %v4706_v42, %v4674_v7  ;;  %v16095_v59 = vadd.f32 %v4866_v26, %v4834_v56  ;;  %v4707_v55 = vmul.f32 %v16091_v63, %v15523_v3  ;;  %v4867_v61 = vmul.f32 %v16091_v63, %v16091_v63  ;;  %v21621_v26 = vld [vmem:[#allocation15_spill] sm:$0xff] }
 0x4ef   : > { %v16101_v33 = vadd.f32 %v4709_v27, %v4677_v18  ;;  %v16103_v6 = vadd.f32 %v4869_v29, %v4837_v57  ;;  %v4680_v7 = vmul.f32 %v15805_v17, %v21620_v11  ;;  %v4840_v56 = vmul.f32 %v15805_v17, %v15805_v17  ;;  %v21623_v18 = vld [vmem:[#allocation13_spill] sm:$0xff] }
 0x4f0   : > { %21615 = vst [vmem:[#allocation161_spill] sm:$0xff] %v16095_v59  ;;  %v16105_v36 = vadd.f32 %v4707_v55, %v4675_v24  ;;  %v16107_v16 = vadd.f32 %v4867_v61, %v4835_v28  ;;  %v4678_v42 = vmul.f32 %v15807_v4, %v21621_v26  ;;  %v4838_v3 = vmul.f32 %v15807_v4, %v15807_v4  ;;  %v21625_v61 = vld [vmem:[#allocation20_spill] sm:$0xff] }
 0x4f1   : > { %21616 = vst [vmem:[#allocation162_spill] sm:$0xff] %v16101_v33  ;;  %21617 = vst [vmem:[#allocation163_spill] sm:$0xff] %v16103_v6  ;;  %v4681_v24 = vmul.f32 %v15809_v41, %v21623_v18  ;;  %v4841_v28 = vmul.f32 %v15809_v41, %v15809_v41  ;;  %v4679_v63 = vmul.f32 %v15811_v45, %v21625_v61 }
 0x4f2   : > { %21618 = vst [vmem:[#allocation164_spill] sm:$0xff] %v16105_v36  ;;  %21619 = vst [vmem:[#allocation165_spill] sm:$0xff] %v16107_v16  ;;  %v16117_v27 = vpop.f32.mrb[180].mxu0  ;;  %v4839_v11 = vmul.f32 %v15811_v45, %v15811_v45 }
 0x4f3   : > { %21622 = vst [vmem:[#allocation166_spill] sm:$0xff] %v16117_v27  ;;  %v4712_v57 = vmul.f32 %v16117_v27, %v15532_v47  ;;  %v4872_v55 = vmul.f32 %v16117_v27, %v16117_v27  ;;  %v16127_v29 = vpop.f32.mrb[181].mxu0 }
 0x4f4   : > { %21624 = vst [vmem:[#allocation167_spill] sm:$0xff] %v16127_v29  ;;  %v4710_v18 = vmul.f32 %v16127_v29, %v15543_v1  ;;  %v4870_v41 = vmul.f32 %v16127_v29, %v16127_v29  ;;  %v16137_v17 = vpop.f32.mrb[182].mxu0 }
 0x4f5   : > { %21626 = vst [vmem:[#allocation168_spill] sm:$0xff] %v16137_v17  ;;  %v16139_v47 = vadd.f32 %v4712_v57, %v4680_v7  ;;  %v16141_v26 = vadd.f32 %v4872_v55, %v4840_v56  ;;  %v4713_v27 = vmul.f32 %v16137_v17, %v15551_v39  ;;  %v4873_v61 = vmul.f32 %v16137_v17, %v16137_v17  ;;  %v16147_v4 = vpop.f32.mrb[183].mxu0  ;;  %v21636_v17 = vld [vmem:[#allocation133_spill] sm:$0xff] }
 0x4f6   : > { %21629 = vst [vmem:[#allocation171_spill] sm:$0xff] %v16147_v4  ;;  %v16149_v45 = vadd.f32 %v4710_v18, %v4678_v42  ;;  %v16151_v1 = vadd.f32 %v4870_v41, %v4838_v3  ;;  %v4711_v29 = vmul.f32 %v16147_v4, %v15558_v25  ;;  %v4871_v7 = vmul.f32 %v16147_v4, %v16147_v4  ;;  %v21637_v41 = vld [vmem:[#allocation19_spill] sm:$0xff]  ;;  %v21638_v18 = vld [vmem:[#allocation134_spill] sm:$0xff] }
 0x4f7   : > { %21627 = vst [vmem:[#allocation169_spill] sm:$0xff] %v16139_v47  ;;  %21628 = vst [vmem:[#allocation170_spill] sm:$0xff] %v16141_v26  ;;  %v16157_v56 = vadd.f32 %v4713_v27, %v4681_v24  ;;  %v16159_v57 = vadd.f32 %v4873_v61, %v4841_v28  ;;  %v4684_v42 = vmul.f32 %v21636_v17, %v15577_v48  ;;  %v21640_v24 = vld [vmem:[#allocation17_spill] sm:$0xff]  ;;  %v21641_v28 = vld [vmem:[#allocation135_spill] sm:$0xff] }
 0x4f8   : > { %21630 = vst [vmem:[#allocation172_spill] sm:$0xff] %v16149_v45  ;;  %21631 = vst [vmem:[#allocation173_spill] sm:$0xff] %v16151_v1  ;;  %v16161_v55 = vadd.f32 %v4711_v29, %v4679_v63  ;;  %v16163_v39 = vadd.f32 %v4871_v7, %v4839_v11  ;;  %v4844_v3 = vmul.f32 %v21636_v17, %v21636_v17  ;;  %v21642_v29 = vld [vmem:[#allocation34_spill] sm:$0xff]  ;;  %v21645_v17 = vld [vmem:[#allocation136_spill] sm:$0xff] }
 0x4f9   : > { %21632 = vst [vmem:[#allocation174_spill] sm:$0xff] %v16157_v56  ;;  %21633 = vst [vmem:[#allocation175_spill] sm:$0xff] %v16159_v57  ;;  %v4682_v25 = vmul.f32 %v21638_v18, %v21637_v41  ;;  %v4842_v4 = vmul.f32 %v21638_v18, %v21638_v18  ;;  %v4685_v63 = vmul.f32 %v21641_v28, %v21640_v24  ;;  %v21644_v41 = vld [vmem:[#allocation24_spill] sm:$0xff] }
 0x4fa   : > { %21634 = vst [vmem:[#allocation176_spill] sm:$0xff] %v16161_v55  ;;  %21635 = vst [vmem:[#allocation177_spill] sm:$0xff] %v16163_v39  ;;  %v16173_v27 = vpop.f32.mrb[184].mxu0  ;;  %v4845_v11 = vmul.f32 %v21641_v28, %v21641_v28  ;;  %v4683_v39 = vmul.f32 %v21645_v17, %v21644_v41  ;;  %v4843_v18 = vmul.f32 %v21645_v17, %v21645_v17  ;;  %v21646_v55 = vld [vmem:[#allocation35_spill] sm:$0xff]  ;;  %v21654_v26 = vld [vmem:[#allocation40_spill] sm:$0xff] }
 0x4fb   : > { %21639 = vst [vmem:[#allocation178_spill] sm:$0xff] %v16173_v27  ;;  %v4716_v61 = vmul.f32 %v16173_v27, %v21642_v29  ;;  %v4876_v7 = vmul.f32 %v16173_v27, %v16173_v27  ;;  %v16183_v48 = vpop.f32.mrb[185].mxu0  ;;  %v21650_v27 = vld [vmem:[#allocation33_spill] sm:$0xff] }
 0x4fc   : > { %21643 = vst [vmem:[#allocation179_spill] sm:$0xff] %v16183_v48  ;;  %v4714_v24 = vmul.f32 %v16183_v48, %v21646_v55  ;;  %v4874_v28 = vmul.f32 %v16183_v48, %v16183_v48  ;;  %v16193_v57 = vpop.f32.mrb[186].mxu0 }
 0x4fd   : > { %21647 = vst [vmem:[#allocation180_spill] sm:$0xff] %v16193_v57  ;;  %v16195_v29 = vadd.f32 %v4716_v61, %v4684_v42  ;;  %v16197_v56 = vadd.f32 %v4876_v7, %v4844_v3  ;;  %v4717_v1 = vmul.f32 %v16193_v57, %v21650_v27  ;;  %v4877_v41 = vmul.f32 %v16193_v57, %v16193_v57  ;;  %v16203_v45 = vpop.f32.mrb[187].mxu0  ;;  %v21659_v57 = vld [vmem:[#allocation22_spill] sm:$0xff] }
 0x4fe   : > { %21651 = vst [vmem:[#allocation183_spill] sm:$0xff] %v16203_v45  ;;  %v16205_v17 = vadd.f32 %v4714_v24, %v4682_v25  ;;  %v16207_v55 = vadd.f32 %v4874_v28, %v4842_v4  ;;  %v4715_v48 = vmul.f32 %v16203_v45, %v21654_v26  ;;  %v4875_v42 = vmul.f32 %v16203_v45, %v16203_v45  ;;  %v21661_v24 = vld [vmem:[#allocation23_spill] sm:$0xff]  ;;  %v21662_v28 = vld [vmem:[#allocation138_spill] sm:$0xff] }
 0x4ff   : > { %21648 = vst [vmem:[#allocation181_spill] sm:$0xff] %v16195_v29  ;;  %21649 = vst [vmem:[#allocation182_spill] sm:$0xff] %v16197_v56  ;;  %v16213_v3 = vadd.f32 %v4717_v1, %v4685_v63  ;;  %v16215_v61 = vadd.f32 %v4877_v41, %v4845_v11  ;;  %v21660_v56 = vld [vmem:[#allocation137_spill] sm:$0xff]  ;;  %v4686_v26 = vmul.f32 %v21662_v28, %v21661_v24  ;;  %v21665_v63 = vld [vmem:[#allocation139_spill] sm:$0xff] }
 0x500   : > { %21652 = vst [vmem:[#allocation184_spill] sm:$0xff] %v16205_v17  ;;  %21653 = vst [vmem:[#allocation185_spill] sm:$0xff] %v16207_v55  ;;  %v16217_v7 = vadd.f32 %v4715_v48, %v4683_v39  ;;  %v16219_v27 = vadd.f32 %v4875_v42, %v4843_v18  ;;  %v4688_v25 = vmul.f32 %v21660_v56, %v21659_v57  ;;  %v21664_v41 = vld [vmem:[#allocation21_spill] sm:$0xff]  ;;  %v21666_v18 = vld [vmem:[#allocation38_spill] sm:$0xff] }
 0x501   : > { %21655 = vst [vmem:[#allocation186_spill] sm:$0xff] %v16213_v3  ;;  %21656 = vst [vmem:[#allocation187_spill] sm:$0xff] %v16215_v61  ;;  %v4848_v4 = vmul.f32 %v21660_v56, %v21660_v56  ;;  %v4846_v45 = vmul.f32 %v21662_v28, %v21662_v28  ;;  %v4689_v39 = vmul.f32 %v21665_v63, %v21664_v41  ;;  %v21668_v24 = vld [vmem:[#allocation28_spill] sm:$0xff] }
 0x502   : > { %21657 = vst [vmem:[#allocation188_spill] sm:$0xff] %v16217_v7  ;;  %21658 = vst [vmem:[#allocation189_spill] sm:$0xff] %v16219_v27  ;;  %v16229_v1 = vpop.f32.mrb[188].mxu0  ;;  %v4849_v48 = vmul.f32 %v21665_v63, %v21665_v63  ;;  %v21669_v56 = vld [vmem:[#allocation140_spill] sm:$0xff]  ;;  %v21670_v7 = vld [vmem:[#allocation39_spill] sm:$0xff] }
 0x503   : > { %21663 = vst [vmem:[#allocation190_spill] sm:$0xff] %v16229_v1  ;;  %v4720_v11 = vmul.f32 %v16229_v1, %v21666_v18  ;;  %v4880_v42 = vmul.f32 %v16229_v1, %v16229_v1  ;;  %v16239_v57 = vpop.f32.mrb[189].mxu0  ;;  %v4687_v27 = vmul.f32 %v21669_v56, %v21668_v24  ;;  %v4847_v28 = vmul.f32 %v21669_v56, %v21669_v56  ;;  %v21674_v1 = vld [vmem:[#allocation37_spill] sm:$0xff]  ;;  %v21678_v29 = vld [vmem:[#allocation44_spill] sm:$0xff] }
 0x504   : > { %21667 = vst [vmem:[#allocation191_spill] sm:$0xff] %v16239_v57  ;;  %v4718_v41 = vmul.f32 %v16239_v57, %v21670_v7  ;;  %v4878_v63 = vmul.f32 %v16239_v57, %v16239_v57  ;;  %v16249_v61 = vpop.f32.mrb[190].mxu0 }
 0x505   : > { %21671 = vst [vmem:[#allocation192_spill] sm:$0xff] %v16249_v61  ;;  %v16251_v18 = vadd.f32 %v4720_v11, %v4688_v25  ;;  %v16253_v3 = vadd.f32 %v4880_v42, %v4848_v4  ;;  %v4721_v55 = vmul.f32 %v16249_v61, %v21674_v1  ;;  %v4881_v24 = vmul.f32 %v16249_v61, %v16249_v61  ;;  %v16259_v17 = vpop.f32.mrb[191].mxu0 }
 0x506   : > { %21675 = vst [vmem:[#allocation195_spill] sm:$0xff] %v16259_v17  ;;  %v16261_v56 = vadd.f32 %v4718_v41, %v4686_v26  ;;  %v16263_v7 = vadd.f32 %v4878_v63, %v4846_v45  ;;  %v4719_v57 = vmul.f32 %v16259_v17, %v21678_v29  ;;  %v4879_v25 = vmul.f32 %v16259_v17, %v16259_v17  ;;  %v21683_v26 = vld [vmem:[#allocation54_spill] sm:$0xff]  ;;  %v21684_v29 = vld [vmem:[#allocation60_spill] sm:$0xff] }
 0x507   : > { %21672 = vst [vmem:[#allocation193_spill] sm:$0xff] %v16251_v18  ;;  %21673 = vst [vmem:[#allocation194_spill] sm:$0xff] %v16253_v3  ;;  %v16269_v4 = vadd.f32 %v4721_v55, %v4689_v39  ;;  %v16271_v11 = vadd.f32 %v4881_v24, %v4849_v48  ;;  %v21685_v39 = vld [vmem:[#allocation57_spill] sm:$0xff]  ;;  %v21687_v3 = vld [vmem:[#allocation71_spill] sm:$0xff] }
 0x508   : > { %21676 = vst [vmem:[#allocation196_spill] sm:$0xff] %v16261_v56  ;;  %21677 = vst [vmem:[#allocation197_spill] sm:$0xff] %v16263_v7  ;;  %v16273_v42 = vadd.f32 %v4719_v57, %v4687_v27  ;;  %v16275_v1 = vadd.f32 %v4879_v25, %v4847_v28 }
 0x509   : > { %21679 = vst [vmem:[#allocation198_spill] sm:$0xff] %v16269_v4  ;;  %21680 = vst [vmem:[#allocation199_spill] sm:$0xff] %v16271_v11  ;;  %v21686_v11 = vld [vmem:[#allocation63_spill] sm:$0xff] }
 0x50a   : > { %21681 = vst [vmem:[#allocation200_spill] sm:$0xff] %v16273_v42  ;;  %21682 = vst [vmem:[#allocation201_spill] sm:$0xff] %v16275_v1  ;;  %v16277_v61 = vpop.f32.mrb[192].mxu0 }
 0x50b   : > { %v4756_v45 = vmul.f32 %v16277_v61, %v21683_v26  ;;  %v4916_v41 = vmul.f32 %v16277_v61, %v16277_v61  ;;  %v16283_v63 = vpop.f32.mrb[193].mxu0 }
 0x50c   : > { %v4754_v55 = vmul.f32 %v16283_v63, %v21684_v29  ;;  %v4914_v24 = vmul.f32 %v16283_v63, %v16283_v63  ;;  %v16289_v57 = vpop.f32.mrb[194].mxu0 }
 0x50d   : > { %v16292_v27 = vadd.f32 %v4756_v45, %v15859_v2  ;;  %v4948_v28 = vadd.f32 %v4916_v41, %v15861_v13  ;;  %v4757_v48 = vmul.f32 %v16289_v57, %v21685_v39  ;;  %v4917_v25 = vmul.f32 %v16289_v57, %v16289_v57  ;;  %v16299_v17 = vpop.f32.mrb[195].mxu0 }
 0x50e   : > { %v16302_v1 = vadd.f32 %v4754_v55, %v15869_v10  ;;  %v4946_v42 = vadd.f32 %v4914_v24, %v15871_v50  ;;  %v4755_v4 = vmul.f32 %v16299_v17, %v21686_v11  ;;  %v4915_v2 = vmul.f32 %v16299_v17, %v16299_v17 }
 0x50f   : > { %v4980_v13 = vadd.f32 1e-06, %v4948_v28  ;;  %v16310_v45 = vadd.f32 %v4757_v48, %v15877_v14  ;;  %v4949_v41 = vadd.f32 %v4917_v25, %v15879_v21  ;;  %v21689_v25 = vld [vmem:[#allocation75_spill] sm:$0xff]  ;;  %vm5076_vm5 = vcmp.ge.f32.partialorder %v16292_v27, 0.0 }
 0x510   : > { %v4978_v7 = vadd.f32 1e-06, %v4946_v42  ;;  %v16314_v56 = vadd.f32 %v4755_v4, %v15881_v34  ;;  %v4947_v10 = vadd.f32 %v4915_v2, %v15883_v9  ;;  %v21688_v34 = vld [vmem:[#allocation65_spill] sm:$0xff]  ;;  %vm5074_vm1 = vcmp.ge.f32.partialorder %v16302_v1, 0.0 }
 0x511   : > { %12891 = vrcp.f32 %v4980_v13  ;;  %v4981_v50 = vadd.f32 1e-06, %v4949_v41  ;;  %vm5077_vm2 = vcmp.ge.f32.partialorder %v16310_v45, 0.0 }
 0x512   : > { %12893 = vrcp.f32 %v4978_v7  ;;  %v4979_v55 = vadd.f32 1e-06, %v4947_v10  ;;  %v16317_v24 = vpop.f32.mrb[196].mxu0  ;;  %vm5075_vm3 = vcmp.ge.f32.partialorder %v16314_v56, 0.0 }
 0x513   : > { %12895 = vrcp.f32 %v4981_v50  ;;  %v4760_v28 = vmul.f32 %v16317_v24, %v21687_v3  ;;  %v4920_v14 = vmul.f32 %v16317_v24, %v16317_v24  ;;  %v16323_v21 = vpop.f32.mrb[197].mxu0 }
 0x514   : > { %12897 = vrcp.f32 %v4979_v55  ;;  %v4758_v4 = vmul.f32 %v16323_v21, %v21688_v34  ;;  %v4918_v9 = vmul.f32 %v16323_v21, %v16323_v21  ;;  %v16329_v7 = vpop.f32.mrb[198].mxu0  ;;  %v21690_v55 = vld [vmem:[#allocation74_spill] sm:$0xff] }
 0x515   : > { %v16332_v42 = vadd.f32 %v4760_v28, %v15915_v31  ;;  %v4952_v48 = vadd.f32 %v4920_v14, %v15917_v32  ;;  %v4761_v2 = vmul.f32 %v16329_v7, %v21689_v25  ;;  %v4921_v13 = vmul.f32 %v16329_v7, %v16329_v7  ;;  %v16339_v41 = vpop.f32.mrb[199].mxu0 }
 0x516   : > { %v16342_v10 = vadd.f32 %v4758_v4, %v15925_v15  ;;  %v4950_v50 = vadd.f32 %v4918_v9, %v15927_v35  ;;  %v4759_v18 = vmul.f32 %v16339_v41, %v21690_v55  ;;  %v4919_v31 = vmul.f32 %v16339_v41, %v16339_v41  ;;  %v21725_v55 = vld [vmem:[#allocation161_spill] sm:$0xff] }
 0x517   : > { %v4984_v32 = vadd.f32 1e-06, %v4952_v48  ;;  %v16350_v28 = vadd.f32 %v4761_v2, %v15933_v49  ;;  %v4953_v14 = vadd.f32 %v4921_v13, %v15935_v46  ;;  %v21691_v49 = vld [vmem:[#allocation79_spill] sm:$0xff]  ;;  %vm5080_vm6 = vcmp.ge.f32.partialorder %v16332_v42, 0.0 }
 0x518   : > { %v4982_v47 = vadd.f32 1e-06, %v4950_v50  ;;  %v16354_v16 = vadd.f32 %v4759_v18, %v15937_v0  ;;  %v4951_v15 = vadd.f32 %v4919_v31, %v15939_v8  ;;  %vm5078_vm7 = vcmp.ge.f32.partialorder %v16342_v10, 0.0 }
 0x519   : > { %12899 = vrcp.f32 %v4984_v32  ;;  %v4985_v35 = vadd.f32 1e-06, %v4953_v14  ;;  %vm5081_vm8 = vcmp.ge.f32.partialorder %v16350_v28, 0.0 }
 0x51a   : > { %12901 = vrcp.f32 %v4982_v47  ;;  %v4983_v4 = vadd.f32 1e-06, %v4951_v15  ;;  %v16358_v9 = vpop.f32.mrb[200].mxu0  ;;  %v21693_v47 = vld [vmem:[#allocation91_spill] sm:$0xff]  ;;  %vm5079_vm9 = vcmp.ge.f32.partialorder %v16354_v16, 0.0 }
 0x51b   : > { %v12892_v48 = vpop.eup %12891  ;;  %12903 = vrcp.f32 %v4985_v35  ;;  %v4764_v46 = vmul.f32 %v16358_v9, %v21691_v49  ;;  %v4924_v0 = vmul.f32 %v16358_v9, %v16358_v9  ;;  %v16365_v18 = vpop.f32.mrb[201].mxu0 }
 0x51c   : > { %21692 = vst [vmem:[#allocation202_spill] sm:$0xff] %v16365_v18  ;;  %v12894_v8 = vpop.eup %12893  ;;  %v5044_v2 = vmul.f32 %v12892_v48, %v16292_v27  ;;  %12905 = vrcp.f32 %v4983_v4  ;;  %v4762_v13 = vmul.f32 %v16365_v18, %v21693_v47  ;;  %v4922_v50 = vmul.f32 %v16365_v18, %v16365_v18  ;;  %v16372_v31 = vpop.f32.mrb[202].mxu0 }
 0x51d   : > { %v12896_v32 = vpop.eup %12895  ;;  %v5042_v14 = vmul.f32 %v12894_v8, %v16302_v1  ;;  %v16377_v15 = vadd.f32 %v4764_v46, %v15971_v60  ;;  %v4956_v35 = vadd.f32 %v4924_v0, %v15973_v22  ;;  %v16380_v48 = vpop.f32.mrb[203].mxu0 }
 0x51e   : > { %v12898_v4 = vpop.eup %12897  ;;  %v5108_v47 = vsel %vm5076_vm5, 0.0, %v5044_v2  ;;  %v5045_v36 = vmul.f32 %v12896_v32, %v16310_v45  ;;  %v16386_v49 = vadd.f32 %v4762_v13, %v15981_v44  ;;  %v4954_v8 = vadd.f32 %v4922_v50, %v15983_v62  ;;  %v21695_v2 = vld [vmem:[#allocation109_spill] sm:$0xff]  ;;  %v21697_v13 = vld [vmem:[#allocation42_spill] sm:$0xff] }
 0x51f   : > { %v16389_v6 = vmul.f32 0.8, %v5108_v47  ;;  %v5106_v60 = vsel %vm5074_vm1, 0.0, %v5042_v14  ;;  %v5043_v22 = vmul.f32 %v12898_v4, %v16314_v56  ;;  %v4988_v46 = vadd.f32 1e-06, %v4956_v35 }
 0x520   : > { %v5109_v0 = vsel %vm5077_vm2, 0.0, %v5045_v36  ;;  %v4986_v27 = vadd.f32 1e-06, %v4954_v8  ;;  %v4765_v62 = vmul.f32 %v16372_v31, %v21697_v13  ;;  %v16404_v50 = vmul.f32 0.8, %v5106_v60  ;;  %v21698_v36 = vld [vmem:[#allocation111_spill] sm:$0xff] }
 0x521   : > { %21694 = vst [vmem:[#allocation203_spill] sm:$0xff] %v16389_v6  ;;  %v5172_v45 = vmul.f32 %v21695_v2, %v16389_v6  ;;  %v16397_v32 = vmul.f32 0.8, %v5109_v0  ;;  %v5107_v44 = vsel %vm5075_vm3, 0.0, %v5043_v22  ;;  %12907 = vrcp.f32 %v4988_v46  ;;  %v21700_v46 = vld [vmem:[#allocation49_spill] sm:$0xff]  ;;  %v21701_v2 = vld [vmem:[#allocation58_spill] sm:$0xff] }
 0x522   : > { %v16402_v1 = vpop.f32.mrb[204].mxu0  ;;  %v16412_v4 = vmul.f32 0.8, %v5107_v44  ;;  %12909 = vrcp.f32 %v4986_v27  ;;  %v16422_v33 = vadd.f32 %v4765_v62, %v15989_v12  ;;  %vm5084_vm10 = vcmp.ge.f32.partialorder %v16377_v15, 0.0 }
 0x523   : > { %21696 = vst [vmem:[#allocation109_spill] sm:$0xff] %v16397_v32  ;;  %v12900_v47 = vpop.eup %12899  ;;  %v5173_v56 = vmul.f32 %v21698_v36, %v16397_v32  ;;  %v16410_v14 = vpop.f32.mrb[205].mxu0  ;;  %v5268_v0 = vsub.f32 %v21700_v46, %v5172_v45  ;;  %v4925_v45 = vmul.f32 %v16372_v31, %v16372_v31  ;;  %vm5082_vm11 = vcmp.ge.f32.partialorder %v16386_v49, 0.0 }
 0x524   : > { %v12902_v35 = vpop.eup %12901  ;;  %21699 = vst [vmem:[#allocation111_spill] sm:$0xff] %v16412_v4  ;;  %v5048_v8 = vmul.f32 %v12900_v47, %v16332_v42  ;;  %v16416_v22 = vpop.f32.mrb[206].mxu0  ;;  %v16428_v47 = vmul.f32 %v16277_v61, %v16389_v6  ;;  %v16446_v42 = vmul.f32 %v16289_v57, %v16397_v32  ;;  %vm5085_vm12 = vcmp.ge.f32.partialorder %v16422_v33, 0.0 }
 0x525   : > { %v12904_v60 = vpop.eup %12903  ;;  %v5269_v36 = vsub.f32 %v21701_v2, %v5173_v56  ;;  %v5046_v13 = vmul.f32 %v12902_v35, %v16342_v10  ;;  %v16424_v18 = vpop.f32.mrb[207].mxu0  ;;  %v16437_v56 = vmul.f32 %v16404_v50, %v16283_v63  ;;  %v16454_v63 = vmul.f32 %v16412_v4, %v16299_v17  ;;  %v21709_v2 = vld [vmem:[#allocation43_spill] sm:$0xff] }
 0x526   : > { %v12906_v44 = vpop.eup %12905  ;;  %21702 = vst [vmem:[#allocation49_spill] sm:$0xff] %v16428_v47  ;;  %v5112_v27 = vsel %vm5080_vm6, 0.0, %v5048_v8  ;;  %v5049_v59 = vmul.f32 %v12904_v60, %v16350_v28  ;;  %21704 = vst [vmem:[#allocation204_spill] sm:$0xff] %v16446_v42  ;;  %v4957_v8 = vadd.f32 %v4925_v45, %v15991_v37  ;;  %v4923_v37 = vmul.f32 %v16380_v48, %v16380_v48  ;;  %v21712_v42 = vld [vmem:[#allocation41_spill] sm:$0xff] }
 0x527   : > { %21703 = vst [vmem:[#allocation58_spill] sm:$0xff] %v16437_v56  ;;  %v16439_v12 = vpack.c.bf16 %v5269_v36, %v5268_v0  ;;  %v5110_v62 = vsel %vm5078_vm7, 0.0, %v5046_v13  ;;  %v5047_v61 = vmul.f32 %v12906_v44, %v16354_v16  ;;  %21705 = vst [vmem:[#allocation205_spill] sm:$0xff] %v16454_v63  ;;  %v16456_v60 = vmul.f32 0.8, %v5112_v27  ;;  %v21707_v13 = vld [vmem:[#allocation89_spill] sm:$0xff] }
 0x528   : > { %v5113_v35 = vsel %vm5081_vm8, 0.0, %v5049_v59  ;;  %v4763_v57 = vmul.f32 %v16380_v48, %v21707_v13  ;;  %v4989_v59 = vadd.f32 1e-06, %v4957_v8  ;;  %v16471_v0 = vmul.f32 0.8, %v5110_v62  ;;  %v21729_v63 = vld [vmem:[#allocation162_spill] sm:$0xff] }
 0x529   : > { %21706 = vst [vmem:[#allocation206_spill] sm:$0xff] %v16456_v60  ;;  %v5111_v10 = vsel %vm5079_vm9, 0.0, %v5047_v61  ;;  %v4768_v36 = vmul.f32 %v16402_v1, %v21709_v2  ;;  %v16482_v61 = vmul.f32 0.8, %v5113_v35  ;;  %v4955_v8 = vadd.f32 %v4923_v37, %v15995_v23  ;;  %v21730_v56 = vld [vmem:[#allocation163_spill] sm:$0xff]  ;;  %v21751_v13 = vld [vmem:[#allocation113_spill] sm:$0xff] }
 0x52a   : > { %v16467_v46 = vpop.f32.mrb[208].mxu0  ;;  %21708 = vst [vmem:[#allocation207_spill] sm:$0xff] %v16471_v0  ;;  %v16474_v16 = vadd.f32 %v4763_v57, %v15993_v19  ;;  %12911 = vrcp.f32 %v4989_v59  ;;  %v16491_v62 = vmul.f32 %v16317_v24, %v16456_v60  ;;  %v16499_v59 = vmul.f32 0.8, %v5111_v10 }
 0x52b   : > { %v16478_v44 = vpop.f32.mrb[209].mxu0  ;;  %v12908_v27 = vpop.eup %12907  ;;  %v16495_v17 = vadd.f32 %v4768_v36, %v16027_v20  ;;  %v4987_v23 = vadd.f32 1e-06, %v4955_v8  ;;  %v4928_v37 = vmul.f32 %v16402_v1, %v16402_v1  ;;  %v4766_v19 = vmul.f32 %v16410_v14, %v21712_v42 }
 0x52c   : > { %v16485_v28 = vpop.f32.mrb[210].mxu0  ;;  %21710 = vst [vmem:[#allocation208_spill] sm:$0xff] %v16491_v62  ;;  %v5052_v57 = vmul.f32 %v12908_v27, %v16377_v15  ;;  %v12910_v35 = vpop.eup %12909  ;;  %21711 = vst [vmem:[#allocation209_spill] sm:$0xff] %v16499_v59  ;;  %v16507_v24 = vmul.f32 %v16471_v0, %v16323_v21  ;;  %v4926_v10 = vmul.f32 %v16410_v14, %v16410_v14  ;;  %vm5083_vm13 = vcmp.ge.f32.partialorder %v16474_v16, 0.0  ;;  %v21720_v62 = vld [vmem:[#allocation112_spill] sm:$0xff] }
 0x52d   : > { %v16497_v45 = vpop.f32.mrb[211].mxu0  ;;  %v5050_v36 = vmul.f32 %v12910_v35, %v16386_v49  ;;  %v16516_v27 = vmul.f32 %v16329_v7, %v16482_v61  ;;  %12913 = vrcp.f32 %v4987_v23  ;;  %v4960_v8 = vadd.f32 %v4928_v37, %v16029_v40  ;;  %v21717_v37 = vld [vmem:[#allocation46_spill] sm:$0xff] }
 0x52e   : > { %21713 = vst [vmem:[#allocation210_spill] sm:$0xff] %v16507_v24  ;;  %v5116_v20 = vsel %vm5084_vm10, 0.0, %v5052_v57  ;;  %v16520_v39 = vadd.f32 %v4766_v19, %v16037_v30  ;;  %v4958_v15 = vadd.f32 %v4926_v10, %v16039_v51  ;;  %v21715_v57 = vld [vmem:[#allocation48_spill] sm:$0xff]  ;;  %v4929_v47 = vmul.f32 %v16416_v22, %v16416_v22 }
 0x52f   : > { %21714 = vst [vmem:[#allocation211_spill] sm:$0xff] %v16516_v27  ;;  %v5114_v21 = vsel %vm5082_vm11, 0.0, %v5050_v36  ;;  %v4769_v35 = vmul.f32 %v16416_v22, %v21715_v57  ;;  %v16533_v40 = vmul.f32 %v16499_v59, %v16339_v41  ;;  %v4992_v30 = vadd.f32 1e-06, %v4960_v8  ;;  %v21772_v57 = vld [vmem:[#allocation102_spill] sm:$0xff] }
 0x530   : > { %v4990_v19 = vadd.f32 1e-06, %v4958_v15  ;;  %v4961_v23 = vadd.f32 %v4929_v47, %v16047_v38  ;;  %v4767_v36 = vmul.f32 %v16424_v18, %v21717_v37  ;;  %v4927_v8 = vmul.f32 %v16424_v18, %v16424_v18  ;;  %v21775_v37 = vld [vmem:[#allocation184_spill] sm:$0xff] }
 0x531   : > { %21716 = vst [vmem:[#allocation212_spill] sm:$0xff] %v16533_v40  ;;  %v16539_v51 = vadd.f32 %v4769_v35, %v16045_v52  ;;  %12915 = vrcp.f32 %v4992_v30  ;;  %v16560_v41 = vmul.f32 0.8, %v5116_v20  ;;  %v21718_v30 = vld [vmem:[#allocation47_spill] sm:$0xff]  ;;  %v4932_v25 = vmul.f32 %v16467_v46, %v16467_v46 }
 0x532   : > { %v16536_v49 = vpop.f32.mrb[212].mxu0  ;;  %12917 = vrcp.f32 %v4990_v19  ;;  %v4993_v52 = vadd.f32 1e-06, %v4961_v23  ;;  %v16556_v38 = vadd.f32 %v4767_v36, %v16049_v43  ;;  %v4959_v7 = vadd.f32 %v4927_v8, %v16051_v5  ;;  %v21719_v43 = vld [vmem:[#allocation110_spill] sm:$0xff] }
 0x533   : > { %v16544_v10 = vpop.f32.mrb[213].mxu0  ;;  %v4772_v27 = vmul.f32 %v16467_v46, %v21718_v30  ;;  %v5170_v36 = vmul.f32 %v16404_v50, %v21719_v43  ;;  %vm5088_vm14 = vcmp.ge.f32.partialorder %v16495_v17, 0.0  ;;  %v4964_v8 = vadd.f32 %v4932_v25, %v16085_v53  ;;  %v21723_v25 = vld [vmem:[#allocation55_spill] sm:$0xff] }
 0x534   : > { %v16552_v15 = vpop.f32.mrb[214].mxu0  ;;  %v12912_v35 = vpop.eup %12911  ;;  %12919 = vrcp.f32 %v4993_v52  ;;  %v4991_v20 = vadd.f32 1e-06, %v4959_v7  ;;  %v5171_v3 = vmul.f32 %v16412_v4, %v21720_v62  ;;  %v16579_v24 = vmul.f32 0.8, %v5114_v21  ;;  %v21721_v52 = vld [vmem:[#allocation45_spill] sm:$0xff] }
 0x535   : > { %v16558_v47 = vpop.f32.mrb[215].mxu0  ;;  %v5053_v23 = vmul.f32 %v12912_v35, %v16422_v33  ;;  %v16574_v5 = vadd.f32 %v4772_v27, %v16083_v58  ;;  %v4770_v19 = vmul.f32 %v16478_v44, %v21721_v52  ;;  %v4930_v43 = vmul.f32 %v16478_v44, %v16478_v44  ;;  %v21724_v21 = vld [vmem:[#allocation64_spill] sm:$0xff] }
 0x536   : > { %v16589_v58 = vmul.f32 %v16358_v9, %v16560_v41  ;;  %12921 = vrcp.f32 %v4991_v20  ;;  %v4996_v53 = vadd.f32 1e-06, %v4964_v8  ;;  %v5266_v62 = vsub.f32 %v21723_v25, %v5170_v36  ;;  %v21726_v9 = vld [vmem:[#allocation52_spill] sm:$0xff] }
 0x537   : > { %v5117_v35 = vsel %vm5085_vm12, 0.0, %v5053_v23  ;;  %v12914_v7 = vpop.eup %12913  ;;  %v5267_v23 = vsub.f32 %v21724_v21, %v5171_v3  ;;  %v16597_v40 = vadd.f32 %v4770_v19, %v16093_v54  ;;  %v4962_v34 = vadd.f32 %v4930_v43, %v21725_v55 }
 0x538   : > { %21722 = vst [vmem:[#allocation110_spill] sm:$0xff] %v16589_v58  ;;  %v5051_v33 = vmul.f32 %v12914_v7, %v16474_v16  ;;  %vm5086_vm15 = vcmp.ge.f32.partialorder %v16520_v39, 0.0  ;;  %12923 = vrcp.f32 %v4996_v53  ;;  %v4773_v20 = vmul.f32 %v16485_v28, %v21726_v9  ;;  %v21727_v7 = vld [vmem:[#allocation202_spill] sm:$0xff] }
 0x539   : > { %v4933_v36 = vmul.f32 %v16485_v28, %v16485_v28  ;;  %v16611_v3 = vmul.f32 %v16579_v24, %v21727_v7  ;;  %v5462_v55 = vpack.c.bf16 %v5267_v23, %v5266_v62  ;;  %v4994_v19 = vadd.f32 1e-06, %v4962_v34  ;;  %v21731_v16 = vld [vmem:[#allocation50_spill] sm:$0xff] }
 0x53a   : > { %v16592_v27 = vpop.f32.mrb[216].mxu0  ;;  %v5115_v54 = vsel %vm5083_vm13, 0.0, %v5051_v33  ;;  %v16617_v25 = vmul.f32 0.8, %v5117_v35  ;;  %v16622_v11 = vadd.f32 %v4773_v20, %v21729_v63  ;;  %v4771_v34 = vmul.f32 %v16497_v45, %v21731_v16 }
 0x53b   : > { %v16600_v26 = vpop.f32.mrb[217].mxu0  ;;  %21728 = vst [vmem:[#allocation112_spill] sm:$0xff] %v16611_v3  ;;  %v12916_v53 = vpop.eup %12915  ;;  %v16619_v21 = vmul.f32 0.8, %v5115_v54  ;;  %v4965_v29 = vadd.f32 %v4933_v36, %v21730_v56  ;;  %12008 = vmatprep.mubr.msk.bf16.mxu1 %vm2572_vm4, %v5462_v55  ;;  %12925 = vrcp.f32 %v4994_v19  ;;  %v4931_v35 = vmul.f32 %v16497_v45, %v16497_v45  ;;  %v21733_v36 = vld [vmem:[#allocation164_spill] sm:$0xff]  ;;  %v21734_v55 = vld [vmem:[#allocation165_spill] sm:$0xff] }
 0x53c   : > { %v16607_v8 = vpop.f32.mrb[218].mxu0  ;;  %v12918_v32 = vpop.eup %12917  ;;  %v5056_v7 = vmul.f32 %v12916_v53, %v16495_v17  ;;  %vm5089_vm0 = vcmp.ge.f32.partialorder %v16539_v51, 0.0  ;;  %12009 = vmatmul.mubr.msk.bf16.vlgmr.msra.gmra.mrb[128].mxu1 %vm2572_vm4, %v16439_v12  ;;  %v16640_v54 = vadd.f32 %v4771_v34, %v21733_v36  ;;  %v21735_v53 = vld [vmem:[#allocation51_spill] sm:$0xff]  ;;  %vm5087_vm5 = vcmp.ge.f32.partialorder %v16556_v38, 0.0  ;;  %v21742_v3 = vld [vmem:[#allocation114_spill] sm:$0xff] }
 0x53d   : > { %v16615_v43 = vpop.f32.mrb[219].mxu0  ;;  %v5054_v63 = vmul.f32 %v12918_v32, %v16520_v39  ;;  %v4997_v56 = vadd.f32 1e-06, %v4965_v29  ;;  %v4963_v19 = vadd.f32 %v4931_v35, %v21734_v55  ;;  %v4776_v33 = vmul.f32 %v16536_v49, %v21735_v53  ;;  %v21739_v39 = vld [vmem:[#allocation169_spill] sm:$0xff] }
 0x53e   : > { %v12920_v23 = vpop.eup %12919  ;;  %v5120_v20 = vsel %vm5088_vm14, 0.0, %v5056_v7  ;;  %v16647_v32 = vmul.f32 %v16372_v31, %v16617_v25  ;;  %v16651_v12 = vmul.f32 %v16619_v21, %v16380_v48  ;;  %vm5092_vm1 = vcmp.ge.f32.partialorder %v16574_v5, 0.0 }
 0x53f   : > { %v5118_v29 = vsel %vm5086_vm15, 0.0, %v5054_v63  ;;  %v5057_v17 = vmul.f32 %v12920_v23, %v16539_v51  ;;  %v16660_v36 = vmul.f32 0.8, %v5120_v20  ;;  %12927 = vrcp.f32 %v4997_v56 }
 0x540   : > { %21736 = vst [vmem:[#allocation55_spill] sm:$0xff] %v16647_v32  ;;  %21737 = vst [vmem:[#allocation64_spill] sm:$0xff] %v16651_v12  ;;  %v4995_v55 = vadd.f32 1e-06, %v4963_v19  ;;  %v12922_v58 = vpop.eup %12921  ;;  %v16668_v63 = vadd.f32 %v4776_v33, %v21739_v39  ;;  %v4936_v23 = vmul.f32 %v16536_v49, %v16536_v49  ;;  %vm5090_vm2 = vcmp.ge.f32.partialorder %v16597_v40, 0.0  ;;  %v21741_v39 = vld [vmem:[#allocation170_spill] sm:$0xff] }
 0x541   : > { %v5121_v48 = vsel %vm5089_vm0, 0.0, %v5057_v17  ;;  %v5055_v20 = vmul.f32 %v12922_v58, %v16556_v38  ;;  %v5174_v34 = vmul.f32 %v16471_v0, %v21742_v3  ;;  %v16688_v58 = vmul.f32 %v16402_v1, %v16660_v36  ;;  %v21745_v38 = vld [vmem:[#allocation66_spill] sm:$0xff]  ;;  %v21749_v19 = vld [vmem:[#allocation172_spill] sm:$0xff] }
 0x542   : > { %v16656_v7 = vpop.f32.mrb[220].mxu0  ;;  %12929 = vrcp.f32 %v4995_v55  ;;  %v12924_v51 = vpop.eup %12923  ;;  %v4968_v35 = vadd.f32 %v4936_v23, %v21741_v39  ;;  %v16690_v6 = vmul.f32 0.8, %v5118_v29  ;;  %vm5093_vm3 = vcmp.ge.f32.partialorder %v16622_v11, 0.0  ;;  %v21744_v39 = vld [vmem:[#allocation116_spill] sm:$0xff] }
 0x543   : > { %v16662_v31 = vpop.f32.mrb[221].mxu0  ;;  %21743 = vst [vmem:[#allocation161_spill] sm:$0xff] %v16688_v58  ;;  %v5119_v55 = vsel %vm5087_vm5, 0.0, %v5055_v20  ;;  %v5060_v4 = vmul.f32 %v12924_v51, %v16574_v5  ;;  %v16696_v17 = vmul.f32 0.8, %v5121_v48  ;;  %v5175_v3 = vmul.f32 %v16499_v59, %v21744_v39  ;;  %v21746_v20 = vld [vmem:[#allocation98_spill] sm:$0xff] }
 0x544   : > { %v16672_v62 = vpop.f32.mrb[222].mxu0  ;;  %v16698_v33 = vmul.f32 0.8, %v5119_v55  ;;  %v5000_v23 = vadd.f32 1e-06, %v4968_v35  ;;  %vm5091_vm6 = vcmp.ge.f32.partialorder %v16640_v54, 0.0  ;;  %v5270_v29 = vsub.f32 %v21745_v38, %v5174_v34 }
 0x545   : > { %v16677_v56 = vpop.f32.mrb[223].mxu0  ;;  %v12926_v32 = vpop.eup %12925  ;;  %v5124_v1 = vsel %vm5092_vm1, 0.0, %v5060_v4  ;;  %v4774_v51 = vmul.f32 %v16544_v10, %v21746_v20  ;;  %v4934_v48 = vmul.f32 %v16544_v10, %v16544_v10  ;;  %v21748_v4 = vld [vmem:[#allocation69_spill] sm:$0xff]  ;;  %v5176_v59 = vmul.f32 %v21751_v13, %v16456_v60  ;;  %v21806_v20 = vld [vmem:[#allocation108_spill] sm:$0xff] }
 0x546   : > { %v16712_v35 = vmul.f32 %v16698_v33, %v16424_v18  ;;  %v16714_v55 = vmul.f32 0.8, %v5124_v1  ;;  %v5058_v39 = vmul.f32 %v12926_v32, %v16597_v40  ;;  %12931 = vrcp.f32 %v5000_v23  ;;  %v21750_v34 = vld [vmem:[#allocation173_spill] sm:$0xff]  ;;  %v21754_v23 = vld [vmem:[#allocation115_spill] sm:$0xff] }
 0x547   : > { %v5271_v5 = vsub.f32 %v21748_v4, %v5175_v3  ;;  %v16719_v12 = vadd.f32 %v4774_v51, %v21749_v19  ;;  %v4966_v38 = vadd.f32 %v4934_v48, %v21750_v34  ;;  %v16726_v0 = vmul.f32 %v16690_v6, %v16410_v14  ;;  %v21756_v4 = vld [vmem:[#allocation61_spill] sm:$0xff] }
 0x548   : > { %21747 = vst [vmem:[#allocation202_spill] sm:$0xff] %v16712_v35  ;;  %v16730_v18 = vmul.f32 %v16467_v46, %v16714_v55  ;;  %v5122_v32 = vsel %vm5090_vm2, 0.0, %v5058_v39  ;;  %v5177_v19 = vmul.f32 %v21754_v23, %v16482_v61  ;;  %v16742_v14 = vmul.f32 %v16416_v22, %v16696_v17  ;;  %v21757_v39 = vld [vmem:[#allocation72_spill] sm:$0xff] }
 0x549   : > { %21752 = vst [vmem:[#allocation162_spill] sm:$0xff] %v16726_v0  ;;  %v12928_v3 = vpop.eup %12927  ;;  %v16738_v51 = vmul.f32 0.8, %v5122_v32  ;;  %v5464_v13 = vpack.c.bf16 %v5271_v5, %v5270_v29  ;;  %v4998_v48 = vadd.f32 1e-06, %v4966_v38  ;;  %v5272_v40 = vsub.f32 %v21756_v4, %v5176_v59  ;;  %v21759_v29 = vld [vmem:[#allocation100_spill] sm:$0xff] }
 0x54a   : > { %21753 = vst [vmem:[#allocation163_spill] sm:$0xff] %v16730_v18  ;;  %21755 = vst [vmem:[#allocation50_spill] sm:$0xff] %v16742_v14  ;;  %v5061_v46 = vmul.f32 %v12928_v3, %v16622_v11  ;;  %v5273_v34 = vsub.f32 %v21757_v39, %v5177_v19  ;;  %v4777_v5 = vmul.f32 %v16552_v15, %v21759_v29  ;;  %v21760_v19 = vld [vmem:[#allocation99_spill] sm:$0xff]  ;;  %vm5096_vm7 = vcmp.ge.f32.partialorder %v16668_v63, 0.0  ;;  %v21763_v11 = vld [vmem:[#allocation176_spill] sm:$0xff] }
 0x54b   : > { %v16749_v23 = vmul.f32 %v16738_v51, %v16478_v44  ;;  %12012 = vmatprep.mubr.msk.bf16.mxu1 %vm2572_vm4, %v5464_v13  ;;  %12933 = vrcp.f32 %v4998_v48  ;;  %v4937_v22 = vmul.f32 %v16552_v15, %v16552_v15  ;;  %v4775_v3 = vmul.f32 %v16558_v47, %v21760_v19  ;;  %v21761_v13 = vld [vmem:[#allocation174_spill] sm:$0xff]  ;;  %v21762_v4 = vld [vmem:[#allocation175_spill] sm:$0xff]  ;;  %v21771_v14 = vld [vmem:[#allocation120_spill] sm:$0xff] }
 0x54c   : > { %v12930_v60 = vpop.eup %12929  ;;  %v5125_v38 = vsel %vm5093_vm3, 0.0, %v5061_v46  ;;  %v5465_v32 = vpack.c.bf16 %v5273_v34, %v5272_v40  ;;  %v16765_v48 = vadd.f32 %v4777_v5, %v21761_v13  ;;  %v4935_v46 = vmul.f32 %v16558_v47, %v16558_v47  ;;  %v21764_v40 = vld [vmem:[#allocation101_spill] sm:$0xff]  ;;  %v21782_v18 = vld [vmem:[#allocation103_spill] sm:$0xff] }
 0x54d   : > { %21758 = vst [vmem:[#allocation164_spill] sm:$0xff] %v16749_v23  ;;  %v5059_v59 = vmul.f32 %v12930_v60, %v16640_v54  ;;  %v16761_v44 = vmul.f32 0.8, %v5125_v38  ;;  %v4969_v39 = vadd.f32 %v4937_v22, %v21762_v4  ;;  %v16772_v60 = vadd.f32 %v4775_v3, %v21763_v11  ;;  %v21766_v3 = vld [vmem:[#allocation177_spill] sm:$0xff]  ;;  %v21788_v23 = vld [vmem:[#allocation188_spill] sm:$0xff] }
 0x54e   : > { %12013 = vmatmul.mubr.msk.bf16.gmra.mrb[132].mxu1 %vm2572_vm4, %v5465_v32  ;;  %v4780_v34 = vmul.f32 %v16592_v27, %v21764_v40  ;;  %v4967_v13 = vadd.f32 %v4935_v46, %v21766_v3  ;;  %v21767_v4 = vld [vmem:[#allocation181_spill] sm:$0xff]  ;;  %v4940_v58 = vmul.f32 %v16592_v27, %v16592_v27  ;;  %vm5094_vm8 = vcmp.ge.f32.partialorder %v16719_v12, 0.0  ;;  %v21769_v46 = vld [vmem:[#allocation182_spill] sm:$0xff] }
 0x54f   : > { %v5123_v1 = vsel %vm5091_vm6, 0.0, %v5059_v59  ;;  %v16782_v22 = vmul.f32 %v16485_v28, %v16761_v44  ;;  %v5001_v38 = vadd.f32 1e-06, %v4969_v39  ;;  %vm5097_vm9 = vcmp.ge.f32.partialorder %v16765_v48, 0.0  ;;  %v21790_v0 = vld [vmem:[#allocation193_spill] sm:$0xff] }
 0x550   : > { %v16784_v54 = vmul.f32 0.8, %v5123_v1  ;;  %v12932_v59 = vpop.eup %12931  ;;  %v16790_v11 = vadd.f32 %v4780_v34, %v21767_v4  ;;  %v4999_v39 = vadd.f32 1e-06, %v4967_v13  ;;  %v4972_v3 = vadd.f32 %v4940_v58, %v21769_v46  ;;  %v21770_v34 = vld [vmem:[#allocation118_spill] sm:$0xff]  ;;  %v21773_v58 = vld [vmem:[#allocation80_spill] sm:$0xff] }
 0x551   : > { %21765 = vst [vmem:[#allocation165_spill] sm:$0xff] %v16782_v22  ;;  %v5064_v1 = vmul.f32 %v12932_v59, %v16668_v63  ;;  %12935 = vrcp.f32 %v5001_v38  ;;  %v5178_v4 = vmul.f32 %v16579_v24, %v21770_v34  ;;  %v4778_v38 = vmul.f32 %v16600_v26, %v21772_v57  ;;  %v21774_v34 = vld [vmem:[#allocation85_spill] sm:$0xff] }
 0x552   : > { %v16798_v28 = vmul.f32 %v16784_v54, %v16497_v45  ;;  %v5179_v45 = vmul.f32 %v16619_v21, %v21771_v14  ;;  %12937 = vrcp.f32 %v4999_v39  ;;  %v5004_v13 = vadd.f32 1e-06, %v4972_v3  ;;  %v21776_v14 = vld [vmem:[#allocation117_spill] sm:$0xff]  ;;  %v21778_v3 = vld [vmem:[#allocation119_spill] sm:$0xff] }
 0x553   : > { %v5128_v5 = vsel %vm5096_vm7, 0.0, %v5064_v1  ;;  %v5274_v46 = vsub.f32 %v21773_v58, %v5178_v4  ;;  %v16818_v32 = vadd.f32 %v4778_v38, %v21775_v37  ;;  %v4938_v63 = vmul.f32 %v16600_v26, %v16600_v26  ;;  %v21779_v38 = vld [vmem:[#allocation185_spill] sm:$0xff] }
 0x554   : > { %21768 = vst [vmem:[#allocation169_spill] sm:$0xff] %v16798_v28  ;;  %v16813_v59 = vmul.f32 0.8, %v5128_v5  ;;  %v5275_v35 = vsub.f32 %v21774_v34, %v5179_v45  ;;  %v5180_v1 = vmul.f32 %v21776_v14, %v16560_v41  ;;  %12939 = vrcp.f32 %v5004_v13 }
 0x555   : > { %v12934_v2 = vpop.eup %12933  ;;  %v5181_v4 = vmul.f32 %v21778_v3, %v16617_v25  ;;  %v4970_v58 = vadd.f32 %v4938_v63, %v21779_v38  ;;  %vm5095_vm10 = vcmp.ge.f32.partialorder %v16772_v60, 0.0  ;;  %v4781_v3 = vmul.f32 %v16607_v8, %v21782_v18 }
 0x556   : > { %v16826_v5 = vmul.f32 %v16536_v49, %v16813_v59  ;;  %v5062_v39 = vmul.f32 %v12934_v2, %v16719_v12  ;;  %v5466_v45 = vpack.c.bf16 %v5275_v35, %v5274_v46  ;;  %v21780_v49 = vld [vmem:[#allocation73_spill] sm:$0xff]  ;;  %v21781_v2 = vld [vmem:[#allocation78_spill] sm:$0xff]  ;;  %v4941_v35 = vmul.f32 %v16607_v8, %v16607_v8  ;;  %v21783_v46 = vld [vmem:[#allocation104_spill] sm:$0xff] }
 0x557   : > { %v5276_v14 = vsub.f32 %v21780_v49, %v5180_v1  ;;  %v5277_v13 = vsub.f32 %v21781_v2, %v5181_v4  ;;  %v5002_v37 = vadd.f32 1e-06, %v4970_v58  ;;  %v4779_v12 = vmul.f32 %v16615_v43, %v21783_v46  ;;  %v21785_v4 = vld [vmem:[#allocation105_spill] sm:$0xff]  ;;  %v21787_v58 = vld [vmem:[#allocation187_spill] sm:$0xff] }
 0x558   : > { %21777 = vst [vmem:[#allocation170_spill] sm:$0xff] %v16826_v5  ;;  %v5126_v34 = vsel %vm5094_vm8, 0.0, %v5062_v39  ;;  %12016 = vmatprep.mubr.msk.bf16.mxu1 %vm2572_vm4, %v5466_v45  ;;  %v21784_v39 = vld [vmem:[#allocation186_spill] sm:$0xff]  ;;  %v4939_v1 = vmul.f32 %v16615_v43, %v16615_v43  ;;  %v4973_v2 = vadd.f32 %v4941_v35, %v21787_v58  ;;  %vm5100_vm11 = vcmp.ge.f32.partialorder %v16790_v11, 0.0 }
 0x559   : > { %v16842_v30 = vmul.f32 0.8, %v5126_v34  ;;  %v5467_v63 = vpack.c.bf16 %v5277_v13, %v5276_v14  ;;  %v16850_v38 = vadd.f32 %v4781_v3, %v21784_v39  ;;  %v4784_v34 = vmul.f32 %v16656_v7, %v21785_v4  ;;  %v21789_v3 = vld [vmem:[#allocation189_spill] sm:$0xff]  ;;  %v21842_v4 = vld [vmem:[#allocation111_spill] sm:$0xff] }
 0x55a   : > { %12941 = vrcp.f32 %v5002_v37  ;;  %v16862_v52 = vadd.f32 %v4779_v12, %v21788_v23  ;;  %v4971_v39 = vadd.f32 %v4939_v1, %v21789_v3  ;;  %v5005_v37 = vadd.f32 1e-06, %v4973_v2  ;;  %v21792_v2 = vld [vmem:[#allocation194_spill] sm:$0xff] }
 0x55b   : > { %v12936_v49 = vpop.eup %12935  ;;  %v16858_v45 = vmul.f32 %v16842_v30, %v16544_v10  ;;  %12017 = vmatmul.mubr.msk.bf16.gmra.mrb[136].mxu1 %vm2572_vm4, %v5467_v63  ;;  %v16870_v42 = vadd.f32 %v4784_v34, %v21790_v0  ;;  %v4944_v23 = vmul.f32 %v16656_v7, %v16656_v7  ;;  %vm5098_vm12 = vcmp.ge.f32.partialorder %v16818_v32, 0.0  ;;  %v21793_v10 = vld [vmem:[#allocation124_spill] sm:$0xff] }
 0x55c   : > { %v5065_v13 = vmul.f32 %v12936_v49, %v16765_v48  ;;  %v12938_v35 = vpop.eup %12937  ;;  %v5003_v1 = vadd.f32 1e-06, %v4971_v39  ;;  %v21791_v49 = vld [vmem:[#allocation122_spill] sm:$0xff]  ;;  %12943 = vrcp.f32 %v5005_v37  ;;  %v5183_v12 = vmul.f32 %v16698_v33, %v21793_v10  ;;  %v21794_v48 = vld [vmem:[#allocation92_spill] sm:$0xff] }
 0x55d   : > { %21786 = vst [vmem:[#allocation114_spill] sm:$0xff] %v16858_v45  ;;  %v5182_v0 = vmul.f32 %v16690_v6, %v21791_v49  ;;  %v5063_v58 = vmul.f32 %v12938_v35, %v16772_v60  ;;  %v4976_v3 = vadd.f32 %v4944_v23, %v21792_v2  ;;  %v21795_v39 = vld [vmem:[#allocation106_spill] sm:$0xff]  ;;  %v21798_v10 = vld [vmem:[#allocation196_spill] sm:$0xff]  ;;  %vm5101_vm13 = vcmp.ge.f32.partialorder %v16850_v38, 0.0  ;;  %v21799_v60 = vld [vmem:[#allocation121_spill] sm:$0xff] }
 0x55e   : > { %v5129_v63 = vsel %vm5097_vm9, 0.0, %v5065_v13  ;;  %v12940_v14 = vpop.eup %12939  ;;  %12945 = vrcp.f32 %v5003_v1  ;;  %v4782_v5 = vmul.f32 %v16662_v31, %v21795_v39  ;;  %v21797_v1 = vld [vmem:[#allocation96_spill] sm:$0xff]  ;;  %vm5099_vm14 = vcmp.ge.f32.partialorder %v16862_v52, 0.0 }
 0x55f   : > { %v16883_v34 = vmul.f32 0.8, %v5129_v63  ;;  %v5278_v13 = vsub.f32 %v21794_v48, %v5182_v0  ;;  %v5127_v35 = vsel %vm5095_vm10, 0.0, %v5063_v58  ;;  %v5068_v37 = vmul.f32 %v12940_v14, %v16790_v11  ;;  %v21805_v11 = vld [vmem:[#allocation198_spill] sm:$0xff] }
 0x560   : > { %v5008_v23 = vadd.f32 1e-06, %v4976_v3  ;;  %v16900_v49 = vmul.f32 0.8, %v5127_v35  ;;  %v5279_v2 = vsub.f32 %v21797_v1, %v5183_v12  ;;  %v16904_v53 = vadd.f32 %v4782_v5, %v21798_v10  ;;  %v21800_v3 = vld [vmem:[#allocation197_spill] sm:$0xff]  ;;  %v21802_v1 = vld [vmem:[#allocation107_spill] sm:$0xff] }
 0x561   : > { %v16895_v63 = vmul.f32 %v16552_v15, %v16883_v34  ;;  %v4942_v0 = vmul.f32 %v16662_v31, %v16662_v31  ;;  %v5132_v15 = vsel %vm5100_vm11, 0.0, %v5068_v37  ;;  %v5184_v14 = vmul.f32 %v21799_v60, %v16660_v36  ;;  %v21801_v37 = vld [vmem:[#allocation123_spill] sm:$0xff]  ;;  %v21804_v60 = vld [vmem:[#allocation94_spill] sm:$0xff] }
 0x562   : > { %12947 = vrcp.f32 %v5008_v23  ;;  %v16915_v58 = vmul.f32 %v16900_v49, %v16558_v47  ;;  %v16917_v12 = vmul.f32 0.8, %v5132_v15  ;;  %v5468_v5 = vpack.c.bf16 %v5279_v2, %v5278_v13 }
 0x563   : > { %21796 = vst [vmem:[#allocation116_spill] sm:$0xff] %v16895_v63  ;;  %v4974_v48 = vadd.f32 %v4942_v0, %v21800_v3  ;;  %v5185_v23 = vmul.f32 %v21801_v37, %v16696_v17  ;;  %v4785_v10 = vmul.f32 %v16672_v62, %v21802_v1  ;;  %v21803_v0 = vld [vmem:[#allocation90_spill] sm:$0xff]  ;;  %vm5104_vm15 = vcmp.ge.f32.partialorder %v16870_v42, 0.0 }
 0x564   : > { %v12942_v35 = vpop.eup %12941  ;;  %v16929_v47 = vmul.f32 %v16592_v27, %v16917_v12  ;;  %12020 = vmatprep.mubr.msk.bf16.mxu1 %vm2572_vm4, %v5468_v5  ;;  %v5280_v15 = vsub.f32 %v21803_v0, %v5184_v14  ;;  %v4945_v45 = vmul.f32 %v16672_v62, %v16672_v62  ;;  %v4783_v27 = vmul.f32 %v16677_v56, %v21806_v20  ;;  %v21807_v0 = vld [vmem:[#allocation199_spill] sm:$0xff] }
 0x565   : > { %v5066_v13 = vmul.f32 %v12942_v35, %v16818_v32  ;;  %v5006_v2 = vadd.f32 1e-06, %v4974_v48  ;;  %v5281_v3 = vsub.f32 %v21804_v60, %v5185_v23  ;;  %v16937_v37 = vadd.f32 %v4785_v10, %v21805_v11  ;;  %v21808_v35 = vld [vmem:[#allocation200_spill] sm:$0xff]  ;;  %v21809_v32 = vld [vmem:[#allocation201_spill] sm:$0xff]  ;;  %v21826_v11 = vld [vmem:[#allocation14_spill] sm:$0xff] }
 0x566   : > { %v4943_v14 = vmul.f32 %v16677_v56, %v16677_v56  ;;  %v12944_v48 = vpop.eup %12943  ;;  %v4977_v60 = vadd.f32 %v4945_v45, %v21807_v0  ;;  %v16956_v63 = vadd.f32 %v4783_v27, %v21808_v35  ;;  %vm5102_vm0 = vcmp.ge.f32.partialorder %v16904_v53, 0.0 }
 0x567   : > { %v5130_v5 = vsel %vm5098_vm12, 0.0, %v5066_v13  ;;  %12949 = vrcp.f32 %v5006_v2  ;;  %v5469_v10 = vpack.c.bf16 %v5281_v3, %v5280_v15  ;;  %v5069_v9 = vmul.f32 %v12944_v48, %v16850_v38  ;;  %v21810_v2 = vld [vmem:[#allocation126_spill] sm:$0xff]  ;;  %v21811_v15 = vld [vmem:[#allocation128_spill] sm:$0xff] }
 0x568   : > { %v16951_v23 = vmul.f32 0.8, %v5130_v5  ;;  %v12946_v22 = vpop.eup %12945  ;;  %v4975_v13 = vadd.f32 %v4943_v14, %v21809_v32  ;;  %v5186_v29 = vmul.f32 %v16738_v51, %v21810_v2  ;;  %v5009_v45 = vadd.f32 1e-06, %v4977_v60  ;;  %v21812_v48 = vld [vmem:[#allocation82_spill] sm:$0xff] }
 0x569   : > { %v5067_v5 = vmul.f32 %v12946_v22, %v16862_v52  ;;  %12021 = vmatmul.mubr.msk.bf16.gmra.mrb[140].mxu1 %vm2572_vm4, %v5469_v10  ;;  %v5187_v3 = vmul.f32 %v16784_v54, %v21811_v15  ;;  %v5133_v35 = vsel %vm5101_vm13, 0.0, %v5069_v9  ;;  %v21813_v9 = vld [vmem:[#allocation16_spill] sm:$0xff]  ;;  %v21817_v52 = vld [vmem:[#allocation130_spill] sm:$0xff]  ;;  %vm5105_vm5 = vcmp.ge.f32.partialorder %v16937_v37, 0.0 }
 0x56a   : > { %v16963_v28 = vmul.f32 %v16951_v23, %v16600_v26  ;;  %v5007_v14 = vadd.f32 1e-06, %v4975_v13  ;;  %v5282_v26 = vsub.f32 %v21812_v48, %v5186_v29  ;;  %v16977_v10 = vmul.f32 0.8, %v5133_v35  ;;  %v21815_v13 = vld [vmem:[#allocation125_spill] sm:$0xff]  ;;  %v21816_v35 = vld [vmem:[#allocation127_spill] sm:$0xff] }
 0x56b   : > { %v5131_v60 = vsel %vm5099_vm14, 0.0, %v5067_v5  ;;  %12951 = vrcp.f32 %v5009_v45  ;;  %v5283_v2 = vsub.f32 %v21813_v9, %v5187_v3  ;;  %v5188_v15 = vmul.f32 %v21815_v13, %v16714_v55  ;;  %v21819_v13 = vld [vmem:[#allocation77_spill] sm:$0xff] }
 0x56c   : > { %v12948_v0 = vpop.eup %12947  ;;  %v16981_v32 = vmul.f32 0.8, %v5131_v60  ;;  %12953 = vrcp.f32 %v5007_v14  ;;  %v16987_v29 = vmul.f32 %v16607_v8, %v16977_v10  ;;  %v5189_v48 = vmul.f32 %v21816_v35, %v16761_v44 }
 0x56d   : > { %v5072_v38 = vmul.f32 %v12948_v0, %v16870_v42  ;;  %v5190_v5 = vmul.f32 %v16842_v30, %v21817_v52  ;;  %v5470_v14 = vpack.c.bf16 %v5283_v2, %v5282_v26  ;;  %v21818_v0 = vld [vmem:[#allocation132_spill] sm:$0xff]  ;;  %v5284_v35 = vsub.f32 %v21819_v13, %v5188_v15  ;;  %v21820_v52 = vld [vmem:[#allocation83_spill] sm:$0xff] }
 0x56e   : > { %21814 = vst [vmem:[#allocation66_spill] sm:$0xff] %v16987_v29  ;;  %v16997_v45 = vmul.f32 %v16981_v32, %v16615_v43  ;;  %v5191_v8 = vmul.f32 %v16900_v49, %v21818_v0  ;;  %v5285_v27 = vsub.f32 %v21820_v52, %v5189_v48  ;;  %vm5103_vm1 = vcmp.ge.f32.partialorder %v16956_v63, 0.0  ;;  %v21821_v26 = vld [vmem:[#allocation15_spill] sm:$0xff]  ;;  %v21822_v2 = vld [vmem:[#allocation20_spill] sm:$0xff]  ;;  %v21827_v29 = vld [vmem:[#allocation134_spill] sm:$0xff] }
 0x56f   : > { %v5136_v3 = vsel %vm5104_vm15, 0.0, %v5072_v38  ;;  %12024 = vmatprep.mubr.msk.bf16.mxu1 %vm2572_vm4, %v5470_v14  ;;  %v5286_v38 = vsub.f32 %v21821_v26, %v5190_v5  ;;  %v21825_v52 = vld [vmem:[#allocation131_spill] sm:$0xff]  ;;  %v5194_v5 = vmul.f32 %v16951_v23, %v21827_v29  ;;  %vm6691_vm12 = vcmask 785408  }
 0x570   : > { %v17005_v9 = vmul.f32 0.8, %v5136_v3  ;;  %v5287_v0 = vsub.f32 %v21822_v2, %v5191_v8  ;;  %v21823_v3 = vld [vmem:[#allocation129_spill] sm:$0xff]  ;;  %v5471_v13 = vpack.c.bf16 %v5285_v27, %v5284_v35  ;;  %v5193_v42 = vmul.f32 %v21825_v52, %v16883_v34  ;;  %v21828_v8 = vld [vmem:[#allocation136_spill] sm:$0xff]  ;;  %v21831_v29 = vld [vmem:[#allocation19_spill] sm:$0xff] }
 0x571   : > { %v12950_v43 = vpop.eup %12949  ;;  %v5192_v60 = vmul.f32 %v21823_v3, %v16813_v59  ;;  %v5195_v26 = vmul.f32 %v16981_v32, %v21828_v8  ;;  %v21829_v27 = vld [vmem:[#allocation13_spill] sm:$0xff]  ;;  %v21833_v52 = vld [vmem:[#allocation135_spill] sm:$0xff]  ;;  %v21834_v2 = vld [vmem:[#allocation18_spill] sm:$0xff] }
 0x572   : > { %v17020_v15 = vmul.f32 %v16656_v7, %v17005_v9  ;;  %v5070_v48 = vmul.f32 %v12950_v43, %v16904_v53  ;;  %v5472_v22 = vpack.c.bf16 %v5287_v0, %v5286_v38  ;;  %12025 = vmatmul.mubr.msk.bf16.gmra.mrb[144].mxu1 %vm2572_vm4, %v5471_v13  ;;  %v5289_v35 = vsub.f32 %v21829_v27, %v5193_v42  ;;  %v21830_v43 = vld [vmem:[#allocation133_spill] sm:$0xff]  ;;  %v21832_v0 = vld [vmem:[#allocation24_spill] sm:$0xff] }
 0x573   : > { %v5288_v14 = vsub.f32 %v21826_v11, %v5192_v60  ;;  %v5196_v38 = vmul.f32 %v21830_v43, %v16917_v12  ;;  %v5290_v60 = vsub.f32 %v21831_v29, %v5194_v5  ;;  %v5291_v3 = vsub.f32 %v21832_v0, %v5195_v26  ;;  %v21835_v42 = vld [vmem:[#allocation137_spill] sm:$0xff] }
 0x574   : > { %21824 = vst [vmem:[#allocation69_spill] sm:$0xff] %v17020_v15  ;;  %v5134_v7 = vsel %vm5102_vm0, 0.0, %v5070_v48  ;;  %12028 = vmatprep.mubr.msk.bf16.mxu1 %vm2572_vm4, %v5472_v22  ;;  %v5197_v8 = vmul.f32 %v21833_v52, %v16977_v10  ;;  %v5200_v27 = vmul.f32 %v21835_v42, %v17005_v9  ;;  %v21836_v15 = vld [vmem:[#allocation142_spill] sm:$0xff]  ;;  %v21838_v29 = vld [vmem:[#allocation17_spill] sm:$0xff]  ;;  %v21841_v42 = vld [vmem:[#allocation144_spill] sm:$0xff] }
 0x575   : > { %v17038_v11 = vmul.f32 0.8, %v5134_v7  ;;  %v12952_v53 = vpop.eup %12951  ;;  %v5473_v48 = vpack.c.bf16 %v5289_v35, %v5288_v14  ;;  %v5292_v13 = vsub.f32 %v21834_v2, %v5196_v38  ;;  %v5202_v7 = vmul.f32 %v16404_v50, %v21836_v15  ;;  %v21839_v35 = vld [vmem:[#allocation138_spill] sm:$0xff] }
 0x576   : > { %v12954_v43 = vpop.eup %12953  ;;  %v5073_v5 = vmul.f32 %v12952_v53, %v16937_v37  ;;  %v5474_v26 = vpack.c.bf16 %v5291_v3, %v5290_v60  ;;  %v5293_v0 = vsub.f32 %v21838_v29, %v5197_v8  ;;  %v21840_v38 = vld [vmem:[#allocation22_spill] sm:$0xff]  ;;  %v5203_v50 = vmul.f32 %v21842_v4, %v21841_v42  ;;  %v21843_v60 = vld [vmem:[#allocation53_spill] sm:$0xff]  ;;  %v21844_v29 = vld [vmem:[#allocation23_spill] sm:$0xff] }
 0x577   : > { %v17052_v22 = vmul.f32 %v17038_v11, %v16662_v31  ;;  %v5071_v14 = vmul.f32 %v12954_v43, %v16956_v63  ;;  %v5198_v2 = vmul.f32 %v17038_v11, %v21839_v35  ;;  %v5296_v52 = vsub.f32 %v21840_v38, %v5200_v27  ;;  %v21845_v27 = vld [vmem:[#allocation62_spill] sm:$0xff]  ;;  %v21846_v4 = vld [vmem:[#allocation203_spill] sm:$0xff]  ;;  %v21847_v42 = vld [vmem:[#allocation141_spill] sm:$0xff] }
 0x578   : > { %v5137_v31 = vsel %vm5105_vm5, 0.0, %v5073_v5  ;;  %v5475_v53 = vpack.c.bf16 %v5293_v0, %v5292_v13  ;;  %v5298_v3 = vsub.f32 %v21843_v60, %v5202_v7  ;;  %v5299_v38 = vsub.f32 %v21845_v27, %v5203_v50  ;;  %v21849_v37 = vld [vmem:[#allocation143_spill] sm:$0xff]  ;;  %v21850_v13 = vld [vmem:[#allocation146_spill] sm:$0xff]  ;;  %v21853_v50 = vld [vmem:[#allocation148_spill] sm:$0xff] }
 0x579   : > { %21837 = vst [vmem:[#allocation172_spill] sm:$0xff] %v17052_v22  ;;  %v17067_v8 = vmul.f32 0.8, %v5137_v31  ;;  %v5135_v43 = vsel %vm5103_vm1, 0.0, %v5071_v14  ;;  %v5294_v35 = vsub.f32 %v21844_v29, %v5198_v2  ;;  %v5204_v15 = vmul.f32 %v21847_v42, %v21846_v4  ;;  %v21848_v22 = vld [vmem:[#allocation109_spill] sm:$0xff]  ;;  %v21851_v0 = vld [vmem:[#allocation207_spill] sm:$0xff] }
 0x57a   : > { %v17073_v18 = vmul.f32 0.8, %v5135_v43  ;;  %v5205_v5 = vmul.f32 %v21849_v37, %v21848_v22  ;;  %v5206_v7 = vmul.f32 %v21851_v0, %v21850_v13  ;;  %12029 = vmatmul.mubr.msk.bf16.gmra.mrb[148].mxu1 %vm2572_vm4, %v5473_v48  ;;  %v21852_v63 = vld [vmem:[#allocation139_spill] sm:$0xff]  ;;  %v17088_v2 = vpack.c.bf16 %v5299_v38, %v5298_v3  ;;  %v21854_v60 = vld [vmem:[#allocation209_spill] sm:$0xff]  ;;  %v21855_v29 = vld [vmem:[#allocation140_spill] sm:$0xff] }
 0x57b   : > { %v17083_v31 = vmul.f32 %v16672_v62, %v17067_v8  ;;  %v5201_v14 = vmul.f32 %v21852_v63, %v17067_v8  ;;  %v5207_v43 = vmul.f32 %v21854_v60, %v21853_v50  ;;  %12032 = vmatprep.mubr.msk.bf16.mxu1 %vm2572_vm4, %v5474_v26  ;;  %v21856_v27 = vld [vmem:[#allocation56_spill] sm:$0xff]  ;;  %v21857_v48 = vld [vmem:[#allocation59_spill] sm:$0xff]  ;;  %v21858_v38 = vld [vmem:[#allocation21_spill] sm:$0xff] }
 0x57c   : > { %v17094_v22 = vmul.f32 %v17073_v18, %v16677_v56  ;;  %v5199_v62 = vmul.f32 %v17073_v18, %v21855_v29  ;;  %v5300_v4 = vsub.f32 %v21856_v27, %v5204_v15  ;;  %v5301_v42 = vsub.f32 %v21857_v48, %v5205_v5  ;;  %v21859_v13 = vld [vmem:[#allocation67_spill] sm:$0xff]  ;;  %v21860_v63 = vld [vmem:[#allocation76_spill] sm:$0xff]  ;;  %v21862_v29 = vld [vmem:[#allocation206_spill] sm:$0xff] }
 0x57d   : > { %v5297_v37 = vsub.f32 %v21858_v38, %v5201_v14  ;;  %v5302_v0 = vsub.f32 %v21859_v13, %v5206_v7  ;;  %v5303_v50 = vsub.f32 %v21860_v63, %v5207_v43  ;;  %v21861_v26 = vld [vmem:[#allocation28_spill] sm:$0xff]  ;;  %v21863_v15 = vld [vmem:[#allocation145_spill] sm:$0xff]  ;;  %v21864_v3 = vld [vmem:[#allocation147_spill] sm:$0xff] }
 0x57e   : > { %v5295_v60 = vsub.f32 %v21861_v26, %v5199_v62  ;;  %v17109_v39 = vpack.c.bf16 %v5301_v42, %v5300_v4  ;;  %v5208_v27 = vmul.f32 %v21863_v15, %v21862_v29  ;;  %v5209_v14 = vmul.f32 %v21864_v3, %v16482_v61  ;;  %v21865_v38 = vld [vmem:[#allocation150_spill] sm:$0xff]  ;;  %v21866_v13 = vld [vmem:[#allocation68_spill] sm:$0xff]  ;;  %v21868_v4 = vld [vmem:[#allocation149_spill] sm:$0xff] }
 0x57f   : > { %v5477_v5 = vpack.c.bf16 %v5297_v37, %v5296_v52  ;;  %v17113_v48 = vpack.c.bf16 %v5303_v50, %v5302_v0  ;;  %v5210_v7 = vmul.f32 %v16579_v24, %v21865_v38  ;;  %v21867_v56 = vld [vmem:[#allocation152_spill] sm:$0xff]  ;;  %v5212_v42 = vmul.f32 %v21868_v4, %v16560_v41  ;;  %v21869_v26 = vld [vmem:[#allocation70_spill] sm:$0xff]  ;;  %v21870_v52 = vld [vmem:[#allocation87_spill] sm:$0xff] }
 0x580   : > { %v5476_v43 = vpack.c.bf16 %v5295_v60, %v5294_v35  ;;  %v5304_v63 = vsub.f32 %v21866_v13, %v5208_v27  ;;  %v5211_v62 = vmul.f32 %v16619_v21, %v21867_v56  ;;  %v5305_v29 = vsub.f32 %v21869_v26, %v5209_v14  ;;  %v21871_v0 = vld [vmem:[#allocation151_spill] sm:$0xff]  ;;  %v21872_v61 = vld [vmem:[#allocation154_spill] sm:$0xff]  ;;  %v21874_v60 = vld [vmem:[#allocation81_spill] sm:$0xff] }
 0x581   : > { %v5306_v37 = vsub.f32 %v21870_v52, %v5210_v7  ;;  %v5213_v50 = vmul.f32 %v21871_v0, %v16617_v25  ;;  %v5214_v3 = vmul.f32 %v16690_v6, %v21872_v61  ;;  %v21873_v24 = vld [vmem:[#allocation86_spill] sm:$0xff]  ;;  %v5308_v15 = vsub.f32 %v21874_v60, %v5212_v42  ;;  %v21875_v27 = vld [vmem:[#allocation156_spill] sm:$0xff]  ;;  %v21876_v56 = vld [vmem:[#allocation153_spill] sm:$0xff] }
 0x582   : > { %v5307_v35 = vsub.f32 %v21873_v24, %v5211_v62  ;;  %v5215_v21 = vmul.f32 %v16698_v33, %v21875_v27  ;;  %v5216_v41 = vmul.f32 %v21876_v56, %v16660_v36  ;;  %12033 = vmatmul.mubr.msk.bf16.gmra.mrb[152].mxu1 %vm2572_vm4, %v5475_v53  ;;  %v17137_v14 = vpack.c.bf16 %v5305_v29, %v5304_v63  ;;  %v21877_v38 = vld [vmem:[#allocation84_spill] sm:$0xff]  ;;  %v21878_v25 = vld [vmem:[#allocation93_spill] sm:$0xff]  ;;  %v21879_v6 = vld [vmem:[#allocation155_spill] sm:$0xff] }
 0x583   : > { %v5309_v7 = vsub.f32 %v21877_v38, %v5213_v50  ;;  %v5310_v13 = vsub.f32 %v21878_v25, %v5214_v3  ;;  %v5217_v4 = vmul.f32 %v21879_v6, %v16696_v17  ;;  %12036 = vmatprep.mubr.msk.bf16.mxu1 %vm2572_vm4, %v5476_v43  ;;  %v21880_v42 = vld [vmem:[#allocation97_spill] sm:$0xff]  ;;  %v21881_v26 = vld [vmem:[#allocation88_spill] sm:$0xff]  ;;  %v21882_v36 = vld [vmem:[#allocation158_spill] sm:$0xff] }
 0x584   : > { %v17144_v62 = vpack.c.bf16 %v5307_v35, %v5306_v37  ;;  %v5311_v33 = vsub.f32 %v21880_v42, %v5215_v21  ;;  %v5312_v52 = vsub.f32 %v21881_v26, %v5216_v41  ;;  %v5218_v53 = vmul.f32 %v16738_v51, %v21882_v36  ;;  %v21883_v29 = vld [vmem:[#allocation95_spill] sm:$0xff]  ;;  %v21884_v50 = vld [vmem:[#allocation160_spill] sm:$0xff]  ;;  %v21885_v17 = vld [vmem:[#allocation157_spill] sm:$0xff] }
 0x585   : > { %v17150_v63 = vpack.c.bf16 %v5309_v7, %v5308_v15  ;;  %v5313_v0 = vsub.f32 %v21883_v29, %v5217_v4  ;;  %v5219_v61 = vmul.f32 %v16784_v54, %v21884_v50  ;;  %v5220_v3 = vmul.f32 %v21885_v17, %v16714_v55  ;;  %v21886_v37 = vld [vmem:[#allocation27_spill] sm:$0xff]  ;;  %v21889_v21 = vld [vmem:[#allocation32_spill] sm:$0xff]  ;;  %v21890_v41 = vld [vmem:[#allocation26_spill] sm:$0xff] }
 0x586   : > { %v17157_v43 = vpack.c.bf16 %v5311_v33, %v5310_v13  ;;  %v5314_v24 = vsub.f32 %v21886_v37, %v5218_v53  ;;  %v21887_v35 = vld [vmem:[#allocation159_spill] sm:$0xff]  ;;  %v21892_v55 = vld [vmem:[#allocation25_spill] sm:$0xff]  ;;  %v21894_v4 = vld [vmem:[#allocation166_spill] sm:$0xff] }
 0x587   : > { %v5221_v60 = vmul.f32 %v21887_v35, %v16761_v44  ;;  %v21888_v27 = vld [vmem:[#allocation167_spill] sm:$0xff]  ;;  %v17164_v15 = vpack.c.bf16 %v5313_v0, %v5312_v52  ;;  %v5315_v56 = vsub.f32 %v21889_v21, %v5219_v61  ;;  %v5316_v38 = vsub.f32 %v21890_v41, %v5220_v3  ;;  %v21895_v44 = vld [vmem:[#allocation168_spill] sm:$0xff]  ;;  %v21899_v50 = vld [vmem:[#allocation30_spill] sm:$0xff] }
 0x588   : > { %v5222_v51 = vmul.f32 %v16842_v30, %v21888_v27  ;;  %v21891_v54 = vld [vmem:[#allocation171_spill] sm:$0xff]  ;;  %v5224_v42 = vmul.f32 %v21894_v4, %v16813_v59  ;;  %v5225_v33 = vmul.f32 %v21895_v44, %v16883_v34  ;;  %v21896_v26 = vld [vmem:[#allocation36_spill] sm:$0xff]  ;;  %v21900_v17 = vld [vmem:[#allocation29_spill] sm:$0xff] }
 0x589   : > { %v5223_v7 = vmul.f32 %v16900_v49, %v21891_v54  ;;  %v5317_v25 = vsub.f32 %v21892_v55, %v5221_v60  ;;  %v21893_v13 = vld [vmem:[#allocation31_spill] sm:$0xff]  ;;  %v5486_v30 = vpack.c.bf16 %v5315_v56, %v5314_v24  ;;  %v21901_v37 = vld [vmem:[#allocation178_spill] sm:$0xff]  ;;  %v21903_v60 = vld [vmem:[#allocation40_spill] sm:$0xff] }
 0x58a   : > { %v5318_v6 = vsub.f32 %v21893_v13, %v5222_v51  ;;  %v21897_v36 = vld [vmem:[#allocation179_spill] sm:$0xff]  ;;  %v5320_v61 = vsub.f32 %v21899_v50, %v5224_v42  ;;  %v5321_v3 = vsub.f32 %v21900_v17, %v5225_v33  ;;  %v5228_v59 = vmul.f32 %v21901_v37, %v16917_v12  ;;  %12037 = vmatmul.mubr.msk.bf16.gmra.mrb[156].mxu1 %vm2572_vm4, %v5477_v5  ;;  %v21905_v56 = vld [vmem:[#allocation34_spill] sm:$0xff]  ;;  %v21908_v55 = vld [vmem:[#allocation33_spill] sm:$0xff] }
 0x58b   : > { %v5319_v52 = vsub.f32 %v21896_v26, %v5223_v7  ;;  %v5226_v53 = vmul.f32 %v16951_v23, %v21897_v36  ;;  %v21898_v29 = vld [vmem:[#allocation183_spill] sm:$0xff]  ;;  %v5487_v49 = vpack.c.bf16 %v5317_v25, %v5316_v38  ;;  %v21904_v23 = vld [vmem:[#allocation180_spill] sm:$0xff]  ;;  %12040 = vmatprep.mubr.msk.bf16.mxu1 %vm2572_vm4, %v17088_v2  ;;  %v21920_v50 = vld [vmem:[#allocation49_spill] sm:$0xff] }
 0x58c   : > { %v5227_v0 = vmul.f32 %v16981_v32, %v21898_v29  ;;  %v21902_v24 = vld [vmem:[#allocation35_spill] sm:$0xff]  ;;  %v5229_v51 = vmul.f32 %v21904_v23, %v16977_v10  ;;  %v12689_v32 = vld [vmem:[%s20617_s14] sm:$0xff]   ;;  %v5489_v21 = vpack.c.bf16 %v5321_v3, %v5320_v61  ;;  %v5324_v12 = vsub.f32 %v21905_v56, %v5228_v59  ;;  %v21912_v44 = vld [vmem:[#allocation44_spill] sm:$0xff] }
 0x58d   : > { %v5488_v34 = vpack.c.bf16 %v5319_v52, %v5318_v6  ;;  %v5322_v35 = vsub.f32 %v21902_v24, %v5226_v53  ;;  %v21906_v41 = vld [vmem:[#allocation191_spill] sm:$0xff]  ;;  %v21909_v10 = vld [vmem:[#allocation190_spill] sm:$0xff]  ;;  %v21910_v6 = vld [vmem:[#allocation192_spill] sm:$0xff]  ;;  %12148 = vmatprep.subr.bf16.mxu1 %v12689_v32 }
 0x58e   : > { %v5323_v27 = vsub.f32 %v21903_v60, %v5227_v0  ;;  %v5230_v5 = vmul.f32 %v17038_v11, %v21906_v41  ;;  %v21907_v38 = vld [vmem:[#allocation195_spill] sm:$0xff]  ;;  %v5325_v25 = vsub.f32 %v21908_v55, %v5229_v51  ;;  %v5232_v13 = vmul.f32 %v21909_v10, %v17005_v9  ;;  %v21913_v26 = vld [vmem:[#allocation60_spill] sm:$0xff]  ;;  %v21914_v52 = vld [vmem:[#allocation58_spill] sm:$0xff]  ;;  %12149 = vmatpush3.bf16.msra.mxu1 %v12689_v32 }
 0x58f   : > { %v5231_v54 = vmul.f32 %v17073_v18, %v21907_v38  ;;  %v5233_v4 = vmul.f32 %v21910_v6, %v17067_v8  ;;  %v21911_v2 = vld [vmem:[#allocation39_spill] sm:$0xff]  ;;  %v21915_v11 = vsub.f32 %v21913_v26, %v21914_v52  ;;  %v21917_v53 = vld [vmem:[#allocation205_spill] sm:$0xff]  ;;  %v21919_v0 = vld [vmem:[#allocation54_spill] sm:$0xff] }
 0x590   : > { %v5490_v7 = vpack.c.bf16 %v5323_v27, %v5322_v35  ;;  %v5326_v42 = vsub.f32 %v21911_v2, %v5230_v5  ;;  %v21916_v36 = vld [vmem:[#allocation63_spill] sm:$0xff]  ;;  %v21921_v61 = vsub.f32 %v21919_v0, %v21920_v50  ;;  %v21922_v17 = vld [vmem:[#allocation57_spill] sm:$0xff]  ;;  %v21923_v9 = vld [vmem:[#allocation204_spill] sm:$0xff]  ;;  %v5491_v8 = vpack.c.bf16 %v5325_v25, %v5324_v12 }
 0x591   : > { %v5327_v33 = vsub.f32 %v21912_v44, %v5231_v54  ;;  %v21918_v18 = vsub.f32 %v21916_v36, %v21917_v53  ;;  %v21924_v3 = vsub.f32 %v21922_v17, %v21923_v9  ;;  %v21925_v59 = vld [vmem:[#allocation38_spill] sm:$0xff]  ;;  %v21926_v35 = vld [vmem:[#allocation37_spill] sm:$0xff]  ;;  %v21931_v41 = vld [vmem:[#allocation212_spill] sm:$0xff] }
 0x592   : > { %v5328_v24 = vsub.f32 %v21925_v59, %v5232_v13  ;;  %v5329_v60 = vsub.f32 %v21926_v35, %v5233_v4  ;;  %v21927_v27 = vld [vmem:[#allocation65_spill] sm:$0xff]  ;;  %v21928_v23 = vld [vmem:[#allocation210_spill] sm:$0xff]  ;;  %v21933_v55 = vld [vmem:[#allocation71_spill] sm:$0xff]  ;;  %12041 = vmatmul.mubr.msk.bf16.gmra.mrb[160].mxu1 %vm2572_vm4, %v17109_v39  ;;  %v21997_v39 = vsub.f32 %v21802_v1, %v17083_v31 }
 0x593   : > { %v5494_v29 = vpack.c.bf16 %v21918_v18, %v21915_v11  ;;  %v5495_v37 = vpack.c.bf16 %v21924_v3, %v21921_v61  ;;  %v21929_v51 = vsub.f32 %v21927_v27, %v21928_v23  ;;  %v21930_v56 = vld [vmem:[#allocation74_spill] sm:$0xff]  ;;  %v5492_v54 = vpack.c.bf16 %v5327_v33, %v5326_v42  ;;  %v21934_v10 = vld [vmem:[#allocation208_spill] sm:$0xff]  ;;  %v21936_v2 = vld [vmem:[#allocation75_spill] sm:$0xff]  ;;  %12044 = vmatprep.mubr.msk.bf16.mxu1 %vm2572_vm4, %v17113_v48 }
 0x594   : > { %v21932_v5 = vsub.f32 %v21930_v56, %v21931_v41  ;;  %v21935_v6 = vsub.f32 %v21933_v55, %v21934_v10  ;;  %v21937_v44 = vld [vmem:[#allocation211_spill] sm:$0xff]  ;;  %v21940_v25 = vld [vmem:[#allocation112_spill] sm:$0xff]  ;;  %v21942_v52 = vld [vmem:[#allocation89_spill] sm:$0xff]  ;;  %v5493_v17 = vpack.c.bf16 %v5329_v60, %v5328_v24 }
 0x595   : > { %v21938_v26 = vsub.f32 %v21936_v2, %v21937_v44  ;;  %v21939_v12 = vld [vmem:[#allocation91_spill] sm:$0xff]  ;;  %v21943_v4 = vld [vmem:[#allocation64_spill] sm:$0xff]  ;;  %v21946_v18 = vld [vmem:[#allocation110_spill] sm:$0xff] }
 0x596   : > { %v5496_v38 = vpack.c.bf16 %v21932_v5, %v21929_v51  ;;  %v21941_v13 = vsub.f32 %v21939_v12, %v21940_v25  ;;  %v21944_v11 = vsub.f32 %v21942_v52, %v21943_v4  ;;  %v21945_v53 = vld [vmem:[#allocation79_spill] sm:$0xff]  ;;  %v21948_v50 = vld [vmem:[#allocation42_spill] sm:$0xff]  ;;  %v21951_v9 = vld [vmem:[#allocation41_spill] sm:$0xff] }
 0x597   : > { %v5497_v32 = vpack.c.bf16 %v21938_v26, %v21935_v6  ;;  %v21947_v0 = vsub.f32 %v21945_v53, %v21946_v18  ;;  %v21949_v61 = vld [vmem:[#allocation55_spill] sm:$0xff]  ;;  %v21952_v3 = vld [vmem:[#allocation162_spill] sm:$0xff]  ;;  %v21958_v41 = vld [vmem:[#allocation161_spill] sm:$0xff] }
 0x598   : > { %v5498_v36 = vpack.c.bf16 %v21944_v11, %v21941_v13  ;;  %v21950_v42 = vsub.f32 %v21948_v50, %v21949_v61  ;;  %v21953_v59 = vsub.f32 %v21951_v9, %v21952_v3  ;;  %v21954_v35 = vld [vmem:[#allocation46_spill] sm:$0xff]  ;;  %v21957_v56 = vld [vmem:[#allocation43_spill] sm:$0xff]  ;;  %v21960_v55 = vld [vmem:[#allocation48_spill] sm:$0xff]  ;;  %v21977_v3 = vsub.f32 %v21760_v19, %v16915_v58 }
 0x599   : > { %v21955_v27 = vld [vmem:[#allocation202_spill] sm:$0xff]  ;;  %v21959_v5 = vsub.f32 %v21957_v56, %v21958_v41  ;;  %v21963_v44 = vld [vmem:[#allocation45_spill] sm:$0xff]  ;;  %v21964_v26 = vld [vmem:[#allocation164_spill] sm:$0xff]  ;;  %v21986_v19 = vsub.f32 %v21764_v40, %v16929_v47 }
 0x59a   : > { %v5499_v33 = vpack.c.bf16 %v21950_v42, %v21947_v0  ;;  %v21956_v23 = vsub.f32 %v21954_v35, %v21955_v27  ;;  %v21961_v10 = vld [vmem:[#allocation50_spill] sm:$0xff]  ;;  %v21965_v12 = vsub.f32 %v21963_v44, %v21964_v26  ;;  %v21966_v25 = vld [vmem:[#allocation169_spill] sm:$0xff]  ;;  %v12690_v13 = vld [vmem:[%s20617_s14 + $0x8] sm:$0xff]   ;;  %12045 = vmatmul.mubr.msk.bf16.gmra.mrb[164].mxu1 %vm2572_vm4, %v17137_v14 }
 0x59b   : > { %v21962_v6 = vsub.f32 %v21960_v55, %v21961_v10  ;;  %v21967_v24 = vsub.f32 %v21731_v16, %v21966_v25  ;;  %v21968_v52 = vld [vmem:[#allocation47_spill] sm:$0xff]  ;;  %v21971_v53 = vld [vmem:[#allocation52_spill] sm:$0xff]  ;;  %v21972_v18 = vld [vmem:[#allocation165_spill] sm:$0xff]  ;;  %v21984_v55 = vsub.f32 %v21772_v57, %v16963_v28  ;;  %v21985_v10 = vsub.f32 %v21783_v46, %v16997_v45  ;;  %12150 = vmatprep.subr.bf16.mxu1 %v12690_v13 }
 0x59c   : > { %v5500_v51 = vpack.c.bf16 %v21956_v23, %v21953_v59  ;;  %v21969_v4 = vld [vmem:[#allocation163_spill] sm:$0xff]  ;;  %v21973_v0 = vsub.f32 %v21971_v53, %v21972_v18  ;;  %v21974_v61 = vld [vmem:[#allocation98_spill] sm:$0xff]  ;;  %v21981_v23 = vld [vmem:[#allocation100_spill] sm:$0xff]  ;;  %v21993_v57 = vsub.f32 %v21806_v20, %v17094_v22  ;;  %12151 = vmatpush3.bf16.msra.mxu1 %v12690_v13  ;;  %12048 = vmatprep.mubr.msk.bf16.mxu1 %vm2572_vm4, %v17144_v62 }
 0x59d   : > { %v5501_v2 = vpack.c.bf16 %v21962_v6, %v21959_v5  ;;  %v5502_v60 = vpack.c.bf16 %v21967_v24, %v21965_v12  ;;  %v21970_v11 = vsub.f32 %v21968_v52, %v21969_v4  ;;  %v21975_v42 = vld [vmem:[#allocation114_spill] sm:$0xff]  ;;  %v21978_v16 = vld [vmem:[#allocation51_spill] sm:$0xff]  ;;  %v21982_v56 = vld [vmem:[#allocation116_spill] sm:$0xff]  ;;  %v5506_v6 = vpack.c.bf16 %v21985_v10, %v21984_v55 }
 0x59e   : > { %v21976_v9 = vsub.f32 %v21974_v61, %v21975_v42  ;;  %v21979_v35 = vld [vmem:[#allocation170_spill] sm:$0xff]  ;;  %v21983_v41 = vsub.f32 %v21981_v23, %v21982_v56  ;;  %v21987_v58 = vld [vmem:[#allocation103_spill] sm:$0xff]  ;;  %v21991_v24 = vld [vmem:[#allocation172_spill] sm:$0xff] }
 0x59f   : > { %v5503_v50 = vpack.c.bf16 %v21973_v0, %v21970_v11  ;;  %v21980_v27 = vsub.f32 %v21978_v16, %v21979_v35  ;;  %v21988_v44 = vld [vmem:[#allocation66_spill] sm:$0xff]  ;;  %v21994_v4 = vld [vmem:[#allocation105_spill] sm:$0xff]  ;;  %v12692_v40 = vld [vmem:[%s21998_s29 + $0x8] sm:$0xff]  }
 0x5a0   : > { %v5504_v59 = vpack.c.bf16 %v21977_v3, %v21976_v9  ;;  %v21989_v26 = vsub.f32 %v21987_v58, %v21988_v44  ;;  %v21990_v25 = vld [vmem:[#allocation106_spill] sm:$0xff]  ;;  %v21995_v46 = vld [vmem:[#allocation69_spill] sm:$0xff]  ;;  %v12693_v1 = vld [vmem:[%s21998_s29 + $0x10] sm:$0xff]  }
 0x5a1   : > { %v5505_v5 = vpack.c.bf16 %v21983_v41, %v21980_v27  ;;  %v21992_v52 = vsub.f32 %v21990_v25, %v21991_v24  ;;  %v21996_v45 = vsub.f32 %v21994_v4, %v21995_v46  ;;  %v12691_v20 = vld [vmem:[%s21998_s29] sm:$0xff]  }
 0x5a2   : > { %v5507_v12 = vpack.c.bf16 %v21989_v26, %v21986_v19  ;;  %12049 = vmatmul.mubr.msk.bf16.gmra.mrb[168].mxu1 %vm2572_vm4, %v17150_v63  ;;  %12104 = vmatprep.subr.bf16.mxu0 %v12691_v20 }
 0x5a3   : > { %v5508_v28 = vpack.c.bf16 %v21993_v57, %v21992_v52  ;;  %v5509_v11 = vpack.c.bf16 %v21997_v39, %v21996_v45  ;;  %12052 = vmatprep.mubr.msk.bf16.mxu1 %vm2572_vm4, %v17157_v43  ;;  %12105 = vmatpush3.bf16.msra.mxu0 %v12691_v20 }
 0x5a4   : > { %12106 = vmatprep.subr.bf16.mxu0 %v12692_v40 }
 0x5a7   : > { %12107 = vmatpush3.bf16.msra.mxu0 %v12692_v40 }
 0x5a8   : > { %12108 = vmatprep.subr.bf16.mxu0 %v12693_v1 }
 0x5aa   : > { %12053 = vmatmul.mubr.msk.bf16.gmra.mrb[172].mxu1 %vm2572_vm4, %v17164_v15 }
 0x5ab   : > { %12056 = vmatprep.mubr.msk.bf16.mxu1 %vm2572_vm4, %v5486_v30  ;;  %12109 = vmatpush3.bf16.msra.mxu0 %v12693_v1 }
 0x5b2   : > { %12057 = vmatmul.mubr.msk.bf16.gmra.mrb[176].mxu1 %vm2572_vm4, %v5487_v49 }
 0x5b3   : > { %12060 = vmatprep.mubr.msk.bf16.mxu1 %vm2572_vm4, %v5488_v34  ;;  %v12694_v34 = vld [vmem:[%s21998_s29 + $0x18] sm:$0xff]  }
 0x5b4   : > { %12110 = vmatprep.subr.bf16.mxu0 %v12694_v34 }
 0x5b5   : > { %12111 = vmatpush3.bf16.msra.mxu0 %v12694_v34 }
 0x5ba   : > { %12061 = vmatmul.mubr.msk.bf16.gmra.mrb[180].mxu1 %vm2572_vm4, %v5489_v21 }
 0x5bb   : > { %12064 = vmatprep.mubr.msk.bf16.mxu1 %vm2572_vm4, %v5490_v7 }
 0x5c2   : > { %12065 = vmatmul.mubr.msk.bf16.gmra.mrb[184].mxu1 %vm2572_vm4, %v5491_v8 }
 0x5c3   : > { %12068 = vmatprep.mubr.msk.bf16.mxu1 %vm2572_vm4, %v5492_v54 }
 0x5ca   : > { %12069 = vmatmul.mubr.msk.bf16.gmra.mrb[188].mxu1 %vm2572_vm4, %v5493_v17  ;;  %v12695_v17 = vld [vmem:[%s21998_s29 + $0x20] sm:$0xff]  }
 0x5cb   : > { %12072 = vmatprep.mubr.msk.bf16.mxu1 %vm2572_vm4, %v5494_v29  ;;  %12112 = vmatprep.subr.bf16.mxu0 %v12695_v17 }
 0x5cc   : > { %12113 = vmatpush3.bf16.msra.mxu0 %v12695_v17 }
 0x5d2   : > { %12073 = vmatmul.mubr.msk.bf16.gmra.mrb[192].mxu1 %vm2572_vm4, %v5495_v37 }
 0x5d3   : > { %12076 = vmatprep.mubr.msk.bf16.mxu1 %vm2572_vm4, %v5496_v38 }
 0x5da   : > { %12077 = vmatmul.mubr.msk.bf16.gmra.mrb[196].mxu1 %vm2572_vm4, %v5497_v32 }
 0x5db   : > { %12080 = vmatprep.mubr.msk.bf16.mxu1 %vm2572_vm4, %v5498_v36 }
 0x5e2   : > { %12081 = vmatmul.mubr.msk.bf16.gmra.mrb[200].mxu1 %vm2572_vm4, %v5499_v33 }
 0x5e3   : > { %12084 = vmatprep.mubr.msk.bf16.mxu1 %vm2572_vm4, %v5500_v51  ;;  %v12696_v51 = vld [vmem:[%s21998_s29 + $0x28] sm:$0xff]  }
 0x5e4   : > { %12114 = vmatprep.subr.bf16.mxu0 %v12696_v51 }
 0x5e5   : > { %12115 = vmatpush3.bf16.msra.mxu0 %v12696_v51 }
 0x5ea   : > { %12085 = vmatmul.mubr.msk.bf16.gmra.mrb[204].mxu1 %vm2572_vm4, %v5501_v2 }
 0x5eb   : > { %12088 = vmatprep.mubr.msk.bf16.mxu1 %vm2572_vm4, %v5502_v60 }
 0x5f2   : > { %12089 = vmatmul.mubr.msk.bf16.gmra.mrb[208].mxu1 %vm2572_vm4, %v5503_v50 }
 0x5f3   : > { %12092 = vmatprep.mubr.msk.bf16.mxu1 %vm2572_vm4, %v5504_v59 }
 0x5fa   : > { %12093 = vmatmul.mubr.msk.bf16.gmra.mrb[212].mxu1 %vm2572_vm4, %v5505_v5 }
 0x5fb   : > { %12096 = vmatprep.mubr.msk.bf16.mxu1 %vm2572_vm4, %v5506_v6 }
 0x602   : > { %12097 = vmatmul.mubr.msk.bf16.gmra.mrb[216].mxu1 %vm2572_vm4, %v5507_v12 }
 0x603   : > { %12100 = vmatprep.mubr.msk.bf16.mxu1 %vm2572_vm4, %v5508_v28 }
 0x60a   : > { %12101 = vmatmul.mubr.msk.bf16.gmra.mrb[220].mxu1 %vm2572_vm4, %v5509_v11 }
 0x60f   : > { %v17355_v47 = vpop.f32.mrb[128].mxu1 }
 0x610   : > { %v17357_v31 = vpop.f32.mrb[129].mxu1  ;;  %v6085_v24 = vmul.f32 %v17355_v47, %v17355_v47 }
 0x611   : > { %v17359_v22 = vpop.f32.mrb[130].mxu1  ;;  %v6083_v28 = vmul.f32 %v17357_v31, %v17357_v31 }
 0x612   : > { %v6906_v48 = vpack.c.bf16 %v17359_v22, %v17355_v47  ;;  %v17363_v14 = vpop.f32.mrb[131].mxu1  ;;  %v6086_v45 = vmul.f32 %v17359_v22, %v17359_v22 }
 0x613   : > { %v6905_v62 = vpack.c.bf16 %v17363_v14, %v17357_v31  ;;  %v6084_v1 = vmul.f32 %v17363_v14, %v17363_v14 }
 0x615   : > { %12152 = vmatprep.mubr.msk.bf16.mxu1 %vm2572_vm4, %v6905_v62 }
 0x616   : > { %12153 = vmatmul.mubr.msk.bf16.vlgmr.msra.gmra.mrb[224].mxu1 %vm2572_vm4, %v6906_v48 }
 0x621   : > { %v17369_v63 = vpop.f32.mrb[132].mxu1 }
 0x622   : > { %v17371_v43 = vpop.f32.mrb[133].mxu1  ;;  %v6089_v34 = vmul.f32 %v17369_v63, %v17369_v63 }
 0x623   : > { %v17373_v15 = vpop.f32.mrb[134].mxu1  ;;  %v6087_v14 = vmul.f32 %v17371_v43, %v17371_v43 }
 0x624   : > { %v6908_v30 = vpack.c.bf16 %v17373_v15, %v17369_v63  ;;  %v17377_v49 = vpop.f32.mrb[135].mxu1  ;;  %v6090_v51 = vmul.f32 %v17373_v15, %v17373_v15 }
 0x625   : > { %v6907_v21 = vpack.c.bf16 %v17377_v49, %v17371_v43 }
 0x627   : > { %12156 = vmatprep.mubr.msk.bf16.mxu1 %vm2572_vm4, %v6907_v21 }
 0x628   : > { %12157 = vmatmul.mubr.msk.bf16.gmra.mrb[228].mxu1 %vm2572_vm4, %v6908_v30 }
 0x62e   : > { %v17386_v7 = vpop.f32.mrb[136].mxu1 }
 0x62f   : > { %v17388_v29 = vpop.f32.mrb[137].mxu1 }
 0x630   : > { %v17390_v37 = vpop.f32.mrb[138].mxu1 }
 0x631   : > { %v6910_v8 = vpack.c.bf16 %v17390_v37, %v17386_v7  ;;  %v17394_v38 = vpop.f32.mrb[139].mxu1 }
 0x632   : > { %v6909_v54 = vpack.c.bf16 %v17394_v38, %v17388_v29 }
 0x634   : > { %12160 = vmatprep.mubr.msk.bf16.mxu1 %vm2572_vm4, %v6909_v54 }
 0x635   : > { %12161 = vmatmul.mubr.msk.bf16.gmra.mrb[232].mxu1 %vm2572_vm4, %v6910_v8 }
 0x63c   : > { %v17400_v32 = vpop.f32.mrb[140].mxu1 }
 0x63d   : > { %v17402_v36 = vpop.f32.mrb[141].mxu1 }
 0x63e   : > { %v17404_v33 = vpop.f32.mrb[142].mxu1 }
 0x63f   : > { %v6912_v2 = vpack.c.bf16 %v17404_v33, %v17400_v32  ;;  %v17414_v60 = vpop.f32.mrb[143].mxu1 }
 0x640   : > { %v6911_v13 = vpack.c.bf16 %v17414_v60, %v17402_v36 }
 0x642   : > { %12164 = vmatprep.mubr.msk.bf16.mxu1 %vm2572_vm4, %v6911_v13 }
 0x643   : > { %12165 = vmatmul.mubr.msk.bf16.gmra.mrb[236].mxu1 %vm2572_vm4, %v6912_v2 }
 0x645   : > { %v17420_v53 = vpop.f32.mrb[144].mxu1 }
 0x646   : > { %v17422_v18 = vpop.f32.mrb[145].mxu1 }
 0x647   : > { %v17424_v0 = vpop.f32.mrb[146].mxu1 }
 0x648   : > { %v6914_v50 = vpack.c.bf16 %v17424_v0, %v17420_v53  ;;  %v17428_v61 = vpop.f32.mrb[147].mxu1 }
 0x649   : > { %v6913_v42 = vpack.c.bf16 %v17428_v61, %v17422_v18 }
 0x64b   : > { %12168 = vmatprep.mubr.msk.bf16.mxu1 %vm2572_vm4, %v6913_v42 }
 0x64c   : > { %12169 = vmatmul.mubr.msk.bf16.gmra.mrb[240].mxu1 %vm2572_vm4, %v6914_v50 }
 0x64d   : > { %v17434_v9 = vpop.f32.mrb[148].mxu1 }
 0x64e   : > { %v17436_v3 = vpop.f32.mrb[149].mxu1 }
 0x64f   : > { %v17438_v59 = vpop.f32.mrb[150].mxu1 }
 0x650   : > { %v6916_v16 = vpack.c.bf16 %v17438_v59, %v17434_v9  ;;  %v17442_v35 = vpop.f32.mrb[151].mxu1 }
 0x651   : > { %v6915_v27 = vpack.c.bf16 %v17442_v35, %v17436_v3 }
 0x653   : > { %12172 = vmatprep.mubr.msk.bf16.mxu1 %vm2572_vm4, %v6915_v27 }
 0x654   : > { %12173 = vmatmul.mubr.msk.bf16.gmra.mrb[244].mxu1 %vm2572_vm4, %v6916_v16  ;;  %v6088_v16 = vmul.f32 %v17377_v49, %v17377_v49  ;;  %v6091_v49 = vmul.f32 %v17388_v29, %v17388_v29 }
 0x655   : > { %v17448_v23 = vpop.f32.mrb[152].mxu1 }
 0x656   : > { %v17450_v56 = vpop.f32.mrb[153].mxu1 }
 0x657   : > { %v17452_v41 = vpop.f32.mrb[154].mxu1 }
 0x658   : > { %v6918_v5 = vpack.c.bf16 %v17452_v41, %v17448_v23  ;;  %v17456_v55 = vpop.f32.mrb[155].mxu1 }
 0x659   : > { %v6917_v10 = vpack.c.bf16 %v17456_v55, %v17450_v56 }
 0x65b   : > { %12176 = vmatprep.mubr.msk.bf16.mxu1 %vm2572_vm4, %v6917_v10 }
 0x65c   : > { %12177 = vmatmul.mubr.msk.bf16.gmra.mrb[248].mxu1 %vm2572_vm4, %v6918_v5 }
 0x65d   : > { %v17462_v6 = vpop.f32.mrb[156].mxu1 }
 0x65e   : > { %v17464_v19 = vpop.f32.mrb[157].mxu1 }
 0x65f   : > { %v17466_v58 = vpop.f32.mrb[158].mxu1 }
 0x660   : > { %v6920_v44 = vpack.c.bf16 %v17466_v58, %v17462_v6  ;;  %v17470_v26 = vpop.f32.mrb[159].mxu1 }
 0x661   : > { %v6919_v12 = vpack.c.bf16 %v17470_v26, %v17464_v19 }
 0x663   : > { %12180 = vmatprep.mubr.msk.bf16.mxu1 %vm2572_vm4, %v6919_v12 }
 0x664   : > { %12181 = vmatmul.mubr.msk.bf16.gmra.mrb[252].mxu1 %vm2572_vm4, %v6920_v44  ;;  %v6093_v44 = vmul.f32 %v17386_v7, %v17386_v7 }
 0x665   : > { %v12042_v25 = vpop.f32.mrb[160].mxu1 }
 0x666   : > { %v6117_v52 = vmul.f32 %v12042_v25, %v12042_v25  ;;  %v5828_v57 = vpop.f32.mrb[161].mxu1 }
 0x667   : > { %v6115_v4 = vmul.f32 %v5828_v57, %v5828_v57  ;;  %v12043_v46 = vpop.f32.mrb[162].mxu1 }
 0x668   : > { %v17482_v39 = vadd.f32 %v6117_v52, %v6085_v24  ;;  %v6118_v11 = vmul.f32 %v12043_v46, %v12043_v46  ;;  %v6922_v20 = vpack.c.bf16 %v12043_v46, %v12042_v25  ;;  %v5831_v40 = vpop.f32.mrb[163].mxu1 }
 0x669   : > { %v17486_v48 = vadd.f32 %v6115_v4, %v6083_v28  ;;  %v6116_v47 = vmul.f32 %v5831_v40, %v5831_v40  ;;  %v6921_v62 = vpack.c.bf16 %v5831_v40, %v5828_v57  ;;  %v6094_v57 = vmul.f32 %v17390_v37, %v17390_v37 }
 0x66a   : > { %v17488_v30 = vadd.f32 %v6118_v11, %v6086_v45  ;;  %v6092_v11 = vmul.f32 %v17394_v38, %v17394_v38  ;;  %v6095_v38 = vmul.f32 %v17402_v36, %v17402_v36 }
 0x66b   : > { %v17490_v31 = vadd.f32 %v6116_v47, %v6084_v1  ;;  %12184 = vmatprep.mubr.msk.bf16.mxu1 %vm2572_vm4, %v6921_v62  ;;  %v6097_v47 = vmul.f32 %v17400_v32, %v17400_v32 }
 0x66c   : > { %12185 = vmatmul.mubr.msk.bf16.gmra.mrb[0].mxu1 %vm2572_vm4, %v6922_v20 }
 0x66d   : > { %v12046_v22 = vpop.f32.mrb[164].mxu1 }
 0x66e   : > { %v6121_v21 = vmul.f32 %v12046_v22, %v12046_v22  ;;  %v5844_v8 = vpop.f32.mrb[165].mxu1 }
 0x66f   : > { %v6119_v54 = vmul.f32 %v5844_v8, %v5844_v8  ;;  %v12047_v17 = vpop.f32.mrb[166].mxu1 }
 0x670   : > { %v17500_v2 = vadd.f32 %v6121_v21, %v6089_v34  ;;  %v6122_v13 = vmul.f32 %v12047_v17, %v12047_v17  ;;  %v6924_v50 = vpack.c.bf16 %v12047_v17, %v12046_v22  ;;  %v5847_v42 = vpop.f32.mrb[167].mxu1 }
 0x671   : > { %v17504_v27 = vadd.f32 %v6119_v54, %v6087_v14  ;;  %v6120_v63 = vmul.f32 %v5847_v42, %v5847_v42  ;;  %v6923_v5 = vpack.c.bf16 %v5847_v42, %v5844_v8  ;;  %v6098_v8 = vmul.f32 %v17404_v33, %v17404_v33 }
 0x672   : > { %v17506_v10 = vadd.f32 %v6122_v13, %v6090_v51  ;;  %v6096_v13 = vmul.f32 %v17414_v60, %v17414_v60  ;;  %v6099_v60 = vmul.f32 %v17422_v18, %v17422_v18  ;;  %v20989_v18 = vmov 0  }
 0x673   : > { %v17508_v43 = vadd.f32 %v6120_v63, %v6088_v16  ;;  %12188 = vmatprep.mubr.msk.bf16.mxu1 %vm2572_vm4, %v6923_v5  ;;  %v6101_v63 = vmul.f32 %v17420_v53, %v17420_v53  ;;  %12623 = vset.pattern.permute.xlu1 %v20989_v18 }
 0x674   : > { %12189 = vmatmul.mubr.msk.bf16.gmra.mrb[4].mxu1 %vm2572_vm4, %v6924_v50  ;;  %12622 = vset.pattern.permute.xlu0 %v20989_v18 }
 0x675   : > { %v12050_v15 = vpop.f32.mrb[168].mxu1 }
 0x676   : > { %v6125_v12 = vmul.f32 %v12050_v15, %v12050_v15  ;;  %v5860_v25 = vpop.f32.mrb[169].mxu1 }
 0x677   : > { %v6123_v24 = vmul.f32 %v5860_v25, %v5860_v25  ;;  %v12051_v52 = vpop.f32.mrb[170].mxu1 }
 0x678   : > { %v17518_v28 = vadd.f32 %v6125_v12, %v6093_v44  ;;  %v6126_v4 = vmul.f32 %v12051_v52, %v12051_v52  ;;  %v6926_v46 = vpack.c.bf16 %v12051_v52, %v12050_v15  ;;  %v5863_v45 = vpop.f32.mrb[171].mxu1  ;;  %v6102_v44 = vmul.f32 %v17424_v0, %v17424_v0 }
 0x679   : > { %v17522_v20 = vadd.f32 %v6123_v24, %v6091_v49  ;;  %v6124_v7 = vmul.f32 %v5863_v45, %v5863_v45  ;;  %v6925_v40 = vpack.c.bf16 %v5863_v45, %v5860_v25  ;;  %v6100_v49 = vmul.f32 %v17428_v61, %v17428_v61 }
 0x67a   : > { %v17524_v1 = vadd.f32 %v6126_v4, %v6094_v57 }
 0x67b   : > { %v17526_v29 = vadd.f32 %v6124_v7, %v6092_v11  ;;  %12192 = vmatprep.mubr.msk.bf16.mxu1 %vm2572_vm4, %v6925_v40  ;;  %v8066_v11 = vld [vmem:[%s13563_s17 + $0x8] sm:$0xff]  ;;  %v6105_v40 = vmul.f32 %v17434_v9, %v17434_v9  ;;  %v6104_v9 = vmul.f32 %v17442_v35, %v17442_v35  ;;  %v6109_v35 = vmul.f32 %v17448_v23, %v17448_v23 }
 0x67c   : > { %12193 = vmatmul.mubr.msk.bf16.gmra.mrb[8].mxu1 %vm2572_vm4, %v6926_v46  ;;  %8104 = vperm.xlu1 %12623, %v8066_v11  }
 0x67d   : > { %v12054_v37 = vpop.f32.mrb[172].mxu1 }
 0x67e   : > { %v6129_v62 = vmul.f32 %v12054_v37, %v12054_v37  ;;  %v5876_v22 = vpop.f32.mrb[173].mxu1 }
 0x67f   : > { %v6127_v34 = vmul.f32 %v5876_v22, %v5876_v22  ;;  %v12055_v21 = vpop.f32.mrb[174].mxu1 }
 0x680   : > { %v17536_v14 = vadd.f32 %v6129_v62, %v6097_v47  ;;  %v6130_v54 = vmul.f32 %v12055_v21, %v12055_v21  ;;  %v6928_v17 = vpack.c.bf16 %v12055_v21, %v12054_v37  ;;  %v5879_v51 = vpop.f32.mrb[175].mxu1  ;;  %v6103_v62 = vmul.f32 %v17436_v3, %v17436_v3 }
 0x681   : > { %v17540_v50 = vadd.f32 %v6127_v34, %v6095_v38  ;;  %v6128_v32 = vmul.f32 %v5879_v51, %v5879_v51  ;;  %v6927_v42 = vpack.c.bf16 %v5879_v51, %v5876_v22  ;;  %v17573_v34 = vpop.permute.xlu1 %12548  ;;  %v6106_v21 = vmul.f32 %v17438_v59, %v17438_v59 }
 0x682   : > { %v17542_v16 = vadd.f32 %v6130_v54, %v6098_v8 }
 0x683   : > { %v17544_v36 = vadd.f32 %v6128_v32, %v6096_v13  ;;  %12196 = vmatprep.mubr.msk.bf16.mxu1 %vm2572_vm4, %v6927_v42  ;;  %v17579_v13 = vpop.permute.xlu0 %12543 }
 0x684   : > { %12197 = vmatmul.mubr.msk.bf16.gmra.mrb[12].mxu1 %vm2572_vm4, %v6928_v17 }
 0x685   : > { %v12058_v33 = vpop.f32.mrb[176].mxu1  ;;  %v17590_v59 = vpop.permute.xlu1 %12558 }
 0x686   : > { %v6133_v5 = vmul.f32 %v12058_v33, %v12058_v33  ;;  %v5892_v15 = vpop.f32.mrb[177].mxu1 }
 0x687   : > { %v6131_v12 = vmul.f32 %v5892_v15, %v5892_v15  ;;  %v12059_v25 = vpop.f32.mrb[178].mxu1 }
 0x688   : > { %v17556_v24 = vadd.f32 %v6133_v5, %v6101_v63  ;;  %v6134_v52 = vmul.f32 %v12059_v25, %v12059_v25  ;;  %v6930_v57 = vpack.c.bf16 %v12059_v25, %v12058_v33  ;;  %v5895_v4 = vpop.f32.mrb[179].mxu1  ;;  %v17593_v5 = vpop.permute.xlu0 %12553 }
 0x689   : > { %v17558_v46 = vadd.f32 %v6131_v12, %v6099_v60  ;;  %v6132_v53 = vmul.f32 %v5895_v4, %v5895_v4  ;;  %v6929_v45 = vpack.c.bf16 %v5895_v4, %v5892_v15  ;;  %v6107_v12 = vmul.f32 %v17450_v56, %v17450_v56 }
 0x68a   : > { %v17561_v7 = vadd.f32 %v6134_v52, %v6102_v44  ;;  %v17599_v52 = vpop.permute.xlu1 %12568 }
 0x68b   : > { %v17565_v0 = vadd.f32 %v6132_v53, %v6100_v49  ;;  %12200 = vmatprep.mubr.msk.bf16.mxu1 %vm2572_vm4, %v6929_v45 }
 0x68c   : > { %12201 = vmatmul.mubr.msk.bf16.gmra.mrb[16].mxu1 %vm2572_vm4, %v6930_v57  ;;  %v6110_v57 = vmul.f32 %v17452_v41, %v17452_v41  ;;  %v17606_v23 = vpop.permute.xlu0 %12563 }
 0x68d   : > { %v12062_v61 = vpop.f32.mrb[180].mxu1 }
 0x68e   : > { %v6137_v37 = vmul.f32 %v12062_v61, %v12062_v61  ;;  %v5908_v47 = vpop.f32.mrb[181].mxu1 }
 0x68f   : > { %v6135_v22 = vmul.f32 %v5908_v47, %v5908_v47  ;;  %v12063_v38 = vpop.f32.mrb[182].mxu1 }
 0x690   : > { %v17577_v8 = vadd.f32 %v6137_v37, %v6105_v40  ;;  %v6138_v54 = vmul.f32 %v12063_v38, %v12063_v38  ;;  %v6932_v17 = vpack.c.bf16 %v12063_v38, %v12062_v61  ;;  %v5911_v51 = vpop.f32.mrb[183].mxu1  ;;  %v8067_v61 = vld [vmem:[%s13563_s17 + $0x10] sm:$0xff]  ;;  %v6108_v40 = vmul.f32 %v17456_v55, %v17456_v55  ;;  %v17618_v38 = vpop.permute.xlu1 %12578 }
 0x691   : > { %v17583_v32 = vadd.f32 %v6135_v22, %v6103_v62  ;;  %v6136_v3 = vmul.f32 %v5911_v51, %v5911_v51  ;;  %v6931_v42 = vpack.c.bf16 %v5911_v51, %v5908_v47  ;;  %8107 = vperm.xlu1 %12623, %v8067_v61   ;;  %v8069_v22 = vld [vmem:[%s13563_s17 + $0x20] sm:$0xff]  ;;  %v6113_v55 = vmul.f32 %v17462_v6, %v17462_v6 }
 0x692   : > { %v17585_v33 = vadd.f32 %v6138_v54, %v6106_v21  ;;  %v17621_v21 = vpop.permute.xlu0 %12573 }
 0x693   : > { %v17587_v63 = vadd.f32 %v6136_v3, %v6104_v9  ;;  %12204 = vmatprep.mubr.msk.bf16.mxu1 %vm2572_vm4, %v6931_v42  ;;  %v6111_v9 = vmul.f32 %v17464_v19, %v17464_v19 }
 0x694   : > { %12205 = vmatmul.mubr.msk.bf16.gmra.mrb[20].mxu1 %vm2572_vm4, %v6932_v17 }
 0x695   : > { %v12066_v15 = vpop.f32.mrb[184].mxu1  ;;  %8113 = vperm.xlu1 %12623, %v8069_v22  }
 0x696   : > { %v6141_v60 = vmul.f32 %v12066_v15, %v12066_v15  ;;  %v5924_v44 = vpop.f32.mrb[185].mxu1  ;;  %v17633_v6 = vpop.permute.xlu0 %12583 }
 0x697   : > { %v6139_v25 = vmul.f32 %v5924_v44, %v5924_v44  ;;  %v12067_v49 = vpop.f32.mrb[186].mxu1 }
 0x698   : > { %v17603_v4 = vadd.f32 %v6141_v60, %v6109_v35  ;;  %v6142_v53 = vmul.f32 %v12067_v49, %v12067_v49  ;;  %v6934_v45 = vpack.c.bf16 %v12067_v49, %v12066_v15  ;;  %v5927_v11 = vpop.f32.mrb[187].mxu1  ;;  %v17627_v15 = vpop.permute.xlu1 %12588  ;;  %v6114_v35 = vmul.f32 %v17466_v58, %v17466_v58 }
 0x699   : > { %v17610_v56 = vadd.f32 %v6139_v25, %v6107_v12  ;;  %v6140_v37 = vmul.f32 %v5927_v11, %v5927_v11  ;;  %v6933_v47 = vpack.c.bf16 %v5927_v11, %v5924_v44  ;;  %v6112_v49 = vmul.f32 %v17470_v26, %v17470_v26  ;;  %v8071_v11 = vld [vmem:[%s13563_s17 + $0x30] sm:$0xff]  ;;  %v8073_v26 = vld [vmem:[%s13563_s17 + $0x40] sm:$0xff] }
 0x69a   : > { %v17612_v62 = vadd.f32 %v6142_v53, %v6110_v57  ;;  %8119 = vperm.xlu1 %12623, %v8071_v11  }
 0x69b   : > { %v17615_v41 = vadd.f32 %v6140_v37, %v6108_v40  ;;  %12208 = vmatprep.mubr.msk.bf16.mxu1 %vm2572_vm4, %v6933_v47 }
 0x69c   : > { %12209 = vmatmul.mubr.msk.bf16.gmra.mrb[24].mxu1 %vm2572_vm4, %v6934_v45  ;;  %v17647_v37 = vpop.permute.xlu1 %12598 }
 0x69d   : > { %v12070_v54 = vpop.f32.mrb[188].mxu1  ;;  %21999 = vst [vmem:[#allocation173_spill] sm:$0xff] %v17647_v37 }
 0x69e   : > { %v6145_v17 = vmul.f32 %v12070_v54, %v12070_v54  ;;  %v5940_v51 = vpop.f32.mrb[189].mxu1  ;;  %8125 = vperm.xlu1 %12623, %v8073_v26  }
 0x69f   : > { %v6143_v3 = vmul.f32 %v5940_v51, %v5940_v51  ;;  %v12071_v42 = vpop.f32.mrb[190].mxu1 }
 0x6a0   : > { %v17631_v60 = vadd.f32 %v6145_v17, %v6113_v55  ;;  %v6146_v44 = vmul.f32 %v12071_v42, %v12071_v42  ;;  %v6936_v12 = vpack.c.bf16 %v12071_v42, %v12070_v54  ;;  %v5943_v25 = vpop.f32.mrb[191].mxu1  ;;  %v17655_v17 = vpop.permute.xlu0 %12593 }
 0x6a1   : > { %v17637_v57 = vadd.f32 %v6143_v3, %v6111_v9  ;;  %v6144_v19 = vmul.f32 %v5943_v25, %v5943_v25  ;;  %v6935_v53 = vpack.c.bf16 %v5943_v25, %v5940_v51  ;;  %22000 = vst [vmem:[#allocation113_spill] sm:$0xff] %v17655_v17  ;;  %v17664_v18 = vpop.permute.xlu1 %12608 }
 0x6a2   : > { %v17639_v45 = vadd.f32 %v6146_v44, %v6114_v35  ;;  %22001 = vst [vmem:[#allocation115_spill] sm:$0xff] %v17664_v18 }
 0x6a3   : > { %v17642_v61 = vadd.f32 %v6144_v19, %v6112_v49  ;;  %12212 = vmatprep.mubr.msk.bf16.mxu1 %vm2572_vm4, %v6935_v53 }
 0x6a4   : > { %12213 = vmatmul.mubr.msk.bf16.gmra.mrb[28].mxu1 %vm2572_vm4, %v6936_v12  ;;  %v17670_v3 = vpop.permute.xlu0 %12603 }
 0x6a5   : > { %v12074_v51 = vpop.f32.mrb[192].mxu1  ;;  %22002 = vst [vmem:[#allocation61_spill] sm:$0xff] %v17670_v3 }
 0x6a6   : > { %v6181_v35 = vmul.f32 %v12074_v51, %v12074_v51  ;;  %v5956_v44 = vpop.f32.mrb[193].mxu1 }
 0x6a7   : > { %v6179_v19 = vmul.f32 %v5956_v44, %v5956_v44  ;;  %v12075_v53 = vpop.f32.mrb[194].mxu1 }
 0x6a8   : > { %v17667_v54 = vadd.f32 %v6181_v35, %v17482_v39  ;;  %v6182_v42 = vmul.f32 %v12075_v53, %v12075_v53  ;;  %v6938_v9 = vpack.c.bf16 %v12075_v53, %v12074_v51  ;;  %v5959_v55 = vpop.f32.mrb[195].mxu1  ;;  %v8075_v51 = vld [vmem:[%s13563_s17 + $0x50] sm:$0xff]  ;;  %v17693_v35 = vpop.permute.xlu1 %12618 }
 0x6a9   : > { %v17673_v25 = vadd.f32 %v6179_v19, %v17486_v48  ;;  %v6180_v49 = vmul.f32 %v5959_v55, %v5959_v55  ;;  %v6937_v26 = vpack.c.bf16 %v5959_v55, %v5956_v44  ;;  %8131 = vperm.xlu1 %12623, %v8075_v51   ;;  %22003 = vst [vmem:[#allocation72_spill] sm:$0xff] %v17693_v35 }
 0x6aa   : > { %12955 = vrsqrt.f32 %v17667_v54  ;;  %v17683_v53 = vadd.f32 %v6182_v42, %v17488_v30  ;;  %v8078_v30 = vld [vmem:[%s13563_s17 + $0x68] sm:$0xff]  ;;  %vm6259_vm2 = vcmp.eq.f32.partialorder %v17667_v54, inf  ;;  %vm6261_vm6 = vcmp.eq.f32.partialorder %v17667_v54, 0.0 }
 0x6ab   : > { %12957 = vrsqrt.f32 %v17673_v25  ;;  %v17686_v48 = vadd.f32 %v6180_v49, %v17490_v31  ;;  %12216 = vmatprep.mubr.msk.bf16.mxu1 %vm2572_vm4, %v6937_v26  ;;  %v17700_v26 = vpop.permute.xlu0 %12613  ;;  %vm6245_vm3 = vcmp.eq.f32.partialorder %v17673_v25, inf  ;;  %vm6247_vm7 = vcmp.eq.f32.partialorder %v17673_v25, 0.0 }
 0x6ac   : > { %12217 = vmatmul.mubr.msk.bf16.gmra.mrb[32].mxu1 %vm2572_vm4, %v6938_v9  ;;  %22004 = vst [vmem:[#allocation99_spill] sm:$0xff] %v17700_v26  ;;  %12959 = vrsqrt.f32 %v17683_v53  ;;  %vm6266_vm8 = vcmp.eq.f32.partialorder %v17683_v53, inf  ;;  %vm6268_vm9 = vcmp.eq.f32.partialorder %v17683_v53, 0.0 }
 0x6ad   : > { %v12078_v51 = vpop.f32.mrb[196].mxu1  ;;  %12961 = vrsqrt.f32 %v17686_v48  ;;  %8140 = vperm.xlu1 %12623, %v8078_v30   ;;  %vm6252_vm10 = vcmp.eq.f32.partialorder %v17686_v48, inf  ;;  %vm6254_vm11 = vcmp.eq.f32.partialorder %v17686_v48, 0.0 }
 0x6ae   : > { %v6185_v55 = vmul.f32 %v12078_v51, %v12078_v51  ;;  %v5972_v9 = vpop.f32.mrb[197].mxu1 }
 0x6af   : > { %v6183_v49 = vmul.f32 %v5972_v9, %v5972_v9  ;;  %v12079_v12 = vpop.f32.mrb[198].mxu1 }
 0x6b0   : > { %v17711_v19 = vadd.f32 %v6185_v55, %v17500_v2  ;;  %v6186_v39 = vmul.f32 %v12079_v12, %v12079_v12  ;;  %v6940_v11 = vpack.c.bf16 %v12079_v12, %v12078_v51  ;;  %v5975_v58 = vpop.f32.mrb[199].mxu1  ;;  %v8079_v2 = vld [vmem:[%s13563_s17 + $0x70] sm:$0xff]  ;;  %v6269_v12 = vand.u32 2147483648, %v17683_v53 }
 0x6b1   : > { %v17715_v44 = vadd.f32 %v6183_v49, %v17504_v27  ;;  %v6184_v42 = vmul.f32 %v5975_v58, %v5975_v58  ;;  %v6939_v40 = vpack.c.bf16 %v5975_v58, %v5972_v9  ;;  %v6248_v58 = vand.u32 2147483648, %v17673_v25  ;;  %8143 = vperm.xlu1 %12623, %v8079_v2  }
 0x6b2   : > { %12963 = vrsqrt.f32 %v17711_v19  ;;  %v17720_v30 = vadd.f32 %v6186_v39, %v17506_v10  ;;  %v6255_v9 = vand.u32 2147483648, %v17686_v48  ;;  %v6290_v35 = vand.u32 2147483648, %v17711_v19 }
 0x6b3   : > { %12965 = vrsqrt.f32 %v17715_v44  ;;  %v17727_v27 = vadd.f32 %v6184_v42, %v17508_v43  ;;  %12220 = vmatprep.mubr.msk.bf16.mxu1 %vm2572_vm4, %v6939_v40  ;;  %v8082_v43 = vld [vmem:[%s13563_s17 + $0x88] sm:$0xff]  ;;  %vm6273_vm13 = vcmp.eq.f32.partialorder %v17715_v44, inf  ;;  %vm6275_vm14 = vcmp.eq.f32.partialorder %v17715_v44, 0.0 }
 0x6b4   : > { %v12956_v10 = vpop.eup %12955  ;;  %12967 = vrsqrt.f32 %v17720_v30  ;;  %12221 = vmatmul.mubr.msk.bf16.gmra.mrb[36].mxu1 %vm2572_vm4, %v6940_v11  ;;  %vm6287_vm15 = vcmp.eq.f32.partialorder %v17711_v19, inf  ;;  %vm6289_vm5 = vcmp.eq.f32.partialorder %v17711_v19, 0.0  ;;  %vm6294_vm1 = vcmp.eq.f32.partialorder %v17720_v30, inf }
 0x6b5   : > { %v12958_v39 = vpop.eup %12957  ;;  %v6258_v40 = vmul.f32 %v12956_v10, %v17667_v54  ;;  %12969 = vrsqrt.f32 %v17727_v27  ;;  %v12082_v55 = vpop.f32.mrb[200].mxu1  ;;  %8152 = vperm.xlu1 %12623, %v8082_v43   ;;  %vm6280_vm0 = vcmp.eq.f32.partialorder %v17727_v27, inf }
 0x6b6   : > { %v6189_v42 = vmul.f32 %v12082_v55, %v12082_v55  ;;  %v5988_v49 = vpop.f32.mrb[201].mxu1  ;;  %v6244_v51 = vmul.f32 %v12958_v39, %v17673_v25  ;;  %v12960_v11 = vpop.eup %12959 }
 0x6b7   : > { %v6260_v10 = vsel %vm6259_vm2, %v17667_v54, %v6258_v40  ;;  %v6187_v47 = vmul.f32 %v5988_v49, %v5988_v49  ;;  %v12083_v31 = vpop.f32.mrb[202].mxu1  ;;  %v12962_v18 = vpop.eup %12961  ;;  %v6265_v39 = vmul.f32 %v12960_v11, %v17683_v53  ;;  %vm6282_vm2 = vcmp.eq.f32.partialorder %v17727_v27, 0.0 }
 0x6b8   : > { %v17752_v3 = vadd.f32 %v6189_v42, %v17518_v28  ;;  %v6190_v2 = vmul.f32 %v12083_v31, %v12083_v31  ;;  %v6942_v37 = vpack.c.bf16 %v12083_v31, %v12082_v55  ;;  %v5991_v26 = vpop.f32.mrb[203].mxu1  ;;  %v6246_v43 = vsel %vm6245_vm3, %v17673_v25, %v6244_v51  ;;  %v8086_v42 = vld [vmem:[%s13563_s17 + $0xa8] sm:$0xff] }
 0x6b9   : > { %v17756_v40 = vadd.f32 %v6187_v47, %v17522_v20  ;;  %v6188_v17 = vmul.f32 %v5991_v26, %v5991_v26  ;;  %v6941_v22 = vpack.c.bf16 %v5991_v26, %v5988_v49  ;;  %v6267_v28 = vsel %vm6266_vm8, %v17683_v53, %v6265_v39  ;;  %v8083_v47 = vld [vmem:[%s13563_s17 + $0x90] sm:$0xff] }
 0x6ba   : > { %12971 = vrsqrt.f32 %v17752_v3  ;;  %v17767_v31 = vadd.f32 %v6190_v2, %v17524_v1  ;;  %v6249_v20 = vsel %vm6247_vm7, %v6248_v58, %v6246_v43  ;;  %v6251_v55 = vmul.f32 %v12962_v18, %v17686_v48  ;;  %8155 = vperm.xlu1 %12623, %v8083_v47  }
 0x6bb   : > { %12973 = vrsqrt.f32 %v17756_v40  ;;  %v17775_v26 = vadd.f32 %v6188_v17, %v17526_v29  ;;  %12224 = vmatprep.mubr.msk.bf16.mxu1 %vm2572_vm4, %v6941_v22  ;;  %v6297_v1 = vand.u32 2147483648, %v17720_v30  ;;  %v22005_v29 = vunpack.i.l.bf16 %v17579_v13 }
 0x6bc   : > { %v12964_v25 = vpop.eup %12963  ;;  %12975 = vrsqrt.f32 %v17767_v31  ;;  %12225 = vmatmul.mubr.msk.bf16.gmra.mrb[40].mxu1 %vm2572_vm4, %v6942_v37  ;;  %v22006_v18 = vand.u32 2147483648, %v17667_v54  ;;  %v6270_v58 = vsel %vm6268_vm9, %v6269_v12, %v6267_v28  ;;  %vm6296_vm3 = vcmp.eq.f32.partialorder %v17720_v30, 0.0 }
 0x6bd   : > { %v6595_v22 = vsel %vm2572_vm4, %v6249_v20, %v22005_v29  ;;  %v12966_v49 = vpop.eup %12965  ;;  %12977 = vrsqrt.f32 %v17775_v26  ;;  %v12086_v37 = vpop.f32.mrb[204].mxu1  ;;  %v6253_v51 = vsel %vm6252_vm10, %v17686_v48, %v6251_v55  ;;  %v22007_v2 = vunpack.i.l.bf16 %v17573_v34 }
 0x6be   : > { %v6263_v17 = vsel %vm6261_vm6, %v22006_v18, %v6260_v10  ;;  %v22008_v53 = vunpack.i.h.bf16 %v17573_v34  ;;  %v12968_v11 = vpop.eup %12967  ;;  %v6193_v10 = vmul.f32 %v12086_v37, %v12086_v37  ;;  %v6004_v39 = vpop.f32.mrb[205].mxu1  ;;  %v6256_v43 = vsel %vm6254_vm11, %v6255_v9, %v6253_v51  ;;  %8164 = vperm.xlu1 %12623, %v8086_v42  }
 0x6bf   : > { %v6597_v54 = vsel %vm2572_vm4, %v6263_v17, %v22007_v2  ;;  %v6272_v20 = vmul.f32 %v12966_v49, %v17715_v44  ;;  %v12970_v47 = vpop.eup %12969  ;;  %v6191_v29 = vmul.f32 %v6004_v39, %v6004_v39  ;;  %v12087_v55 = vpop.f32.mrb[206].mxu1  ;;  %v22009_v18 = vunpack.i.h.bf16 %v17579_v13 }
 0x6c0   : > { %v6598_v12 = vsel %vm2572_vm4, %v6270_v58, %v22008_v53  ;;  %v6286_v34 = vmul.f32 %v12964_v25, %v17711_v19  ;;  %v6293_v58 = vmul.f32 %v12968_v11, %v17720_v30  ;;  %vm6301_vm6 = vcmp.eq.f32.partialorder %v17756_v40, inf  ;;  %v6007_v2 = vpop.f32.mrb[207].mxu1 }
 0x6c1   : > { %v6640_v28 = vpack.c.bf16 %v6598_v12, %v6597_v54  ;;  %v6596_v17 = vsel %vm2572_vm4, %v6256_v43, %v22009_v18  ;;  %v17817_v48 = vadd.f32 %v6193_v10, %v17536_v14  ;;  %v6194_v9 = vmul.f32 %v12087_v55, %v12087_v55  ;;  %v8065_v12 = vld [vmem:[%s13563_s17] sm:$0xff] }
 0x6c2   : > { %v6944_v49 = vpack.c.bf16 %v12087_v55, %v12086_v37  ;;  %v6639_v51 = vpack.c.bf16 %v6596_v17, %v6595_v22  ;;  %v17820_v13 = vadd.f32 %v6191_v29, %v17540_v50  ;;  %v6192_v54 = vmul.f32 %v6007_v2, %v6007_v2  ;;  %v8087_v37 = vld [vmem:[%s13563_s17 + $0xb0] sm:$0xff]  ;;  %v8090_v17 = vld [vmem:[%s13563_s17 + $0xc8] sm:$0xff]  ;;  %8101 = vperm.xlu0 %12622, %v8065_v12  }
 0x6c3   : > { %v6943_v53 = vpack.c.bf16 %v6007_v2, %v6004_v39  ;;  %v6274_v25 = vsel %vm6273_vm13, %v17715_v44, %v6272_v20  ;;  %12979 = vrsqrt.f32 %v17817_v48  ;;  %v17827_v42 = vadd.f32 %v6194_v9, %v17542_v16  ;;  %8167 = vperm.xlu1 %12623, %v8087_v37  }
 0x6c4   : > { %12116 = vmatprep.mubr.msk.bf16.mxu0 %vm6691_vm12, %v6639_v51  ;;  %v22010_v14 = vand.u32 2147483648, %v17715_v44  ;;  %v6279_v50 = vmul.f32 %v12970_v47, %v17727_v27  ;;  %12981 = vrsqrt.f32 %v17820_v13  ;;  %v17839_v11 = vadd.f32 %v6192_v54, %v17544_v36  ;;  %v12972_v39 = vpop.eup %12971 }
 0x6c5   : > { %12117 = vmatmul.mubr.msk.bf16.vlgmr.msra.gmra.mrb[224].mxu0 %vm6691_vm12, %v6640_v28  ;;  %12228 = vmatprep.mubr.msk.bf16.mxu1 %vm2572_vm4, %v6943_v53  ;;  %v22011_v16 = vunpack.i.l.bf16 %v17593_v5  ;;  %v6288_v44 = vsel %vm6287_vm15, %v17711_v19, %v6286_v34  ;;  %12983 = vrsqrt.f32 %v17827_v42  ;;  %v6295_v28 = vsel %vm6294_vm1, %v17720_v30, %v6293_v58  ;;  %v12974_v20 = vpop.eup %12973  ;;  %v12090_v47 = vpop.f32.mrb[208].mxu1 }
 0x6c6   : > { %v6277_v22 = vsel %vm6275_vm14, %v22010_v14, %v6274_v25  ;;  %12229 = vmatmul.mubr.msk.bf16.gmra.mrb[44].mxu1 %vm2572_vm4, %v6944_v49  ;;  %v6281_v36 = vsel %vm6280_vm0, %v17727_v27, %v6279_v50  ;;  %v6291_v43 = vsel %vm6289_vm5, %v6290_v35, %v6288_v44  ;;  %12985 = vrsqrt.f32 %v17839_v11  ;;  %v12976_v34 = vpop.eup %12975  ;;  %v6020_v9 = vpop.f32.mrb[209].mxu1 }
 0x6c7   : > { %v6599_v10 = vsel %vm2572_vm4, %v6277_v22, %v22011_v16  ;;  %v22012_v29 = vand.u32 2147483648, %v17727_v27  ;;  %v6298_v19 = vsel %vm6296_vm3, %v6297_v1, %v6295_v28  ;;  %v22013_v35 = vunpack.i.l.bf16 %v17590_v59  ;;  %v12978_v1 = vpop.eup %12977  ;;  %v12091_v53 = vpop.f32.mrb[210].mxu1  ;;  %8176 = vperm.xlu1 %12623, %v8090_v17   ;;  %v8068_v28 = vld [vmem:[%s13563_s17 + $0x18] sm:$0xff] }
 0x6c8   : > { %v6197_v58 = vmul.f32 %v12090_v47, %v12090_v47  ;;  %v22014_v49 = vunpack.i.h.bf16 %v17593_v5  ;;  %v22015_v27 = vunpack.i.h.bf16 %v17590_v59  ;;  %v6300_v30 = vmul.f32 %v12974_v20, %v17756_v40  ;;  %v6023_v37 = vpop.f32.mrb[211].mxu1  ;;  %8110 = vperm.xlu0 %12622, %v8068_v28  }
 0x6c9   : > { %v6284_v55 = vsel %vm6282_vm2, %v22012_v29, %v6281_v36  ;;  %v6601_v18 = vsel %vm2572_vm4, %v6291_v43, %v22013_v35  ;;  %v6195_v54 = vmul.f32 %v6020_v9, %v6020_v9  ;;  %vm6303_vm7 = vcmp.eq.f32.partialorder %v17756_v40, 0.0  ;;  %v8091_v43 = vld [vmem:[%s13563_s17 + $0xd0] sm:$0xff] }
 0x6ca   : > { %v6600_v51 = vsel %vm2572_vm4, %v6284_v55, %v22014_v49  ;;  %v6602_v2 = vsel %vm2572_vm4, %v6298_v19, %v22015_v27  ;;  %v17883_v22 = vadd.f32 %v6197_v58, %v17556_v24  ;;  %v6198_v5 = vmul.f32 %v12091_v53, %v12091_v53 }
 0x6cb   : > { %v6641_v25 = vpack.c.bf16 %v6600_v51, %v6599_v10  ;;  %v6642_v14 = vpack.c.bf16 %v6602_v2, %v6601_v18  ;;  %v6946_v50 = vpack.c.bf16 %v12091_v53, %v12090_v47  ;;  %v6302_v59 = vsel %vm6301_vm6, %v17756_v40, %v6300_v30  ;;  %8179 = vperm.xlu1 %12623, %v8091_v43   ;;  %v8094_v18 = vld [vmem:[%s13563_s17 + $0xe8] sm:$0xff] }
 0x6cc   : > { %v17889_v12 = vadd.f32 %v6195_v54, %v17558_v46  ;;  %v6196_v16 = vmul.f32 %v6023_v37, %v6023_v37  ;;  %v6945_v10 = vpack.c.bf16 %v6023_v37, %v6020_v9  ;;  %v6304_v44 = vand.u32 2147483648, %v17756_v40  ;;  %v8070_v2 = vld [vmem:[%s13563_s17 + $0x28] sm:$0xff] }
 0x6cd   : > { %12120 = vmatprep.mubr.msk.bf16.mxu0 %vm6691_vm12, %v6641_v25  ;;  %12987 = vrsqrt.f32 %v17883_v22  ;;  %v17895_v24 = vadd.f32 %v6198_v5, %v17561_v7  ;;  %v6307_v36 = vmul.f32 %v12978_v1, %v17775_v26  ;;  %vm6308_vm8 = vcmp.eq.f32.partialorder %v17775_v26, inf  ;;  %v17910_v7 = vpop.eup %12979  ;;  %v12094_v19 = vpop.f32.mrb[212].mxu1  ;;  %8116 = vperm.xlu0 %12622, %v8070_v2  }
 0x6ce   : > { %12989 = vrsqrt.f32 %v17889_v12  ;;  %v17903_v46 = vadd.f32 %v6196_v16, %v17565_v0  ;;  %12121 = vmatmul.mubr.msk.bf16.gmra.mrb[228].mxu0 %vm6691_vm12, %v6642_v14  ;;  %12232 = vmatprep.mubr.msk.bf16.mxu1 %vm2572_vm4, %v6945_v10  ;;  %v6305_v20 = vsel %vm6303_vm7, %v6304_v44, %v6302_v59  ;;  %vm6310_vm9 = vcmp.eq.f32.partialorder %v17775_v26, 0.0  ;;  %v12982_v40 = vpop.eup %12981  ;;  %v6036_v9 = vpop.f32.mrb[213].mxu1  ;;  %v8095_v44 = vld [vmem:[%s13563_s17 + $0xf0] sm:$0xff] }
 0x6cf   : > { %12991 = vrsqrt.f32 %v17895_v24  ;;  %12233 = vmatmul.mubr.msk.bf16.gmra.mrb[48].mxu1 %vm2572_vm4, %v6946_v50  ;;  %v6309_v47 = vsel %vm6308_vm8, %v17775_v26, %v6307_v36  ;;  %v6311_v0 = vand.u32 2147483648, %v17775_v26  ;;  %v22016_v29 = vunpack.i.l.bf16 %v17606_v23  ;;  %v17924_v17 = vpop.eup %12983  ;;  %v12095_v1 = vpop.f32.mrb[214].mxu1  ;;  %8188 = vperm.xlu1 %12623, %v8094_v18  }
 0x6d0   : > { %12993 = vrsqrt.f32 %v17903_v46  ;;  %v6314_v35 = vmul.f32 %v12972_v39, %v17752_v3  ;;  %vm6315_vm10 = vcmp.eq.f32.partialorder %v17752_v3, inf  ;;  %vm6317_vm11 = vcmp.eq.f32.partialorder %v17752_v3, 0.0  ;;  %v12986_v30 = vpop.eup %12985  ;;  %v6039_v50 = vpop.f32.mrb[215].mxu1 }
 0x6d1   : > { %v6603_v55 = vsel %vm2572_vm4, %v6305_v20, %v22016_v29  ;;  %v6201_v58 = vmul.f32 %v12094_v19, %v12094_v19  ;;  %v6312_v49 = vsel %vm6310_vm9, %v6311_v0, %v6309_v47  ;;  %v6318_v51 = vand.u32 2147483648, %v17752_v3 }
 0x6d2   : > { %v6321_v27 = vmul.f32 %v12976_v34, %v17767_v31  ;;  %v6199_v39 = vmul.f32 %v6036_v9, %v6036_v9  ;;  %v22017_v54 = vunpack.i.h.bf16 %v17606_v23  ;;  %v6316_v25 = vsel %vm6315_vm10, %v17752_v3, %v6314_v35 }
 0x6d3   : > { %vm6322_vm13 = vcmp.eq.f32.partialorder %v17767_v31, inf  ;;  %v17937_v14 = vadd.f32 %v6201_v58, %v17577_v8  ;;  %v6202_v26 = vmul.f32 %v12095_v1, %v12095_v1  ;;  %v6948_v5 = vpack.c.bf16 %v12095_v1, %v12094_v19  ;;  %8191 = vperm.xlu1 %12623, %v8095_v44  }
 0x6d4   : > { %v6604_v53 = vsel %vm2572_vm4, %v6312_v49, %v22017_v54  ;;  %v17940_v37 = vadd.f32 %v6199_v39, %v17583_v32  ;;  %v6200_v23 = vmul.f32 %v6039_v50, %v6039_v50  ;;  %v6947_v59 = vpack.c.bf16 %v6039_v50, %v6036_v9  ;;  %v8072_v32 = vld [vmem:[%s13563_s17 + $0x38] sm:$0xff] }
 0x6d5   : > { %v6643_v34 = vpack.c.bf16 %v6604_v53, %v6603_v55  ;;  %v6319_v16 = vsel %vm6317_vm11, %v6318_v51, %v6316_v25  ;;  %12995 = vrsqrt.f32 %v17937_v14  ;;  %v17946_v8 = vadd.f32 %v6202_v26, %v17585_v33  ;;  %v12098_v0 = vpop.f32.mrb[216].mxu1  ;;  %8122 = vperm.xlu0 %12622, %v8072_v32  }
 0x6d6   : > { %v6323_v10 = vsel %vm6322_vm13, %v17767_v31, %v6321_v27  ;;  %vm6324_vm14 = vcmp.eq.f32.partialorder %v17767_v31, 0.0  ;;  %12997 = vrsqrt.f32 %v17940_v37  ;;  %v17955_v36 = vadd.f32 %v6200_v23, %v17587_v63  ;;  %12236 = vmatprep.mubr.msk.bf16.mxu1 %vm2572_vm4, %v6947_v59  ;;  %v6052_v58 = vpop.f32.mrb[217].mxu1  ;;  %v8076_v59 = vld [vmem:[%s13563_s17 + $0x58] sm:$0xff] }
 0x6d7   : > { %12124 = vmatprep.mubr.msk.bf16.mxu0 %vm6691_vm12, %v6643_v34  ;;  %v6325_v3 = vand.u32 2147483648, %v17767_v31  ;;  %v22018_v43 = vunpack.i.l.bf16 %v17599_v52  ;;  %v17962_v28 = vpop.eup %12987  ;;  %12999 = vrsqrt.f32 %v17946_v8  ;;  %12237 = vmatmul.mubr.msk.bf16.gmra.mrb[52].mxu1 %vm2572_vm4, %v6948_v5  ;;  %v6328_v20 = vmul.f32 %v12982_v40, %v17820_v13  ;;  %v8074_v31 = vld [vmem:[%s13563_s17 + $0x48] sm:$0xff]  ;;  %v12099_v2 = vpop.f32.mrb[218].mxu1 }
 0x6d8   : > { %vm6329_vm15 = vcmp.eq.f32.partialorder %v17820_v13, inf  ;;  %vm6331_vm0 = vcmp.eq.f32.partialorder %v17820_v13, 0.0  ;;  %v17969_v63 = vpop.eup %12989  ;;  %13001 = vrsqrt.f32 %v17955_v36  ;;  %v6332_v29 = vand.u32 2147483648, %v17820_v13  ;;  %v6055_v53 = vpop.f32.mrb[219].mxu1 }
 0x6d9   : > { %v6605_v33 = vsel %vm2572_vm4, %v6319_v16, %v22018_v43  ;;  %v6326_v47 = vsel %vm6324_vm14, %v6325_v3, %v6323_v10  ;;  %v6335_v55 = vmul.f32 %v12986_v30, %v17839_v11  ;;  %v17976_v40 = vpop.eup %12991  ;;  %v22019_v19 = vunpack.i.h.bf16 %v17599_v52  ;;  %8128 = vperm.xlu0 %12622, %v8074_v31  }
 0x6da   : > { %v6205_v18 = vmul.f32 %v12098_v0, %v12098_v0  ;;  %v6330_v9 = vsel %vm6329_vm15, %v17820_v13, %v6328_v20  ;;  %vm6336_vm5 = vcmp.eq.f32.partialorder %v17839_v11, inf  ;;  %v17984_v49 = vpop.eup %12993  ;;  %v6203_v27 = vmul.f32 %v6052_v58, %v6052_v58 }
 0x6db   : > { %v6606_v35 = vsel %vm2572_vm4, %v6326_v47, %v22019_v19  ;;  %v6333_v30 = vsel %vm6331_vm0, %v6332_v29, %v6330_v9  ;;  %v6337_v39 = vsel %vm6336_vm5, %v17839_v11, %v6335_v55  ;;  %v6206_v1 = vmul.f32 %v12099_v2, %v12099_v2 }
 0x6dc   : > { %v6644_v51 = vpack.c.bf16 %v6606_v35, %v6605_v33  ;;  %v17990_v52 = vadd.f32 %v6205_v18, %v17603_v4  ;;  %v6950_v54 = vpack.c.bf16 %v12099_v2, %v12098_v0  ;;  %vm6338_vm1 = vcmp.eq.f32.partialorder %v17839_v11, 0.0  ;;  %v8077_v0 = vld [vmem:[%s13563_s17 + $0x60] sm:$0xff] }
 0x6dd   : > { %v17995_v25 = vadd.f32 %v6203_v27, %v17610_v56  ;;  %v6339_v26 = vand.u32 2147483648, %v17839_v11  ;;  %v22020_v13 = vunpack.i.l.bf16 %v17621_v21  ;;  %v6204_v34 = vmul.f32 %v6055_v53, %v6055_v53  ;;  %8134 = vperm.xlu0 %12622, %v8076_v59  }
 0x6de   : > { %12125 = vmatmul.mubr.msk.bf16.gmra.mrb[232].mxu0 %vm6691_vm12, %v6644_v51  ;;  %13003 = vrsqrt.f32 %v17990_v52  ;;  %v18003_v4 = vadd.f32 %v6206_v1, %v17612_v62  ;;  %v6949_v50 = vpack.c.bf16 %v6055_v53, %v6052_v58  ;;  %v6342_v23 = vmul.f32 %v17910_v7, %v17817_v48 }
 0x6df   : > { %v6607_v5 = vsel %vm2572_vm4, %v6333_v30, %v22020_v13  ;;  %13005 = vrsqrt.f32 %v17995_v25  ;;  %v6340_v56 = vsel %vm6338_vm1, %v6339_v26, %v6337_v39  ;;  %v18010_v11 = vadd.f32 %v6204_v34, %v17615_v41  ;;  %v18013_v16 = vpop.eup %12995 }
 0x6e0   : > { %vm6343_vm2 = vcmp.eq.f32.partialorder %v17817_v48, inf  ;;  %13007 = vrsqrt.f32 %v18003_v4  ;;  %v22021_v62 = vunpack.i.h.bf16 %v17621_v21  ;;  %vm6345_vm3 = vcmp.eq.f32.partialorder %v17817_v48, 0.0  ;;  %12240 = vmatprep.mubr.msk.bf16.mxu1 %vm2572_vm4, %v6949_v50  ;;  %v18022_v7 = vpop.eup %12997  ;;  %v18029_v21 = vpop.f32.mrb[220].mxu1 }
 0x6e1   : > { %v6344_v44 = vsel %vm6343_vm2, %v17817_v48, %v6342_v23  ;;  %13009 = vrsqrt.f32 %v18010_v11  ;;  %v6346_v32 = vand.u32 2147483648, %v17817_v48  ;;  %v6349_v3 = vmul.f32 %v17924_v17, %v17827_v42  ;;  %12241 = vmatmul.mubr.msk.bf16.gmra.mrb[56].mxu1 %vm2572_vm4, %v6950_v54  ;;  %v18031_v43 = vpop.eup %12999  ;;  %v6068_v47 = vpop.f32.mrb[221].mxu1  ;;  %8137 = vperm.xlu0 %12622, %v8077_v0   ;;  %v8080_v54 = vld [vmem:[%s13563_s17 + $0x78] sm:$0xff] }
 0x6e2   : > { %v6608_v10 = vsel %vm2572_vm4, %v6340_v56, %v22021_v62  ;;  %vm6350_vm6 = vcmp.eq.f32.partialorder %v17827_v42, inf  ;;  %vm6352_vm7 = vcmp.eq.f32.partialorder %v17827_v42, 0.0  ;;  %v6353_v33 = vand.u32 2147483648, %v17827_v42  ;;  %v18039_v29 = vpop.eup %13001  ;;  %v12103_v35 = vpop.f32.mrb[222].mxu1 }
 0x6e3   : > { %v6645_v41 = vpack.c.bf16 %v6608_v10, %v6607_v5  ;;  %v6209_v20 = vmul.f32 %v18029_v21, %v18029_v21  ;;  %v6347_v17 = vsel %vm6345_vm3, %v6346_v32, %v6344_v44  ;;  %v6351_v55 = vsel %vm6350_vm6, %v17827_v42, %v6349_v3  ;;  %v6071_v2 = vpop.f32.mrb[223].mxu1  ;;  %v8081_v10 = vld [vmem:[%s13563_s17 + $0x80] sm:$0xff] }
 0x6e4   : > { %v6207_v19 = vmul.f32 %v6068_v47, %v6068_v47  ;;  %v6356_v18 = vmul.f32 %v17969_v63, %v17889_v12  ;;  %v6354_v58 = vsel %vm6352_vm7, %v6353_v33, %v6351_v55  ;;  %v22022_v9 = vunpack.i.l.bf16 %v17618_v38 }
 0x6e5   : > { %12128 = vmatprep.mubr.msk.bf16.mxu0 %vm6691_vm12, %v6645_v41  ;;  %v18051_v51 = vadd.f32 %v6209_v20, %v17631_v60  ;;  %v6210_v27 = vmul.f32 %v12103_v35, %v12103_v35  ;;  %v22023_v48 = vunpack.i.h.bf16 %v17618_v38  ;;  %v6952_v39 = vpack.c.bf16 %v12103_v35, %v18029_v21  ;;  %8146 = vperm.xlu0 %12622, %v8080_v54   ;;  %v8085_v54 = vld [vmem:[%s13563_s17 + $0xa0] sm:$0xff] }
 0x6e6   : > { %v6609_v31 = vsel %vm2572_vm4, %v6347_v17, %v22022_v9  ;;  %v18057_v30 = vadd.f32 %v6207_v19, %v17637_v57  ;;  %vm6357_vm8 = vcmp.eq.f32.partialorder %v17889_v12, inf  ;;  %vm6359_vm9 = vcmp.eq.f32.partialorder %v17889_v12, 0.0  ;;  %v8084_v19 = vld [vmem:[%s13563_s17 + $0x98] sm:$0xff] }
 0x6e7   : > { %v6610_v42 = vsel %vm2572_vm4, %v6354_v58, %v22023_v48  ;;  %13011 = vrsqrt.f32 %v18051_v51  ;;  %v18063_v60 = vadd.f32 %v6210_v27, %v17639_v45  ;;  %v6358_v1 = vsel %vm6357_vm8, %v17889_v12, %v6356_v18 }
 0x6e8   : > { %v6646_v63 = vpack.c.bf16 %v6610_v42, %v6609_v31  ;;  %13013 = vrsqrt.f32 %v18057_v30  ;;  %v6360_v38 = vand.u32 2147483648, %v17889_v12  ;;  %v6363_v57 = vmul.f32 %v17984_v49, %v17903_v46  ;;  %v18072_v53 = vpop.eup %13003 }
 0x6e9   : > { %13015 = vrsqrt.f32 %v18063_v60  ;;  %vm6364_vm10 = vcmp.eq.f32.partialorder %v17903_v46, inf  ;;  %vm6366_vm11 = vcmp.eq.f32.partialorder %v17903_v46, 0.0  ;;  %v6367_v45 = vand.u32 2147483648, %v17903_v46  ;;  %v18079_v26 = vpop.eup %13005  ;;  %v18090_v62 = vpop.f32.mrb[224].mxu1  ;;  %8149 = vperm.xlu0 %12622, %v8081_v10   ;;  %v22033_v10 = vld [vmem:[#allocation173_spill] sm:$0xff] }
 0x6ea   : > { %12129 = vmatmul.mubr.msk.bf16.gmra.mrb[236].mxu0 %vm6691_vm12, %v6646_v63  ;;  %v6361_v13 = vsel %vm6359_vm9, %v6360_v38, %v6358_v1  ;;  %v6365_v12 = vsel %vm6364_vm10, %v17903_v46, %v6363_v57  ;;  %v6208_v5 = vmul.f32 %v6071_v2, %v6071_v2  ;;  %v6951_v49 = vpack.c.bf16 %v6071_v2, %v6068_v47  ;;  %v18082_v34 = vpop.eup %13007 }
 0x6eb   : > { %v6368_v50 = vsel %vm6366_vm11, %v6367_v45, %v6365_v12  ;;  %v22024_v23 = vunpack.i.l.bf16 %v17633_v6  ;;  %v6370_v56 = vmul.f32 %v17962_v28, %v17883_v22  ;;  %vm6371_vm13 = vcmp.eq.f32.partialorder %v17883_v22, inf  ;;  %v18093_v44 = vpop.eup %13009  ;;  %v18104_v28 = vpop.f32.mrb[225].mxu1 }
 0x6ec   : > { %v22025_v46 = vunpack.i.h.bf16 %v17633_v6  ;;  %v18099_v32 = vadd.f32 %v6208_v5, %v17642_v61  ;;  %vm6373_vm14 = vcmp.eq.f32.partialorder %v17883_v22, 0.0  ;;  %v6374_v3 = vand.u32 2147483648, %v17883_v22  ;;  %12244 = vmatprep.mubr.msk.bf16.mxu1 %vm2572_vm4, %v6951_v49  ;;  %v18111_v61 = vpop.f32.mrb[226].mxu1 }
 0x6ed   : > { %v6611_v59 = vsel %vm2572_vm4, %v6361_v13, %v22024_v23  ;;  %v6372_v33 = vsel %vm6371_vm13, %v17883_v22, %v6370_v56  ;;  %v6377_v6 = vmul.f32 %v17976_v40, %v17895_v24  ;;  %vm6378_vm15 = vcmp.eq.f32.partialorder %v17895_v24, inf  ;;  %12245 = vmatmul.mubr.msk.bf16.gmra.mrb[60].mxu1 %vm2572_vm4, %v6952_v39  ;;  %v18116_v0 = vpop.f32.mrb[227].mxu1  ;;  %8158 = vperm.xlu0 %12622, %v8084_v19   ;;  %v22036_v19 = vld [vmem:[#allocation61_spill] sm:$0xff] }
 0x6ee   : > { %v6612_v41 = vsel %vm2572_vm4, %v6368_v50, %v22025_v46  ;;  %13017 = vrsqrt.f32 %v18099_v32  ;;  %v6375_v20 = vsel %vm6373_vm14, %v6374_v3, %v6372_v33  ;;  %vm6380_vm0 = vcmp.eq.f32.partialorder %v17895_v24, 0.0  ;;  %22026 = vst [vmem:[#allocation174_spill] sm:$0xff] %v18116_v0 }
 0x6ef   : > { %v6647_v21 = vpack.c.bf16 %v6612_v41, %v6611_v59  ;;  %v6381_v47 = vand.u32 2147483648, %v17895_v24  ;;  %v6379_v22 = vsel %vm6378_vm15, %v17895_v24, %v6377_v6  ;;  %v22027_v40 = vunpack.i.l.bf16 %v17627_v15 }
 0x6f0   : > { %v6384_v55 = vmul.f32 %v18022_v7, %v17940_v37  ;;  %vm6385_vm5 = vcmp.eq.f32.partialorder %v17940_v37, inf  ;;  %vm6387_vm1 = vcmp.eq.f32.partialorder %v17940_v37, 0.0  ;;  %v6388_v18 = vand.u32 2147483648, %v17940_v37 }
 0x6f1   : > { %12132 = vmatprep.mubr.msk.bf16.mxu0 %vm6691_vm12, %v6647_v21  ;;  %v6613_v17 = vsel %vm2572_vm4, %v6375_v20, %v22027_v40  ;;  %v6382_v35 = vsel %vm6380_vm0, %v6381_v47, %v6379_v22  ;;  %v6391_v58 = vmul.f32 %v18039_v29, %v17955_v36  ;;  %v18131_v9 = vpop.eup %13011  ;;  %v22028_v24 = vunpack.i.h.bf16 %v17627_v15  ;;  %v22029_v15 = vld [vmem:[#allocation113_spill] sm:$0xff]  ;;  %8161 = vperm.xlu0 %12622, %v8085_v54  }
 0x6f2   : > { %v6386_v7 = vsel %vm6385_vm5, %v17940_v37, %v6384_v55  ;;  %vm6392_vm2 = vcmp.eq.f32.partialorder %v17955_v36, inf  ;;  %vm6394_vm3 = vcmp.eq.f32.partialorder %v17955_v36, 0.0  ;;  %v18139_v27 = vpop.eup %13013  ;;  %v6395_v29 = vand.u32 2147483648, %v17955_v36 }
 0x6f3   : > { %v6614_v31 = vsel %vm2572_vm4, %v6382_v35, %v22028_v24  ;;  %v6389_v48 = vsel %vm6387_vm1, %v6388_v18, %v6386_v7  ;;  %v6393_v42 = vsel %vm6392_vm2, %v17955_v36, %v6391_v58  ;;  %v18143_v39 = vpop.eup %13015  ;;  %v22030_v63 = vunpack.i.l.bf16 %v22029_v15  ;;  %v8089_v18 = vld [vmem:[%s13563_s17 + $0xc0] sm:$0xff] }
 0x6f4   : > { %v6648_v2 = vpack.c.bf16 %v6614_v31, %v6613_v17  ;;  %v6398_v37 = vmul.f32 %v18013_v16, %v17937_v14  ;;  %vm6399_vm6 = vcmp.eq.f32.partialorder %v17937_v14, inf  ;;  %vm6401_vm7 = vcmp.eq.f32.partialorder %v17937_v14, 0.0 }
 0x6f5   : > { %v6615_v1 = vsel %vm2572_vm4, %v6389_v48, %v22030_v63  ;;  %v6396_v38 = vsel %vm6394_vm3, %v6395_v29, %v6393_v42  ;;  %v6402_v36 = vand.u32 2147483648, %v17937_v14  ;;  %v6405_v57 = vmul.f32 %v18031_v43, %v17946_v8  ;;  %v22032_v43 = vld [vmem:[#allocation99_spill] sm:$0xff] }
 0x6f6   : > { %12133 = vmatmul.mubr.msk.bf16.gmra.mrb[240].mxu0 %vm6691_vm12, %v6648_v2  ;;  %vm6406_vm8 = vcmp.eq.f32.partialorder %v17946_v8, inf  ;;  %v22031_v45 = vunpack.i.h.bf16 %v22029_v15  ;;  %v6400_v13 = vsel %vm6399_vm6, %v17937_v14, %v6398_v37  ;;  %vm6408_vm9 = vcmp.eq.f32.partialorder %v17946_v8, 0.0  ;;  %v8088_v14 = vld [vmem:[%s13563_s17 + $0xb8] sm:$0xff]  ;;  %v22040_v29 = vld [vmem:[#allocation115_spill] sm:$0xff] }
 0x6f7   : > { %v6409_v12 = vand.u32 2147483648, %v17946_v8  ;;  %v6403_v49 = vsel %vm6401_vm7, %v6402_v36, %v6400_v13  ;;  %v6407_v50 = vsel %vm6406_vm8, %v17946_v8, %v6405_v57  ;;  %v6412_v23 = vmul.f32 %v18079_v26, %v17995_v25  ;;  %8170 = vperm.xlu0 %12622, %v8088_v14  }
 0x6f8   : > { %v6616_v16 = vsel %vm2572_vm4, %v6396_v38, %v22031_v45  ;;  %v12615_v59 = vunpack.i.l.bf16 %v22032_v43  ;;  %v22034_v46 = vunpack.i.l.bf16 %v22033_v10  ;;  %vm6413_vm10 = vcmp.eq.f32.partialorder %v17995_v25, inf  ;;  %v13018_v3 = vpop.eup %13017  ;;  %v8092_v38 = vld [vmem:[%s13563_s17 + $0xd8] sm:$0xff] }
 0x6f9   : > { %v6649_v5 = vpack.c.bf16 %v6616_v16, %v6615_v1  ;;  %v6410_v56 = vsel %vm6408_vm9, %v6409_v12, %v6407_v50  ;;  %v22035_v21 = vunpack.i.h.bf16 %v22033_v10  ;;  %v6414_v26 = vsel %vm6413_vm10, %v17995_v25, %v6412_v23  ;;  %v8093_v10 = vld [vmem:[%s13563_s17 + $0xe0] sm:$0xff] }
 0x6fa   : > { %v6617_v41 = vsel %vm2572_vm4, %v6403_v49, %v22034_v46  ;;  %v6416_v33 = vand.u32 2147483648, %v17995_v25  ;;  %v6419_v6 = vmul.f32 %v18093_v44, %v18010_v11  ;;  %vm6415_vm11 = vcmp.eq.f32.partialorder %v17995_v25, 0.0 }
 0x6fb   : > { %12136 = vmatprep.mubr.msk.bf16.mxu0 %vm6691_vm12, %v6649_v5  ;;  %v6618_v8 = vsel %vm2572_vm4, %v6410_v56, %v22035_v21  ;;  %vm6420_vm13 = vcmp.eq.f32.partialorder %v18010_v11, inf  ;;  %v6423_v47 = vand.u32 2147483648, %v18010_v11  ;;  %vm6422_vm14 = vcmp.eq.f32.partialorder %v18010_v11, 0.0  ;;  %v18204_v48 = vpop.f32.mrb[228].mxu1  ;;  %8173 = vperm.xlu0 %12622, %v8089_v18   ;;  %v22047_v21 = vld [vmem:[#allocation72_spill] sm:$0xff] }
 0x6fc   : > { %v6650_v20 = vpack.c.bf16 %v6618_v8, %v6617_v41  ;;  %v6417_v22 = vsel %vm6415_vm11, %v6416_v33, %v6414_v26  ;;  %v6421_v40 = vsel %vm6420_vm13, %v18010_v11, %v6419_v6  ;;  %v6426_v17 = vmul.f32 %v18072_v53, %v17990_v52  ;;  %22039 = vst [vmem:[#allocation175_spill] sm:$0xff] %v18204_v48  ;;  %v18213_v63 = vpop.f32.mrb[229].mxu1  ;;  %v8096_v33 = vld [vmem:[%s13563_s17 + $0xf8] sm:$0xff] }
 0x6fd   : > { %v6424_v55 = vsel %vm6422_vm14, %v6423_v47, %v6421_v40  ;;  %v22037_v35 = vunpack.i.l.bf16 %v22036_v19  ;;  %vm6427_vm15 = vcmp.eq.f32.partialorder %v17990_v52, inf  ;;  %v6430_v25 = vand.u32 2147483648, %v17990_v52  ;;  %22042 = vst [vmem:[#allocation176_spill] sm:$0xff] %v18213_v63  ;;  %v12697_v40 = vld [vmem:[%s22054_s26] sm:$0xff]  }
 0x6fe   : > { %12137 = vmatmul.mubr.msk.bf16.gmra.mrb[244].mxu0 %vm6691_vm12, %v6650_v20  ;;  %v22038_v58 = vunpack.i.h.bf16 %v22036_v19  ;;  %v6428_v24 = vsel %vm6427_vm15, %v17990_v52, %v6426_v17  ;;  %vm6429_vm0 = vcmp.eq.f32.partialorder %v17990_v52, 0.0  ;;  %v6433_v53 = vmul.f32 %v18082_v34, %v18003_v4  ;;  %12248 = vmatprep.subr.bf16.mxu0 %v12697_v40 }
 0x6ff   : > { %v6619_v44 = vsel %vm2572_vm4, %v6417_v22, %v22037_v35  ;;  %v6431_v7 = vsel %vm6429_vm0, %v6430_v25, %v6428_v24  ;;  %vm6434_vm5 = vcmp.eq.f32.partialorder %v18003_v4, inf  ;;  %v6437_v2 = vand.u32 2147483648, %v18003_v4  ;;  %8182 = vperm.xlu0 %12622, %v8092_v38   ;;  %12249 = vmatpush3.bf16.msra.mxu0 %v12697_v40  ;;  %v12698_v25 = vld [vmem:[%s22055_s0 + $0x8] ss:$0 sps:$4 sm:$0x11]  }
 0x700   : > { %v6620_v11 = vsel %vm2572_vm4, %v6424_v55, %v22038_v58  ;;  %v6435_v42 = vsel %vm6434_vm5, %v18003_v4, %v6433_v53  ;;  %vm6436_vm1 = vcmp.eq.f32.partialorder %v18003_v4, 0.0  ;;  %v22041_v15 = vunpack.i.l.bf16 %v22040_v29  ;;  %v18219_v4 = vpop.f32.mrb[230].mxu1 }
 0x701   : > { %v6651_v31 = vpack.c.bf16 %v6620_v11, %v6619_v44  ;;  %v6440_v34 = vmul.f32 %v18139_v27, %v18057_v30  ;;  %v6438_v1 = vsel %vm6436_vm1, %v6437_v2, %v6435_v42  ;;  %vm6441_vm2 = vcmp.eq.f32.partialorder %v18057_v30, inf  ;;  %22043 = vst [vmem:[#allocation101_spill] sm:$0xff] %v18219_v4  ;;  %v18228_v45 = vpop.f32.mrb[231].mxu1 }
 0x702   : > { %v6621_v52 = vsel %vm2572_vm4, %v6431_v7, %v22041_v15  ;;  %v6444_v37 = vand.u32 2147483648, %v18057_v30  ;;  %v6447_v54 = vmul.f32 %v13018_v3, %v18099_v32  ;;  %v22044_v36 = vunpack.i.h.bf16 %v22040_v29  ;;  %22045 = vst [vmem:[#allocation177_spill] sm:$0xff] %v18228_v45 }
 0x703   : > { %12140 = vmatprep.mubr.msk.bf16.mxu0 %vm6691_vm12, %v6651_v31  ;;  %v6442_v27 = vsel %vm6441_vm2, %v18057_v30, %v6440_v34  ;;  %vm6443_vm3 = vcmp.eq.f32.partialorder %v18057_v30, 0.0  ;;  %vm6448_vm6 = vcmp.eq.f32.partialorder %v18099_v32, inf  ;;  %v6451_v5 = vand.u32 2147483648, %v18099_v32  ;;  %8185 = vperm.xlu0 %12622, %v8093_v10  }
 0x704   : > { %v6622_v57 = vsel %vm2572_vm4, %v6438_v1, %v22044_v36  ;;  %v6445_v13 = vsel %vm6443_vm3, %v6444_v37, %v6442_v27  ;;  %v6449_v12 = vsel %vm6448_vm6, %v18099_v32, %v6447_v54  ;;  %vm6450_vm7 = vcmp.eq.f32.partialorder %v18099_v32, 0.0 }
 0x705   : > { %v6652_v16 = vpack.c.bf16 %v6622_v57, %v6621_v52  ;;  %v6623_v49 = vsel %vm2572_vm4, %v6445_v13, %v12615_v59  ;;  %v6454_v50 = vmul.f32 %v18131_v9, %v18051_v51  ;;  %vm6455_vm8 = vcmp.eq.f32.partialorder %v18051_v51, inf }
 0x706   : > { %v6452_v30 = vsel %vm6450_vm7, %v6451_v5, %v6449_v12  ;;  %vm6457_vm9 = vcmp.eq.f32.partialorder %v18051_v51, 0.0  ;;  %v6458_v23 = vand.u32 2147483648, %v18051_v51  ;;  %v6461_v56 = vmul.f32 %v18143_v39, %v18063_v60 }
 0x707   : > { %12141 = vmatmul.mubr.msk.bf16.gmra.mrb[248].mxu0 %vm6691_vm12, %v6652_v16  ;;  %v22046_v32 = vunpack.i.h.bf16 %v22032_v43  ;;  %v6456_v9 = vsel %vm6455_vm8, %v18051_v51, %v6454_v50  ;;  %vm6462_vm10 = vcmp.eq.f32.partialorder %v18063_v60, inf  ;;  %v6465_v46 = vand.u32 2147483648, %v18063_v60  ;;  %8194 = vperm.xlu0 %12622, %v8096_v33  }
 0x708   : > { %v6459_v14 = vsel %vm6457_vm9, %v6458_v23, %v6456_v9  ;;  %v6463_v3 = vsel %vm6462_vm10, %v18063_v60, %v6461_v56  ;;  %vm6464_vm11 = vcmp.eq.f32.partialorder %v18063_v60, 0.0  ;;  %v22048_v43 = vunpack.i.l.bf16 %v22047_v21  ;;  %v18259_v20 = vpop.f32.mrb[232].mxu1 }
 0x709   : > { %v6624_v59 = vsel %vm2572_vm4, %v6452_v30, %v22046_v32  ;;  %v6466_v39 = vsel %vm6464_vm11, %v6465_v46, %v6463_v3  ;;  %v22049_v51 = vunpack.i.h.bf16 %v22047_v21  ;;  %22050 = vst [vmem:[#allocation181_spill] sm:$0xff] %v18259_v20  ;;  %v18262_v60 = vpop.f32.mrb[233].mxu1  ;;  %v13306_v17 = vmov 16  }
 0x70a   : > { %v6653_v41 = vpack.c.bf16 %v6624_v59, %v6623_v49  ;;  %v6625_v8 = vsel %vm2572_vm4, %v6459_v14, %v22048_v43  ;;  %22051 = vst [vmem:[#allocation182_spill] sm:$0xff] %v18262_v60  ;;  %v18264_v47 = vpop.f32.mrb[234].mxu1  ;;  %12624 = vset.pattern.permute.xlu1 %v13306_v17  ;;  %v22060_v18 = vmov 0   ;;  %vm8564_vm14 = vcmask 23552  }
 0x70b   : > { %v6626_v26 = vsel %vm2572_vm4, %v6466_v39, %v22049_v51  ;;  %22052 = vst [vmem:[#allocation118_spill] sm:$0xff] %v18264_v47  ;;  %v18266_v22 = vpop.f32.mrb[235].mxu1  ;;  %12625 = vset.pattern.permute.xlu0 %v13306_v17  ;;  %vm7610_vm4 = vcmask 1040384   ;;  %v9380_v47 = vld [vmem:[%s13558_s24 + $0xd0] sm:$0xff] }
 0x70c   : > { %12144 = vmatprep.mubr.msk.bf16.mxu0 %vm6691_vm12, %v6653_v41  ;;  %v6654_v6 = vpack.c.bf16 %v6626_v26, %v6625_v8  ;;  %22053 = vst [vmem:[#allocation120_spill] sm:$0xff] %v18266_v22  ;;  %v7612_v58 = vsel %vm7610_vm4, 65535, %v22060_v18 }
 0x70d   : > { %v7614_v11 = vand.u32 %v12698_v25, %v7612_v58 }
 0x70f   : > { %12145 = vmatmul.mubr.msk.bf16.gmra.mrb[252].mxu0 %vm6691_vm12, %v6654_v6  ;;  %12250 = vmatprep.subr.bf16.mxu0 %v7614_v11  ;;  %vm21071_vm12 = vcmask 138240  }
 0x710   : > { %12251 = vmatpush3.bf16.msra.mxu0 %v7614_v11 }
 0x716   : > { %v18271_v55 = vpop.f32.mrb[236].mxu1 }
 0x717   : > { %22056 = vst [vmem:[#allocation102_spill] sm:$0xff] %v18271_v55  ;;  %v18273_v19 = vpop.f32.mrb[237].mxu1 }
 0x718   : > { %22057 = vst [vmem:[#allocation80_spill] sm:$0xff] %v18273_v19  ;;  %v18275_v35 = vpop.f32.mrb[238].mxu1  ;;  %v9366_v19 = vld [vmem:[%s13558_s24 + $0x60] sm:$0xff] }
 0x719   : > { %22058 = vst [vmem:[#allocation85_spill] sm:$0xff] %v18275_v35  ;;  %v18277_v44 = vpop.f32.mrb[239].mxu1 }
 0x71a   : > { %22059 = vst [vmem:[#allocation184_spill] sm:$0xff] %v18277_v44 }
 0x71f   : > { %v18283_v24 = vpop.f32.mrb[240].mxu1 }
 0x720   : > { %22061 = vst [vmem:[#allocation117_spill] sm:$0xff] %v18283_v24  ;;  %v18285_v53 = vpop.f32.mrb[241].mxu1 }
 0x721   : > { %22062 = vst [vmem:[#allocation119_spill] sm:$0xff] %v18285_v53  ;;  %v18287_v31 = vpop.f32.mrb[242].mxu1 }
 0x722   : > { %22063 = vst [vmem:[#allocation185_spill] sm:$0xff] %v18287_v31  ;;  %v18289_v7 = vpop.f32.mrb[243].mxu1 }
 0x723   : > { %22064 = vst [vmem:[#allocation73_spill] sm:$0xff] %v18289_v7 }
 0x727   : > { %v18291_v2 = vpop.f32.mrb[244].mxu1 }
 0x728   : > { %22065 = vst [vmem:[#allocation78_spill] sm:$0xff] %v18291_v2  ;;  %v18293_v42 = vpop.f32.mrb[245].mxu1 }
 0x729   : > { %22066 = vst [vmem:[#allocation104_spill] sm:$0xff] %v18293_v42  ;;  %v18295_v29 = vpop.f32.mrb[246].mxu1 }
 0x72a   : > { %22067 = vst [vmem:[#allocation186_spill] sm:$0xff] %v18295_v29  ;;  %v18297_v15 = vpop.f32.mrb[247].mxu1 }
 0x72b   : > { %22068 = vst [vmem:[#allocation187_spill] sm:$0xff] %v18297_v15 }
 0x72f   : > { %v18299_v52 = vpop.f32.mrb[248].mxu1 }
 0x730   : > { %22069 = vst [vmem:[#allocation188_spill] sm:$0xff] %v18299_v52  ;;  %v18301_v34 = vpop.f32.mrb[249].mxu1 }
 0x731   : > { %22070 = vst [vmem:[#allocation189_spill] sm:$0xff] %v18301_v34  ;;  %v18303_v1 = vpop.f32.mrb[250].mxu1 }
 0x732   : > { %22071 = vst [vmem:[#allocation193_spill] sm:$0xff] %v18303_v1  ;;  %v18305_v37 = vpop.f32.mrb[251].mxu1 }
 0x733   : > { %22072 = vst [vmem:[#allocation122_spill] sm:$0xff] %v18305_v37 }
 0x737   : > { %v18307_v54 = vpop.f32.mrb[252].mxu1 }
 0x738   : > { %22073 = vst [vmem:[#allocation194_spill] sm:$0xff] %v18307_v54  ;;  %v18309_v38 = vpop.f32.mrb[253].mxu1 }
 0x739   : > { %22074 = vst [vmem:[#allocation124_spill] sm:$0xff] %v18309_v38  ;;  %v18311_v36 = vpop.f32.mrb[254].mxu1 }
 0x73a   : > { %22075 = vst [vmem:[#allocation92_spill] sm:$0xff] %v18311_v36  ;;  %v18313_v57 = vpop.f32.mrb[255].mxu1 }
 0x73b   : > { %22076 = vst [vmem:[#allocation96_spill] sm:$0xff] %v18313_v57 }
 0x73f   : > { %v18315_v27 = vpop.f32.mrb[0].mxu1 }
 0x740   : > { %v18317_v16 = vpop.f32.mrb[1].mxu1 }
 0x741   : > { %v18319_v13 = vpop.f32.mrb[2].mxu1 }
 0x742   : > { %v18321_v12 = vpop.f32.mrb[3].mxu1 }
 0x743   : > { %22077 = vst [vmem:[#allocation196_spill] sm:$0xff] %v18321_v12 }
 0x747   : > { %v18323_v5 = vpop.f32.mrb[4].mxu1 }
 0x748   : > { %22078 = vst [vmem:[#allocation121_spill] sm:$0xff] %v18323_v5  ;;  %v18325_v49 = vpop.f32.mrb[5].mxu1 }
 0x749   : > { %22079 = vst [vmem:[#allocation197_spill] sm:$0xff] %v18325_v49  ;;  %v18327_v50 = vpop.f32.mrb[6].mxu1 }
 0x74a   : > { %22080 = vst [vmem:[#allocation123_spill] sm:$0xff] %v18327_v50  ;;  %v18329_v30 = vpop.f32.mrb[7].mxu1 }
 0x74b   : > { %22081 = vst [vmem:[#allocation107_spill] sm:$0xff] %v18329_v30 }
 0x74f   : > { %v18331_v23 = vpop.f32.mrb[8].mxu1 }
 0x750   : > { %22082 = vst [vmem:[#allocation90_spill] sm:$0xff] %v18331_v23  ;;  %v18333_v56 = vpop.f32.mrb[9].mxu1 }
 0x751   : > { %22083 = vst [vmem:[#allocation94_spill] sm:$0xff] %v18333_v56  ;;  %v18335_v10 = vpop.f32.mrb[10].mxu1  ;;  %v9372_v56 = vld [vmem:[%s13558_s24 + $0x90] sm:$0xff] }
 0x752   : > { %22084 = vst [vmem:[#allocation198_spill] sm:$0xff] %v18335_v10  ;;  %v18337_v32 = vpop.f32.mrb[11].mxu1 }
 0x753   : > { %22085 = vst [vmem:[#allocation108_spill] sm:$0xff] %v18337_v32  ;;  %v9376_v32 = vld [vmem:[%s13558_s24 + $0xb0] sm:$0xff] }
 0x757   : > { %v18339_v59 = vpop.f32.mrb[12].mxu1 }
 0x758   : > { %22086 = vst [vmem:[#allocation199_spill] sm:$0xff] %v18339_v59  ;;  %v18341_v9 = vpop.f32.mrb[13].mxu1  ;;  %v9368_v59 = vld [vmem:[%s13558_s24 + $0x70] sm:$0xff] }
 0x759   : > { %22087 = vst [vmem:[#allocation200_spill] sm:$0xff] %v18341_v9  ;;  %v18343_v46 = vpop.f32.mrb[14].mxu1 }
 0x75a   : > { %22088 = vst [vmem:[#allocation201_spill] sm:$0xff] %v18343_v46  ;;  %v18345_v41 = vpop.f32.mrb[15].mxu1  ;;  %v8102_v46 = vpop.permute.xlu0 %8101 }
 0x75b   : > { %22089 = vst [vmem:[#allocation126_spill] sm:$0xff] %v18345_v41 }
 0x75f   : > { %v18347_v14 = vpop.f32.mrb[16].mxu1 }
 0x760   : > { %22090 = vst [vmem:[#allocation128_spill] sm:$0xff] %v18347_v14  ;;  %v18349_v3 = vpop.f32.mrb[17].mxu1 }
 0x761   : > { %22091 = vst [vmem:[#allocation82_spill] sm:$0xff] %v18349_v3  ;;  %v18351_v39 = vpop.f32.mrb[18].mxu1 }
 0x762   : > { %22092 = vst [vmem:[#allocation16_spill] sm:$0xff] %v18351_v39  ;;  %v18353_v21 = vpop.f32.mrb[19].mxu1 }
 0x763   : > { %22093 = vst [vmem:[#allocation125_spill] sm:$0xff] %v18353_v21 }
 0x767   : > { %v18355_v43 = vpop.f32.mrb[20].mxu1 }
 0x768   : > { %22094 = vst [vmem:[#allocation127_spill] sm:$0xff] %v18355_v43  ;;  %v18357_v8 = vpop.f32.mrb[21].mxu1 }
 0x769   : > { %22095 = vst [vmem:[#allocation130_spill] sm:$0xff] %v18357_v8  ;;  %v18359_v51 = vpop.f32.mrb[22].mxu1 }
 0x76a   : > { %22096 = vst [vmem:[#allocation132_spill] sm:$0xff] %v18359_v51  ;;  %v18361_v26 = vpop.f32.mrb[23].mxu1 }
 0x76b   : > { %22097 = vst [vmem:[#allocation77_spill] sm:$0xff] %v18361_v26 }
 0x76f   : > { %v18363_v33 = vpop.f32.mrb[24].mxu1 }
 0x770   : > { %22098 = vst [vmem:[#allocation83_spill] sm:$0xff] %v18363_v33  ;;  %v18365_v6 = vpop.f32.mrb[25].mxu1 }
 0x771   : > { %22099 = vst [vmem:[#allocation15_spill] sm:$0xff] %v18365_v6  ;;  %v18367_v40 = vpop.f32.mrb[26].mxu1 }
 0x772   : > { %22100 = vst [vmem:[#allocation20_spill] sm:$0xff] %v18367_v40  ;;  %v18369_v17 = vpop.f32.mrb[27].mxu1 }
 0x773   : > { %22101 = vst [vmem:[#allocation129_spill] sm:$0xff] %v18369_v17 }
 0x777   : > { %v18371_v25 = vpop.f32.mrb[28].mxu1 }
 0x778   : > { %22102 = vst [vmem:[#allocation131_spill] sm:$0xff] %v18371_v25  ;;  %v18373_v58 = vpop.f32.mrb[29].mxu1 }
 0x779   : > { %22103 = vst [vmem:[#allocation14_spill] sm:$0xff] %v18373_v58  ;;  %v18375_v11 = vpop.f32.mrb[30].mxu1 }
 0x77a   : > { %22104 = vst [vmem:[#allocation134_spill] sm:$0xff] %v18375_v11  ;;  %v18377_v57 = vpop.f32.mrb[31].mxu1 }
 0x77b   : > { %22105 = vst [vmem:[#allocation136_spill] sm:$0xff] %v18377_v57 }
 0x77f   : > { %v18379_v36 = vpop.f32.mrb[32].mxu1 }
 0x780   : > { %22106 = vst [vmem:[#allocation13_spill] sm:$0xff] %v18379_v36  ;;  %v18381_v38 = vpop.f32.mrb[33].mxu1 }
 0x781   : > { %v18383_v54 = vpop.f32.mrb[34].mxu1 }
 0x782   : > { %v18385_v37 = vpop.f32.mrb[35].mxu1 }
 0x783   : > { %22107 = vst [vmem:[#allocation133_spill] sm:$0xff] %v18385_v37 }
 0x787   : > { %v18387_v1 = vpop.f32.mrb[36].mxu1 }
 0x788   : > { %22108 = vst [vmem:[#allocation19_spill] sm:$0xff] %v18387_v1  ;;  %v18389_v40 = vpop.f32.mrb[37].mxu1 }
 0x789   : > { %22109 = vst [vmem:[#allocation24_spill] sm:$0xff] %v18389_v40  ;;  %v18391_v17 = vpop.f32.mrb[38].mxu1 }
 0x78a   : > { %22110 = vst [vmem:[#allocation135_spill] sm:$0xff] %v18391_v17  ;;  %v18393_v25 = vpop.f32.mrb[39].mxu1 }
 0x78b   : > { %22111 = vst [vmem:[#allocation18_spill] sm:$0xff] %v18393_v25 }
 0x78f   : > { %v18395_v58 = vpop.f32.mrb[40].mxu1 }
 0x790   : > { %22112 = vst [vmem:[#allocation137_spill] sm:$0xff] %v18395_v58  ;;  %v18397_v11 = vpop.f32.mrb[41].mxu1  ;;  %v9382_v58 = vld [vmem:[%s13558_s24 + $0xe0] sm:$0xff] }
 0x791   : > { %22113 = vst [vmem:[#allocation142_spill] sm:$0xff] %v18397_v11  ;;  %v18399_v57 = vpop.f32.mrb[42].mxu1 }
 0x792   : > { %22114 = vst [vmem:[#allocation17_spill] sm:$0xff] %v18399_v57  ;;  %v18401_v6 = vpop.f32.mrb[43].mxu1  ;;  %v9378_v57 = vld [vmem:[%s13558_s24 + $0xc0] sm:$0xff] }
 0x793   : > { %22115 = vst [vmem:[#allocation138_spill] sm:$0xff] %v18401_v6  ;;  %v9374_v6 = vld [vmem:[%s13558_s24 + $0xa0] sm:$0xff] }
 0x798   : > { %v18403_v34 = vpop.f32.mrb[224].mxu0 }
 0x799   : > { %22116 = vst [vmem:[#allocation22_spill] sm:$0xff] %v18403_v34  ;;  %8384 = vperm.xlu1 %12624, %v18403_v34   ;;  %v18406_v33 = vpop.f32.mrb[225].mxu0  ;;  %v18408_v52 = vpop.f32.mrb[44].mxu1 }
 0x79a   : > { %22117 = vst [vmem:[#allocation144_spill] sm:$0xff] %v18406_v33  ;;  %22118 = vst [vmem:[#allocation111_spill] sm:$0xff] %v18408_v52  ;;  %v18410_v26 = vpop.f32.mrb[226].mxu0  ;;  %v18412_v15 = vpop.f32.mrb[45].mxu1 }
 0x79b   : > { %22119 = vst [vmem:[#allocation53_spill] sm:$0xff] %v18410_v26  ;;  %22120 = vst [vmem:[#allocation23_spill] sm:$0xff] %v18412_v15  ;;  %v7530_v51 = vpack.c.bf16 %v18410_v26, %v18403_v34  ;;  %v18416_v29 = vpop.f32.mrb[227].mxu0  ;;  %v18418_v8 = vpop.f32.mrb[46].mxu1 }
 0x79c   : > { %22121 = vst [vmem:[#allocation62_spill] sm:$0xff] %v18416_v29  ;;  %22122 = vst [vmem:[#allocation203_spill] sm:$0xff] %v18418_v8  ;;  %v7529_v42 = vpack.c.bf16 %v18416_v29, %v18406_v33  ;;  %8379 = vperm.xlu0 %12625, %v18416_v29   ;;  %v18423_v43 = vpop.f32.mrb[47].mxu1 }
 0x79d   : > { %22123 = vst [vmem:[#allocation141_spill] sm:$0xff] %v18423_v43  ;;  %8374 = vperm.xlu1 %12624, %v18406_v33  }
 0x79e   : > { %12252 = vmatprep.mubr.msk.bf16.mxu0 %vm21071_vm12, %v7529_v42 }
 0x79f   : > { %12253 = vmatmul.mubr.msk.bf16.vlgmr.msra.gmra.mrb[0].mxu0 %vm21071_vm12, %v7530_v51 }
 0x7a1   : > { %v18428_v2 = vpop.f32.mrb[228].mxu0  ;;  %8389 = vperm.xlu1 %12624, %v18410_v26  }
 0x7a2   : > { %22124 = vst [vmem:[#allocation109_spill] sm:$0xff] %v18428_v2  ;;  %8404 = vperm.xlu0 %12625, %v18428_v2   ;;  %v18432_v34 = vpop.f32.mrb[229].mxu0  ;;  %v18434_v21 = vpop.f32.mrb[48].mxu1 }
 0x7a3   : > { %22125 = vst [vmem:[#allocation143_spill] sm:$0xff] %v18432_v34  ;;  %22126 = vst [vmem:[#allocation146_spill] sm:$0xff] %v18434_v21  ;;  %v18436_v7 = vpop.f32.mrb[230].mxu0  ;;  %v18438_v29 = vpop.f32.mrb[49].mxu1 }
 0x7a4   : > { %22127 = vst [vmem:[#allocation207_spill] sm:$0xff] %v18436_v7  ;;  %22128 = vst [vmem:[#allocation139_spill] sm:$0xff] %v18438_v29  ;;  %v7532_v33 = vpack.c.bf16 %v18436_v7, %v18428_v2  ;;  %v18442_v42 = vpop.f32.mrb[231].mxu0  ;;  %v18444_v51 = vpop.f32.mrb[50].mxu1 }
 0x7a5   : > { %22129 = vst [vmem:[#allocation148_spill] sm:$0xff] %v18442_v42  ;;  %22130 = vst [vmem:[#allocation209_spill] sm:$0xff] %v18444_v51  ;;  %v7531_v26 = vpack.c.bf16 %v18442_v42, %v18432_v34  ;;  %v18448_v31 = vpop.f32.mrb[51].mxu1  ;;  %8409 = vperm.xlu1 %12624, %v18436_v7  }
 0x7a6   : > { %22131 = vst [vmem:[#allocation140_spill] sm:$0xff] %v18448_v31  ;;  %8394 = vperm.xlu0 %12625, %v18432_v34  }
 0x7a7   : > { %12256 = vmatprep.mubr.msk.bf16.mxu0 %vm21071_vm12, %v7531_v26 }
 0x7a8   : > { %12257 = vmatmul.mubr.msk.bf16.gmra.mrb[4].mxu0 %vm21071_vm12, %v7532_v33 }
 0x7a9   : > { %8399 = vperm.xlu1 %12624, %v18442_v42  }
 0x7aa   : > { %v18455_v2 = vpop.f32.mrb[52].mxu1 }
 0x7ab   : > { %22132 = vst [vmem:[#allocation56_spill] sm:$0xff] %v18455_v2  ;;  %v18457_v39 = vpop.f32.mrb[53].mxu1  ;;  %v18491_v2 = vpop.permute.xlu1 %8104 }
 0x7ac   : > { %22133 = vst [vmem:[#allocation59_spill] sm:$0xff] %v18457_v39  ;;  %v18459_v51 = vpop.f32.mrb[54].mxu1 }
 0x7ad   : > { %22134 = vst [vmem:[#allocation21_spill] sm:$0xff] %v18459_v51  ;;  %v18461_v21 = vpop.f32.mrb[55].mxu1 }
 0x7ae   : > { %22135 = vst [vmem:[#allocation67_spill] sm:$0xff] %v18461_v21 }
 0x7b1   : > { %v18463_v29 = vpop.f32.mrb[232].mxu0 }
 0x7b2   : > { %22136 = vst [vmem:[#allocation76_spill] sm:$0xff] %v18463_v29  ;;  %v18465_v31 = vpop.f32.mrb[233].mxu0  ;;  %8424 = vperm.xlu1 %12624, %v18463_v29  }
 0x7b3   : > { %22137 = vst [vmem:[#allocation28_spill] sm:$0xff] %v18465_v31  ;;  %v18468_v7 = vpop.f32.mrb[234].mxu0 }
 0x7b4   : > { %22138 = vst [vmem:[#allocation206_spill] sm:$0xff] %v18468_v7  ;;  %v7534_v26 = vpack.c.bf16 %v18468_v7, %v18463_v29  ;;  %v18472_v33 = vpop.f32.mrb[235].mxu0  ;;  %v18477_v42 = vpop.f32.mrb[56].mxu1 }
 0x7b5   : > { %22139 = vst [vmem:[#allocation145_spill] sm:$0xff] %v18472_v33  ;;  %v7533_v34 = vpack.c.bf16 %v18472_v33, %v18465_v31  ;;  %8419 = vperm.xlu0 %12625, %v18472_v33   ;;  %22140 = vst [vmem:[#allocation147_spill] sm:$0xff] %v18477_v42  ;;  %v18480_v21 = vpop.f32.mrb[57].mxu1 }
 0x7b6   : > { %8414 = vperm.xlu1 %12624, %v18465_v31   ;;  %22141 = vst [vmem:[#allocation150_spill] sm:$0xff] %v18480_v21  ;;  %v18483_v51 = vpop.f32.mrb[58].mxu1  ;;  %v18513_v21 = vpop.permute.xlu1 %8107 }
 0x7b7   : > { %12260 = vmatprep.mubr.msk.bf16.mxu0 %vm21071_vm12, %v7533_v34  ;;  %22142 = vst [vmem:[#allocation68_spill] sm:$0xff] %v18483_v51  ;;  %v18486_v29 = vpop.f32.mrb[59].mxu1 }
 0x7b8   : > { %12261 = vmatmul.mubr.msk.bf16.gmra.mrb[8].mxu0 %vm21071_vm12, %v7534_v26  ;;  %22143 = vst [vmem:[#allocation152_spill] sm:$0xff] %v18486_v29 }
 0x7ba   : > { %8429 = vperm.xlu1 %12624, %v18468_v7  }
 0x7bd   : > { %v18489_v39 = vpop.f32.mrb[236].mxu0 }
 0x7be   : > { %22144 = vst [vmem:[#allocation149_spill] sm:$0xff] %v18489_v39  ;;  %v18493_v33 = vpop.f32.mrb[237].mxu0  ;;  %8444 = vperm.xlu1 %12624, %v18489_v39  }
 0x7bf   : > { %22145 = vst [vmem:[#allocation70_spill] sm:$0xff] %v18493_v33  ;;  %v18495_v42 = vpop.f32.mrb[238].mxu0 }
 0x7c0   : > { %22146 = vst [vmem:[#allocation87_spill] sm:$0xff] %v18495_v42  ;;  %v7536_v34 = vpack.c.bf16 %v18495_v42, %v18489_v39  ;;  %v18500_v31 = vpop.f32.mrb[239].mxu0  ;;  %v18505_v7 = vpop.f32.mrb[60].mxu1 }
 0x7c1   : > { %22147 = vst [vmem:[#allocation151_spill] sm:$0xff] %v18500_v31  ;;  %v7535_v26 = vpack.c.bf16 %v18500_v31, %v18493_v33  ;;  %8439 = vperm.xlu0 %12625, %v18500_v31   ;;  %22148 = vst [vmem:[#allocation154_spill] sm:$0xff] %v18505_v7  ;;  %v18507_v29 = vpop.f32.mrb[61].mxu1  ;;  %v18523_v7 = vpop.permute.xlu1 %8113 }
 0x7c2   : > { %22149 = vst [vmem:[#allocation86_spill] sm:$0xff] %v18507_v29  ;;  %8434 = vperm.xlu1 %12624, %v18493_v33   ;;  %v18511_v51 = vpop.f32.mrb[62].mxu1 }
 0x7c3   : > { %12264 = vmatprep.mubr.msk.bf16.mxu0 %vm21071_vm12, %v7535_v26  ;;  %22150 = vst [vmem:[#allocation81_spill] sm:$0xff] %v18511_v51  ;;  %v18516_v39 = vpop.f32.mrb[63].mxu1 }
 0x7c4   : > { %12265 = vmatmul.mubr.msk.bf16.gmra.mrb[12].mxu0 %vm21071_vm12, %v7536_v34  ;;  %22151 = vst [vmem:[#allocation156_spill] sm:$0xff] %v18516_v39 }
 0x7c6   : > { %8449 = vperm.xlu1 %12624, %v18495_v42   ;;  %v18538_v42 = vpop.permute.xlu1 %8119 }
 0x7c9   : > { %v18519_v3 = vpop.f32.mrb[240].mxu0 }
 0x7ca   : > { %22152 = vst [vmem:[#allocation153_spill] sm:$0xff] %v18519_v3  ;;  %v18521_v31 = vpop.f32.mrb[241].mxu0  ;;  %8464 = vperm.xlu1 %12624, %v18519_v3  }
 0x7cb   : > { %22153 = vst [vmem:[#allocation84_spill] sm:$0xff] %v18521_v31  ;;  %v18525_v29 = vpop.f32.mrb[242].mxu0 }
 0x7cc   : > { %22154 = vst [vmem:[#allocation93_spill] sm:$0xff] %v18525_v29  ;;  %v7538_v26 = vpack.c.bf16 %v18525_v29, %v18519_v3  ;;  %v18529_v33 = vpop.f32.mrb[243].mxu0 }
 0x7cd   : > { %22155 = vst [vmem:[#allocation155_spill] sm:$0xff] %v18529_v33  ;;  %v7537_v34 = vpack.c.bf16 %v18529_v33, %v18521_v31  ;;  %8459 = vperm.xlu0 %12625, %v18529_v33  }
 0x7ce   : > { %8454 = vperm.xlu1 %12624, %v18521_v31  }
 0x7cf   : > { %12268 = vmatprep.mubr.msk.bf16.mxu0 %vm21071_vm12, %v7537_v34  ;;  %v18554_v34 = vpop.permute.xlu1 %8125 }
 0x7d0   : > { %12269 = vmatmul.mubr.msk.bf16.gmra.mrb[16].mxu0 %vm21071_vm12, %v7538_v26 }
 0x7d1   : > { %v18540_v39 = vpop.f32.mrb[244].mxu0 }
 0x7d2   : > { %22156 = vst [vmem:[#allocation97_spill] sm:$0xff] %v18540_v39  ;;  %v18542_v51 = vpop.f32.mrb[245].mxu0  ;;  %8469 = vperm.xlu1 %12624, %v18525_v29  }
 0x7d3   : > { %22157 = vst [vmem:[#allocation88_spill] sm:$0xff] %v18542_v51  ;;  %v18544_v53 = vpop.f32.mrb[246].mxu0 }
 0x7d4   : > { %22158 = vst [vmem:[#allocation158_spill] sm:$0xff] %v18544_v53  ;;  %v7540_v3 = vpack.c.bf16 %v18544_v53, %v18540_v39  ;;  %v18548_v14 = vpop.f32.mrb[247].mxu0 }
 0x7d5   : > { %22159 = vst [vmem:[#allocation95_spill] sm:$0xff] %v18548_v14  ;;  %v7539_v26 = vpack.c.bf16 %v18548_v14, %v18542_v51  ;;  %8479 = vperm.xlu0 %12625, %v18548_v14   ;;  %v18570_v14 = vpop.permute.xlu1 %8131 }
 0x7d6   : > { %8484 = vperm.xlu1 %12624, %v18540_v39  }
 0x7d7   : > { %12272 = vmatprep.mubr.msk.bf16.mxu0 %vm21071_vm12, %v7539_v26  ;;  %v22164_v26 = vlaneseq }
 0x7d8   : > { %12273 = vmatmul.mubr.msk.bf16.gmra.mrb[20].mxu0 %vm21071_vm12, %v7540_v3 }
 0x7d9   : > { %v18579_v39 = vand.u32 127, %v22164_v26  ;;  %v18585_v15 = vpop.permute.xlu1 %8140 }
 0x7da   : > { %v18559_v31 = vpop.f32.mrb[248].mxu0  ;;  %8474 = vperm.xlu1 %12624, %v18542_v51  }
 0x7db   : > { %22160 = vst [vmem:[#allocation160_spill] sm:$0xff] %v18559_v31  ;;  %v18561_v33 = vpop.f32.mrb[249].mxu0  ;;  %vm8196_vm13 = vcmp.eq.s32.totalorder %v8102_v46, %v18579_v39  ;;  %vm8197_vm15 = vcmp.eq.s32.totalorder %v18491_v2, %v18579_v39  ;;  %vm8198_vm0 = vcmp.eq.s32.totalorder %v18513_v21, %v18579_v39  ;;  %vm8200_vm5 = vcmp.eq.s32.totalorder %v18523_v7, %v18579_v39 }
 0x7dc   : > { %22161 = vst [vmem:[#allocation157_spill] sm:$0xff] %v18561_v33  ;;  %v18563_v24 = vpop.f32.mrb[250].mxu0  ;;  %vm8202_vm1 = vcmp.eq.s32.totalorder %v18538_v42, %v18579_v39  ;;  %vm8204_vm2 = vcmp.eq.s32.totalorder %v18554_v34, %v18579_v39  ;;  %vm8206_vm3 = vcmp.eq.s32.totalorder %v18570_v14, %v18579_v39  ;;  %vm8209_vm6 = vcmp.eq.s32.totalorder %v18585_v15, %v18579_v39 }
 0x7dd   : > { %22162 = vst [vmem:[#allocation27_spill] sm:$0xff] %v18563_v24  ;;  %v7542_v29 = vpack.c.bf16 %v18563_v24, %v18559_v31  ;;  %v18567_v8 = vpop.f32.mrb[251].mxu0  ;;  %v18605_v46 = vpop.permute.xlu1 %8143  ;;  %v22169_v21 = vmov 0.0  }
 0x7de   : > { %22163 = vst [vmem:[#allocation159_spill] sm:$0xff] %v18567_v8  ;;  %v7541_v3 = vpack.c.bf16 %v18567_v8, %v18561_v33  ;;  %8499 = vperm.xlu0 %12625, %v18567_v8   ;;  %8489 = vperm.xlu1 %12624, %v18544_v53   ;;  %v21053_v53 = vmov 0.0   ;;  %v18735_v17 = vsel %vm8197_vm15, 1.0, %v22169_v21  ;;  %v18738_v7 = vsel %vm8198_vm0, 1.0, %v22169_v21 }
 0x7df   : > { %v18599_v43 = vsel %vm8196_vm13, 1.0, %v21053_v53  ;;  %v18611_v53 = vpop.permute.xlu0 %8110  ;;  %22170 = vst [vmem:[#allocation25_spill] sm:$0xff] %v18735_v17  ;;  %22171 = vst [vmem:[#allocation31_spill] sm:$0xff] %v18738_v7  ;;  %v18741_v42 = vsel %vm8200_vm5, 1.0, %v22169_v21  ;;  %v18744_v34 = vsel %vm8202_vm1, 1.0, %v22169_v21  ;;  %v18747_v14 = vsel %vm8204_vm2, 1.0, %v22169_v21 }
 0x7e0   : > { %12276 = vmatprep.mubr.msk.bf16.mxu0 %vm21071_vm12, %v7541_v3  ;;  %22172 = vst [vmem:[#allocation166_spill] sm:$0xff] %v18744_v34  ;;  %v18750_v15 = vsel %vm8206_vm3, 1.0, %v22169_v21  ;;  %v18753_v50 = vsel %vm8209_vm6, 1.0, %v22169_v21  ;;  %vm8210_vm7 = vcmp.eq.s32.totalorder %v18605_v46, %v18579_v39  ;;  %vm8199_vm15 = vcmp.eq.s32.totalorder %v18611_v53, %v18579_v39 }
 0x7e1   : > { %12277 = vmatmul.mubr.msk.bf16.gmra.mrb[24].mxu0 %vm21071_vm12, %v7542_v29  ;;  %22173 = vst [vmem:[#allocation168_spill] sm:$0xff] %v18750_v15  ;;  %22174 = vst [vmem:[#allocation36_spill] sm:$0xff] %v18753_v50  ;;  %v18776_v46 = vsel %vm8210_vm7, 1.0, %v22169_v21 }
 0x7e2   : > { %v18581_v52 = vpop.f32.mrb[252].mxu0  ;;  %8504 = vperm.xlu1 %12624, %v18559_v31   ;;  %v9354_v31 = vld [vmem:[%s13558_s24] sm:$0xff]  ;;  %22175 = vst [vmem:[#allocation179_spill] sm:$0xff] %v18776_v46 }
 0x7e3   : > { %22165 = vst [vmem:[#allocation167_spill] sm:$0xff] %v18581_v52  ;;  %v18583_v51 = vpop.f32.mrb[253].mxu0 }
 0x7e4   : > { %22166 = vst [vmem:[#allocation32_spill] sm:$0xff] %v18583_v51  ;;  %8514 = vperm.xlu0 %12625, %v18583_v51   ;;  %v18589_v8 = vpop.f32.mrb[254].mxu0 }
 0x7e5   : > { %22167 = vst [vmem:[#allocation26_spill] sm:$0xff] %v18589_v8  ;;  %v7544_v29 = vpack.c.bf16 %v18589_v8, %v18581_v52  ;;  %v18593_v3 = vpop.f32.mrb[255].mxu0 }
 0x7e6   : > { %22168 = vst [vmem:[#allocation171_spill] sm:$0xff] %v18593_v3  ;;  %v7543_v26 = vpack.c.bf16 %v18593_v3, %v18583_v51  ;;  %8494 = vperm.xlu1 %12624, %v18561_v33  }
 0x7e8   : > { %8524 = vperm.xlu0 %12625, %v18581_v52   ;;  %12280 = vmatprep.mubr.msk.bf16.mxu0 %vm21071_vm12, %v7543_v26  ;;  %v18613_v52 = vpop.permute.xlu1 %8152 }
 0x7e9   : > { %12281 = vmatmul.mubr.msk.bf16.gmra.mrb[28].mxu0 %vm21071_vm12, %v7544_v29  ;;  %v18616_v29 = vpop.permute.xlu0 %8116  ;;  %vm8213_vm8 = vcmp.eq.s32.totalorder %v18613_v52, %v18579_v39 }
 0x7ea   : > { %12286 = vmatprep.mubr.msk.f32.mxu0 %vm8564_vm14, %v18599_v43  ;;  %8509 = vperm.xlu1 %12624, %v18563_v24   ;;  %v9356_v24 = vld [vmem:[%s13558_s24 + $0x10] sm:$0xff]  ;;  %vm8201_vm5 = vcmp.eq.s32.totalorder %v18616_v29, %v18579_v39 }
 0x7ec   : > { %12626 = vset.pattern.permute.xlu0 %v22060_v18  ;;  %v18619_v26 = vpop.permute.xlu1 %8155 }
 0x7ed   : > { %v18623_v33 = vpop.permute.xlu0 %8122  ;;  %vm8214_vm9 = vcmp.eq.s32.totalorder %v18619_v26, %v18579_v39 }
 0x7ee   : > { %8519 = vperm.xlu1 %12624, %v18593_v3   ;;  %v9358_v3 = vld [vmem:[%s13558_s24 + $0x20] sm:$0xff]  ;;  %vm8203_vm2 = vcmp.eq.s32.totalorder %v18623_v33, %v18579_v39  ;;  %v18788_v53 = vsel %vm8214_vm9, 1.0, %v22169_v21  ;;  %v18803_v33 = vsel %vm8199_vm15, 1.0, %v22169_v21 }
 0x7ef   : > { %22177 = vst [vmem:[#allocation30_spill] sm:$0xff] %v18788_v53  ;;  %v18815_v1 = vsel %vm8203_vm2, 1.0, %v22169_v21  ;;  %vm8341_vm2 = vcmp.gt.f32.partialorder %v18735_v17, 0.0 }
 0x7f0   : > { %v18627_v51 = vpop.permute.xlu1 %8164  ;;  %22185 = vst [vmem:[#allocation195_spill] sm:$0xff] %v18815_v1 }
 0x7f1   : > { %vm8217_vm10 = vcmp.eq.s32.totalorder %v18627_v51, %v18579_v39 }
 0x7f2   : > { %8529 = vperm.xlu1 %12624, %v18589_v8   ;;  %v18631_v8 = vpop.permute.xlu0 %8128 }
 0x7f3   : > { %vm8205_vm3 = vcmp.eq.s32.totalorder %v18631_v8, %v18579_v39 }
 0x7f4   : > { %v18634_v41 = vpop.permute.xlu1 %8167 }
 0x7f5   : > { %vm8218_vm11 = vcmp.eq.s32.totalorder %v18634_v41, %v18579_v39 }
 0x7f6   : > { %9418 = vrot.lane.b32.xlu1 %v9354_v31, %s13308_s28  ;;  %v9360_v31 = vld [vmem:[%s13558_s24 + $0x30] sm:$0xff]  ;;  %v18638_v44 = vpop.permute.xlu0 %8134  ;;  %v18794_v41 = vsel %vm8218_vm11, 1.0, %v22169_v21 }
 0x7f7   : > { %12627 = vset.pattern.permute.xlu1 %v22060_v18  ;;  %v9362_v18 = vld [vmem:[%s13558_s24 + $0x40] sm:$0xff]  ;;  %22179 = vst [vmem:[#allocation178_spill] sm:$0xff] %v18794_v41  ;;  %vm8207_vm6 = vcmp.eq.s32.totalorder %v18638_v44, %v18579_v39 }
 0x7f8   : > { %v18641_v9 = vpop.permute.xlu1 %8176 }
 0x7f9   : > { %vm8221_vm4 = vcmp.eq.s32.totalorder %v18641_v9, %v18579_v39  ;;  %v18785_v9 = vsel %vm8213_vm8, 1.0, %v22169_v21 }
 0x7fa   : > { %9422 = vrot.lane.b32.xlu1 %v9356_v24, %s13308_s28  ;;  %v9364_v24 = vld [vmem:[%s13558_s24 + $0x50] sm:$0xff]  ;;  %v18645_v35 = vpop.permute.xlu0 %8137  ;;  %22176 = vst [vmem:[#allocation183_spill] sm:$0xff] %v18785_v9  ;;  %v18797_v29 = vsel %vm8221_vm4, 1.0, %v22169_v21 }
 0x7fb   : > { %22180 = vst [vmem:[#allocation35_spill] sm:$0xff] %v18797_v29  ;;  %vm8208_vm7 = vcmp.eq.s32.totalorder %v18645_v35, %v18579_v39  ;;  %v18838_v35 = vsel %vm8205_vm3, 1.0, %v22169_v21  ;;  %vm8346_vm3 = vcmp.gt.f32.partialorder %v18744_v34, 0.0 }
 0x7fc   : > { %22186 = vst [vmem:[#allocation33_spill] sm:$0xff] %v18838_v35  ;;  %v18850_v8 = vsel %vm8208_vm7, 1.0, %v22169_v21  ;;  %vm8350_vm7 = vcmp.gt.f32.partialorder %v18750_v15, 0.0 }
 0x7fd   : > { %22188 = vst [vmem:[#allocation192_spill] sm:$0xff] %v18850_v8  ;;  %vm8352_vm12 = vcmp.gt.f32.partialorder %v18850_v8, 0.0 }
 0x7fe   : > { %9426 = vrot.lane.b32.xlu1 %v9358_v3, %s13308_s28  ;;  %v18648_v3 = vpop.permute.xlu1 %8179 }
 0x7ff   : > { %vm8222_vm13 = vcmp.eq.s32.totalorder %v18648_v3, %v18579_v39 }
 0x800   : > { %v18800_v26 = vsel %vm8222_vm13, 1.0, %v22169_v21 }
 0x801   : > { %22181 = vst [vmem:[#allocation40_spill] sm:$0xff] %v18800_v26 }
 0x802   : > { %9430 = vrot.lane.b32.xlu1 %v9360_v31, %s13308_s28  ;;  %v18652_v31 = vpop.permute.xlu0 %8146  ;;  %v18655_v55 = vpop.permute.xlu1 %8188 }
 0x803   : > { %vm8225_vm0 = vcmp.eq.s32.totalorder %v18655_v55, %v18579_v39  ;;  %v18791_v55 = vsel %vm8217_vm10, 1.0, %v22169_v21  ;;  %vm8211_vm8 = vcmp.eq.s32.totalorder %v18652_v31, %v18579_v39 }
 0x804   : > { %22178 = vst [vmem:[#allocation29_spill] sm:$0xff] %v18791_v55  ;;  %v18806_v3 = vsel %vm8225_vm0, 1.0, %v22169_v21 }
 0x805   : > { %22182 = vst [vmem:[#allocation180_spill] sm:$0xff] %v18806_v3 }
 0x806   : > { %9434 = vrot.lane.b32.xlu1 %v9362_v18, %s13308_s28  ;;  %v9370_v18 = vld [vmem:[%s13558_s24 + $0x80] sm:$0xff]  ;;  %v18659_v11 = vpop.permute.xlu0 %8149 }
 0x807   : > { %vm8212_vm9 = vcmp.eq.s32.totalorder %v18659_v11, %v18579_v39 }
 0x808   : > { %v18856_v11 = vsel %vm8212_vm9, 1.0, %v22169_v21  ;;  %vm8348_vm9 = vcmp.gt.f32.partialorder %v18747_v14, 0.0 }
 0x809   : > { %22190 = vst [vmem:[#allocation44_spill] sm:$0xff] %v18856_v11 }
 0x80a   : > { %9438 = vrot.lane.b32.xlu1 %v9364_v24, %s13308_s28  ;;  %v18662_v24 = vpop.permute.xlu1 %8191 }
 0x80b   : > { %vm8226_vm1 = vcmp.eq.s32.totalorder %v18662_v24, %v18579_v39  ;;  %v18809_v24 = vsel %vm8201_vm5, 1.0, %v22169_v21 }
 0x80c   : > { %22183 = vst [vmem:[#allocation34_spill] sm:$0xff] %v18809_v24  ;;  %v18812_v4 = vsel %vm8226_vm1, 1.0, %v22169_v21  ;;  %vm8342_vm1 = vcmp.gt.f32.partialorder %v18738_v7, 0.0 }
 0x80d   : > { %22184 = vst [vmem:[#allocation191_spill] sm:$0xff] %v18812_v4 }
 0x80e   : > { %9442 = vrot.lane.b32.xlu1 %v9366_v19, %s13308_s28  ;;  %v18666_v19 = vpop.permute.xlu0 %8158 }
 0x80f   : > { %vm8215_vm10 = vcmp.eq.s32.totalorder %v18666_v19, %v18579_v39 }
 0x810   : > { %v18861_v19 = vsel %vm8215_vm10, 1.0, %v22169_v21 }
 0x811   : > { %22191 = vst [vmem:[#allocation60_spill] sm:$0xff] %v18861_v19 }
 0x812   : > { %9446 = vrot.lane.b32.xlu1 %v9368_v59, %s13308_s28  ;;  %v18675_v22 = vpop.permute.xlu0 %8161 }
 0x813   : > { %vm8216_vm11 = vcmp.eq.s32.totalorder %v18675_v22, %v18579_v39  ;;  %v18847_v22 = vsel %vm8207_vm6, 1.0, %v22169_v21  ;;  %vm8344_vm6 = vcmp.gt.f32.partialorder %v18741_v42, 0.0 }
 0x814   : > { %22187 = vst [vmem:[#allocation190_spill] sm:$0xff] %v18847_v22 }
 0x816   : > { %9450 = vrot.lane.b32.xlu1 %v9370_v18, %s13308_s28 }
 0x818   : > { %v18668_v60 = vpop.permute.xlu1 %8384 }
 0x819   : > { %v8534_v7 = vsel %vm8342_vm1, %v18668_v60, -1e+30  ;;  %vm8357_vm1 = vcmp.gt.f32.partialorder %v18785_v9, 0.0 }
 0x81a   : > { %9454 = vrot.lane.b32.xlu1 %v9372_v56, %s13308_s28  ;;  %v18682_v56 = vpop.permute.xlu0 %8170 }
 0x81b   : > { %vm8219_vm4 = vcmp.eq.s32.totalorder %v18682_v56, %v18579_v39 }
 0x81c   : > { %v18672_v59 = vpop.permute.xlu1 %8374 }
 0x81e   : > { %9458 = vrot.lane.b32.xlu1 %v9374_v6, %s13308_s28  ;;  %v18691_v23 = vpop.permute.xlu0 %8173 }
 0x81f   : > { %vm8220_vm13 = vcmp.eq.s32.totalorder %v18691_v23, %v18579_v39  ;;  %v18853_v23 = vsel %vm8211_vm8, 1.0, %v22169_v21  ;;  %vm8340_vm8 = vcmp.gt.f32.partialorder %v18599_v43, 0.0 }
 0x820   : > { %v18678_v18 = vpop.permute.xlu1 %8389  ;;  %22189 = vst [vmem:[#allocation39_spill] sm:$0xff] %v18853_v23  ;;  %v18870_v56 = vsel %vm8220_vm13, 1.0, %v22169_v21  ;;  %vm8347_vm13 = vcmp.gt.f32.partialorder %v18815_v1, 0.0  ;;  %v8532_v36 = vsel %vm8340_vm8, %v18672_v59, -1e+30  ;;  %vm8355_vm10 = vcmp.gt.f32.partialorder %v18853_v23, 0.0 }
 0x821   : > { %22194 = vst [vmem:[#allocation205_spill] sm:$0xff] %v18870_v56  ;;  %vm8356_vm8 = vcmp.gt.f32.partialorder %v18856_v11, 0.0  ;;  %v22304_v23 = vld [vmem:[#allocation124_spill] sm:$0xff] }
 0x822   : > { %9462 = vrot.lane.b32.xlu1 %v9376_v32, %s13308_s28  ;;  %v9384_v32 = vld [vmem:[%s13558_s24 + $0xf0] sm:$0xff] }
 0x824   : > { %v18684_v10 = vpop.permute.xlu1 %8409 }
 0x825   : > { %v8539_v1 = vsel %vm8347_vm13, %v18684_v10, -1e+30  ;;  %v8565_v10 = vsel %vm8564_vm14, %v8532_v36, -inf  ;;  %vm8365_vm13 = vcmp.gt.f32.partialorder %v18797_v29, 0.0 }
 0x826   : > { %9466 = vrot.lane.b32.xlu1 %v9378_v57, %s13308_s28  ;;  %v18698_v57 = vpop.permute.xlu0 %8182  ;;  %v8575_v15 = vsel %vm8564_vm14, %v8539_v1, -inf }
 0x827   : > { %vm8223_vm15 = vcmp.eq.s32.totalorder %v18698_v57, %v18579_v39 }
 0x828   : > { %v18688_v6 = vpop.permute.xlu1 %8399  ;;  %v18873_v57 = vsel %vm8223_vm15, 1.0, %v22169_v21  ;;  %vm8345_vm15 = vcmp.gt.f32.partialorder %v18809_v24, 0.0 }
 0x829   : > { %22195 = vst [vmem:[#allocation54_spill] sm:$0xff] %v18873_v57  ;;  %v8537_v43 = vsel %vm8345_vm15, %v18688_v6, -1e+30  ;;  %v8567_v6 = vsel %vm8564_vm14, %v8534_v7, -inf  ;;  %vm22198_vm15 = vcmp.gt.f32.partialorder %v18753_v50, 0.0 }
 0x82a   : > { %9470 = vrot.lane.b32.xlu1 %v9380_v47, %s13308_s28  ;;  %v18702_v49 = vpop.permute.xlu0 %8185  ;;  %v8571_v24 = vsel %vm8564_vm14, %v8537_v43, -inf }
 0x82b   : > { %vm8224_vm0 = vcmp.eq.s32.totalorder %v18702_v49, %v18579_v39  ;;  %v18864_v49 = vsel %vm8216_vm11, 1.0, %v22169_v21  ;;  %vm8354_vm11 = vcmp.gt.f32.partialorder %v18776_v46, 0.0 }
 0x82c   : > { %22192 = vst [vmem:[#allocation58_spill] sm:$0xff] %v18864_v49  ;;  %v18876_v48 = vsel %vm8224_vm0, 1.0, %v22169_v21  ;;  %vm8349_vm0 = vcmp.gt.f32.partialorder %v18838_v35, 0.0 }
 0x82d   : > { %22196 = vst [vmem:[#allocation49_spill] sm:$0xff] %v18876_v48 }
 0x82e   : > { %9474 = vrot.lane.b32.xlu1 %v9382_v58, %s13308_s28  ;;  %v18708_v25 = vpop.permute.xlu0 %8194 }
 0x82f   : > { %vm8227_vm5 = vcmp.eq.s32.totalorder %v18708_v25, %v18579_v39  ;;  %v18867_v25 = vsel %vm8219_vm4, 1.0, %v22169_v21  ;;  %vm8343_vm4 = vcmp.gt.f32.partialorder %v18803_v33, 0.0 }
 0x830   : > { %22193 = vst [vmem:[#allocation63_spill] sm:$0xff] %v18867_v25  ;;  %v18879_v37 = vsel %vm8227_vm5, 1.0, %v22169_v21  ;;  %vm8351_vm5 = vcmp.gt.f32.partialorder %v18847_v22, 0.0  ;;  %v8535_v34 = vsel %vm8343_vm4, %v18678_v18, -1e+30  ;;  %vm8362_vm4 = vcmp.gt.f32.partialorder %v18794_v41, 0.0 }
 0x831   : > { %v18695_v20 = vpop.permute.xlu1 %8424  ;;  %22197 = vst [vmem:[#allocation57_spill] sm:$0xff] %v18879_v37 }
 0x832   : > { %9478 = vrot.lane.b32.xlu1 %v9384_v32, %s13308_s28  ;;  %v18712_v58 = vpop.permute.xlu0 %8379  ;;  %v8542_v7 = vsel %vm8350_vm7, %v18695_v20, -1e+30  ;;  %vm8360_vm7 = vcmp.gt.f32.partialorder %v18864_v49, 0.0 }
 0x833   : > { %v8533_v17 = vsel %vm8341_vm2, %v18712_v58, -1e+30  ;;  %vm8358_vm2 = vcmp.gt.f32.partialorder %v18788_v53, 0.0  ;;  %v9379_v53 = vld [vmem:[%s13558_s24 + $0xc8] sm:$0xff] }
 0x835   : > { %v18700_v40 = vpop.permute.xlu1 %8414 }
 0x836   : > { %v18730_v32 = vpop.permute.xlu0 %8404  ;;  %v8540_v18 = vsel %vm8348_vm9, %v18700_v40, -1e+30  ;;  %vm8363_vm9 = vcmp.gt.f32.partialorder %v18867_v25, 0.0  ;;  %v22237_v25 = vld [vmem:[#allocation141_spill] sm:$0xff] }
 0x837   : > { %v8538_v60 = vsel %vm8346_vm3, %v18730_v32, -1e+30  ;;  %v8566_v32 = vsel %vm8564_vm14, %v8533_v17, -inf  ;;  %vm8361_vm3 = vcmp.gt.f32.partialorder %v18791_v55, 0.0  ;;  %v22241_v55 = vld [vmem:[#allocation111_spill] sm:$0xff] }
 0x838   : > { %v8572_v40 = vmax.f32 %v8566_v32, %v8571_v24  ;;  %v8577_v24 = vsel %vm8564_vm14, %v8540_v18, -inf }
 0x839   : > { %v18704_v63 = vpop.permute.xlu1 %8429 }
 0x83a   : > { %v8395_v51 = vpop.permute.xlu0 %8394  ;;  %v8543_v36 = vsel %vm8351_vm5, %v18704_v63, -1e+30  ;;  %vm8364_vm5 = vcmp.gt.f32.partialorder %v18870_v56, 0.0 }
 0x83b   : > { %v8536_v58 = vsel %vm8344_vm6, %v8395_v51, -1e+30  ;;  %vm8359_vm6 = vcmp.gt.f32.partialorder %v18861_v19, 0.0  ;;  %v8573_v51 = vsel %vm8564_vm14, %v8538_v60, -inf  ;;  %v8581_v60 = vsel %vm8564_vm14, %v8542_v7, -inf }
 0x83c   : > { %v8569_v20 = vsel %vm8564_vm14, %v8536_v58, -inf  ;;  %v8574_v46 = vmax.f32 %v8567_v6, %v8573_v51  ;;  %v8583_v7 = vsel %vm8564_vm14, %v8543_v36, -inf }
 0x83d   : > { %v18706_v47 = vpop.permute.xlu1 %8444  ;;  %v8570_v32 = vmax.f32 %v8565_v10, %v8569_v20 }
 0x83e   : > { %v8420_v44 = vpop.permute.xlu0 %8419  ;;  %v8582_v35 = vmax.f32 %v8574_v46, %v8581_v60 }
 0x83f   : > { %v8541_v17 = vsel %vm8349_vm0, %v8420_v44, -1e+30  ;;  %v8546_v44 = vsel %vm8354_vm11, %v18706_v47, -1e+30  ;;  %vm8366_vm0 = vcmp.gt.f32.partialorder %v18800_v26, 0.0  ;;  %v8568_v47 = vsel %vm8564_vm14, %v8535_v34, -inf }
 0x840   : > { %v8579_v22 = vsel %vm8564_vm14, %v8541_v17, -inf  ;;  %v8576_v8 = vmax.f32 %v8568_v47, %v8575_v15  ;;  %v8578_v17 = vmax.f32 %v8570_v32, %v8577_v24  ;;  %vm8370_vm11 = vcmp.gt.f32.partialorder %v18812_v4, 0.0 }
 0x841   : > { %v18710_v30 = vpop.permute.xlu1 %8434  ;;  %v8580_v51 = vmax.f32 %v8572_v40, %v8579_v22 }
 0x842   : > { %v8440_v12 = vpop.permute.xlu0 %8439  ;;  %v8544_v1 = vsel %vm8352_vm12, %v18710_v30, -1e+30  ;;  %vm8367_vm12 = vcmp.gt.f32.partialorder %v18873_v57, 0.0 }
 0x843   : > { %v8545_v58 = vsel %vm22198_vm15, %v8440_v12, -1e+30  ;;  %v8589_v12 = vsel %vm8564_vm14, %v8546_v44, -inf  ;;  %v8585_v6 = vsel %vm8564_vm14, %v8544_v1, -inf }
 0x844   : > { %v8587_v34 = vsel %vm8564_vm14, %v8545_v58, -inf  ;;  %v8590_v36 = vmax.f32 %v8582_v35, %v8589_v12  ;;  %v8586_v44 = vmax.f32 %v8578_v17, %v8585_v6 }
 0x845   : > { %v18714_v45 = vpop.permute.xlu1 %8449  ;;  %v8588_v22 = vmax.f32 %v8580_v51, %v8587_v34 }
 0x846   : > { %v8547_v30 = vsel %vm8355_vm10, %v18714_v45, -1e+30  ;;  %vm8369_vm10 = vcmp.gt.f32.partialorder %v18806_v3, 0.0  ;;  %v8584_v45 = vmax.f32 %v8576_v8, %v8583_v7 }
 0x847   : > { %v8591_v15 = vsel %vm8564_vm14, %v8547_v30, -inf }
 0x849   : > { %v18732_v2 = vpop.permute.xlu1 %8464 }
 0x84a   : > { %v8550_v18 = vsel %vm8358_vm2, %v18732_v2, -1e+30  ;;  %vm8371_vm2 = vcmp.gt.f32.partialorder %v18879_v37, 0.0  ;;  %v22229_v37 = vld [vmem:[#allocation102_spill] sm:$0xff] }
 0x84b   : > { %v8597_v8 = vsel %vm8564_vm14, %v8550_v18, -inf }
 0x84c   : > { %v8460_v0 = vpop.permute.xlu0 %8459  ;;  %v8598_v12 = vmax.f32 %v8590_v36, %v8597_v8 }
 0x84d   : > { %v18773_v52 = vpop.permute.xlu1 %8454  ;;  %v8549_v10 = vsel %vm8357_vm1, %v8460_v0, -1e+30  ;;  %vm8368_vm1 = vcmp.gt.f32.partialorder %v18876_v48, 0.0 }
 0x84e   : > { %v8548_v46 = vsel %vm8356_vm8, %v18773_v52, -1e+30  ;;  %v8595_v35 = vsel %vm8564_vm14, %v8549_v10, -inf }
 0x84f   : > { %v8593_v58 = vsel %vm8564_vm14, %v8548_v46, -inf  ;;  %v8596_v7 = vmax.f32 %v8588_v22, %v8595_v35 }
 0x850   : > { %v8594_v34 = vmax.f32 %v8586_v44, %v8593_v58 }
 0x851   : > { %v18819_v5 = vpop.permute.xlu1 %8469 }
 0x852   : > { %v8551_v2 = vsel %vm8359_vm6, %v18819_v5, -1e+30  ;;  %vm21100_vm6 = vcmask 2048  }
 0x853   : > { %v8599_v32 = vsel %vm8564_vm14, %v8551_v2, -inf }
 0x854   : > { %v8480_v43 = vpop.permute.xlu0 %8479 }
 0x855   : > { %v18858_v31 = vpop.permute.xlu1 %8484  ;;  %v8553_v0 = vsel %vm8361_vm3, %v8480_v43, -1e+30  ;;  %v8592_v43 = vmax.f32 %v8584_v45, %v8591_v15  ;;  %vm8636_vm3 = vcmask 18432  }
 0x856   : > { %v8554_v52 = vsel %vm8362_vm4, %v18858_v31, -1e+30  ;;  %v8603_v24 = vsel %vm8564_vm14, %v8553_v0, -inf  ;;  %vm8741_vm4 = vcmask 1042432  }
 0x857   : > { %v8605_v30 = vsel %vm8564_vm14, %v8554_v52, -inf  ;;  %v8604_v17 = vmax.f32 %v8596_v7, %v8603_v24  ;;  %v8600_v10 = vmax.f32 %v8592_v43, %v8599_v32 }
 0x858   : > { %v8606_v36 = vmax.f32 %v8598_v12, %v8605_v30 }
 0x859   : > { %v18890_v21 = vpop.permute.xlu1 %8474 }
 0x85a   : > { %v8552_v60 = vsel %vm8360_vm7, %v18890_v21, -1e+30  ;;  %vm21102_vm7 = vcmask 162816  }
 0x85d   : > { %v18913_v59 = vpop.permute.xlu1 %8489  ;;  %v8500_v50 = vpop.permute.xlu0 %8499 }
 0x85e   : > { %v8557_v5 = vsel %vm8365_vm13, %v8500_v50, -1e+30  ;;  %v8555_v1 = vsel %vm8363_vm9, %v18913_v59, -1e+30  ;;  %v8601_v50 = vsel %vm8564_vm14, %v8552_v60, -inf  ;;  %vm21101_vm13 = vcmask 228352  }
 0x85f   : > { %v8611_v59 = vsel %vm8564_vm14, %v8557_v5, -inf  ;;  %v8607_v6 = vsel %vm8564_vm14, %v8555_v1, -inf  ;;  %v8602_v15 = vmax.f32 %v8594_v34, %v8601_v50 }
 0x860   : > { %v8612_v22 = vmax.f32 %v8604_v17, %v8611_v59  ;;  %v8608_v44 = vmax.f32 %v8600_v10, %v8607_v6 }
 0x861   : > { %v8505_v63 = vpop.permute.xlu1 %8504 }
 0x862   : > { %v8558_v31 = vsel %vm8366_vm0, %v8505_v63, -1e+30 }
 0x863   : > { %v8515_v40 = vpop.permute.xlu0 %8514  ;;  %v8613_v18 = vsel %vm8564_vm14, %v8558_v31, -inf }
 0x864   : > { %v8560_v35 = vsel %vm8368_vm1, %v8515_v40, -1e+30  ;;  %v8614_v52 = vmax.f32 %v8606_v36, %v8613_v18  ;;  %v19021_v40 = vld [vmem:[%s22199_s19] ss:$0 sm:$0xff] }
 0x865   : > { %v8495_v20 = vpop.permute.xlu1 %8494 }
 0x866   : > { %v8556_v21 = vsel %vm8364_vm5, %v8495_v20, -1e+30 }
 0x867   : > { %v8525_v63 = vpop.permute.xlu0 %8524  ;;  %v8609_v20 = vsel %vm8564_vm14, %v8556_v21, -inf }
 0x868   : > { %v8562_v8 = vsel %vm8370_vm11, %v8525_v63, -1e+30  ;;  %v8610_v60 = vmax.f32 %v8602_v15, %v8609_v20 }
 0x869   : > { %v8510_v47 = vpop.permute.xlu1 %8509  ;;  %v8621_v24 = vsel %vm8564_vm14, %v8562_v8, -inf }
 0x86a   : > { %v8559_v51 = vsel %vm8367_vm12, %v8510_v47, -1e+30  ;;  %v8617_v47 = vsel %vm8564_vm14, %v8560_v35, -inf  ;;  %v8622_v31 = vmax.f32 %v8614_v52, %v8621_v24 }
 0x86b   : > { %v8615_v0 = vsel %vm8564_vm14, %v8559_v51, -inf  ;;  %v8618_v21 = vmax.f32 %v8610_v60, %v8617_v47 }
 0x86c   : > { %v8616_v58 = vmax.f32 %v8608_v44, %v8615_v0 }
 0x86d   : > { %v8520_v45 = vpop.permute.xlu1 %8519 }
 0x86e   : > { %v8561_v46 = vsel %vm8369_vm10, %v8520_v45, -1e+30 }
 0x86f   : > { %v8619_v2 = vsel %vm8564_vm14, %v8561_v46, -inf }
 0x870   : > { %v8620_v5 = vmax.f32 %v8612_v22, %v8619_v2 }
 0x871   : > { %v8530_v43 = vpop.permute.xlu1 %8529 }
 0x872   : > { %v8563_v1 = vsel %vm8371_vm2, %v8530_v43, -1e+30  ;;  %v12254_v12 = vpop.f32.mrb[0].mxu0  ;;  %v8625_v30 = vmax.f32 %v8618_v21, %v8620_v5  ;;  %v22200_v21 = vld [vmem:[#allocation12_spill] sm:$0xff] }
 0x873   : > { %v8623_v32 = vsel %vm8564_vm14, %v8563_v1, -inf  ;;  %v7659_v34 = vadd.f32 %v12254_v12, %v19021_v40  ;;  %v7650_v59 = vpop.f32.mrb[1].mxu0  ;;  %vm8634_vm8 = vcmp.eq.s32.totalorder %v22200_v21, %v18579_v39 }
 0x874   : > { %v8624_v7 = vmax.f32 %v8616_v58, %v8623_v32  ;;  %v7651_v6 = vadd.f32 %v19021_v40, %v7650_v59  ;;  %v12255_v51 = vpop.f32.mrb[2].mxu0 }
 0x875   : > { %v10979_v10 = vmul.f32 -1.442695, %v7659_v34  ;;  %v7662_v63 = vadd.f32 %v12255_v51, %v19021_v40  ;;  %v7653_v18 = vpop.f32.mrb[3].mxu0 }
 0x876   : > { %v8626_v50 = vmax.f32 %v8622_v31, %v8624_v7  ;;  %v10977_v20 = vmul.f32 -1.442695, %v7651_v6  ;;  %v7654_v45 = vadd.f32 %v19021_v40, %v7653_v18 }
 0x877   : > { %13019 = vpow2.f32 %v10979_v10  ;;  %v10980_v36 = vmul.f32 -1.442695, %v7662_v63 }
 0x878   : > { %v8627_v17 = vmax.f32 %v8625_v30, %v8626_v50  ;;  %13021 = vpow2.f32 %v10977_v20  ;;  %v10978_v46 = vmul.f32 -1.442695, %v7654_v45 }
 0x879   : > { %13023 = vpow2.f32 %v10980_v36 }
 0x87a   : > { %v8628_v15 = vrot.slane %v8627_v17, 4  ;;  %13025 = vpow2.f32 %v10978_v46 }
 0x87b   : > { %v12258_v44 = vpop.f32.mrb[4].mxu0 }
 0x87c   : > { %v8629_v22 = vmax.f32 %v8627_v17, %v8628_v15  ;;  %v7675_v0 = vadd.f32 %v12258_v44, %v19021_v40  ;;  %v7666_v2 = vpop.f32.mrb[5].mxu0 }
 0x87d   : > { %v7667_v8 = vadd.f32 %v19021_v40, %v7666_v2  ;;  %v12259_v52 = vpop.f32.mrb[6].mxu0 }
 0x87e   : > { %v8630_v35 = vrot.slane %v8629_v22, 2  ;;  %v10983_v60 = vmul.f32 -1.442695, %v7675_v0  ;;  %v7678_v43 = vadd.f32 %v12259_v52, %v19021_v40  ;;  %v7669_v58 = vpop.f32.mrb[7].mxu0 }
 0x87f   : > { %v10981_v1 = vmul.f32 -1.442695, %v7667_v8  ;;  %v7670_v47 = vadd.f32 %v19021_v40, %v7669_v58 }
 0x880   : > { %v8631_v5 = vmax.f32 %v8629_v22, %v8630_v35  ;;  %13027 = vpow2.f32 %v10983_v60  ;;  %v10984_v24 = vmul.f32 -1.442695, %v7678_v43 }
 0x881   : > { %13029 = vpow2.f32 %v10981_v1  ;;  %v10982_v31 = vmul.f32 -1.442695, %v7670_v47  ;;  %v13020_v7 = vpop.eup %13019 }
 0x882   : > { %v8632_v32 = vrot.slane %v8631_v5, 1  ;;  %13031 = vpow2.f32 %v10984_v24  ;;  %v13022_v30 = vpop.eup %13021  ;;  %v7875_v50 = vadd.f32 1.0, %v13020_v7 }
 0x883   : > { %13033 = vpow2.f32 %v10982_v31  ;;  %v13024_v34 = vpop.eup %13023  ;;  %v7873_v59 = vadd.f32 1.0, %v13022_v30 }
 0x884   : > { %v8633_v12 = vmax.f32 %v8631_v5, %v8632_v32  ;;  %v13026_v51 = vpop.eup %13025  ;;  %13035 = vrcp.f32 %v7875_v50  ;;  %v7876_v17 = vadd.f32 1.0, %v13024_v34 }
 0x885   : > { %13037 = vrcp.f32 %v7873_v59  ;;  %v7874_v63 = vadd.f32 1.0, %v13026_v51 }
 0x886   : > { %v8635_v6 = vsel %vm8634_vm8, %v8633_v12, -3e+38  ;;  %13039 = vrcp.f32 %v7876_v17  ;;  %v22203_v17 = vld [vmem:[#allocation196_spill] sm:$0xff] }
 0x887   : > { %v8637_v10 = vsel %vm8636_vm3, %v8635_v6, -inf  ;;  %13041 = vrcp.f32 %v7874_v63 }
 0x888   : > { %8638 = vmax.xlane.f32.xlu0 %v8637_v10 }
 0x88a   : > { %v13028_v18 = vpop.eup %13027 }
 0x88b   : > { %v12262_v39 = vpop.f32.mrb[8].mxu0  ;;  %v13030_v36 = vpop.eup %13029  ;;  %v7879_v15 = vadd.f32 1.0, %v13028_v18 }
 0x88c   : > { %v7691_v20 = vadd.f32 %v12262_v39, %v19021_v40  ;;  %v7682_v45 = vpop.f32.mrb[9].mxu0  ;;  %v13032_v44 = vpop.eup %13031  ;;  %v7877_v0 = vadd.f32 1.0, %v13030_v36 }
 0x88d   : > { %v7683_v46 = vadd.f32 %v19021_v40, %v7682_v45  ;;  %v12263_v22 = vpop.f32.mrb[10].mxu0  ;;  %v13034_v8 = vpop.eup %13033  ;;  %13043 = vrcp.f32 %v7879_v15  ;;  %v7880_v52 = vadd.f32 1.0, %v13032_v44 }
 0x88e   : > { %v7694_v2 = vadd.f32 %v12263_v22, %v19021_v40  ;;  %v7685_v35 = vpop.f32.mrb[11].mxu0  ;;  %v10987_v60 = vmul.f32 -1.442695, %v7691_v20  ;;  %13045 = vrcp.f32 %v7877_v0  ;;  %v7878_v58 = vadd.f32 1.0, %v13034_v8  ;;  %v13036_v1 = vpop.eup %13035 }
 0x88f   : > { %v7686_v43 = vadd.f32 %v19021_v40, %v7685_v35  ;;  %v10985_v5 = vmul.f32 -1.442695, %v7683_v46  ;;  %13047 = vrcp.f32 %v7880_v52  ;;  %v13038_v24 = vpop.eup %13037  ;;  %v7971_v31 = vmul.f32 %v13036_v1, %v18090_v62 }
 0x890   : > { %v10988_v47 = vmul.f32 -1.442695, %v7694_v2  ;;  %13049 = vrcp.f32 %v7878_v58  ;;  %v19039_v7 = vmul.f32 %v13036_v1, %v18315_v27  ;;  %v13040_v12 = vpop.eup %13039  ;;  %v7969_v30 = vmul.f32 %v13038_v24, %v18104_v28  ;;  %v22201_v28 = vld [vmem:[#allocation13_spill] sm:$0xff]  ;;  %v22205_v2 = vld [vmem:[#allocation175_spill] sm:$0xff] }
 0x891   : > { %v10986_v32 = vmul.f32 -1.442695, %v7686_v43  ;;  %13051 = vpow2.f32 %v10987_v60  ;;  %v8001_v50 = vmul.f32 %v13038_v24, %v18317_v16  ;;  %v8033_v34 = vmul.f32 %v13038_v24, %v18381_v38  ;;  %v13042_v59 = vpop.eup %13041  ;;  %9550 = vrot.lane.b32.xlu1 %v7971_v31, %s13309_s20  ;;  %v22202_v16 = vld [vmem:[#allocation174_spill] sm:$0xff]  ;;  %v9355_v60 = vld [vmem:[%s13558_s24 + $0x8] sm:$0xff]  ;;  %v22206_v43 = vld [vmem:[#allocation121_spill] sm:$0xff] }
 0x892   : > { %13053 = vpow2.f32 %v10985_v5  ;;  %v19046_v6 = vmul.f32 %v13040_v12, %v18111_v61  ;;  %v19049_v62 = vmul.f32 %v13040_v12, %v18319_v13  ;;  %v19052_v27 = vmul.f32 %v13040_v12, %v18383_v54  ;;  %v22204_v61 = vld [vmem:[#allocation133_spill] sm:$0xff]  ;;  %v22207_v5 = vld [vmem:[#allocation19_spill] sm:$0xff] }
 0x893   : > { %13055 = vpow2.f32 %v10988_v47  ;;  %v19055_v51 = vmul.f32 %v13036_v1, %v22201_v28  ;;  %v19058_v38 = vmul.f32 %v13042_v59, %v22202_v16  ;;  %v19061_v10 = vmul.f32 %v13042_v59, %v22203_v17  ;;  %v22209_v12 = vld [vmem:[#allocation123_spill] sm:$0xff]  ;;  %v22211_v17 = vld [vmem:[#allocation177_spill] sm:$0xff] }
 0x894   : > { %13057 = vpow2.f32 %v10986_v32  ;;  %v19064_v39 = vmul.f32 %v13042_v59, %v22204_v61  ;;  %v22208_v32 = vld [vmem:[#allocation101_spill] sm:$0xff]  ;;  %v22210_v28 = vld [vmem:[#allocation135_spill] sm:$0xff] }
 0x895   : > { %9546 = vrot.lane.b32.xlu1 %v7969_v30, %s13309_s20  ;;  %v22212_v61 = vld [vmem:[#allocation107_spill] sm:$0xff] }
 0x897   : > { %v12266_v63 = vpop.f32.mrb[12].mxu0  ;;  %v13044_v45 = vpop.eup %13043 }
 0x898   : > { %v7707_v13 = vadd.f32 %v12266_v63, %v19021_v40  ;;  %v7698_v54 = vpop.f32.mrb[13].mxu0  ;;  %v13046_v22 = vpop.eup %13045  ;;  %v19072_v35 = vmul.f32 %v13044_v45, %v22205_v2  ;;  %v19076_v58 = vmul.f32 %v13044_v45, %v22206_v43  ;;  %v19079_v1 = vmul.f32 %v13044_v45, %v22207_v5 }
 0x899   : > { %v7699_v18 = vadd.f32 %v19021_v40, %v7698_v54  ;;  %v12267_v20 = vpop.f32.mrb[14].mxu0  ;;  %v13048_v8 = vpop.eup %13047  ;;  %9674 = vrot.lane.b32.xlu1 %v8001_v50, %s13310_s21  ;;  %v22213_v50 = vld [vmem:[#allocation18_spill] sm:$0xff] }
 0x89a   : > { %v10991_v36 = vmul.f32 -1.442695, %v7707_v13  ;;  %v7710_v15 = vadd.f32 %v12267_v20, %v19021_v40  ;;  %v7701_v46 = vpop.f32.mrb[15].mxu0  ;;  %v13050_v47 = vpop.eup %13049  ;;  %v19083_v31 = vmul.f32 %v13048_v8, %v22208_v32  ;;  %v19086_v30 = vmul.f32 %v13048_v8, %v22209_v12 }
 0x89b   : > { %v10989_v44 = vmul.f32 -1.442695, %v7699_v18  ;;  %v7702_v0 = vadd.f32 %v19021_v40, %v7701_v46  ;;  %v13052_v59 = vpop.eup %13051  ;;  %v19089_v16 = vmul.f32 %v13048_v8, %v22210_v28  ;;  %v19092_v63 = vmul.f32 %v13050_v47, %v22211_v17  ;;  %v22214_v46 = vld [vmem:[#allocation176_spill] sm:$0xff] }
 0x89c   : > { %13059 = vpow2.f32 %v10991_v36  ;;  %v10992_v52 = vmul.f32 -1.442695, %v7710_v15  ;;  %v19095_v13 = vmul.f32 %v13050_v47, %v22212_v61  ;;  %v13054_v54 = vpop.eup %13053  ;;  %v7883_v18 = vadd.f32 1.0, %v13052_v59  ;;  %v9357_v15 = vld [vmem:[%s13558_s24 + $0x18] sm:$0xff]  ;;  %v22216_v8 = vld [vmem:[#allocation24_spill] sm:$0xff]  ;;  %v9359_v59 = vld [vmem:[%s13558_s24 + $0x28] sm:$0xff] }
 0x89d   : > { %13061 = vpow2.f32 %v10989_v44  ;;  %v10990_v24 = vmul.f32 -1.442695, %v7702_v0  ;;  %v19099_v20 = vmul.f32 %v13050_v47, %v22213_v50  ;;  %v13056_v45 = vpop.eup %13055  ;;  %v7881_v36 = vadd.f32 1.0, %v13054_v54  ;;  %v22215_v0 = vld [vmem:[#allocation197_spill] sm:$0xff]  ;;  %9802 = vrot.lane.b32.xlu1 %v8033_v34, %s13311_s22 }
 0x89e   : > { %13063 = vpow2.f32 %v10992_v52  ;;  %9420 = vrot.lane.b32.xlu0 %v9355_v60, %s13308_s28  ;;  %v19103_v44 = vmul.f32 %v13046_v22, %v22214_v46  ;;  %v19106_v2 = vmul.f32 %v13046_v22, %v22215_v0  ;;  %v19109_v52 = vmul.f32 %v13046_v22, %v22216_v8  ;;  %v13058_v43 = vpop.eup %13057  ;;  %v9361_v46 = vld [vmem:[%s13558_s24 + $0x38] sm:$0xff] }
 0x89f   : > { %13065 = vpow2.f32 %v10990_v24  ;;  %v7884_v5 = vadd.f32 1.0, %v13056_v45  ;;  %v7882_v60 = vadd.f32 1.0, %v13058_v43 }
 0x8a0   : > { %13067 = vrcp.f32 %v7883_v18 }
 0x8a1   : > { %13069 = vrcp.f32 %v7881_v36  ;;  %9552 = vrot.lane.b32.xlu1 %v19046_v6, %s13309_s20 }
 0x8a2   : > { %13071 = vrcp.f32 %v7884_v5  ;;  %9424 = vrot.lane.b32.xlu0 %v9357_v15, %s13308_s28 }
 0x8a3   : > { %v12270_v47 = vpop.f32.mrb[16].mxu0  ;;  %13073 = vrcp.f32 %v7882_v60 }
 0x8a4   : > { %v7723_v24 = vadd.f32 %v12270_v47, %v19021_v40  ;;  %v7714_v32 = vpop.f32.mrb[17].mxu0 }
 0x8a5   : > { %v7715_v22 = vadd.f32 %v19021_v40, %v7714_v32  ;;  %v12271_v12 = vpop.f32.mrb[18].mxu0  ;;  %9680 = vrot.lane.b32.xlu1 %v19049_v62, %s13310_s21  ;;  %v22218_v62 = vld [vmem:[#allocation90_spill] sm:$0xff] }
 0x8a6   : > { %v10995_v28 = vmul.f32 -1.442695, %v7723_v24  ;;  %v7726_v17 = vadd.f32 %v12271_v12, %v19021_v40  ;;  %v7717_v61 = vpop.f32.mrb[19].mxu0  ;;  %v13060_v34 = vpop.eup %13059  ;;  %9428 = vrot.lane.b32.xlu0 %v9359_v59, %s13308_s28 }
 0x8a7   : > { %v10993_v54 = vmul.f32 -1.442695, %v7715_v22  ;;  %v7718_v18 = vadd.f32 %v19021_v40, %v7717_v61  ;;  %v13062_v50 = vpop.eup %13061  ;;  %v7887_v45 = vadd.f32 1.0, %v13060_v34 }
 0x8a8   : > { %13075 = vpow2.f32 %v10995_v28  ;;  %v13064_v36 = vpop.eup %13063  ;;  %v7885_v15 = vadd.f32 1.0, %v13062_v50  ;;  %v10996_v43 = vmul.f32 -1.442695, %v7726_v17  ;;  %v9363_v28 = vld [vmem:[%s13558_s24 + $0x48] sm:$0xff]  ;;  %v22217_v17 = vld [vmem:[#allocation181_spill] sm:$0xff] }
 0x8a9   : > { %13077 = vpow2.f32 %v10993_v54  ;;  %v13066_v0 = vpop.eup %13065  ;;  %v7888_v8 = vadd.f32 1.0, %v13064_v36  ;;  %v10994_v5 = vmul.f32 -1.442695, %v7718_v18  ;;  %9808 = vrot.lane.b32.xlu1 %v19052_v27, %s13311_s22  ;;  %v22219_v36 = vld [vmem:[#allocation137_spill] sm:$0xff] }
 0x8aa   : > { %13079 = vrcp.f32 %v7887_v45  ;;  %v7886_v6 = vadd.f32 1.0, %v13066_v0  ;;  %v13068_v47 = vpop.eup %13067  ;;  %9432 = vrot.lane.b32.xlu0 %v9361_v46, %s13308_s28 }
 0x8ab   : > { %13081 = vrcp.f32 %v7885_v15  ;;  %v12274_v60 = vpop.f32.mrb[20].mxu0  ;;  %v13070_v22 = vpop.eup %13069  ;;  %v19129_v61 = vmul.f32 %v13068_v47, %v22217_v17  ;;  %v19132_v34 = vmul.f32 %v13068_v47, %v22218_v62  ;;  %v19138_v15 = vmul.f32 %v13068_v47, %v22219_v36  ;;  %v22222_v47 = vld [vmem:[#allocation17_spill] sm:$0xff]  ;;  %v22226_v36 = vld [vmem:[#allocation182_spill] sm:$0xff] }
 0x8ac   : > { %13083 = vrcp.f32 %v7888_v8  ;;  %v7739_v24 = vadd.f32 %v12274_v60, %v19021_v40  ;;  %v7730_v32 = vpop.f32.mrb[21].mxu0  ;;  %v13072_v54 = vpop.eup %13071 }
 0x8ad   : > { %13085 = vrcp.f32 %v7886_v6  ;;  %v7731_v12 = vadd.f32 %v19021_v40, %v7730_v32  ;;  %v12275_v59 = vpop.f32.mrb[22].mxu0  ;;  %v13074_v46 = vpop.eup %13073  ;;  %v22220_v6 = vld [vmem:[#allocation118_spill] sm:$0xff]  ;;  %v19150_v17 = vmul.f32 %v13072_v54, %v22222_v47  ;;  %9560 = vrot.lane.b32.xlu1 %v19083_v31, %s13309_s20 }
 0x8ae   : > { %13087 = vpow2.f32 %v10996_v43  ;;  %v10999_v18 = vmul.f32 -1.442695, %v7739_v24  ;;  %v7742_v50 = vadd.f32 %v12275_v59, %v19021_v40  ;;  %v7733_v45 = vpop.f32.mrb[23].mxu0  ;;  %v19142_v60 = vmul.f32 %v13072_v54, %v22220_v6  ;;  %9436 = vrot.lane.b32.xlu0 %v9363_v28, %s13308_s28  ;;  %v22221_v24 = vld [vmem:[#allocation198_spill] sm:$0xff]  ;;  %v9365_v59 = vld [vmem:[%s13558_s24 + $0x58] sm:$0xff] }
 0x8af   : > { %13089 = vpow2.f32 %v10994_v5  ;;  %v10997_v0 = vmul.f32 -1.442695, %v7731_v12  ;;  %v7734_v8 = vadd.f32 %v19021_v40, %v7733_v45  ;;  %v19146_v32 = vmul.f32 %v13072_v54, %v22221_v24  ;;  %v22223_v5 = vld [vmem:[#allocation120_spill] sm:$0xff]  ;;  %v22225_v28 = vld [vmem:[#allocation138_spill] sm:$0xff] }
 0x8b0   : > { %13091 = vpow2.f32 %v10999_v18  ;;  %v11000_v43 = vmul.f32 -1.442695, %v7742_v50  ;;  %v19153_v12 = vmul.f32 %v13074_v46, %v22223_v5  ;;  %v22224_v18 = vld [vmem:[#allocation108_spill] sm:$0xff]  ;;  %v19161_v45 = vmul.f32 %v13074_v46, %v22225_v28  ;;  %v22227_v24 = vld [vmem:[#allocation94_spill] sm:$0xff] }
 0x8b1   : > { %13093 = vpow2.f32 %v10997_v0  ;;  %v10998_v27 = vmul.f32 -1.442695, %v7734_v8  ;;  %v19158_v50 = vmul.f32 %v13074_v46, %v22224_v18  ;;  %v19164_v0 = vmul.f32 %v13070_v22, %v22226_v36  ;;  %9688 = vrot.lane.b32.xlu1 %v19086_v30, %s13310_s21  ;;  %v22236_v30 = vld [vmem:[#allocation126_spill] sm:$0xff] }
 0x8b2   : > { %v13076_v62 = vpop.eup %13075  ;;  %13095 = vpow2.f32 %v11000_v43  ;;  %v19167_v47 = vmul.f32 %v13070_v22, %v22227_v24  ;;  %v22228_v43 = vld [vmem:[#allocation142_spill] sm:$0xff]  ;;  %9440 = vrot.lane.b32.xlu0 %v9365_v59, %s13308_s28  ;;  %v22230_v24 = vld [vmem:[#allocation199_spill] sm:$0xff]  ;;  %v22232_v59 = vld [vmem:[#allocation80_spill] sm:$0xff] }
 0x8b3   : > { %v13078_v54 = vpop.eup %13077  ;;  %v7891_v8 = vadd.f32 1.0, %v13076_v62  ;;  %13097 = vpow2.f32 %v10998_v27  ;;  %v19170_v5 = vmul.f32 %v13070_v22, %v22228_v43  ;;  %v9367_v27 = vld [vmem:[%s13558_s24 + $0x68] sm:$0xff] }
 0x8b4   : > { %v12278_v6 = vpop.f32.mrb[24].mxu0  ;;  %v13080_v31 = vpop.eup %13079  ;;  %v7889_v18 = vadd.f32 1.0, %v13078_v54 }
 0x8b5   : > { %v7755_v21 = vadd.f32 %v12278_v6, %v19021_v40  ;;  %v7746_v46 = vpop.f32.mrb[25].mxu0  ;;  %v13082_v28 = vpop.eup %13081  ;;  %13099 = vrcp.f32 %v7891_v8  ;;  %v19177_v4 = vmul.f32 %v13080_v31, %v22229_v37  ;;  %v19180_v3 = vmul.f32 %v13080_v31, %v22230_v24  ;;  %v22233_v37 = vld [vmem:[#allocation85_spill] sm:$0xff]  ;;  %v22234_v24 = vld [vmem:[#allocation200_spill] sm:$0xff]  ;;  %9816 = vrot.lane.b32.xlu1 %v19089_v16, %s13311_s22 }
 0x8b6   : > { %v7747_v36 = vadd.f32 %v19021_v40, %v7746_v46  ;;  %v12279_v62 = vpop.f32.mrb[26].mxu0  ;;  %v13084_v22 = vpop.eup %13083  ;;  %13101 = vrcp.f32 %v7889_v18  ;;  %v19186_v8 = vmul.f32 %v13082_v28, %v22232_v59  ;;  %9444 = vrot.lane.b32.xlu0 %v9367_v27, %s13308_s28  ;;  %v22238_v27 = vld [vmem:[#allocation23_spill] sm:$0xff] }
 0x8b7   : > { %22231 = vst [vmem:[#allocation204_spill] sm:$0xff] %v19180_v3  ;;  %v11003_v54 = vmul.f32 -1.442695, %v7755_v21  ;;  %v7758_v6 = vadd.f32 %v12279_v62, %v19021_v40  ;;  %v7749_v43 = vpop.f32.mrb[27].mxu0  ;;  %v13086_v46 = vpop.eup %13085  ;;  %v19189_v57 = vmul.f32 %v13084_v22, %v22233_v37  ;;  %v19192_v3 = vmul.f32 %v13082_v28, %v22234_v24  ;;  %v22235_v62 = vld [vmem:[#allocation184_spill] sm:$0xff]  ;;  %v9369_v37 = vld [vmem:[%s13558_s24 + $0x78] sm:$0xff] }
 0x8b8   : > { %v11001_v48 = vmul.f32 -1.442695, %v7747_v36  ;;  %v13088_v18 = vpop.eup %13087  ;;  %v19196_v26 = vmul.f32 %v13086_v46, %v22235_v62  ;;  %v19199_v29 = vmul.f32 %v13086_v46, %v22236_v30  ;;  %v7750_v36 = vadd.f32 %v19021_v40, %v7749_v43  ;;  %v22239_v62 = vld [vmem:[#allocation201_spill] sm:$0xff] }
 0x8b9   : > { %13103 = vpow2.f32 %v11003_v54  ;;  %v11004_v21 = vmul.f32 -1.442695, %v7758_v6  ;;  %v13090_v59 = vpop.eup %13089  ;;  %v7892_v56 = vadd.f32 1.0, %v13088_v18  ;;  %v19204_v24 = vmul.f32 %v13086_v46, %v22237_v25  ;;  %v22243_v46 = vld [vmem:[#allocation203_spill] sm:$0xff]  ;;  %9556 = vrot.lane.b32.xlu1 %v19092_v63, %s13309_s20 }
 0x8ba   : > { %13105 = vpow2.f32 %v11001_v48  ;;  %v13092_v41 = vpop.eup %13091  ;;  %v7890_v54 = vadd.f32 1.0, %v13090_v59  ;;  %v19209_v6 = vmul.f32 %v13082_v28, %v22238_v27  ;;  %v19212_v30 = vmul.f32 %v13084_v22, %v22239_v62  ;;  %9448 = vrot.lane.b32.xlu0 %v9369_v37, %s13308_s28 }
 0x8bb   : > { %13107 = vpow2.f32 %v11004_v21  ;;  %v13094_v18 = vpop.eup %13093  ;;  %v7895_v48 = vadd.f32 1.0, %v13092_v41  ;;  %v19215_v25 = vmul.f32 %v13080_v31, %v22241_v55  ;;  %v19218_v59 = vmul.f32 %v13084_v22, %v22243_v46  ;;  %v9371_v55 = vld [vmem:[%s13558_s24 + $0x88] sm:$0xff] }
 0x8bc   : > { %22240 = vst [vmem:[#allocation38_spill] sm:$0xff] %v19212_v30  ;;  %13109 = vrcp.f32 %v7892_v56  ;;  %v12282_v43 = vpop.f32.mrb[28].mxu0  ;;  %v13096_v21 = vpop.eup %13095  ;;  %v7893_v16 = vadd.f32 1.0, %v13094_v18  ;;  %v11002_v41 = vmul.f32 -1.442695, %v7750_v36 }
 0x8bd   : > { %22242 = vst [vmem:[#allocation37_spill] sm:$0xff] %v19215_v25  ;;  %22244 = vst [vmem:[#allocation65_spill] sm:$0xff] %v19218_v59  ;;  %13111 = vrcp.f32 %v7890_v54  ;;  %v7771_v28 = vadd.f32 %v12282_v43, %v19021_v40  ;;  %v7762_v27 = vpop.f32.mrb[29].mxu0  ;;  %v13098_v62 = vpop.eup %13097  ;;  %v7896_v56 = vadd.f32 1.0, %v13096_v21  ;;  %v22245_v21 = vld [vmem:[#allocation117_spill] sm:$0xff]  ;;  %9684 = vrot.lane.b32.xlu1 %v19095_v13, %s13310_s21  ;;  %v9375_v25 = vld [vmem:[%s13558_s24 + $0xa8] sm:$0xff] }
 0x8be   : > { %13113 = vrcp.f32 %v7895_v48  ;;  %v7763_v30 = vadd.f32 %v19021_v40, %v7762_v27  ;;  %v12283_v49 = vpop.f32.mrb[30].mxu0  ;;  %v7894_v31 = vadd.f32 1.0, %v13098_v62  ;;  %9452 = vrot.lane.b32.xlu0 %v9371_v55, %s13308_s28  ;;  %v22247_v62 = vld [vmem:[#allocation119_spill] sm:$0xff] }
 0x8bf   : > { %13115 = vrcp.f32 %v7893_v16  ;;  %v11007_v22 = vmul.f32 -1.442695, %v7771_v28  ;;  %v7774_v54 = vadd.f32 %v12283_v49, %v19021_v40  ;;  %v7765_v18 = vpop.f32.mrb[31].mxu0  ;;  %v13100_v43 = vpop.eup %13099  ;;  %v22246_v28 = vld [vmem:[#allocation128_spill] sm:$0xff]  ;;  %v9373_v49 = vld [vmem:[%s13558_s24 + $0x98] sm:$0xff]  ;;  %v22249_v55 = vld [vmem:[#allocation139_spill] sm:$0xff] }
 0x8c0   : > { %13117 = vrcp.f32 %v7896_v56  ;;  %v11005_v37 = vmul.f32 -1.442695, %v7763_v30  ;;  %v7766_v48 = vadd.f32 %v19021_v40, %v7765_v18  ;;  %v13102_v36 = vpop.eup %13101  ;;  %v19230_v16 = vmul.f32 %v13100_v43, %v22245_v21  ;;  %v22248_v56 = vld [vmem:[#allocation82_spill] sm:$0xff] }
 0x8c1   : > { %13119 = vrcp.f32 %v7894_v31  ;;  %v11008_v46 = vmul.f32 -1.442695, %v7774_v54  ;;  %v19233_v27 = vmul.f32 %v13100_v43, %v22246_v28  ;;  %v19237_v63 = vmul.f32 %v13102_v36, %v22247_v62  ;;  %v22250_v54 = vld [vmem:[#allocation146_spill] sm:$0xff]  ;;  %9812 = vrot.lane.b32.xlu1 %v19099_v20, %s13311_s22 }
 0x8c2   : > { %13121 = vpow2.f32 %v11002_v41  ;;  %v19240_v30 = vmul.f32 %v13102_v36, %v22248_v56  ;;  %v19245_v31 = vmul.f32 %v13102_v36, %v22249_v55  ;;  %v19248_v18 = vmul.f32 %v13100_v43, %v22250_v54  ;;  %9456 = vrot.lane.b32.xlu0 %v9373_v49, %s13308_s28  ;;  %v22252_v43 = vld [vmem:[#allocation16_spill] sm:$0xff]  ;;  %v22256_v55 = vld [vmem:[#allocation73_spill] sm:$0xff] }
 0x8c3   : > { %v13104_v40 = vpop.eup %13103  ;;  %13123 = vpow2.f32 %v11007_v22  ;;  %v11006_v56 = vmul.f32 -1.442695, %v7766_v48 }
 0x8c4   : > { %22251 = vst [vmem:[#allocation210_spill] sm:$0xff] %v19248_v18  ;;  %v13106_v41 = vpop.eup %13105  ;;  %v7899_v21 = vadd.f32 1.0, %v13104_v40  ;;  %13125 = vpow2.f32 %v11005_v37  ;;  %v22253_v37 = vld [vmem:[#allocation209_spill] sm:$0xff]  ;;  %v22305_v18 = vld [vmem:[#allocation14_spill] sm:$0xff] }
 0x8c5   : > { %v13108_v28 = vpop.eup %13107  ;;  %v7897_v62 = vadd.f32 1.0, %v13106_v41  ;;  %13127 = vpow2.f32 %v11008_v46  ;;  %v22254_v46 = vld [vmem:[#allocation185_spill] sm:$0xff]  ;;  %9568 = vrot.lane.b32.xlu1 %v19142_v60, %s13309_s20 }
 0x8c6   : > { %v13110_v59 = vpop.eup %13109  ;;  %13129 = vrcp.f32 %v7899_v21  ;;  %v7900_v22 = vadd.f32 1.0, %v13108_v28  ;;  %v22258_v41 = vld [vmem:[#allocation125_spill] sm:$0xff]  ;;  %v22260_v28 = vld [vmem:[#allocation140_spill] sm:$0xff]  ;;  %9460 = vrot.lane.b32.xlu0 %v9375_v25, %s13308_s28 }
 0x8c7   : > { %v13112_v13 = vpop.eup %13111  ;;  %13131 = vrcp.f32 %v7897_v62  ;;  %v19255_v36 = vmul.f32 %v13110_v59, %v22252_v43  ;;  %v19258_v40 = vmul.f32 %v13110_v59, %v22253_v37  ;;  %v19261_v48 = vmul.f32 %v13110_v59, %v22254_v46  ;;  %v22262_v43 = vld [vmem:[#allocation78_spill] sm:$0xff]  ;;  %v22264_v59 = vld [vmem:[#allocation127_spill] sm:$0xff] }
 0x8c8   : > { %v13114_v49 = vpop.eup %13113  ;;  %13133 = vrcp.f32 %v7900_v22  ;;  %v19264_v54 = vmul.f32 %v13112_v13, %v22256_v55  ;;  %v19267_v21 = vmul.f32 %v13112_v13, %v22258_v41  ;;  %v19270_v20 = vmul.f32 %v13112_v13, %v22260_v28  ;;  %v22266_v22 = vld [vmem:[#allocation56_spill] sm:$0xff]  ;;  %v22270_v13 = vld [vmem:[#allocation130_spill] sm:$0xff] }
 0x8c9   : > { %22255 = vst [vmem:[#allocation74_spill] sm:$0xff] %v19261_v48  ;;  %v13116_v62 = vpop.eup %13115  ;;  %13135 = vpow2.f32 %v11006_v56  ;;  %v19274_v37 = vmul.f32 %v13114_v49, %v22262_v43  ;;  %v19277_v46 = vmul.f32 %v13114_v49, %v22264_v59  ;;  %v19280_v19 = vmul.f32 %v13114_v49, %v22266_v22  ;;  %v22268_v41 = vld [vmem:[#allocation104_spill] sm:$0xff]  ;;  %v22272_v56 = vld [vmem:[#allocation59_spill] sm:$0xff]  ;;  %v22274_v59 = vld [vmem:[#allocation186_spill] sm:$0xff]  ;;  %9696 = vrot.lane.b32.xlu1 %v19146_v32, %s13310_s21 }
 0x8ca   : > { %22257 = vst [vmem:[#allocation212_spill] sm:$0xff] %v19264_v54  ;;  %22259 = vst [vmem:[#allocation71_spill] sm:$0xff] %v19267_v21  ;;  %v13118_v55 = vpop.eup %13117  ;;  %v9377_v54 = vld [vmem:[%s13558_s24 + $0xb8] sm:$0xff]  ;;  %v19284_v21 = vmul.f32 %v13116_v62, %v22268_v41  ;;  %v19287_v28 = vmul.f32 %v13116_v62, %v22270_v13  ;;  %v19290_v25 = vmul.f32 %v13116_v62, %v22272_v56  ;;  %v22275_v49 = vld [vmem:[#allocation132_spill] sm:$0xff] }
 0x8cb   : > { %22261 = vst [vmem:[#allocation208_spill] sm:$0xff] %v19270_v20  ;;  %22263 = vst [vmem:[#allocation75_spill] sm:$0xff] %v19274_v37  ;;  %v13120_v43 = vpop.eup %13119  ;;  %v19298_v22 = vmul.f32 %v13118_v55, %v22275_v49  ;;  %v22277_v13 = vld [vmem:[#allocation187_spill] sm:$0xff]  ;;  %v22278_v37 = vld [vmem:[#allocation77_spill] sm:$0xff]  ;;  %9464 = vrot.lane.b32.xlu0 %v9377_v54, %s13308_s28 }
 0x8cc   : > { %22265 = vst [vmem:[#allocation211_spill] sm:$0xff] %v19277_v46  ;;  %22267 = vst [vmem:[#allocation91_spill] sm:$0xff] %v19280_v19  ;;  %v19295_v46 = vmul.f32 %v13118_v55, %v22274_v59  ;;  %v22276_v19 = vld [vmem:[#allocation21_spill] sm:$0xff]  ;;  %v19307_v62 = vmul.f32 %v13120_v43, %v22278_v37  ;;  %v22279_v56 = vld [vmem:[#allocation67_spill] sm:$0xff] }
 0x8cd   : > { %22269 = vst [vmem:[#allocation112_spill] sm:$0xff] %v19284_v21  ;;  %22271 = vst [vmem:[#allocation89_spill] sm:$0xff] %v19287_v28  ;;  %v19301_v41 = vmul.f32 %v13118_v55, %v22276_v19  ;;  %v13122_v21 = vpop.eup %13121  ;;  %v19304_v28 = vmul.f32 %v13120_v43, %v22277_v13  ;;  %v22282_v54 = vld [vmem:[#allocation83_spill] sm:$0xff]  ;;  %v9381_v32 = vld [vmem:[%s13558_s24 + $0xd8] sm:$0xff]  ;;  %9824 = vrot.lane.b32.xlu1 %v19150_v17, %s13311_s22 }
 0x8ce   : > { %22273 = vst [vmem:[#allocation64_spill] sm:$0xff] %v19290_v25  ;;  %v19310_v25 = vmul.f32 %v13120_v43, %v22279_v56  ;;  %v13124_v60 = vpop.eup %13123  ;;  %v7898_v20 = vadd.f32 1.0, %v13122_v21  ;;  %v22280_v21 = vld [vmem:[#allocation188_spill] sm:$0xff]  ;;  %v22286_v48 = vld [vmem:[#allocation189_spill] sm:$0xff] }
 0x8cf   : > { %v13126_v59 = vpop.eup %13125  ;;  %v7903_v49 = vadd.f32 1.0, %v13124_v60  ;;  %9468 = vrot.lane.b32.xlu0 %v9379_v53, %s13308_s28  ;;  %v22284_v60 = vld [vmem:[#allocation147_spill] sm:$0xff]  ;;  %v22290_v53 = vld [vmem:[#allocation150_spill] sm:$0xff] }
 0x8d0   : > { %v13128_v19 = vpop.eup %13127  ;;  %13137 = vrcp.f32 %v7898_v20  ;;  %v7901_v55 = vadd.f32 1.0, %v13126_v59 }
 0x8d1   : > { %v13130_v13 = vpop.eup %13129  ;;  %13139 = vrcp.f32 %v7903_v49  ;;  %v7904_v37 = vadd.f32 1.0, %v13128_v19  ;;  %v22288_v19 = vld [vmem:[#allocation15_spill] sm:$0xff]  ;;  %9564 = vrot.lane.b32.xlu1 %v19153_v12, %s13309_s20 }
 0x8d2   : > { %v13132_v9 = vpop.eup %13131  ;;  %13141 = vrcp.f32 %v7901_v55  ;;  %v19318_v43 = vmul.f32 %v13130_v13, %v22280_v21  ;;  %v19321_v56 = vmul.f32 %v13130_v13, %v22282_v54  ;;  %v19324_v20 = vmul.f32 %v13130_v13, %v22284_v60  ;;  %v22292_v54 = vld [vmem:[#allocation193_spill] sm:$0xff]  ;;  %v22293_v60 = vld [vmem:[#allocation20_spill] sm:$0xff] }
 0x8d3   : > { %v13134_v59 = vpop.eup %13133  ;;  %13143 = vrcp.f32 %v7904_v37  ;;  %v19328_v49 = vmul.f32 %v13132_v9, %v22286_v48  ;;  %v19331_v55 = vmul.f32 %v13132_v9, %v22288_v19  ;;  %v19334_v21 = vmul.f32 %v13132_v9, %v22290_v53  ;;  %9472 = vrot.lane.b32.xlu0 %v9381_v32, %s13308_s28  ;;  %v9383_v19 = vld [vmem:[%s13558_s24 + $0xe8] sm:$0xff]  ;;  %v9385_v53 = vld [vmem:[%s13558_s24 + $0xf8] sm:$0xff]  ;;  %v22299_v32 = vld [vmem:[#allocation194_spill] sm:$0xff]  ;;  %s13312_s24 = smov 16  }
 0x8d4   : > { %22281 = vst [vmem:[#allocation79_spill] sm:$0xff] %v19318_v43  ;;  %22283 = vst [vmem:[#allocation110_spill] sm:$0xff] %v19321_v56  ;;  %v13136_v43 = vpop.eup %13135  ;;  %v19339_v13 = vmul.f32 %v13134_v59, %v22292_v54  ;;  %v19342_v37 = vmul.f32 %v13134_v59, %v22293_v60  ;;  %v22295_v54 = vld [vmem:[#allocation122_spill] sm:$0xff]  ;;  %v22296_v60 = vld [vmem:[#allocation129_spill] sm:$0xff] }
 0x8d5   : > { %22285 = vst [vmem:[#allocation42_spill] sm:$0xff] %v19324_v20  ;;  %22287 = vst [vmem:[#allocation55_spill] sm:$0xff] %v19328_v49  ;;  %v22294_v20 = vld [vmem:[#allocation68_spill] sm:$0xff]  ;;  %v7902_v49 = vadd.f32 1.0, %v13136_v43  ;;  %9692 = vrot.lane.b32.xlu1 %v19158_v50, %s13310_s21  ;;  %v22302_v56 = vld [vmem:[#allocation154_spill] sm:$0xff] }
 0x8d6   : > { %22289 = vst [vmem:[#allocation41_spill] sm:$0xff] %v19331_v55  ;;  %22291 = vst [vmem:[#allocation162_spill] sm:$0xff] %v19334_v21  ;;  %v19345_v48 = vmul.f32 %v13134_v59, %v22294_v20  ;;  %v22297_v20 = vld [vmem:[#allocation152_spill] sm:$0xff] }
 0x8d7   : > { %13145 = vrcp.f32 %v7902_v49  ;;  %9476 = vrot.lane.b32.xlu0 %v9383_v19, %s13308_s28  ;;  %v22300_v49 = vld [vmem:[#allocation131_spill] sm:$0xff]  ;;  %v22307_v50 = vld [vmem:[#allocation92_spill] sm:$0xff] }
 0x8d9   : > { %9820 = vrot.lane.b32.xlu1 %v19161_v45, %s13311_s22 }
 0x8da   : > { %v13138_v9 = vpop.eup %13137 }
 0x8db   : > { %v13140_v17 = vpop.eup %13139  ;;  %v19354_v21 = vmul.f32 %v13138_v9, %v22295_v54  ;;  %v19357_v55 = vmul.f32 %v13138_v9, %v22296_v60  ;;  %v19360_v43 = vmul.f32 %v13138_v9, %v22297_v20  ;;  %v22306_v20 = vld [vmem:[#allocation86_spill] sm:$0xff]  ;;  %9480 = vrot.lane.b32.xlu0 %v9385_v53, %s13308_s28  ;;  %v22311_v53 = vld [vmem:[#allocation136_spill] sm:$0xff] }
 0x8dc   : > { %v13142_v59 = vpop.eup %13141  ;;  %v19365_v12 = vmul.f32 %v13140_v17, %v22299_v32  ;;  %v19368_v19 = vmul.f32 %v13140_v17, %v22300_v49  ;;  %v19371_v11 = vmul.f32 %v13140_v17, %v22302_v56  ;;  %v22308_v49 = vld [vmem:[#allocation134_spill] sm:$0xff]  ;;  %v22309_v56 = vld [vmem:[#allocation81_spill] sm:$0xff] }
 0x8dd   : > { %22298 = vst [vmem:[#allocation46_spill] sm:$0xff] %v19360_v43  ;;  %v13144_v54 = vpop.eup %13143  ;;  %v19374_v60 = vmul.f32 %v13142_v59, %v22304_v23  ;;  %v19377_v9 = vmul.f32 %v13142_v59, %v22305_v18  ;;  %v19380_v43 = vmul.f32 %v13142_v59, %v22306_v20  ;;  %v22310_v18 = vld [vmem:[#allocation96_spill] sm:$0xff]  ;;  %9576 = vrot.lane.b32.xlu1 %v19189_v57, %s13309_s20  ;;  %v19421_v57 = vpop.permute.xlu1 %9418 }
 0x8de   : > { %22301 = vst [vmem:[#allocation202_spill] sm:$0xff] %v19368_v19  ;;  %22303 = vst [vmem:[#allocation43_spill] sm:$0xff] %v19371_v11  ;;  %v19384_v32 = vmul.f32 %v13144_v54, %v22307_v50  ;;  %v19387_v19 = vmul.f32 %v13144_v54, %v22308_v49  ;;  %v19390_v17 = vmul.f32 %v13144_v54, %v22309_v56  ;;  %v22312_v50 = vld [vmem:[#allocation156_spill] sm:$0xff]  ;;  %v22355_v56 = vld [vmem:[#allocation29_spill] sm:$0xff] }
 0x8df   : > { %9678 = vrot.lane.b32.xlu0 %v19039_v7, %s13310_s21  ;;  %v22351_v54 = vld [vmem:[#allocation60_spill] sm:$0xff] }
 0x8e1   : > { %v13146_v23 = vpop.eup %13145  ;;  %9572 = vrot.lane.b32.xlu1 %v19196_v26, %s13309_s20 }
 0x8e2   : > { %v19397_v59 = vmul.f32 %v13146_v23, %v22310_v18  ;;  %v19400_v20 = vmul.f32 %v13146_v23, %v22311_v53  ;;  %v19403_v11 = vmul.f32 %v13146_v23, %v22312_v50  ;;  %v22356_v23 = vld [vmem:[#allocation178_spill] sm:$0xff]  ;;  %v22359_v50 = vld [vmem:[#allocation63_spill] sm:$0xff] }
 0x8e3   : > { %9806 = vrot.lane.b32.xlu0 %v19055_v51, %s13311_s22 }
 0x8e5   : > { %9700 = vrot.lane.b32.xlu1 %v19199_v29, %s13310_s21  ;;  %v19429_v29 = vpop.permute.xlu1 %9422 }
 0x8e7   : > { %9548 = vrot.lane.b32.xlu0 %v19058_v38, %s13309_s20 }
 0x8e9   : > { %9828 = vrot.lane.b32.xlu1 %v19204_v24, %s13311_s22  ;;  %v19437_v26 = vpop.permute.xlu1 %9426  ;;  %v22329_v24 = vld [vmem:[#allocation33_spill] sm:$0xff] }
 0x8ea   : > { %22313 = vst [vmem:[#allocation161_spill] sm:$0xff] %v19437_v26  ;;  %v13230_v26 = vld [vmem:[%s13563_s17 + $0x80] sm:$0xff] }
 0x8eb   : > { %9676 = vrot.lane.b32.xlu0 %v19061_v10, %s13310_s21  ;;  %v19469_v10 = vld [vmem:[#allocation2] sm:$0x7] }
 0x8ed   : > { %9582 = vrot.lane.b32.xlu1 %v19230_v16, %s13309_s20  ;;  %v19445_v7 = vpop.permute.xlu1 %9430  ;;  %v22330_v16 = vld [vmem:[#allocation168_spill] sm:$0xff] }
 0x8ee   : > { %22314 = vst [vmem:[#allocation48_spill] sm:$0xff] %v19445_v7  ;;  %v20087_v7 = vld [vmem:[%s13563_s17 + $0x50] sm:$0xff] }
 0x8ef   : > { %9804 = vrot.lane.b32.xlu0 %v19064_v39, %s13311_s22 }
 0x8f1   : > { %9578 = vrot.lane.b32.xlu1 %v19237_v63, %s13309_s20  ;;  %v19453_v51 = vpop.permute.xlu1 %9434  ;;  %v22333_v63 = vld [vmem:[#allocation190_spill] sm:$0xff] }
 0x8f2   : > { %22315 = vst [vmem:[#allocation50_spill] sm:$0xff] %v19453_v51 }
 0x8f3   : > { %9558 = vrot.lane.b32.xlu0 %v19072_v35, %s13309_s20 }
 0x8f5   : > { %9706 = vrot.lane.b32.xlu1 %v19240_v30, %s13310_s21  ;;  %v19461_v38 = vpop.permute.xlu1 %9438 }
 0x8f6   : > { %22316 = vst [vmem:[#allocation45_spill] sm:$0xff] %v19461_v38 }
 0x8f7   : > { %9686 = vrot.lane.b32.xlu0 %v19076_v58, %s13310_s21 }
 0x8f9   : > { %9834 = vrot.lane.b32.xlu1 %v19245_v31, %s13311_s22  ;;  %v19471_v39 = vpop.permute.xlu1 %9442 }
 0x8fa   : > { %22317 = vst [vmem:[#allocation164_spill] sm:$0xff] %v19471_v39 }
 0x8fb   : > { %9814 = vrot.lane.b32.xlu0 %v19079_v1, %s13311_s22 }
 0x8fd   : > { %9712 = vrot.lane.b32.xlu1 %v19255_v36, %s13310_s21  ;;  %v22337_v36 = vld [vmem:[#allocation36_spill] sm:$0xff] }
 0x8ff   : > { %9554 = vrot.lane.b32.xlu0 %v19103_v44, %s13309_s20 }
 0x901   : > { %9840 = vrot.lane.b32.xlu1 %v19258_v40, %s13311_s22  ;;  %v22339_v40 = vld [vmem:[#allocation46_spill] sm:$0xff] }
 0x903   : > { %9682 = vrot.lane.b32.xlu0 %v19106_v2, %s13310_s21  ;;  %v19490_v2 = vpop.permute.xlu1 %9446 }
 0x904   : > { %22318 = vst [vmem:[#allocation169_spill] sm:$0xff] %v19490_v2 }
 0x905   : > { %9592 = vrot.lane.b32.xlu1 %v19295_v46, %s13309_s20 }
 0x907   : > { %9810 = vrot.lane.b32.xlu0 %v19109_v52, %s13311_s22  ;;  %v22319_v52 = vld [vmem:[#allocation25_spill] sm:$0xff] }
 0x909   : > { %9720 = vrot.lane.b32.xlu1 %v19298_v22, %s13310_s21  ;;  %v22342_v22 = vld [vmem:[#allocation44_spill] sm:$0xff] }
 0x90b   : > { %9566 = vrot.lane.b32.xlu0 %v19129_v61, %s13309_s20  ;;  %v22320_v61 = vld [vmem:[#allocation31_spill] sm:$0xff] }
 0x90d   : > { %9848 = vrot.lane.b32.xlu1 %v19301_v41, %s13311_s22 }
 0x90f   : > { %9694 = vrot.lane.b32.xlu0 %v19132_v34, %s13310_s21 }
 0x911   : > { %9588 = vrot.lane.b32.xlu1 %v19304_v28, %s13309_s20  ;;  %v22340_v28 = vld [vmem:[#allocation210_spill] sm:$0xff] }
 0x913   : > { %9822 = vrot.lane.b32.xlu0 %v19138_v15, %s13311_s22  ;;  %v19508_v15 = vpop.permute.xlu1 %9450 }
 0x914   : > { %22321 = vst [vmem:[#allocation47_spill] sm:$0xff] %v19508_v15 }
 0x915   : > { %v8639_v35 = vpop.xlane.xlu0 %8638  ;;  %9716 = vrot.lane.b32.xlu1 %v19307_v62, %s13310_s21  ;;  %v22345_v62 = vld [vmem:[#allocation74_spill] sm:$0xff] }
 0x916   : > { %v19476_v58 = vmax.f32 %v19469_v10, %v8639_v35  ;;  %v22360_v35 = vld [vmem:[#allocation205_spill] sm:$0xff] }
 0x917   : > { %9562 = vrot.lane.b32.xlu0 %v19164_v0, %s13309_s20  ;;  %v22323_v0 = vld [vmem:[#allocation34_spill] sm:$0xff] }
 0x918   : > { %10376 = vst.msk [vmem:[#allocation2] sm:$0x7] %vm21100_vm6, %v19476_v58  ;;  %12284 = vmatprep.subr.msk.mxu0 %vm8741_vm4, %v19476_v58 }
 0x919   : > { %12285 = vmatpush3.msk.msra.mxu0 %vm8741_vm4, %v19476_v58  ;;  %v19488_v44 = vpop.permute.xlu0 %9420  ;;  %9844 = vrot.lane.b32.xlu1 %v19310_v25, %s13311_s22  ;;  %v22341_v25 = vld [vmem:[#allocation39_spill] sm:$0xff] }
 0x91a   : > { %12287 = vmatmul.mubr.msk.f32.vlgmr.msra.gmra.mrb[32].mxu0 %vm8564_vm14, %v22319_v52 }
 0x91b   : > { %9690 = vrot.lane.b32.xlu0 %v19167_v47, %s13310_s21  ;;  %12289 = vmatprep.mubr.msk.f32.mxu0 %vm8564_vm14, %v22320_v61  ;;  %v22324_v47 = vld [vmem:[#allocation166_spill] sm:$0xff] }
 0x91d   : > { %v19500_v34 = vpop.permute.xlu0 %9424  ;;  %9600 = vrot.lane.b32.xlu1 %v19339_v13, %s13309_s20 }
 0x91e   : > { %12290 = vmatmul.mubr.msk.f32.gmra.mrb[34].mxu0 %vm8564_vm14, %v18803_v33  ;;  %v19524_v33 = vpop.permute.xlu1 %9454 }
 0x91f   : > { %9818 = vrot.lane.b32.xlu0 %v19170_v5, %s13311_s22  ;;  %12292 = vmatprep.mubr.msk.f32.mxu0 %vm8564_vm14, %v18741_v42  ;;  %22326 = vst [vmem:[#allocation165_spill] sm:$0xff] %v19524_v33  ;;  %v22327_v5 = vld [vmem:[#allocation195_spill] sm:$0xff] }
 0x921   : > { %v19512_v45 = vpop.permute.xlu0 %9428  ;;  %9728 = vrot.lane.b32.xlu1 %v19342_v37, %s13310_s21 }
 0x922   : > { %22322 = vst [vmem:[#allocation163_spill] sm:$0xff] %v19512_v45  ;;  %12293 = vmatmul.mubr.msk.f32.gmra.mrb[36].mxu0 %vm8564_vm14, %v22323_v0  ;;  %v22364_v0 = vld [vmem:[#allocation35_spill] sm:$0xff] }
 0x923   : > { %9574 = vrot.lane.b32.xlu0 %v19177_v4, %s13309_s20  ;;  %12295 = vmatprep.mubr.msk.f32.mxu0 %vm8564_vm14, %v22324_v47  ;;  %v22365_v47 = vld [vmem:[#allocation40_spill] sm:$0xff] }
 0x925   : > { %v19522_v42 = vpop.permute.xlu0 %9432  ;;  %9856 = vrot.lane.b32.xlu1 %v19345_v48, %s13311_s22  ;;  %v22350_v48 = vld [vmem:[#allocation212_spill] sm:$0xff] }
 0x926   : > { %22325 = vst [vmem:[#allocation52_spill] sm:$0xff] %v19522_v42  ;;  %12296 = vmatmul.mubr.msk.f32.gmra.mrb[38].mxu0 %vm8564_vm14, %v22327_v5  ;;  %v20105_v42 = vld [vmem:[%s13563_s17 + $0x60] sm:$0xff] }
 0x927   : > { %9570 = vrot.lane.b32.xlu0 %v19186_v8, %s13309_s20  ;;  %12298 = vmatprep.mubr.msk.f32.mxu0 %vm8564_vm14, %v18747_v14  ;;  %v19542_v8 = vpop.permute.xlu1 %9458  ;;  %vm21105_vm6 = vcmp.lt.s32.totalorder %v20105_v42, 3 }
 0x928   : > { %22331 = vst [vmem:[#allocation114_spill] sm:$0xff] %v19542_v8 }
 0x929   : > { %v19534_v4 = vpop.permute.xlu0 %9436  ;;  %9596 = vrot.lane.b32.xlu1 %v19354_v21, %s13309_s20  ;;  %v22347_v21 = vld [vmem:[#allocation30_spill] sm:$0xff] }
 0x92a   : > { %22328 = vst [vmem:[#allocation98_spill] sm:$0xff] %v19534_v4  ;;  %12299 = vmatmul.mubr.msk.f32.gmra.mrb[40].mxu0 %vm8564_vm14, %v22329_v24 }
 0x92b   : > { %9698 = vrot.lane.b32.xlu0 %v19192_v3, %s13310_s21  ;;  %12301 = vmatprep.mubr.msk.f32.mxu0 %vm8564_vm14, %v22330_v16  ;;  %v22334_v3 = vld [vmem:[#allocation192_spill] sm:$0xff]  ;;  %v19558_v31 = vpop.permute.xlu1 %9462  ;;  %v22367_v16 = vld [vmem:[#allocation211_spill] sm:$0xff] }
 0x92c   : > { %22336 = vst [vmem:[#allocation100_spill] sm:$0xff] %v19558_v31 }
 0x92d   : > { %v19546_v14 = vpop.permute.xlu0 %9440  ;;  %9724 = vrot.lane.b32.xlu1 %v19357_v55, %s13310_s21  ;;  %v22346_v55 = vld [vmem:[#allocation183_spill] sm:$0xff] }
 0x92e   : > { %22332 = vst [vmem:[#allocation51_spill] sm:$0xff] %v19546_v14  ;;  %12302 = vmatmul.mubr.msk.f32.gmra.mrb[42].mxu0 %vm8564_vm14, %v22333_v63  ;;  %v22369_v63 = vld [vmem:[#allocation49_spill] sm:$0xff] }
 0x92f   : > { %9826 = vrot.lane.b32.xlu0 %v19209_v6, %s13311_s22  ;;  %12304 = vmatprep.mubr.msk.f32.mxu0 %vm8564_vm14, %v22334_v3  ;;  %v22338_v6 = vld [vmem:[#allocation179_spill] sm:$0xff] }
 0x931   : > { %v19556_v30 = vpop.permute.xlu0 %9444  ;;  %9852 = vrot.lane.b32.xlu1 %v22339_v40, %s13311_s22  ;;  %v22373_v40 = vld [vmem:[#allocation191_spill] sm:$0xff] }
 0x932   : > { %22335 = vst [vmem:[#allocation170_spill] sm:$0xff] %v19556_v30  ;;  %12305 = vmatmul.mubr.msk.f32.gmra.mrb[44].mxu0 %vm8564_vm14, %v22337_v36  ;;  %v22371_v36 = vld [vmem:[#allocation91_spill] sm:$0xff] }
 0x933   : > { %9710 = vrot.lane.b32.xlu0 %v19233_v27, %s13310_s21  ;;  %12307 = vmatprep.mubr.msk.f32.mxu0 %vm8564_vm14, %v22338_v6  ;;  %v19576_v27 = vpop.permute.xlu1 %9466  ;;  %v22372_v6 = vld [vmem:[#allocation180_spill] sm:$0xff] }
 0x934   : > { %22343 = vst [vmem:[#allocation116_spill] sm:$0xff] %v19576_v27 }
 0x935   : > { %v19568_v46 = vpop.permute.xlu0 %9448  ;;  %9608 = vrot.lane.b32.xlu1 %v19384_v32, %s13309_s20  ;;  %v22352_v32 = vld [vmem:[#allocation58_spill] sm:$0xff] }
 0x936   : > { %12308 = vmatmul.mubr.msk.f32.gmra.mrb[46].mxu0 %vm8564_vm14, %v22341_v25 }
 0x937   : > { %9838 = vrot.lane.b32.xlu0 %v22340_v28, %s13311_s22  ;;  %12310 = vmatprep.mubr.msk.f32.mxu0 %vm8564_vm14, %v22342_v22  ;;  %v19592_v37 = vpop.permute.xlu1 %9470  ;;  %v22375_v22 = vld [vmem:[#allocation112_spill] sm:$0xff] }
 0x938   : > { %22349 = vst [vmem:[#allocation106_spill] sm:$0xff] %v19592_v37 }
 0x939   : > { %v19580_v41 = vpop.permute.xlu0 %9452  ;;  %9736 = vrot.lane.b32.xlu1 %v19387_v19, %s13310_s21  ;;  %v22354_v19 = vld [vmem:[#allocation71_spill] sm:$0xff] }
 0x93a   : > { %22344 = vst [vmem:[#allocation103_spill] sm:$0xff] %v19580_v41  ;;  %12311 = vmatmul.mubr.msk.f32.gmra.mrb[48].mxu0 %vm8564_vm14, %v22346_v55 }
 0x93b   : > { %9584 = vrot.lane.b32.xlu0 %v22345_v62, %s13309_s20  ;;  %12313 = vmatprep.mubr.msk.f32.mxu0 %vm8564_vm14, %v22347_v21  ;;  %v19610_v18 = vpop.permute.xlu1 %9474  ;;  %v22376_v62 = vld [vmem:[#allocation57_spill] sm:$0xff] }
 0x93d   : > { %v19590_v13 = vpop.permute.xlu0 %9456  ;;  %9604 = vrot.lane.b32.xlu1 %v19397_v59, %s13309_s20  ;;  %v22358_v59 = vld [vmem:[#allocation208_spill] sm:$0xff] }
 0x93e   : > { %22348 = vst [vmem:[#allocation66_spill] sm:$0xff] %v19590_v13  ;;  %12314 = vmatmul.mubr.msk.f32.gmra.mrb[50].mxu0 %vm8564_vm14, %v22351_v54 }
 0x93f   : > { %9580 = vrot.lane.b32.xlu0 %v22350_v48, %s13309_s20  ;;  %12316 = vmatprep.mubr.msk.f32.mxu0 %vm8564_vm14, %v22352_v32  ;;  %v19626_v61 = vpop.permute.xlu1 %9478  ;;  %v22378_v48 = vld [vmem:[#allocation89_spill] sm:$0xff]  ;;  %v22380_v32 = vld [vmem:[#allocation64_spill] sm:$0xff] }
 0x940   : > { %22362 = vst [vmem:[#allocation113_spill] sm:$0xff] %v19626_v61 }
 0x941   : > { %v19602_v49 = vpop.permute.xlu0 %9460  ;;  %9732 = vrot.lane.b32.xlu1 %v19400_v20, %s13310_s21  ;;  %v22363_v20 = vld [vmem:[#allocation75_spill] sm:$0xff] }
 0x942   : > { %22353 = vst [vmem:[#allocation172_spill] sm:$0xff] %v19602_v49  ;;  %12317 = vmatmul.mubr.msk.f32.gmra.mrb[52].mxu0 %vm8564_vm14, %v22355_v56 }
 0x943   : > { %9708 = vrot.lane.b32.xlu0 %v22354_v19, %s13310_s21  ;;  %12319 = vmatprep.mubr.msk.f32.mxu0 %vm8564_vm14, %v22356_v23  ;;  %v19636_v24 = vpop.permute.xlu1 %9550  ;;  %v22381_v23 = vld [vmem:[#allocation79_spill] sm:$0xff] }
 0x945   : > { %v19614_v53 = vpop.permute.xlu0 %9464  ;;  %9860 = vrot.lane.b32.xlu1 %v19403_v11, %s13311_s22  ;;  %v22368_v11 = vld [vmem:[#allocation54_spill] sm:$0xff] }
 0x946   : > { %22357 = vst [vmem:[#allocation105_spill] sm:$0xff] %v19614_v53  ;;  %12320 = vmatmul.mubr.msk.f32.gmra.mrb[54].mxu0 %vm8564_vm14, %v22359_v50 }
 0x947   : > { %9836 = vrot.lane.b32.xlu0 %v22358_v59, %s13311_s22  ;;  %12322 = vmatprep.mubr.msk.f32.mxu0 %vm8564_vm14, %v22360_v35  ;;  %v19652_v28 = vpop.permute.xlu1 %9546  ;;  %v22382_v35 = vld [vmem:[#allocation110_spill] sm:$0xff] }
 0x949   : > { %v19624_v52 = vpop.permute.xlu0 %9468 }
 0x94a   : > { %22361 = vst [vmem:[#allocation69_spill] sm:$0xff] %v19624_v52  ;;  %12323 = vmatmul.mubr.msk.f32.gmra.mrb[56].mxu0 %vm8564_vm14, %v22364_v0  ;;  %v22383_v0 = vld [vmem:[#allocation42_spill] sm:$0xff] }
 0x94b   : > { %9590 = vrot.lane.b32.xlu0 %v22363_v20, %s13309_s20  ;;  %12325 = vmatprep.mubr.msk.f32.mxu0 %vm8564_vm14, %v22365_v47  ;;  %v19662_v21 = vpop.permute.xlu1 %9674 }
 0x94d   : > { %v19634_v5 = vpop.permute.xlu0 %9472 }
 0x94e   : > { %22366 = vst [vmem:[#allocation99_spill] sm:$0xff] %v19634_v5  ;;  %12326 = vmatmul.mubr.msk.f32.gmra.mrb[58].mxu0 %vm8564_vm14, %v22368_v11  ;;  %v22385_v11 = vld [vmem:[#allocation55_spill] sm:$0xff] }
 0x94f   : > { %9718 = vrot.lane.b32.xlu0 %v22367_v16, %s13310_s21  ;;  %12328 = vmatprep.mubr.msk.f32.mxu0 %vm8564_vm14, %v22369_v63  ;;  %v19670_v19 = vpop.permute.xlu1 %9802 }
 0x951   : > { %v19644_v3 = vpop.permute.xlu0 %9476 }
 0x952   : > { %22370 = vst [vmem:[#allocation173_spill] sm:$0xff] %v19644_v3  ;;  %12329 = vmatmul.mubr.msk.f32.gmra.mrb[60].mxu0 %vm8564_vm14, %v22372_v6  ;;  %v22388_v6 = vld [vmem:[#allocation41_spill] sm:$0xff] }
 0x953   : > { %9846 = vrot.lane.b32.xlu0 %v22371_v36, %s13311_s22  ;;  %12331 = vmatprep.mubr.msk.f32.mxu0 %vm8564_vm14, %v22373_v40  ;;  %v19678_v50 = vpop.permute.xlu1 %9552 }
 0x955   : > { %v19654_v25 = vpop.permute.xlu0 %9480 }
 0x956   : > { %22374 = vst [vmem:[#allocation61_spill] sm:$0xff] %v19654_v25  ;;  %12332 = vmatmul.mubr.msk.f32.gmra.mrb[62].mxu0 %vm8564_vm14, %v22376_v62  ;;  %vm22448_vm14 = vcmask 138240  }
 0x957   : > { %9586 = vrot.lane.b32.xlu0 %v22375_v22, %s13309_s20  ;;  %v19686_v47 = vpop.permute.xlu1 %9680  ;;  %v22390_v22 = vld [vmem:[#allocation162_spill] sm:$0xff]  ;;  %vm22500_vm9 = vmmov %vm22448_vm14 }
 0x959   : > { %v19660_v55 = vpop.permute.xlu0 %9678 }
 0x95a   : > { %22377 = vst [vmem:[#allocation115_spill] sm:$0xff] %v19660_v55 }
 0x95b   : > { %9714 = vrot.lane.b32.xlu0 %v22378_v48, %s13310_s21  ;;  %v19694_v36 = vpop.permute.xlu1 %9808 }
 0x95c   : > { %22387 = vst [vmem:[#allocation196_spill] sm:$0xff] %v19694_v36  ;;  %v13231_v36 = vld [vmem:[%s13563_s17 + $0x90] sm:$0xff] }
 0x95d   : > { %v19666_v54 = vpop.permute.xlu0 %9806 }
 0x95e   : > { %22379 = vst [vmem:[#allocation72_spill] sm:$0xff] %v19666_v54 }
 0x95f   : > { %9842 = vrot.lane.b32.xlu0 %v22380_v32, %s13311_s22  ;;  %v19702_v62 = vpop.permute.xlu1 %9560 }
 0x960   : > { %22391 = vst [vmem:[#allocation175_spill] sm:$0xff] %v19702_v62 }
 0x961   : > { %v19672_v56 = vpop.permute.xlu0 %9548 }
 0x963   : > { %9598 = vrot.lane.b32.xlu0 %v22381_v23, %s13309_s20  ;;  %v19710_v23 = vpop.permute.xlu1 %9688 }
 0x964   : > { %22394 = vst [vmem:[#allocation101_spill] sm:$0xff] %v19710_v23 }
 0x965   : > { %v19676_v59 = vpop.permute.xlu0 %9676 }
 0x967   : > { %9726 = vrot.lane.b32.xlu0 %v22382_v35, %s13310_s21  ;;  %v22395_v35 = vld [vmem:[#allocation202_spill] sm:$0xff] }
 0x969   : > { %v19682_v20 = vpop.permute.xlu0 %9804 }
 0x96b   : > { %9854 = vrot.lane.b32.xlu0 %v22383_v0, %s13311_s22 }
 0x96d   : > { %v19688_v16 = vpop.permute.xlu0 %9558 }
 0x96e   : > { %22384 = vst [vmem:[#allocation13_spill] sm:$0xff] %v19688_v16 }
 0x96f   : > { %9594 = vrot.lane.b32.xlu0 %v22385_v11, %s13309_s20  ;;  %v19718_v11 = vpop.permute.xlu1 %9816 }
 0x970   : > { %22397 = vst [vmem:[#allocation135_spill] sm:$0xff] %v19718_v11 }
 0x971   : > { %v19692_v63 = vpop.permute.xlu0 %9686 }
 0x972   : > { %22386 = vst [vmem:[#allocation174_spill] sm:$0xff] %v19692_v63  ;;  %v22483_v63 = vld [vmem:[#allocation155_spill] sm:$0xff] }
 0x973   : > { %9722 = vrot.lane.b32.xlu0 %v22388_v6, %s13310_s21 }
 0x975   : > { %v19698_v40 = vpop.permute.xlu0 %9814 }
 0x976   : > { %22389 = vst [vmem:[#allocation133_spill] sm:$0xff] %v19698_v40 }
 0x977   : > { %9850 = vrot.lane.b32.xlu0 %v22390_v22, %s13311_s22  ;;  %v19726_v22 = vpop.permute.xlu1 %9556 }
 0x978   : > { %22400 = vst [vmem:[#allocation18_spill] sm:$0xff] %v19726_v22 }
 0x979   : > { %v19704_v48 = vpop.permute.xlu0 %9554 }
 0x97a   : > { %22392 = vst [vmem:[#allocation121_spill] sm:$0xff] %v19704_v48  ;;  %v13229_v48 = vld [vmem:[%s13563_s17 + $0x88] sm:$0xff] }
 0x97b   : > { %9606 = vrot.lane.b32.xlu0 %v19365_v12, %s13309_s20  ;;  %v19732_v1 = vpop.permute.xlu1 %9684 }
 0x97c   : > { %22402 = vst [vmem:[#allocation197_spill] sm:$0xff] %v19732_v1  ;;  %v20123_v1 = vld [vmem:[%s13563_s17 + $0x70] sm:$0xff] }
 0x97d   : > { %v19708_v32 = vpop.permute.xlu0 %9682 }
 0x97e   : > { %22393 = vst [vmem:[#allocation19_spill] sm:$0xff] %v19708_v32 }
 0x97f   : > { %9734 = vrot.lane.b32.xlu0 %v22395_v35, %s13310_s21  ;;  %v19738_v25 = vpop.permute.xlu1 %9812 }
 0x980   : > { %22405 = vst [vmem:[#allocation90_spill] sm:$0xff] %v19738_v25 }
 0x981   : > { %v19714_v0 = vpop.permute.xlu0 %9810 }
 0x982   : > { %22396 = vst [vmem:[#allocation123_spill] sm:$0xff] %v19714_v0  ;;  %v20109_v0 = vld [vmem:[%s13563_s17 + $0x78] sm:$0xff] }
 0x983   : > { %9602 = vrot.lane.b32.xlu0 %v19374_v60, %s13309_s20 }
 0x985   : > { %v19720_v6 = vpop.permute.xlu0 %9566 }
 0x986   : > { %22398 = vst [vmem:[#allocation177_spill] sm:$0xff] %v19720_v6 }
 0x987   : > { %9730 = vrot.lane.b32.xlu0 %v19377_v9, %s13310_s21  ;;  %v19742_v9 = vpop.permute.xlu1 %9568 }
 0x988   : > { %22407 = vst [vmem:[#allocation118_spill] sm:$0xff] %v19742_v9 }
 0x989   : > { %v19724_v12 = vpop.permute.xlu0 %9694 }
 0x98a   : > { %22399 = vst [vmem:[#allocation107_spill] sm:$0xff] %v19724_v12 }
 0x98b   : > { %9858 = vrot.lane.b32.xlu0 %v19380_v43, %s13311_s22  ;;  %v19748_v37 = vpop.permute.xlu1 %9696 }
 0x98c   : > { %22410 = vst [vmem:[#allocation120_spill] sm:$0xff] %v19748_v37 }
 0x98d   : > { %v19730_v35 = vpop.permute.xlu0 %9822 }
 0x98e   : > { %22401 = vst [vmem:[#allocation176_spill] sm:$0xff] %v19730_v35 }
 0x98f   : > { %v19752_v52 = vpop.permute.xlu1 %9824 }
 0x990   : > { %22412 = vst [vmem:[#allocation138_spill] sm:$0xff] %v19752_v52 }
 0x991   : > { %v19734_v2 = vpop.permute.xlu0 %9562 }
 0x992   : > { %22403 = vst [vmem:[#allocation24_spill] sm:$0xff] %v19734_v2 }
 0x993   : > { %v19758_v31 = vpop.permute.xlu1 %9564 }
 0x994   : > { %22415 = vst [vmem:[#allocation142_spill] sm:$0xff] %v19758_v31 }
 0x995   : > { %v19736_v60 = vpop.permute.xlu0 %9690 }
 0x996   : > { %22404 = vst [vmem:[#allocation181_spill] sm:$0xff] %v19736_v60 }
 0x997   : > { %v19762_v8 = vpop.permute.xlu1 %9692 }
 0x998   : > { %22417 = vst [vmem:[#allocation199_spill] sm:$0xff] %v19762_v8 }
 0x999   : > { %v19740_v61 = vpop.permute.xlu0 %9818 }
 0x99a   : > { %22406 = vst [vmem:[#allocation137_spill] sm:$0xff] %v19740_v61 }
 0x99b   : > { %v19768_v13 = vpop.permute.xlu1 %9820 }
 0x99c   : > { %22420 = vst [vmem:[#allocation200_spill] sm:$0xff] %v19768_v13 }
 0x99d   : > { %v19744_v3 = vpop.permute.xlu0 %9574 }
 0x99e   : > { %22408 = vst [vmem:[#allocation198_spill] sm:$0xff] %v19744_v3 }
 0x99f   : > { %v19772_v15 = vpop.permute.xlu1 %9576 }
 0x9a1   : > { %v19746_v5 = vpop.permute.xlu0 %9570 }
 0x9a2   : > { %22409 = vst [vmem:[#allocation17_spill] sm:$0xff] %v19746_v5 }
 0x9a5   : > { %v19750_v43 = vpop.permute.xlu0 %9698 }
 0x9a6   : > { %22411 = vst [vmem:[#allocation108_spill] sm:$0xff] %v19750_v43 }
 0x9a9   : > { %v19754_v27 = vpop.permute.xlu0 %9826 }
 0x9aa   : > { %22413 = vst [vmem:[#allocation182_spill] sm:$0xff] %v19754_v27 }
 0x9ad   : > { %v19756_v53 = vpop.permute.xlu0 %9710 }
 0x9ae   : > { %22414 = vst [vmem:[#allocation94_spill] sm:$0xff] %v19756_v53  ;;  %v19778_v53 = vpop.permute.xlu1 %9572 }
 0x9af   : > { %22424 = vst [vmem:[#allocation23_spill] sm:$0xff] %v19778_v53 }
 0x9b1   : > { %v19760_v49 = vpop.permute.xlu0 %9838 }
 0x9b2   : > { %22416 = vst [vmem:[#allocation102_spill] sm:$0xff] %v19760_v49  ;;  %v19782_v49 = vpop.permute.xlu1 %9700 }
 0x9b3   : > { %22426 = vst [vmem:[#allocation111_spill] sm:$0xff] %v19782_v49 }
 0x9b5   : > { %v19764_v33 = vpop.permute.xlu0 %9584 }
 0x9b6   : > { %22418 = vst [vmem:[#allocation80_spill] sm:$0xff] %v19764_v33 }
 0x9b9   : > { %v19766_v3 = vpop.permute.xlu0 %9580 }
 0x9ba   : > { %22419 = vst [vmem:[#allocation85_spill] sm:$0xff] %v19766_v3  ;;  %v19788_v3 = vpop.permute.xlu1 %9828 }
 0x9bb   : > { %22429 = vst [vmem:[#allocation128_spill] sm:$0xff] %v19788_v3 }
 0x9bd   : > { %v19770_v41 = vpop.permute.xlu0 %9708 }
 0x9be   : > { %22421 = vst [vmem:[#allocation184_spill] sm:$0xff] %v19770_v41  ;;  %v19792_v41 = vpop.permute.xlu1 %9582 }
 0x9bf   : > { %22431 = vst [vmem:[#allocation82_spill] sm:$0xff] %v19792_v41 }
 0x9c1   : > { %v19774_v43 = vpop.permute.xlu0 %9836 }
 0x9c2   : > { %22422 = vst [vmem:[#allocation126_spill] sm:$0xff] %v19774_v43 }
 0x9c5   : > { %v19776_v27 = vpop.permute.xlu0 %9590 }
 0x9c6   : > { %22423 = vst [vmem:[#allocation141_spill] sm:$0xff] %v19776_v27  ;;  %v19798_v27 = vpop.permute.xlu1 %9578 }
 0x9c7   : > { %22434 = vst [vmem:[#allocation16_spill] sm:$0xff] %v19798_v27 }
 0x9c9   : > { %v19780_v5 = vpop.permute.xlu0 %9718 }
 0x9ca   : > { %22425 = vst [vmem:[#allocation201_spill] sm:$0xff] %v19780_v5  ;;  %v19802_v5 = vpop.permute.xlu1 %9706 }
 0x9cb   : > { %22436 = vst [vmem:[#allocation185_spill] sm:$0xff] %v19802_v5 }
 0x9cd   : > { %v19784_v30 = vpop.permute.xlu0 %9846 }
 0x9ce   : > { %22427 = vst [vmem:[#allocation203_spill] sm:$0xff] %v19784_v30 }
 0x9d1   : > { %v19786_v33 = vpop.permute.xlu0 %9586 }
 0x9d2   : > { %22428 = vst [vmem:[#allocation117_spill] sm:$0xff] %v19786_v33  ;;  %v19808_v33 = vpop.permute.xlu1 %9834 }
 0x9d3   : > { %22439 = vst [vmem:[#allocation140_spill] sm:$0xff] %v19808_v33 }
 0x9d5   : > { %v19790_v39 = vpop.permute.xlu0 %9714 }
 0x9d6   : > { %22430 = vst [vmem:[#allocation119_spill] sm:$0xff] %v19790_v39 }
 0x9d9   : > { %v19794_v35 = vpop.permute.xlu0 %9842 }
 0x9da   : > { %22432 = vst [vmem:[#allocation139_spill] sm:$0xff] %v19794_v35 }
 0x9dd   : > { %v19796_v43 = vpop.permute.xlu0 %9598 }
 0x9de   : > { %22433 = vst [vmem:[#allocation146_spill] sm:$0xff] %v19796_v43  ;;  %v19813_v43 = vpop.permute.xlu1 %9712 }
 0x9df   : > { %22441 = vst [vmem:[#allocation127_spill] sm:$0xff] %v19813_v43 }
 0x9e1   : > { %v19800_v53 = vpop.permute.xlu0 %9726 }
 0x9e2   : > { %22435 = vst [vmem:[#allocation209_spill] sm:$0xff] %v19800_v53  ;;  %v19820_v5 = vpop.permute.xlu1 %9840 }
 0x9e3   : > { %22444 = vst [vmem:[#allocation130_spill] sm:$0xff] %v19820_v5 }
 0x9e5   : > { %v19804_v49 = vpop.permute.xlu0 %9854 }
 0x9e6   : > { %22437 = vst [vmem:[#allocation73_spill] sm:$0xff] %v19804_v49  ;;  %v19826_v43 = vpop.permute.xlu1 %9592 }
 0x9e7   : > { %22446 = vst [vmem:[#allocation186_spill] sm:$0xff] %v19826_v43 }
 0x9e9   : > { %v19806_v30 = vpop.permute.xlu0 %9594 }
 0x9ea   : > { %22438 = vst [vmem:[#allocation125_spill] sm:$0xff] %v19806_v30 }
 0x9ed   : > { %v19810_v3 = vpop.permute.xlu0 %9722  ;;  %v12288_v39 = vpop.f32.mrb[32].mxu0 }
 0x9ee   : > { %22440 = vst [vmem:[#allocation78_spill] sm:$0xff] %v19810_v3  ;;  %v8811_v41 = vpop.f32.mrb[33].mxu0  ;;  %9004 = vrot.lane.b32.xlu1 %v12288_v39, %s13312_s24 }
 0x9f1   : > { %v19815_v35 = vpop.permute.xlu0 %9850  ;;  %v12291_v53 = vpop.f32.mrb[34].mxu0 }
 0x9f2   : > { %22442 = vst [vmem:[#allocation56_spill] sm:$0xff] %v19815_v35  ;;  %v8821_v27 = vpop.f32.mrb[35].mxu0  ;;  %9002 = vrot.lane.b32.xlu1 %v8811_v41, %s13312_s24  ;;  %v22447_v35 = vld [vmem:[#allocation32_spill] sm:$0xff] }
 0x9f3   : > { %v9926_v41 = vsel %vm22448_vm14, %v22447_v35, %v19610_v18 }
 0x9f5   : > { %v19818_v49 = vpop.permute.xlu0 %9606  ;;  %v12294_v30 = vpop.f32.mrb[36].mxu0 }
 0x9f6   : > { %22443 = vst [vmem:[#allocation104_spill] sm:$0xff] %v19818_v49  ;;  %v8831_v33 = vpop.f32.mrb[37].mxu0  ;;  %9008 = vrot.lane.b32.xlu1 %v12291_v53, %s13312_s24 }
 0x9f9   : > { %v19823_v3 = vpop.permute.xlu0 %9734  ;;  %v12297_v52 = vpop.f32.mrb[38].mxu0 }
 0x9fa   : > { %22445 = vst [vmem:[#allocation59_spill] sm:$0xff] %v19823_v3  ;;  %v8841_v39 = vpop.f32.mrb[39].mxu0  ;;  %9006 = vrot.lane.b32.xlu1 %v8821_v27, %s13312_s24  ;;  %v19834_v27 = vpop.permute.xlu1 %9720 }
 0x9fb   : > { %22449 = vst [vmem:[#allocation132_spill] sm:$0xff] %v19834_v27 }
 0x9fd   : > { %v12300_v49 = vpop.f32.mrb[40].mxu0  ;;  %v9603_v12 = vpop.permute.xlu0 %9602 }
 0x9fe   : > { %v9959_v5 = vsel %vm21102_vm7, %v9926_v41, %v9603_v12  ;;  %v8851_v37 = vpop.f32.mrb[41].mxu0  ;;  %9012 = vrot.lane.b32.xlu1 %v12294_v30, %s13312_s24  ;;  %v19841_v12 = vpop.permute.xlu1 %9848 }
 0x9ff   : > { %9018 = vrot.lane.b32.xlu0 %v8851_v37, %s13312_s24  ;;  %22451 = vst [vmem:[#allocation187_spill] sm:$0xff] %v19841_v12 }
 0xa01   : > { %v12303_v53 = vpop.f32.mrb[42].mxu0  ;;  %v9731_v3 = vpop.permute.xlu0 %9730 }
 0xa02   : > { %v19837_v43 = vsel %vm21101_vm13, %v9959_v5, %v9731_v3  ;;  %v8861_v6 = vpop.f32.mrb[43].mxu0  ;;  %9010 = vrot.lane.b32.xlu1 %v8831_v33, %s13312_s24  ;;  %v19845_v27 = vpop.permute.xlu1 %9588 }
 0xa03   : > { %22450 = vst [vmem:[#allocation21_spill] sm:$0xff] %v19837_v43  ;;  %22452 = vst [vmem:[#allocation77_spill] sm:$0xff] %v19845_v27 }
 0xa05   : > { %v12306_v18 = vpop.f32.mrb[44].mxu0 }
 0xa06   : > { %v8871_v9 = vpop.f32.mrb[45].mxu0  ;;  %9016 = vrot.lane.b32.xlu1 %v12297_v52, %s13312_s24  ;;  %v19851_v52 = vpop.permute.xlu1 %9716 }
 0xa07   : > { %22453 = vst [vmem:[#allocation67_spill] sm:$0xff] %v19851_v52 }
 0xa09   : > { %v12309_v30 = vpop.f32.mrb[46].mxu0 }
 0xa0a   : > { %v8881_v41 = vpop.f32.mrb[47].mxu0  ;;  %9014 = vrot.lane.b32.xlu1 %v8841_v39, %s13312_s24  ;;  %9032 = vrot.lane.b32.xlu0 %v12309_v30, %s13312_s24  ;;  %v19855_v12 = vpop.permute.xlu1 %9844 }
 0xa0b   : > { %22454 = vst [vmem:[#allocation188_spill] sm:$0xff] %v19855_v12 }
 0xa0d   : > { %v12312_v37 = vpop.f32.mrb[48].mxu0 }
 0xa0e   : > { %v8891_v5 = vpop.f32.mrb[49].mxu0  ;;  %9020 = vrot.lane.b32.xlu1 %v12300_v49, %s13312_s24  ;;  %9036 = vrot.lane.b32.xlu0 %v12312_v37, %s13312_s24 }
 0xa11   : > { %v12315_v33 = vpop.f32.mrb[50].mxu0 }
 0xa12   : > { %v8901_v3 = vpop.f32.mrb[51].mxu0  ;;  %9024 = vrot.lane.b32.xlu1 %v12303_v53, %s13312_s24  ;;  %9040 = vrot.lane.b32.xlu0 %v12315_v33, %s13312_s24  ;;  %v19861_v33 = vpop.permute.xlu1 %9600 }
 0xa13   : > { %22455 = vst [vmem:[#allocation83_spill] sm:$0xff] %v19861_v33 }
 0xa15   : > { %v12318_v43 = vpop.f32.mrb[52].mxu0 }
 0xa16   : > { %v8911_v39 = vpop.f32.mrb[53].mxu0  ;;  %9022 = vrot.lane.b32.xlu1 %v8861_v6, %s13312_s24  ;;  %9044 = vrot.lane.b32.xlu0 %v12318_v43, %s13312_s24  ;;  %v19865_v12 = vpop.permute.xlu1 %9728 }
 0xa17   : > { %22456 = vst [vmem:[#allocation147_spill] sm:$0xff] %v19865_v12 }
 0xa19   : > { %v12321_v30 = vpop.f32.mrb[54].mxu0 }
 0xa1a   : > { %v8921_v49 = vpop.f32.mrb[55].mxu0  ;;  %9028 = vrot.lane.b32.xlu1 %v12306_v18, %s13312_s24  ;;  %9048 = vrot.lane.b32.xlu0 %v12321_v30, %s13312_s24 }
 0xa1d   : > { %v12324_v37 = vpop.f32.mrb[56].mxu0 }
 0xa1e   : > { %v8931_v53 = vpop.f32.mrb[57].mxu0  ;;  %9026 = vrot.lane.b32.xlu1 %v8871_v9, %s13312_s24  ;;  %9052 = vrot.lane.b32.xlu0 %v12324_v37, %s13312_s24  ;;  %v19871_v37 = vpop.permute.xlu1 %9856 }
 0xa1f   : > { %22457 = vst [vmem:[#allocation189_spill] sm:$0xff] %v19871_v37  ;;  %v22468_v37 = vld [vmem:[#allocation62_spill] sm:$0xff] }
 0xa21   : > { %v12327_v52 = vpop.f32.mrb[58].mxu0 }
 0xa22   : > { %v8941_v6 = vpop.f32.mrb[59].mxu0  ;;  %9030 = vrot.lane.b32.xlu1 %v8881_v41, %s13312_s24  ;;  %9056 = vrot.lane.b32.xlu0 %v12327_v52, %s13312_s24  ;;  %v22458_v41 = vld [vmem:[#allocation204_spill] sm:$0xff]  ;;  %v19876_v52 = vpop.permute.xlu1 %9596 }
 0xa23   : > { %22459 = vst [vmem:[#allocation15_spill] sm:$0xff] %v19876_v52 }
 0xa25   : > { %v12330_v43 = vpop.f32.mrb[60].mxu0 }
 0xa26   : > { %v8951_v18 = vpop.f32.mrb[61].mxu0  ;;  %9034 = vrot.lane.b32.xlu1 %v8891_v5, %s13312_s24  ;;  %9060 = vrot.lane.b32.xlu0 %v12330_v43, %s13312_s24  ;;  %v19880_v5 = vpop.permute.xlu1 %9724  ;;  %v22463_v43 = vld [vmem:[#allocation38_spill] sm:$0xff] }
 0xa27   : > { %22460 = vst [vmem:[#allocation150_spill] sm:$0xff] %v19880_v5 }
 0xa29   : > { %v12333_v30 = vpop.f32.mrb[62].mxu0 }
 0xa2a   : > { %v8961_v9 = vpop.f32.mrb[63].mxu0  ;;  %9038 = vrot.lane.b32.xlu1 %v8901_v3, %s13312_s24  ;;  %9064 = vrot.lane.b32.xlu0 %v12333_v30, %s13312_s24  ;;  %v19883_v3 = vpop.permute.xlu1 %9852 }
 0xa2b   : > { %22461 = vst [vmem:[#allocation193_spill] sm:$0xff] %v19883_v3 }
 0xa2e   : > { %9042 = vrot.lane.b32.xlu1 %v8911_v39, %s13312_s24  ;;  %9702 = vrot.lane.b32.xlu0 %v22458_v41, %s13310_s21  ;;  %v19887_v39 = vpop.permute.xlu1 %9608 }
 0xa2f   : > { %22462 = vst [vmem:[#allocation20_spill] sm:$0xff] %v19887_v39 }
 0xa32   : > { %9046 = vrot.lane.b32.xlu1 %v8921_v49, %s13312_s24  ;;  %v19891_v30 = vpop.permute.xlu1 %9736 }
 0xa33   : > { %22464 = vst [vmem:[#allocation68_spill] sm:$0xff] %v19891_v30 }
 0xa36   : > { %9050 = vrot.lane.b32.xlu1 %v8931_v53, %s13312_s24  ;;  %v19893_v49 = vpop.permute.xlu1 %9604 }
 0xa37   : > { %22465 = vst [vmem:[#allocation122_spill] sm:$0xff] %v19893_v49  ;;  %v22471_v49 = vld [vmem:[#allocation22_spill] sm:$0xff] }
 0xa3a   : > { %9054 = vrot.lane.b32.xlu1 %v8941_v6, %s13312_s24  ;;  %v19895_v53 = vpop.permute.xlu1 %9732 }
 0xa3b   : > { %22466 = vst [vmem:[#allocation129_spill] sm:$0xff] %v19895_v53 }
 0xa3e   : > { %9058 = vrot.lane.b32.xlu1 %v8951_v18, %s13312_s24  ;;  %v19897_v41 = vpop.permute.xlu1 %9860 }
 0xa3f   : > { %22467 = vst [vmem:[#allocation152_spill] sm:$0xff] %v19897_v41 }
 0xa42   : > { %9062 = vrot.lane.b32.xlu1 %v8961_v9, %s13312_s24  ;;  %v22469_v9 = vld [vmem:[#allocation144_spill] sm:$0xff] }
 0xa46   : > { %9704 = vrot.lane.b32.xlu1 %v22463_v43, %s13310_s21  ;;  %v22470_v43 = vld [vmem:[#allocation53_spill] sm:$0xff] }
 0xa60   : > { %v9005_v6 = vpop.permute.xlu1 %9004 }
 0xa61   : > { %v9099_v12 = vsub.f32 %v22468_v37, %v9005_v6 }
 0xa63   : > { %v9132_v33 = vmul.f32 1.442695, %v9099_v12  ;;  %v22472_v12 = vld [vmem:[#allocation148_spill] sm:$0xff] }
 0xa64   : > { %v9003_v18 = vpop.permute.xlu1 %9002 }
 0xa65   : > { %13147 = vpow2.f32 %v9132_v33  ;;  %v9098_v3 = vsub.f32 %v22469_v9, %v9003_v18  ;;  %v19905_v18 = vpop.permute.xlu0 %9858 }
 0xa66   : > { %22473 = vst [vmem:[#allocation194_spill] sm:$0xff] %v19905_v18 }
 0xa67   : > { %v9130_v39 = vmul.f32 1.442695, %v9098_v3 }
 0xa68   : > { %v9009_v5 = vpop.permute.xlu1 %9008 }
 0xa69   : > { %13149 = vpow2.f32 %v9130_v39  ;;  %v9101_v52 = vsub.f32 %v22470_v43, %v9009_v5  ;;  %v22474_v5 = vld [vmem:[#allocation143_spill] sm:$0xff] }
 0xa6b   : > { %v9136_v30 = vmul.f32 1.442695, %v9101_v52 }
 0xa6c   : > { %v9007_v27 = vpop.permute.xlu1 %9006 }
 0xa6d   : > { %13151 = vpow2.f32 %v9136_v30  ;;  %v9100_v53 = vsub.f32 %v22471_v49, %v9007_v27 }
 0xa6f   : > { %v13148_v14 = vpop.eup %13147  ;;  %v9134_v41 = vmul.f32 1.442695, %v9100_v53 }
 0xa70   : > { %v9013_v38 = vpop.permute.xlu1 %9012  ;;  %9228 = vrot.lane.b32.xlu0 %v13148_v14, %s13313_s23  ;;  %v22475_v14 = vld [vmem:[#allocation207_spill] sm:$0xff] }
 0xa71   : > { %13153 = vpow2.f32 %v9134_v41  ;;  %v9103_v33 = vsub.f32 %v22472_v12, %v9013_v38  ;;  %v9019_v53 = vpop.permute.xlu0 %9018 }
 0xa73   : > { %v13150_v6 = vpop.eup %13149  ;;  %v9140_v3 = vmul.f32 1.442695, %v9103_v33  ;;  %v22476_v33 = vld [vmem:[#allocation28_spill] sm:$0xff] }
 0xa74   : > { %9226 = vrot.lane.b32.xlu1 %v13150_v6, %s13313_s23  ;;  %v9011_v52 = vpop.permute.xlu1 %9010  ;;  %v9106_v60 = vsub.f32 %v22476_v33, %v9019_v53 }
 0xa75   : > { %13155 = vpow2.f32 %v9140_v3  ;;  %v9102_v39 = vsub.f32 %v22474_v5, %v9011_v52  ;;  %v22477_v3 = vld [vmem:[#allocation109_spill] sm:$0xff] }
 0xa76   : > { %v9146_v2 = vmul.f32 1.442695, %v9106_v60 }
 0xa77   : > { %v13152_v27 = vpop.eup %13151  ;;  %v9138_v30 = vmul.f32 1.442695, %v9102_v39 }
 0xa78   : > { %v9017_v61 = vpop.permute.xlu1 %9016  ;;  %9232 = vrot.lane.b32.xlu0 %v13152_v27, %s13313_s23 }
 0xa79   : > { %13157 = vpow2.f32 %v9138_v30  ;;  %v9105_v41 = vsub.f32 %v22475_v14, %v9017_v61  ;;  %v22478_v61 = vld [vmem:[#allocation145_spill] sm:$0xff] }
 0xa7b   : > { %v13154_v38 = vpop.eup %13153  ;;  %v9144_v13 = vmul.f32 1.442695, %v9105_v41 }
 0xa7c   : > { %9230 = vrot.lane.b32.xlu1 %v13154_v38, %s13313_s23  ;;  %v9015_v6 = vpop.permute.xlu1 %9014  ;;  %v9033_v18 = vpop.permute.xlu0 %9032 }
 0xa7d   : > { %13159 = vpow2.f32 %v9144_v13  ;;  %v9104_v52 = vsub.f32 %v22477_v3, %v9015_v6  ;;  %v22479_v13 = vld [vmem:[#allocation206_spill] sm:$0xff] }
 0xa7f   : > { %v13156_v8 = vpop.eup %13155  ;;  %v9142_v39 = vmul.f32 1.442695, %v9104_v52 }
 0xa80   : > { %v9021_v31 = vpop.permute.xlu1 %9020  ;;  %9236 = vrot.lane.b32.xlu0 %v13156_v8, %s13313_s23  ;;  %v9037_v27 = vpop.permute.xlu0 %9036  ;;  %v22480_v8 = vld [vmem:[#allocation76_spill] sm:$0xff] }
 0xa81   : > { %13161 = vpow2.f32 %v9142_v39  ;;  %v9107_v30 = vsub.f32 %v22478_v61, %v9021_v31 }
 0xa82   : > { %13163 = vpow2.f32 %v9146_v2 }
 0xa83   : > { %v13158_v41 = vpop.eup %13157  ;;  %v9148_v4 = vmul.f32 1.442695, %v9107_v30  ;;  %v22481_v30 = vld [vmem:[#allocation87_spill] sm:$0xff] }
 0xa84   : > { %9234 = vrot.lane.b32.xlu1 %v13158_v41, %s13313_s23  ;;  %v9025_v53 = vpop.permute.xlu1 %9024  ;;  %v9041_v6 = vpop.permute.xlu0 %9040  ;;  %v9113_v2 = vsub.f32 %v22481_v30, %v9033_v18  ;;  %v22484_v18 = vld [vmem:[#allocation70_spill] sm:$0xff] }
 0xa85   : > { %13165 = vpow2.f32 %v9148_v4  ;;  %v9109_v38 = vsub.f32 %v22479_v13, %v9025_v53  ;;  %v22482_v4 = vld [vmem:[#allocation151_spill] sm:$0xff] }
 0xa86   : > { %v9160_v11 = vmul.f32 1.442695, %v9113_v2 }
 0xa87   : > { %v13160_v33 = vpop.eup %13159  ;;  %v9152_v52 = vmul.f32 1.442695, %v9109_v38 }
 0xa88   : > { %v9023_v60 = vpop.permute.xlu1 %9022  ;;  %9240 = vrot.lane.b32.xlu0 %v13160_v33, %s13313_s23  ;;  %v9045_v61 = vpop.permute.xlu0 %9044  ;;  %v9115_v33 = vsub.f32 %v22483_v63, %v9037_v27  ;;  %v22486_v27 = vld [vmem:[#allocation149_spill] sm:$0xff] }
 0xa89   : > { %13167 = vpow2.f32 %v9152_v52  ;;  %v9108_v39 = vsub.f32 %v22480_v8, %v9023_v60 }
 0xa8b   : > { %v13162_v51 = vpop.eup %13161  ;;  %v9150_v31 = vmul.f32 1.442695, %v9108_v39 }
 0xa8c   : > { %9238 = vrot.lane.b32.xlu1 %v13162_v51, %s13313_s23  ;;  %v9029_v41 = vpop.permute.xlu1 %9028  ;;  %v13164_v13 = vpop.eup %13163 }
 0xa8d   : > { %13169 = vpow2.f32 %v9150_v31  ;;  %v9111_v53 = vsub.f32 %v22482_v4, %v9029_v41  ;;  %v9049_v60 = vpop.permute.xlu0 %9048  ;;  %v9164_v31 = vmul.f32 1.442695, %v9115_v33  ;;  %v22485_v41 = vld [vmem:[#allocation93_spill] sm:$0xff] }
 0xa8e   : > { %v9117_v4 = vsub.f32 %v22485_v41, %v9041_v6 }
 0xa8f   : > { %v13166_v40 = vpop.eup %13165  ;;  %v9156_v38 = vmul.f32 1.442695, %v9111_v53 }
 0xa90   : > { %v9027_v52 = vpop.permute.xlu1 %9026  ;;  %9244 = vrot.lane.b32.xlu0 %v13166_v40, %s13313_s23  ;;  %9242 = vrot.lane.b32.xlu1 %v13164_v13, %s13313_s23  ;;  %v9168_v13 = vmul.f32 1.442695, %v9117_v4  ;;  %v22490_v4 = vld [vmem:[#allocation153_spill] sm:$0xff] }
 0xa91   : > { %13171 = vpow2.f32 %v9156_v38  ;;  %v9110_v39 = vsub.f32 %v22484_v18, %v9027_v52  ;;  %v9053_v40 = vpop.permute.xlu0 %9052  ;;  %v22487_v38 = vld [vmem:[#allocation95_spill] sm:$0xff] }
 0xa92   : > { %13173 = vpow2.f32 %v9160_v11  ;;  %v9119_v16 = vsub.f32 %v22487_v38, %v9045_v61  ;;  %v22488_v11 = vld [vmem:[#allocation84_spill] sm:$0xff] }
 0xa93   : > { %v13168_v51 = vpop.eup %13167  ;;  %v9154_v8 = vmul.f32 1.442695, %v9110_v39 }
 0xa94   : > { %v9031_v23 = vpop.permute.xlu1 %9030  ;;  %9248 = vrot.lane.b32.xlu0 %v13168_v51, %s13313_s23  ;;  %v9172_v51 = vmul.f32 1.442695, %v9119_v16  ;;  %v22492_v16 = vld [vmem:[#allocation88_spill] sm:$0xff] }
 0xa95   : > { %13175 = vpow2.f32 %v9154_v8  ;;  %v9112_v2 = vsub.f32 %v22486_v27, %v9031_v23  ;;  %v22489_v8 = vld [vmem:[#allocation158_spill] sm:$0xff] }
 0xa96   : > { %13177 = vpow2.f32 %v9164_v31  ;;  %v9121_v41 = vsub.f32 %v22489_v8, %v9049_v60  ;;  %v22493_v8 = vld [vmem:[#allocation27_spill] sm:$0xff] }
 0xa97   : > { %v13170_v53 = vpop.eup %13169  ;;  %v9158_v63 = vmul.f32 1.442695, %v9112_v2  ;;  %v9057_v2 = vpop.permute.xlu0 %9056 }
 0xa98   : > { %v9035_v52 = vpop.permute.xlu1 %9034  ;;  %9246 = vrot.lane.b32.xlu1 %v13170_v53, %s13313_s23  ;;  %v22491_v53 = vld [vmem:[#allocation159_spill] sm:$0xff] }
 0xa99   : > { %13179 = vpow2.f32 %v9158_v63  ;;  %v9114_v33 = vsub.f32 %v22488_v11, %v9035_v52  ;;  %v9176_v63 = vmul.f32 1.442695, %v9121_v41  ;;  %v9123_v52 = vsub.f32 %v22491_v53, %v9053_v40  ;;  %v22494_v41 = vld [vmem:[#allocation97_spill] sm:$0xff]  ;;  %v22495_v53 = vld [vmem:[#allocation171_spill] sm:$0xff] }
 0xa9a   : > { %13181 = vpow2.f32 %v9168_v13 }
 0xa9b   : > { %v13172_v6 = vpop.eup %13171  ;;  %v9162_v39 = vmul.f32 1.442695, %v9114_v33 }
 0xa9c   : > { %v9039_v23 = vpop.permute.xlu1 %9038  ;;  %9252 = vrot.lane.b32.xlu0 %v13172_v6, %s13313_s23  ;;  %v13174_v61 = vpop.eup %13173 }
 0xa9d   : > { %13183 = vpow2.f32 %v9162_v39  ;;  %v9116_v31 = vsub.f32 %v22490_v4, %v9039_v23  ;;  %v9061_v6 = vpop.permute.xlu0 %9060  ;;  %v9180_v23 = vmul.f32 1.442695, %v9123_v52  ;;  %v20078_v4 = vld [vmem:[%s13563_s17 + $0x58] sm:$0xff] }
 0xa9e   : > { %13185 = vpow2.f32 %v9172_v51  ;;  %vm21106_vm14 = vcmp.lt.s32.totalorder %v20078_v4, 3 }
 0xa9f   : > { %v13176_v27 = vpop.eup %13175  ;;  %v9166_v38 = vmul.f32 1.442695, %v9116_v31  ;;  %v9125_v31 = vsub.f32 %v22493_v8, %v9057_v2  ;;  %v22497_v8 = vld [vmem:[#allocation26_spill] sm:$0xff] }
 0xaa0   : > { %v9043_v11 = vpop.permute.xlu1 %9042  ;;  %9250 = vrot.lane.b32.xlu1 %v13176_v27, %s13313_s23  ;;  %9256 = vrot.lane.b32.xlu0 %v13174_v61, %s13313_s23  ;;  %v13178_v13 = vpop.eup %13177 }
 0xaa1   : > { %13187 = vpow2.f32 %v9166_v38  ;;  %v9118_v60 = vsub.f32 %v22492_v16, %v9043_v11  ;;  %v9184_v11 = vmul.f32 1.442695, %v9125_v31  ;;  %v9127_v16 = vsub.f32 %v22495_v53, %v9061_v6  ;;  %v9065_v2 = vpop.permute.xlu0 %9064  ;;  %v22498_v6 = vld [vmem:[#allocation160_spill] sm:$0xff] }
 0xaa2   : > { %13189 = vpow2.f32 %v9176_v63  ;;  %v22496_v63 = vld [vmem:[#allocation157_spill] sm:$0xff] }
 0xaa3   : > { %v13180_v33 = vpop.eup %13179  ;;  %v9170_v39 = vmul.f32 1.442695, %v9118_v60 }
 0xaa4   : > { %v9047_v51 = vpop.permute.xlu1 %9046  ;;  %9254 = vrot.lane.b32.xlu1 %v13180_v33, %s13313_s23  ;;  %9260 = vrot.lane.b32.xlu0 %v13178_v13, %s13313_s23  ;;  %v13182_v40 = vpop.eup %13181 }
 0xaa5   : > { %13191 = vpow2.f32 %v9170_v39  ;;  %v9120_v27 = vsub.f32 %v22494_v41, %v9047_v51  ;;  %v9188_v51 = vmul.f32 1.442695, %v9127_v16 }
 0xaa6   : > { %13193 = vpow2.f32 %v9180_v23 }
 0xaa7   : > { %v13184_v38 = vpop.eup %13183  ;;  %v9174_v61 = vmul.f32 1.442695, %v9120_v27  ;;  %v9129_v27 = vsub.f32 %v22497_v8, %v9065_v2 }
 0xaa8   : > { %v9051_v60 = vpop.permute.xlu1 %9050  ;;  %9258 = vrot.lane.b32.xlu1 %v13184_v38, %s13313_s23  ;;  %9264 = vrot.lane.b32.xlu0 %v13182_v40, %s13313_s23  ;;  %v13186_v13 = vpop.eup %13185 }
 0xaa9   : > { %13195 = vpow2.f32 %v9174_v61  ;;  %v9122_v52 = vsub.f32 %v22496_v63, %v9051_v60  ;;  %v9192_v60 = vmul.f32 1.442695, %v9129_v27 }
 0xaaa   : > { %13197 = vpow2.f32 %v9184_v11 }
 0xaab   : > { %v13188_v33 = vpop.eup %13187  ;;  %v9178_v39 = vmul.f32 1.442695, %v9122_v52 }
 0xaac   : > { %v9055_v23 = vpop.permute.xlu1 %9054  ;;  %9262 = vrot.lane.b32.xlu1 %v13188_v33, %s13313_s23  ;;  %9268 = vrot.lane.b32.xlu0 %v13186_v13, %s13313_s23  ;;  %v13190_v40 = vpop.eup %13189  ;;  %v22499_v33 = vld [vmem:[#allocation167_spill] sm:$0xff] }
 0xaad   : > { %13199 = vpow2.f32 %v9178_v39  ;;  %v9124_v31 = vsub.f32 %v22498_v6, %v9055_v23  ;;  %v9913_v23 = vsel %vm22500_vm9, %v22481_v30, %v19568_v46  ;;  %v22502_v46 = vld [vmem:[#allocation12_spill] sm:$0xff]  ;;  %v20064_v6 = vld [vmem:[%s13563_s17 + $0x48] sm:$0xff]  ;;  %vm21107_vm9 = vcmp.lt.s32.totalorder %v20087_v7, 3 }
 0xaae   : > { %13201 = vpow2.f32 %v9188_v51  ;;  %v8300_v30 = vsub.s32 1, %v22502_v46  ;;  %vm8317_vm4 = vcmp.lt.s32.totalorder %v20064_v6, 3 }
 0xaaf   : > { %v13192_v38 = vpop.eup %13191  ;;  %v9182_v61 = vmul.f32 1.442695, %v9124_v31 }
 0xab0   : > { %v9059_v53 = vpop.permute.xlu1 %9058  ;;  %9266 = vrot.lane.b32.xlu1 %v13192_v38, %s13313_s23  ;;  %9272 = vrot.lane.b32.xlu0 %v13190_v40, %s13313_s23  ;;  %v13194_v11 = vpop.eup %13193 }
 0xab1   : > { %13203 = vpow2.f32 %v9182_v61  ;;  %v9126_v16 = vsub.f32 %v22447_v35, %v9059_v53  ;;  %v9946_v53 = vsel %vm21102_vm7, %v9913_v23, %v19772_v15  ;;  %v19973_v61 = vld [vmem:[%s1041_s13] sm:$0x3]  ;;  %vm21108_vm7 = vcmp.lt.s32.totalorder %v20123_v1, 3 }
 0xab2   : > { %13205 = vpow2.f32 %v9192_v60  ;;  %v8301_v60 = vrot.slane %v19973_v61, %v8300_v30  ;;  %v19997_v23 = vld [vmem:[%s13563_s17] sm:$0xff] }
 0xab3   : > { %v13196_v2 = vpop.eup %13195  ;;  %v9186_v52 = vmul.f32 1.442695, %v9126_v16  ;;  %vm8308_vm5 = vcmp.lt.s32.totalorder %v19997_v23, 3  ;;  %v13233_v23 = vld [vmem:[%s13563_s17 + $0xa0] sm:$0xff] }
 0xab4   : > { %v9063_v13 = vpop.permute.xlu1 %9062  ;;  %9270 = vrot.lane.b32.xlu1 %v13196_v2, %s13313_s23  ;;  %9276 = vrot.lane.b32.xlu0 %v13194_v11, %s13313_s23  ;;  %v13198_v51 = vpop.eup %13197  ;;  %vm8303_vm15 = vcmp.eq.s32.totalorder %v22502_v46, %v8301_v60  ;;  %v21098_v2 = vmov 1.0  }
 0xab5   : > { %13207 = vpow2.f32 %v9186_v52  ;;  %v9128_v39 = vsub.f32 %v22499_v33, %v9063_v13  ;;  %11110 = vmatprep.mubr.msk.f32.mxu1 %vm8303_vm15, %v21098_v2  ;;  %11076 = vmatprep.mubr.msk.f32.mxu0 %vm8303_vm15, %v21098_v2  ;;  %v19985_v13 = vpop.permute.xlu0 %9702  ;;  %v20042_v2 = vld [vmem:[%s13563_s17 + $0x38] sm:$0xff]  ;;  %v20060_v33 = vld [vmem:[%s13563_s17 + $0x40] sm:$0xff] }
 0xab6   : > { %22503 = vst [vmem:[#allocation154_spill] sm:$0xff] %v19985_v13  ;;  %vm8315_vm2 = vcmp.lt.s32.totalorder %v20042_v2, 3  ;;  %v20051_v13 = vld [vmem:[%s13563_s17 + $0x30] sm:$0xff]  ;;  %vm8316_vm3 = vcmp.lt.s32.totalorder %v20060_v33, 3 }
 0xab7   : > { %v13200_v27 = vpop.eup %13199  ;;  %v9190_v35 = vmul.f32 1.442695, %v9128_v39  ;;  %v19988_v39 = vld [vmem:[%s13563_s17 + $0x8] sm:$0xff]  ;;  %vm8314_vm8 = vcmp.lt.s32.totalorder %v20051_v13, 3 }
 0xab8   : > { %v9705_v31 = vpop.permute.xlu1 %9704  ;;  %9274 = vrot.lane.b32.xlu1 %v13200_v27, %s13313_s23  ;;  %9280 = vrot.lane.b32.xlu0 %v13198_v51, %s13313_s23  ;;  %v13202_v38 = vpop.eup %13201  ;;  %vm8309_vm0 = vcmp.lt.s32.totalorder %v19988_v39, 3 }
 0xab9   : > { %13209 = vpow2.f32 %v9190_v35  ;;  %v19966_v40 = vsel %vm21101_vm13, %v9946_v53, %v9705_v31  ;;  %v20006_v31 = vld [vmem:[%s13563_s17 + $0x18] sm:$0xff]  ;;  %vm21104_vm13 = vcmp.lt.s32.totalorder %v20109_v0, 3 }
 0xaba   : > { %22501 = vst [vmem:[#allocation131_spill] sm:$0xff] %v19966_v40  ;;  %vm8311_vm12 = vcmp.lt.s32.totalorder %v20006_v31, 3 }
 0xabb   : > { %v13204_v15 = vpop.eup %13203 }
 0xabc   : > { %9278 = vrot.lane.b32.xlu1 %v13204_v15, %s13313_s23  ;;  %9284 = vrot.lane.b32.xlu0 %v13202_v38, %s13313_s23  ;;  %v13206_v16 = vpop.eup %13205  ;;  %v20015_v15 = vld [vmem:[%s13563_s17 + $0x10] sm:$0xff] }
 0xabd   : > { %vm8310_vm10 = vcmp.lt.s32.totalorder %v20015_v15, 3 }
 0xabf   : > { %v13208_v11 = vpop.eup %13207 }
 0xac0   : > { %9282 = vrot.lane.b32.xlu1 %v13208_v11, %s13313_s23  ;;  %9288 = vrot.lane.b32.xlu0 %v13206_v16, %s13313_s23  ;;  %v20024_v11 = vld [vmem:[%s13563_s17 + $0x28] sm:$0xff] }
 0xac1   : > { %vm8313_vm11 = vcmp.lt.s32.totalorder %v20024_v11, 3 }
 0xac3   : > { %v13210_v52 = vpop.eup %13209 }
 0xac4   : > { %9286 = vrot.lane.b32.xlu1 %v13210_v52, %s13313_s23 }
 0xae2   : > { %v19991_v51 = vpop.permute.xlu0 %9228 }
 0xae3   : > { %v9323_v27 = vsel %vm8309_vm0, %v19991_v51, 0.0 }
 0xae4   : > { %10043 = vperm.xlu0 %12626, %v9323_v27  }
 0xae6   : > { %v20000_v35 = vpop.permute.xlu1 %9226 }
 0xae7   : > { %v9322_v53 = vsel %vm8308_vm5, %v20000_v35, 0.0  ;;  %v12369_v55 = vpack.c.bf16 %v19991_v51, %v20000_v35  ;;  %v13234_v35 = vld [vmem:[%s13563_s17 + $0xa8] sm:$0xff] }
 0xae8   : > { %10038 = vperm.xlu1 %12627, %v9322_v53   ;;  %v20033_v53 = vld [vmem:[%s13563_s17 + $0x20] sm:$0xff] }
 0xae9   : > { %vm8312_vm1 = vcmp.lt.s32.totalorder %v20033_v53, 3 }
 0xaea   : > { %v20009_v38 = vpop.permute.xlu0 %9232 }
 0xaeb   : > { %v9325_v30 = vsel %vm8311_vm12, %v20009_v38, 0.0 }
 0xaec   : > { %10053 = vperm.xlu0 %12626, %v9325_v30  }
 0xaee   : > { %v20018_v60 = vpop.permute.xlu1 %9230 }
 0xaef   : > { %v9324_v16 = vsel %vm8310_vm10, %v20018_v60, 0.0  ;;  %v12375_v51 = vpack.c.bf16 %v20009_v38, %v20018_v60  ;;  %v13236_v60 = vld [vmem:[%s13563_s17 + $0xb8] sm:$0xff] }
 0xaf0   : > { %10048 = vperm.xlu1 %12627, %v9324_v16  }
 0xaf2   : > { %v20027_v52 = vpop.permute.xlu0 %9236 }
 0xaf3   : > { %v9327_v27 = vsel %vm8313_vm11, %v20027_v52, 0.0 }
 0xaf4   : > { %10063 = vperm.xlu1 %12627, %v9327_v27  }
 0xaf6   : > { %v20036_v30 = vpop.permute.xlu1 %9234 }
 0xaf7   : > { %v9326_v16 = vsel %vm8312_vm1, %v20036_v30, 0.0  ;;  %v12381_v38 = vpack.c.bf16 %v20027_v52, %v20036_v30  ;;  %v13238_v30 = vld [vmem:[%s13563_s17 + $0xc8] sm:$0xff] }
 0xaf8   : > { %10058 = vperm.xlu0 %12626, %v9326_v16  }
 0xafa   : > { %v20045_v40 = vpop.permute.xlu0 %9240 }
 0xafb   : > { %v9329_v27 = vsel %vm8315_vm2, %v20045_v40, 0.0 }
 0xafc   : > { %10073 = vperm.xlu1 %12627, %v9329_v27  }
 0xafe   : > { %v20054_v8 = vpop.permute.xlu1 %9238 }
 0xaff   : > { %v9328_v16 = vsel %vm8314_vm8, %v20054_v8, 0.0  ;;  %v12387_v52 = vpack.c.bf16 %v20045_v40, %v20054_v8  ;;  %v13240_v40 = vld [vmem:[%s13563_s17 + $0xd8] sm:$0xff] }
 0xb00   : > { %10068 = vperm.xlu0 %12626, %v9328_v16  }
 0xb02   : > { %v20067_v27 = vpop.permute.xlu1 %9242  ;;  %v20069_v63 = vpop.permute.xlu0 %9244 }
 0xb03   : > { %v9330_v41 = vsel %vm8316_vm3, %v20067_v27, 0.0  ;;  %v9331_v16 = vsel %vm8317_vm4, %v20069_v63, 0.0  ;;  %v12393_v8 = vpack.c.bf16 %v20069_v63, %v20067_v27  ;;  %v13241_v63 = vld [vmem:[%s13563_s17 + $0xe0] sm:$0xff] }
 0xb04   : > { %10078 = vperm.xlu0 %12626, %v9330_v41   ;;  %10083 = vperm.xlu1 %12627, %v9331_v16   ;;  %v20096_v16 = vld [vmem:[%s13563_s17 + $0x68] sm:$0xff] }
 0xb05   : > { %vm21103_vm15 = vcmp.lt.s32.totalorder %v20096_v16, 3 }
 0xb06   : > { %v20081_v18 = vpop.permute.xlu0 %9248 }
 0xb07   : > { %v9333_v3 = vsel %vm21106_vm14, %v20081_v18, 0.0  ;;  %vm12370_vm14 = vmpackc.low %vm8309_vm0, %vm8308_vm5  ;;  %vm8328_vm0 = vcmp.lt.s32.totalorder %v13233_v23, 3  ;;  %v13239_v23 = vld [vmem:[%s13563_s17 + $0xd0] sm:$0xff] }
 0xb08   : > { %10093 = vperm.xlu1 %12627, %v9333_v3  }
 0xb0a   : > { %v20090_v62 = vpop.permute.xlu1 %9246 }
 0xb0b   : > { %v9332_v41 = vsel %vm21107_vm9, %v20090_v62, 0.0  ;;  %vm8326_vm9 = vcmp.lt.s32.totalorder %v13231_v36, 3  ;;  %v12399_v27 = vpack.c.bf16 %v20081_v18, %v20090_v62  ;;  %v13244_v18 = vld [vmem:[%s13563_s17 + $0xf8] sm:$0xff] }
 0xb0c   : > { %10088 = vperm.xlu0 %12626, %v9332_v41  }
 0xb0e   : > { %v20099_v14 = vpop.permute.xlu0 %9252 }
 0xb0f   : > { %v9335_v3 = vsel %vm21103_vm15, %v20099_v14, 0.0  ;;  %vm8325_vm15 = vcmp.lt.s32.totalorder %v13229_v48, 3 }
 0xb10   : > { %10103 = vperm.xlu1 %12627, %v9335_v3  }
 0xb12   : > { %v20112_v41 = vpop.permute.xlu1 %9250  ;;  %v20114_v25 = vpop.permute.xlu0 %9256 }
 0xb13   : > { %v9334_v32 = vsel %vm21105_vm6, %v20112_v41, 0.0  ;;  %v9337_v3 = vsel %vm21104_vm13, %v20114_v25, 0.0  ;;  %vm8324_vm13 = vcmp.lt.s32.totalorder %v13230_v26, 3  ;;  %v13232_v26 = vld [vmem:[%s13563_s17 + $0x98] sm:$0xff]  ;;  %v12405_v62 = vpack.c.bf16 %v20099_v14, %v20112_v41 }
 0xb14   : > { %10098 = vperm.xlu0 %12626, %v9334_v32   ;;  %10113 = vperm.xlu1 %12627, %v9337_v3   ;;  %vm12367_vm6 = vmpackc.low %vm8325_vm15, %vm8324_vm13 }
 0xb16   : > { %v20127_v22 = vpop.permute.xlu1 %9254  ;;  %v9261_v12 = vpop.permute.xlu0 %9260 }
 0xb17   : > { %v9336_v45 = vsel %vm21108_vm7, %v20127_v22, 0.0  ;;  %v9339_v5 = vsel %vm8325_vm15, %v9261_v12, 0.0  ;;  %vm8327_vm7 = vcmp.lt.s32.totalorder %v13232_v26, 3 }
 0xb18   : > { %10108 = vperm.xlu0 %12626, %v9336_v45   ;;  %10123 = vperm.xlu1 %12627, %v9339_v5   ;;  %vm12373_vm15 = vmpackc.low %vm8327_vm7, %vm8326_vm9 }
 0xb1a   : > { %v9259_v32 = vpop.permute.xlu1 %9258  ;;  %v9265_v3 = vpop.permute.xlu0 %9264 }
 0xb1b   : > { %v9338_v48 = vsel %vm8324_vm13, %v9259_v32, 0.0  ;;  %v12366_v54 = vpack.c.bf16 %v9261_v12, %v9259_v32  ;;  %vm12376_vm13 = vmpackc.low %vm8311_vm12, %vm8310_vm10  ;;  %v9341_v12 = vsel %vm8327_vm7, %v9265_v3, 0.0  ;;  %vm8331_vm10 = vcmp.lt.s32.totalorder %v13236_v60, 3 }
 0xb1c   : > { %10118 = vperm.xlu0 %12626, %v9338_v48   ;;  %vm12382_vm7 = vmpackc.low %vm8313_vm11, %vm8312_vm1  ;;  %v22509_v60 = vsub.s32 0, %v22502_v46 }
 0xb1d   : > { %12368 = vmatprep.subr.msk.bf16.mxu1 %vm12367_vm6, %v12366_v54  ;;  %vm8329_vm6 = vcmp.lt.s32.totalorder %v13234_v35, 3  ;;  %vm12388_vm11 = vmpackc.low %vm8315_vm2, %vm8314_vm8  ;;  %vm8334_vm8 = vcmp.lt.s32.totalorder %v13239_v23, 3 }
 0xb1e   : > { %v9263_v45 = vpop.permute.xlu1 %9262  ;;  %12371 = vmatpush3.bf16.msk.msra.mxu1 %vm12370_vm14, %v12369_v55  ;;  %v9269_v5 = vpop.permute.xlu0 %9268  ;;  %vm12379_vm5 = vmpackc.low %vm8329_vm6, %vm8328_vm0 }
 0xb1f   : > { %v9340_v39 = vsel %vm8326_vm9, %v9263_v45, 0.0  ;;  %v12372_v36 = vpack.c.bf16 %v9265_v3, %v9263_v45  ;;  %v9343_v31 = vsel %vm8329_vm6, %v9269_v5, 0.0  ;;  %v13235_v3 = vld [vmem:[%s13563_s17 + $0xb0] sm:$0xff]  ;;  %vm8333_vm9 = vcmp.lt.s32.totalorder %v13238_v30, 3  ;;  %vm12394_vm2 = vmpackc.low %vm8317_vm4, %vm8316_vm3  ;;  %v22527_v30 = vld [vmem:[#allocation115_spill] sm:$0xff] }
 0xb20   : > { %10128 = vperm.xlu1 %12627, %v9340_v39   ;;  %10133 = vperm.xlu0 %12626, %v9341_v12   ;;  %vm8330_vm12 = vcmp.lt.s32.totalorder %v13235_v3, 3  ;;  %vm22504_vm3 = vcmp.lt.s32.totalorder %v20087_v7, 3  ;;  %vm22505_vm4 = vcmp.lt.s32.totalorder %v20078_v4, 3 }
 0xb21   : > { %12374 = vmatprep.subr.msk.bf16.mxu1 %vm12373_vm15, %v12372_v36  ;;  %vm12385_vm14 = vmpackc.low %vm8331_vm10, %vm8330_vm12 }
 0xb22   : > { %v9267_v55 = vpop.permute.xlu1 %9266  ;;  %12377 = vmatpush3.bf16.msk.msra.mxu1 %vm12376_vm13, %v12375_v51  ;;  %v9273_v54 = vpop.permute.xlu0 %9272  ;;  %vm8335_vm13 = vcmp.lt.s32.totalorder %v13240_v40, 3  ;;  %vm12400_vm6 = vmpackc.low %vm22505_vm4, %vm22504_vm3  ;;  %vm22516_vm3 = vcmask 138240   ;;  %v22534_v40 = vld [vmem:[#allocation163_spill] sm:$0xff] }
 0xb23   : > { %v9342_v15 = vsel %vm8328_vm0, %v9267_v55, 0.0  ;;  %v12378_v32 = vpack.c.bf16 %v9269_v5, %v9267_v55  ;;  %v9345_v11 = vsel %vm8331_vm10, %v9273_v54, 0.0  ;;  %v13237_v5 = vld [vmem:[%s13563_s17 + $0xc0] sm:$0xff]  ;;  %vm12397_vm0 = vmpackc.low %vm8335_vm13, %vm8334_vm8  ;;  %vm22506_vm10 = vcmp.lt.s32.totalorder %v20105_v42, 3 }
 0xb24   : > { %10138 = vperm.xlu1 %12627, %v9342_v15   ;;  %10143 = vperm.xlu0 %12626, %v9343_v31   ;;  %vm8332_vm1 = vcmp.lt.s32.totalorder %v13237_v5, 3  ;;  %vm22517_vm4 = vmmov %vm22516_vm3 }
 0xb25   : > { %12380 = vmatprep.subr.msk.bf16.mxu1 %vm12379_vm5, %v12378_v32  ;;  %vm12391_vm15 = vmpackc.low %vm8333_vm9, %vm8332_vm1  ;;  %vm8336_vm5 = vcmp.lt.s32.totalorder %v13241_v63, 3  ;;  %v13243_v32 = vld [vmem:[%s13563_s17 + $0xf0] sm:$0xff] }
 0xb26   : > { %v9271_v48 = vpop.permute.xlu1 %9270  ;;  %12383 = vmatpush3.bf16.msk.msra.mxu1 %vm12382_vm7, %v12381_v38  ;;  %v9277_v53 = vpop.permute.xlu0 %9276  ;;  %v22508_v38 = vsub.f32 %v19469_v10, %v19476_v58  ;;  %v12411_v10 = vpack.c.bf16 %v20114_v25, %v20127_v22  ;;  %v22512_v58 = vld [vmem:[#allocation43_spill] sm:$0xff]  ;;  %v22514_v25 = vld [vmem:[#allocation37_spill] sm:$0xff] }
 0xb27   : > { %v9344_v26 = vsel %vm8330_vm12, %v9271_v48, 0.0  ;;  %v12384_v45 = vpack.c.bf16 %v9273_v54, %v9271_v48  ;;  %v9347_v2 = vsel %vm8333_vm9, %v9277_v53, 0.0  ;;  %v13242_v54 = vld [vmem:[%s13563_s17 + $0xe8] sm:$0xff]  ;;  %vm8339_vm9 = vcmp.lt.s32.totalorder %v13244_v18, 3 }
 0xb28   : > { %10148 = vperm.xlu0 %12626, %v9344_v26   ;;  %10153 = vperm.xlu1 %12627, %v9345_v11   ;;  %vm8337_vm7 = vcmp.lt.s32.totalorder %v13242_v54, 3  ;;  %v8643_v42 = vmul.f32 1.442695, %v22508_v38  ;;  %v20195_v48 = vrot.slane %v19973_v61, %v22509_v60  ;;  %v9898_v61 = vsel %vm22516_vm3, %v22469_v9, %v19421_v57  ;;  %v22541_v54 = vld [vmem:[#allocation197_spill] sm:$0xff]  ;;  %v22547_v38 = vld [vmem:[#allocation52_spill] sm:$0xff] }
 0xb29   : > { %12386 = vmatprep.subr.msk.bf16.mxu1 %vm12385_vm14, %v12384_v45  ;;  %vm12403_vm12 = vmpackc.low %vm8337_vm7, %vm8336_vm5  ;;  %vm22507_vm14 = vcmp.lt.s32.totalorder %v20096_v16, 3 }
 0xb2a   : > { %v9275_v12 = vpop.permute.xlu1 %9274  ;;  %12389 = vmatpush3.bf16.msk.msra.mxu1 %vm12388_vm11, %v12387_v52  ;;  %v9281_v13 = vpop.permute.xlu0 %9280  ;;  %vm12406_vm11 = vmpackc.low %vm22507_vm14, %vm22506_vm10  ;;  %13211 = vpow2.f32 %v8643_v42  ;;  %v22548_v42 = vld [vmem:[#allocation207_spill] sm:$0xff] }
 0xb2b   : > { %v9346_v39 = vsel %vm8332_vm1, %v9275_v12, 0.0  ;;  %v12390_v36 = vpack.c.bf16 %v9277_v53, %v9275_v12  ;;  %v9349_v6 = vsel %vm8335_vm13, %v9281_v13, 0.0  ;;  %vm8338_vm1 = vcmp.lt.s32.totalorder %v13243_v32, 3  ;;  %vm22521_vm10 = vmmov %vm22516_vm3 }
 0xb2c   : > { %10158 = vperm.xlu0 %12626, %v9346_v39   ;;  %10163 = vperm.xlu1 %12627, %v9347_v2   ;;  %v9901_v52 = vsel %vm22521_vm10, %v22470_v43, %v19500_v34  ;;  %v22530_v2 = vld [vmem:[#allocation72_spill] sm:$0xff] }
 0xb2d   : > { %12392 = vmatprep.subr.msk.bf16.mxu1 %vm12391_vm15, %v12390_v36  ;;  %vm12409_vm15 = vmpackc.low %vm8339_vm9, %vm8338_vm1 }
 0xb2e   : > { %v9279_v51 = vpop.permute.xlu1 %9278  ;;  %12395 = vmatpush3.bf16.msk.msra.mxu1 %vm12394_vm2, %v12393_v8  ;;  %v9285_v33 = vpop.permute.xlu0 %9284  ;;  %vm22510_vm2 = vcmp.lt.s32.totalorder %v20123_v1, 3  ;;  %v22513_v1 = vmov 1.0  }
 0xb2f   : > { %v9348_v35 = vsel %vm8334_vm8, %v9279_v51, 0.0  ;;  %v12396_v55 = vpack.c.bf16 %v9281_v13, %v9279_v51  ;;  %v9351_v7 = vsel %vm8337_vm7, %v9285_v33, 0.0  ;;  %vm22511_vm8 = vcmp.lt.s32.totalorder %v20109_v0, 3  ;;  %v22515_v0 = vld [vmem:[#allocation65_spill] sm:$0xff]  ;;  %v22529_v13 = vld [vmem:[#allocation196_spill] sm:$0xff] }
 0xb30   : > { %10168 = vperm.xlu0 %12626, %v9348_v35   ;;  %10173 = vperm.xlu1 %12627, %v9349_v6   ;;  %vm12412_vm13 = vmpackc.low %vm22511_vm8, %vm22510_vm2  ;;  %v22535_v51 = vld [vmem:[#allocation148_spill] sm:$0xff]  ;;  %v22537_v6 = vld [vmem:[#allocation18_spill] sm:$0xff] }
 0xb31   : > { %12398 = vmatprep.subr.msk.bf16.mxu1 %vm12397_vm0, %v12396_v55  ;;  %vm8302_vm0 = vcmp.eq.s32.totalorder %v22502_v46, %v20195_v48  ;;  %v22539_v55 = vld [vmem:[#allocation121_spill] sm:$0xff]  ;;  %v13315_v48 = vmov (!%p11112_p11), 0  }
 0xb32   : > { %v9283_v31 = vpop.permute.xlu1 %9282  ;;  %12401 = vmatpush3.bf16.msk.msra.mxu1 %vm12400_vm6, %v12399_v27  ;;  %v9289_v3 = vpop.permute.xlu0 %9288  ;;  %vm9996_vm6 = vcmask 293888  }
 0xb33   : > { %v9350_v4 = vsel %vm8336_vm5, %v9283_v31, 0.0  ;;  %v12402_v15 = vpack.c.bf16 %v9285_v33, %v9283_v31  ;;  %v9353_v14 = vsel %vm8339_vm9, %v9289_v3, 0.0  ;;  %vm22518_vm5 = vcmask 162816  }
 0xb34   : > { %10178 = vperm.xlu0 %12626, %v9350_v4   ;;  %10183 = vperm.xlu1 %12627, %v9351_v7   ;;  %v20217_v22 = vpop.eup %13211  ;;  %v9931_v11 = vsel %vm22518_vm5, %v9898_v61, %v19652_v28  ;;  %vm22519_vm7 = vmmov %vm22518_vm5  ;;  %v22543_v7 = vld [vmem:[#allocation19_spill] sm:$0xff]  ;;  %v22555_v61 = vld [vmem:[#allocation13_spill] sm:$0xff] }
 0xb35   : > { %12404 = vmatprep.subr.msk.bf16.mxu1 %vm12403_vm12, %v12402_v15  ;;  %vm22520_vm12 = vcmask 228352   ;;  %v22545_v15 = vld [vmem:[#allocation90_spill] sm:$0xff] }
 0xb36   : > { %v9287_v16 = vpop.permute.xlu1 %9286  ;;  %12407 = vmatpush3.bf16.msk.msra.mxu1 %vm12406_vm11, %v12405_v62  ;;  %v9964_v5 = vsel %vm22520_vm12, %v9931_v11, %v19662_v21  ;;  %vm22522_vm14 = vmmov %vm22520_vm12  ;;  %v22546_v62 = vld [vmem:[#allocation123_spill] sm:$0xff] }
 0xb37   : > { %v9352_v41 = vsel %vm8338_vm1, %v9287_v16, 0.0  ;;  %v12408_v53 = vpack.c.bf16 %v9289_v3, %v9287_v16  ;;  %v9997_v28 = vsel %vm9996_vm6, %v9964_v5, %v19670_v19  ;;  %vm22523_vm11 = vmmov %vm22518_vm5  ;;  %v22559_v5 = vld [vmem:[#allocation174_spill] sm:$0xff] }
 0xb38   : > { %10188 = vperm.xlu0 %12626, %v9352_v41   ;;  %10193 = vperm.xlu1 %12627, %v9353_v14   ;;  %v9934_v21 = vsel %vm22523_vm11, %v9901_v52, %v19678_v50  ;;  %vm22524_vm1 = vmmov %vm22516_vm3 }
 0xb39   : > { %12410 = vmatprep.subr.msk.bf16.mxu1 %vm12409_vm15, %v12408_v53  ;;  %vm22525_vm9 = vmmov %vm22520_vm12  ;;  %v22550_v53 = vld [vmem:[#allocation175_spill] sm:$0xff] }
 0xb3a   : > { %12413 = vmatpush3.bf16.msk.msra.mxu1 %vm12412_vm13, %v12411_v10  ;;  %vm22526_vm15 = vmmov %vm22518_vm5 }
 0xb3b   : > { %vm22528_vm2 = vmmov %vm22525_vm9 }
 0xb3c   : > { %9862 = vrot.lane.b32.xlu0 %v22512_v58, %s13311_s22  ;;  %9864 = vrot.lane.b32.xlu1 %v19390_v17, %s13311_s22  ;;  %v9899_v17 = vsel %vm22517_vm4, %v22468_v37, %v19488_v44  ;;  %vm22533_vm8 = vmmov %vm22524_vm1  ;;  %v22552_v58 = vld [vmem:[#allocation48_spill] sm:$0xff] }
 0xb3d   : > { %11111 = vmatmul.mubr.msk.f32.vlgmr.msra.gmra.mrb[64].mxu1 %vm8302_vm0, %v22513_v1  ;;  %v9932_v26 = vsel %vm22519_vm7, %v9899_v17, %v19672_v56  ;;  %vm22536_vm13 = vmmov %vm22524_vm1 }
 0xb3e   : > { %v9965_v57 = vsel %vm22522_vm14, %v9932_v26, %v19676_v59  ;;  %v9900_v59 = vsel %vm22524_vm1, %v22471_v49, %v19429_v29  ;;  %v22531_v49 = vld [vmem:[#allocation161_spill] sm:$0xff]  ;;  %v9903_v33 = vsel %vm22536_vm13, %v22535_v51, %v22534_v40  ;;  %vm22538_vm3 = vmmov %vm22518_vm5 }
 0xb3f   : > { %v9998_v44 = vsel %vm9996_vm6, %v9965_v57, %v19682_v20  ;;  %v9967_v20 = vsel %vm22525_vm9, %v9934_v21, %v19686_v47  ;;  %v9933_v19 = vsel %vm22526_vm15, %v9900_v59, %v19636_v24  ;;  %v22532_v24 = vld [vmem:[#allocation143_spill] sm:$0xff]  ;;  %v9936_v35 = vsel %vm22538_vm3, %v9903_v33, %v22537_v6  ;;  %vm22540_vm4 = vmmov %vm22538_vm3  ;;  %v22557_v26 = vld [vmem:[#allocation101_spill] sm:$0xff] }
 0xb40   : > { %9830 = vrot.lane.b32.xlu0 %v22514_v25, %s13311_s22  ;;  %9832 = vrot.lane.b32.xlu1 %v22515_v0, %s13311_s22  ;;  %v9966_v12 = vsel %vm22528_vm2, %v9933_v19, %v22527_v30  ;;  %v10000_v50 = vsel %vm9996_vm6, %v9967_v20, %v22529_v13  ;;  %v9902_v8 = vsel %vm22533_vm8, %v22532_v24, %v22531_v49  ;;  %vm22542_vm5 = vmmov %vm22528_vm2  ;;  %v22553_v25 = vld [vmem:[#allocation109_spill] sm:$0xff]  ;;  %v22561_v57 = vld [vmem:[#allocation135_spill] sm:$0xff] }
 0xb41   : > { %v9999_v39 = vsel %vm9996_vm6, %v9966_v12, %v22530_v2  ;;  %v9935_v63 = vsel %vm22540_vm4, %v9902_v8, %v22539_v55  ;;  %v9969_v31 = vsel %vm22542_vm5, %v9936_v35, %v22541_v54  ;;  %vm22544_vm7 = vmmov %vm22528_vm2  ;;  %v22563_v59 = vld [vmem:[#allocation50_spill] sm:$0xff]  ;;  %v22564_v20 = vld [vmem:[#allocation28_spill] sm:$0xff] }
 0xb42   : > { %v9968_v4 = vsel %vm22544_vm7, %v9935_v63, %v22543_v7  ;;  %v10002_v32 = vsel %vm9996_vm6, %v9969_v31, %v22545_v15  ;;  %vm22549_vm12 = vmmov %vm22524_vm1  ;;  %v22567_v30 = vld [vmem:[#allocation145_spill] sm:$0xff]  ;;  %v22569_v2 = vld [vmem:[#allocation142_spill] sm:$0xff] }
 0xb43   : > { %v10001_v18 = vsel %vm9996_vm6, %v9968_v4, %v22546_v62  ;;  %v9905_v16 = vsel %vm22549_vm12, %v22548_v42, %v22547_v38  ;;  %vm22551_vm10 = vmmov %vm22538_vm3  ;;  %v22573_v24 = vld [vmem:[#allocation199_spill] sm:$0xff]  ;;  %v22575_v40 = vld [vmem:[#allocation181_spill] sm:$0xff] }
 0xb44   : > { %10032 = vperm.xlu0 %12626, %v20217_v22   ;;  %v9938_v10 = vsel %vm22551_vm10, %v9905_v16, %v22550_v53  ;;  %vm22554_vm14 = vmmov %vm22524_vm1  ;;  %v22577_v6 = vld [vmem:[#allocation200_spill] sm:$0xff]  ;;  %v22578_v63 = vld [vmem:[#allocation137_spill] sm:$0xff] }
 0xb45   : > { %v9904_v0 = vsel %vm22554_vm14, %v22553_v25, %v22552_v58  ;;  %vm22556_vm11 = vmmov %vm22538_vm3  ;;  %v22579_v15 = vld [vmem:[#allocation45_spill] sm:$0xff]  ;;  %v22585_v42 = vld [vmem:[#allocation118_spill] sm:$0xff] }
 0xb46   : > { %v9937_v17 = vsel %vm22556_vm11, %v9904_v0, %v22555_v61  ;;  %vm22558_vm1 = vmmov %vm22528_vm2  ;;  %v22587_v53 = vld [vmem:[#allocation177_spill] sm:$0xff]  ;;  %v22589_v25 = vld [vmem:[#allocation120_spill] sm:$0xff] }
 0xb47   : > { %vm22560_vm9 = vmmov %vm22558_vm1  ;;  %v22591_v61 = vld [vmem:[#allocation107_spill] sm:$0xff] }
 0xb48   : > { %v9970_v52 = vsel %vm22560_vm9, %v9937_v17, %v22559_v5  ;;  %vm22565_vm15 = vmmov %vm22533_vm8  ;;  %13245 = vset.pattern.permute.xlu0 (!%p11112_p11), %v13315_v48 }
 0xb49   : > { %v9906_v19 = vsel %vm22565_vm15, %v22564_v20, %v22563_v59  ;;  %vm22568_vm2 = vmmov %vm22533_vm8  ;;  %v22596_v59 = vld [vmem:[#allocation70_spill] sm:$0xff] }
 0xb4a   : > { %vm22570_vm8 = vmmov %vm22538_vm3 }
 0xb4b   : > { %vm22572_vm13 = vmmov %vm22538_vm3 }
 0xb4c   : > { %vm22574_vm3 = vmmov %vm22558_vm1 }
 0xb4d   : > { %vm22576_vm4 = vmmov %vm22558_vm1 }
 0xb4e   : > { %vm22581_vm5 = vmmov %vm22568_vm2 }
 0xb4f   : > { %vm22584_vm7 = vmmov %vm22568_vm2 }
 0xb50   : > { %vm22586_vm12 = vmmov %vm22570_vm8 }
 0xb51   : > { %vm22588_vm10 = vmmov %vm22570_vm8 }
 0xb52   : > { %vm22590_vm14 = vmmov %vm22558_vm1 }
 0xb53   : > { %vm22592_vm11 = vmmov %vm22558_vm1 }
 0xb54   : > { %vm22602_vm15 = vmmov %vm22570_vm8 }
 0xb63   : > { %v10044_v45 = vpop.permute.xlu0 %10043 }
 0xb64   : > { %v20241_v9 = vmul.f32 %v10044_v45, %v9998_v44  ;;  %v9971_v45 = vsel %vm22558_vm1, %v9938_v10, %v22557_v26  ;;  %vm22597_vm1 = vmmov %vm22568_vm2 }
 0xb65   : > { %v10004_v44 = vsel %vm9996_vm6, %v9971_v45, %v22561_v57  ;;  %v22594_v45 = vld [vmem:[#allocation176_spill] sm:$0xff]  ;;  %vm22600_vm9 = vmmov %vm22597_vm1 }
 0xb67   : > { %v10039_v37 = vpop.permute.xlu1 %10038 }
 0xb68   : > { %v20243_v56 = vmul.f32 %v10039_v37, %v9997_v28  ;;  %v22562_v28 = vld [vmem:[#allocation133_spill] sm:$0xff] }
 0xb69   : > { %v10003_v37 = vsel %vm9996_vm6, %v9970_v52, %v22562_v28 }
 0xb6a   : > { %v12336_v34 = vpack.c.bf16 %v20241_v9, %v20243_v56  ;;  %v22661_v56 = vld [vmem:[#allocation105_spill] sm:$0xff] }
 0xb6b   : > { %v10054_v43 = vpop.permute.xlu0 %10053 }
 0xb6c   : > { %v20262_v23 = vmul.f32 %v10054_v43, %v10000_v50  ;;  %v22566_v43 = vld [vmem:[#allocation98_spill] sm:$0xff] }
 0xb6d   : > { %v9907_v12 = vsel %vm22568_vm2, %v22567_v30, %v22566_v43  ;;  %v22599_v43 = vld [vmem:[#allocation151_spill] sm:$0xff]  ;;  %vm22604_vm2 = vmmov %vm22570_vm8 }
 0xb6f   : > { %v10049_v36 = vpop.permute.xlu1 %10048 }
 0xb70   : > { %v20264_v29 = vmul.f32 %v10049_v36, %v9999_v39  ;;  %v9940_v39 = vsel %vm22570_vm8, %v9907_v12, %v22569_v2  ;;  %v22571_v36 = vld [vmem:[#allocation24_spill] sm:$0xff]  ;;  %v22601_v12 = vld [vmem:[#allocation23_spill] sm:$0xff]  ;;  %vm22606_vm8 = vmmov %vm22574_vm3 }
 0xb71   : > { %v9939_v49 = vsel %vm22572_vm13, %v9906_v19, %v22571_v36  ;;  %v9973_v8 = vsel %vm22574_vm3, %v9940_v39, %v22573_v24  ;;  %v22598_v19 = vld [vmem:[#allocation170_spill] sm:$0xff]  ;;  %v22603_v39 = vld [vmem:[#allocation17_spill] sm:$0xff]  ;;  %vm22608_vm13 = vmmov %vm22574_vm3 }
 0xb72   : > { %v12340_v47 = vpack.c.bf16 %v20262_v23, %v20264_v29  ;;  %v9972_v51 = vsel %vm22576_vm4, %v9939_v49, %v22575_v40  ;;  %v10006_v35 = vsel %vm9996_vm6, %v9973_v8, %v22577_v6  ;;  %v9911_v30 = vsel %vm22600_vm9, %v22599_v43, %v22598_v19  ;;  %v22605_v49 = vld [vmem:[#allocation111_spill] sm:$0xff]  ;;  %v22607_v8 = vld [vmem:[#allocation108_spill] sm:$0xff]  ;;  %vm22613_vm3 = vmmov %vm22597_vm1 }
 0xb73   : > { %v10064_v27 = vpop.permute.xlu1 %10063  ;;  %v9944_v2 = vsel %vm22602_vm15, %v9911_v30, %v22601_v12  ;;  %vm22616_vm4 = vmmov %vm22597_vm1  ;;  %v22631_v43 = vld [vmem:[#allocation140_spill] sm:$0xff]  ;;  %v22677_v29 = vld [vmem:[#allocation69_spill] sm:$0xff] }
 0xb74   : > { %v20289_v60 = vmul.f32 %v10064_v27, %v10002_v32  ;;  %v10005_v27 = vsel %vm9996_vm6, %v9972_v51, %v22578_v63  ;;  %v22580_v32 = vld [vmem:[#allocation76_spill] sm:$0xff]  ;;  %v9977_v24 = vsel %vm22606_vm8, %v9944_v2, %v22605_v49  ;;  %v22632_v2 = vld [vmem:[#allocation165_spill] sm:$0xff]  ;;  %vm22635_vm9 = vmmov %vm22606_vm8 }
 0xb75   : > { %v9908_v62 = vsel %vm22581_vm5, %v22580_v32, %v22579_v15  ;;  %v22609_v51 = vld [vmem:[#allocation128_spill] sm:$0xff]  ;;  %vm22619_vm5 = vmmov %vm22597_vm1 }
 0xb76   : > { %v9941_v10 = vsel %vm22588_vm10, %v9908_v62, %v22587_v53  ;;  %v10010_v6 = vsel %vm9996_vm6, %v9977_v24, %v22609_v51  ;;  %vm22625_vm10 = vmmov %vm22604_vm2  ;;  %v22636_v51 = vld [vmem:[#allocation82_spill] sm:$0xff] }
 0xb77   : > { %v10059_v3 = vpop.permute.xlu0 %10058  ;;  %v9974_v17 = vsel %vm22592_vm11, %v9941_v10, %v22591_v61  ;;  %v22617_v10 = vld [vmem:[#allocation66_spill] sm:$0xff]  ;;  %vm22629_vm11 = vmmov %vm22606_vm8 }
 0xb78   : > { %v20291_v14 = vmul.f32 %v10059_v3, %v10001_v18  ;;  %v22582_v18 = vld [vmem:[#allocation51_spill] sm:$0xff]  ;;  %v22583_v3 = vld [vmem:[#allocation206_spill] sm:$0xff]  ;;  %v10007_v5 = vsel %vm9996_vm6, %v9974_v17, %v22594_v45  ;;  %v22622_v17 = vld [vmem:[#allocation80_spill] sm:$0xff] }
 0xb79   : > { %v9909_v38 = vsel %vm22584_vm7, %v22583_v3, %v22582_v18  ;;  %v22611_v18 = vld [vmem:[#allocation47_spill] sm:$0xff]  ;;  %v22612_v3 = vld [vmem:[#allocation84_spill] sm:$0xff]  ;;  %vm22621_vm7 = vmmov %vm22604_vm2 }
 0xb7a   : > { %v12344_v41 = vpack.c.bf16 %v20289_v60, %v20291_v14  ;;  %v9942_v16 = vsel %vm22586_vm12, %v9909_v38, %v22585_v42  ;;  %v9914_v38 = vsel %vm22613_vm3, %v22612_v3, %v22611_v18  ;;  %v22614_v42 = vld [vmem:[#allocation103_spill] sm:$0xff]  ;;  %vm22623_vm12 = vmmov %vm22604_vm2  ;;  %v22640_v18 = vld [vmem:[#allocation102_spill] sm:$0xff] }
 0xb7b   : > { %v10074_v11 = vpop.permute.xlu1 %10073  ;;  %v9975_v0 = vsel %vm22590_vm14, %v9942_v16, %v22589_v25  ;;  %v22615_v16 = vld [vmem:[#allocation155_spill] sm:$0xff]  ;;  %vm22627_vm14 = vmmov %vm22606_vm8 }
 0xb7c   : > { %v20316_v13 = vmul.f32 %v10074_v11, %v10004_v44  ;;  %v22593_v11 = vld [vmem:[#allocation138_spill] sm:$0xff]  ;;  %v9915_v53 = vsel %vm22616_vm4, %v22615_v16, %v22614_v42  ;;  %vm22637_vm15 = vmmov %vm22604_vm2  ;;  %v22693_v14 = vld [vmem:[#allocation99_spill] sm:$0xff] }
 0xb7d   : > { %v10008_v26 = vsel %vm9996_vm6, %v9975_v0, %v22593_v11  ;;  %v22620_v0 = vld [vmem:[#allocation16_spill] sm:$0xff]  ;;  %v22641_v42 = vld [vmem:[#allocation130_spill] sm:$0xff]  ;;  %vm22649_vm3 = vmmov %vm22621_vm7 }
 0xb7e   : > { %v9947_v61 = vsel %vm22621_vm7, %v9914_v38, %v22620_v0  ;;  %v22645_v0 = vld [vmem:[#allocation172_spill] sm:$0xff]  ;;  %vm22651_vm4 = vmmov %vm22649_vm3 }
 0xb7f   : > { %v10069_v21 = vpop.permute.xlu0 %10068 }
 0xb80   : > { %v20318_v50 = vmul.f32 %v10069_v21, %v10003_v37  ;;  %v22595_v21 = vld [vmem:[#allocation164_spill] sm:$0xff] }
 0xb81   : > { %v9910_v20 = vsel %vm22597_vm1, %v22596_v59, %v22595_v21  ;;  %v22628_v21 = vld [vmem:[#allocation184_spill] sm:$0xff] }
 0xb82   : > { %v12348_v33 = vpack.c.bf16 %v20316_v13, %v20318_v50  ;;  %v9943_v36 = vsel %vm22604_vm2, %v9910_v20, %v22603_v39  ;;  %v22630_v20 = vld [vmem:[#allocation126_spill] sm:$0xff]  ;;  %v22633_v39 = vld [vmem:[#allocation153_spill] sm:$0xff]  ;;  %vm22639_vm2 = vmmov %vm22606_vm8 }
 0xb83   : > { %v10084_v55 = vpop.permute.xlu1 %10083  ;;  %v10079_v54 = vpop.permute.xlu0 %10078  ;;  %v9976_v40 = vsel %vm22608_vm13, %v9943_v36, %v22607_v8  ;;  %v9916_v36 = vsel %vm22597_vm1, %v22633_v39, %v22632_v2  ;;  %v22634_v8 = vld [vmem:[#allocation127_spill] sm:$0xff]  ;;  %vm22644_vm8 = vmmov %vm22597_vm1  ;;  %v22657_v39 = vld [vmem:[#allocation188_spill] sm:$0xff] }
 0xb84   : > { %v20334_v31 = vmul.f32 %v10084_v55, %v10006_v35  ;;  %v20336_v7 = vmul.f32 %v10079_v54, %v10005_v27  ;;  %v22610_v55 = vld [vmem:[#allocation182_spill] sm:$0xff]  ;;  %vm22647_vm13 = vmmov %vm22597_vm1 }
 0xb85   : > { %v10009_v63 = vsel %vm9996_vm6, %v9976_v40, %v22610_v55  ;;  %v22638_v55 = vld [vmem:[#allocation94_spill] sm:$0xff]  ;;  %vm22655_vm7 = vmmov %vm22639_vm2 }
 0xb86   : > { %v12352_v4 = vpack.c.bf16 %v20334_v31, %v20336_v7 }
 0xb87   : > { %v10094_v58 = vpop.permute.xlu1 %10093 }
 0xb88   : > { %v20358_v57 = vmul.f32 %v10094_v58, %v10008_v26  ;;  %v22618_v58 = vld [vmem:[#allocation93_spill] sm:$0xff] }
 0xb89   : > { %v9917_v25 = vsel %vm22619_vm5, %v22618_v58, %v22617_v10  ;;  %v22624_v26 = vld [vmem:[#allocation85_spill] sm:$0xff]  ;;  %v22642_v10 = vld [vmem:[#allocation114_spill] sm:$0xff]  ;;  %v22643_v58 = vld [vmem:[#allocation88_spill] sm:$0xff] }
 0xb8a   : > { %v9950_v11 = vsel %vm22623_vm12, %v9917_v25, %v22622_v17  ;;  %v9948_v45 = vsel %vm22625_vm10, %v9915_v53, %v22624_v26  ;;  %v9918_v25 = vsel %vm22644_vm8, %v22643_v58, %v22642_v10  ;;  %vm22653_vm5 = vmmov %vm22639_vm2  ;;  %v22672_v10 = vld [vmem:[#allocation187_spill] sm:$0xff] }
 0xb8b   : > { %v10089_v52 = vpop.permute.xlu0 %10088  ;;  %v9981_v59 = vsel %vm22629_vm11, %v9948_v45, %v22628_v21  ;;  %v9983_v40 = vsel %vm22635_vm9, %v9950_v11, %v22634_v8  ;;  %v22648_v45 = vld [vmem:[#allocation77_spill] sm:$0xff]  ;;  %v22652_v21 = vld [vmem:[#allocation67_spill] sm:$0xff]  ;;  %vm22660_vm12 = vmmov %vm22597_vm1 }
 0xb8c   : > { %v20360_v44 = vmul.f32 %v10089_v52, %v10007_v5  ;;  %v22626_v52 = vld [vmem:[#allocation185_spill] sm:$0xff]  ;;  %v10014_v19 = vsel %vm9996_vm6, %v9981_v59, %v22630_v20  ;;  %v10016_v16 = vsel %vm9996_vm6, %v9983_v40, %v22641_v42  ;;  %v22654_v20 = vld [vmem:[#allocation119_spill] sm:$0xff]  ;;  %vm22663_vm10 = vmmov %vm22597_vm1 }
 0xb8d   : > { %v22659_v8 = vld [vmem:[#allocation97_spill] sm:$0xff]  ;;  %vm22667_vm11 = vmmov %vm22649_vm3 }
 0xb8e   : > { %v12356_v28 = vpack.c.bf16 %v20358_v57, %v20360_v44  ;;  %vm22669_vm1 = vmmov %vm22639_vm2  ;;  %v22670_v42 = vld [vmem:[#allocation201_spill] sm:$0xff]  ;;  %v22724_v44 = vld [vmem:[#allocation104_spill] sm:$0xff] }
 0xb8f   : > { %v10104_v37 = vpop.permute.xlu1 %10103  ;;  %vm22671_vm9 = vmmov %vm22669_vm1 }
 0xb90   : > { %v20384_v54 = vmul.f32 %v10104_v37, %v10010_v6  ;;  %v9980_v37 = vsel %vm22627_vm14, %v9947_v61, %v22626_v52  ;;  %v9949_v6 = vsel %vm22637_vm15, %v9916_v36, %v22636_v51  ;;  %v22646_v61 = vld [vmem:[#allocation95_spill] sm:$0xff]  ;;  %v22650_v52 = vld [vmem:[#allocation117_spill] sm:$0xff]  ;;  %vm22665_vm14 = vmmov %vm22649_vm3 }
 0xb91   : > { %v10013_v30 = vsel %vm9996_vm6, %v9980_v37, %v22631_v43  ;;  %v9919_v17 = vsel %vm22647_vm13, %v22646_v61, %v22645_v0  ;;  %v9951_v37 = vsel %vm22651_vm4, %v9918_v25, %v22650_v52  ;;  %v22673_v0 = vld [vmem:[#allocation203_spill] sm:$0xff]  ;;  %vm22676_vm15 = vmmov %vm22644_vm8 }
 0xb92   : > { %vm22683_vm13 = vmmov %vm22649_vm3 }
 0xb93   : > { %v20380_v35 = vpop.permute.xlu1 %10113  ;;  %v10099_v27 = vpop.permute.xlu0 %10098  ;;  %vm22687_vm4 = vmmov %vm22669_vm1 }
 0xb94   : > { %v20386_v15 = vmul.f32 %v10099_v27, %v10009_v63  ;;  %v9982_v63 = vsel %vm22639_vm2, %v9949_v6, %v22638_v55  ;;  %v22664_v55 = vld [vmem:[#allocation186_spill] sm:$0xff]  ;;  %vm22679_vm2 = vmmov %vm22644_vm8 }
 0xb95   : > { %v10015_v3 = vsel %vm9996_vm6, %v9982_v63, %v22640_v18  ;;  %vm22681_vm8 = vmmov %vm22649_vm3 }
 0xb96   : > { %v12360_v32 = vpack.c.bf16 %v20384_v54, %v20386_v15  ;;  %v22729_v54 = vld [vmem:[#allocation169_spill] sm:$0xff] }
 0xb97   : > { %v20390_v62 = vpop.permute.xlu0 %10108  ;;  %v10124_v5 = vpop.permute.xlu1 %10123  ;;  %v22730_v15 = vld [vmem:[#allocation149_spill] sm:$0xff] }
 0xb98   : > { %v10213_v49 = vmul.f32 %v10124_v5, %v10014_v19  ;;  %v9952_v5 = vsel %vm22649_vm3, %v9919_v17, %v22648_v45  ;;  %v9984_v19 = vsel %vm22655_vm7, %v9951_v37, %v22654_v20  ;;  %v22680_v37 = vld [vmem:[#allocation15_spill] sm:$0xff]  ;;  %vm22685_vm3 = vmmov %vm22669_vm1 }
 0xb99   : > { %v9985_v59 = vsel %vm22653_vm5, %v9952_v5, %v22652_v21  ;;  %vm22692_vm5 = vmmov %vm22679_vm2 }
 0xb9a   : > { %v10018_v36 = vsel %vm9996_vm6, %v9985_v59, %v22657_v39  ;;  %v22682_v59 = vld [vmem:[#allocation125_spill] sm:$0xff]  ;;  %vm22695_vm7 = vmmov %vm22679_vm2 }
 0xb9b   : > { %v10119_v12 = vpop.permute.xlu0 %10118  ;;  %v22688_v39 = vld [vmem:[#allocation193_spill] sm:$0xff] }
 0xb9c   : > { %v10212_v24 = vmul.f32 %v10119_v12, %v10013_v30  ;;  %v22656_v30 = vld [vmem:[#allocation139_spill] sm:$0xff] }
 0xb9d   : > { %v10017_v12 = vsel %vm9996_vm6, %v9984_v19, %v22656_v30  ;;  %v22684_v19 = vld [vmem:[#allocation150_spill] sm:$0xff] }
 0xb9e   : > { %v12334_v27 = vpack.c.bf16 %v10213_v49, %v10212_v24  ;;  %v22658_v24 = vld [vmem:[#allocation100_spill] sm:$0xff]  ;;  %v22686_v30 = vld [vmem:[#allocation78_spill] sm:$0xff] }
 0xb9f   : > { %v10129_v38 = vpop.permute.xlu1 %10128  ;;  %v10134_v53 = vpop.permute.xlu0 %10133  ;;  %v9920_v9 = vsel %vm22660_vm12, %v22659_v8, %v22658_v24  ;;  %v22689_v24 = vld [vmem:[#allocation56_spill] sm:$0xff]  ;;  %vm22697_vm12 = vmmov %vm22681_vm8 }
 0xba0   : > { %v10214_v11 = vmul.f32 %v10129_v38, %v10015_v3  ;;  %v10215_v26 = vmul.f32 %v10134_v53, %v10016_v16  ;;  %12335 = vmatprep.subr.bf16.mxu0 %v12334_v27  ;;  %v22666_v27 = vld [vmem:[#allocation141_spill] sm:$0xff]  ;;  %v22668_v3 = vld [vmem:[#allocation132_spill] sm:$0xff] }
 0xba1   : > { %12337 = vmatpush3.bf16.msra.mxu0 %v12336_v34  ;;  %v22662_v34 = vld [vmem:[#allocation158_spill] sm:$0xff]  ;;  %v9953_v18 = vsel %vm22667_vm11, %v9920_v9, %v22666_v27  ;;  %vm22703_vm11 = vmmov %vm22669_vm1 }
 0xba2   : > { %v12338_v43 = vpack.c.bf16 %v10215_v26, %v10214_v11  ;;  %v9921_v40 = vsel %vm22663_vm10, %v22662_v34, %v22661_v56  ;;  %v9986_v16 = vsel %vm22671_vm9, %v9953_v18, %v22670_v42  ;;  %v22674_v11 = vld [vmem:[#allocation116_spill] sm:$0xff]  ;;  %v22675_v26 = vld [vmem:[#allocation157_spill] sm:$0xff]  ;;  %v22690_v56 = vld [vmem:[#allocation106_spill] sm:$0xff] }
 0xba3   : > { %v10139_v2 = vpop.permute.xlu1 %10138  ;;  %v10144_v49 = vpop.permute.xlu0 %10143  ;;  %v9954_v63 = vsel %vm22665_vm14, %v9921_v40, %v22664_v55  ;;  %v10019_v61 = vsel %vm9996_vm6, %v9986_v16, %v22673_v0  ;;  %v9922_v23 = vsel %vm22676_vm15, %v22675_v26, %v22674_v11  ;;  %v22691_v34 = vld [vmem:[#allocation160_spill] sm:$0xff]  ;;  %v22696_v55 = vld [vmem:[#allocation83_spill] sm:$0xff]  ;;  %v22698_v27 = vld [vmem:[#allocation146_spill] sm:$0xff] }
 0xba4   : > { %v10216_v51 = vmul.f32 %v10139_v2, %v10017_v12  ;;  %v10217_v6 = vmul.f32 %v10144_v49, %v10018_v36  ;;  %12339 = vmatprep.subr.bf16.mxu0 %v12338_v43  ;;  %v9987_v38 = vsel %vm22669_vm1, %v9954_v63, %v22668_v3  ;;  %v9955_v20 = vsel %vm22683_vm13, %v9922_v23, %v22682_v59  ;;  %vm22699_vm10 = vmmov %vm22681_vm8  ;;  %v22700_v3 = vld [vmem:[#allocation147_spill] sm:$0xff]  ;;  %v22702_v42 = vld [vmem:[#allocation209_spill] sm:$0xff] }
 0xba5   : > { %12341 = vmatpush3.bf16.msra.mxu0 %v12340_v47  ;;  %v10020_v58 = vsel %vm9996_vm6, %v9987_v38, %v22672_v10  ;;  %v22678_v47 = vld [vmem:[#allocation159_spill] sm:$0xff]  ;;  %v9988_v12 = vsel %vm22687_vm4, %v9955_v20, %v22686_v30  ;;  %v9924_v60 = vsel %vm22692_vm5, %v22691_v34, %v22690_v56  ;;  %vm22701_vm14 = vmmov %vm22669_vm1  ;;  %v22704_v10 = vld [vmem:[#allocation189_spill] sm:$0xff] }
 0xba6   : > { %v12342_v53 = vpack.c.bf16 %v10217_v6, %v10216_v51  ;;  %v9923_v45 = vsel %vm22679_vm2, %v22678_v47, %v22677_v29  ;;  %v10021_v8 = vsel %vm9996_vm6, %v9988_v12, %v22689_v24  ;;  %v9957_v18 = vsel %vm22699_vm10, %v9924_v60, %v22698_v27  ;;  %v22705_v0 = vld [vmem:[#allocation73_spill] sm:$0xff]  ;;  %v22707_v26 = vld [vmem:[#allocation171_spill] sm:$0xff]  ;;  %vm22708_vm1 = vmmov %vm22679_vm2 }
 0xba7   : > { %v10154_v25 = vpop.permute.xlu1 %10153  ;;  %v10149_v17 = vpop.permute.xlu0 %10148  ;;  %v9956_v21 = vsel %vm22681_vm8, %v9923_v45, %v22680_v37  ;;  %v9990_v16 = vsel %vm22703_vm11, %v9957_v18, %v22702_v42  ;;  %v22706_v11 = vld [vmem:[#allocation173_spill] sm:$0xff]  ;;  %v22709_v23 = vld [vmem:[#allocation122_spill] sm:$0xff]  ;;  %vm22710_vm9 = vmmov %vm22681_vm8 }
 0xba8   : > { %v10219_v5 = vmul.f32 %v10154_v25, %v10020_v58  ;;  %v10218_v52 = vmul.f32 %v10149_v17, %v10019_v61  ;;  %12343 = vmatprep.subr.bf16.mxu0 %v12342_v53  ;;  %v9989_v43 = vsel %vm22685_vm3, %v9956_v21, %v22684_v19  ;;  %v10023_v61 = vsel %vm9996_vm6, %v9990_v16, %v22705_v0  ;;  %v22711_v47 = vld [vmem:[#allocation129_spill] sm:$0xff]  ;;  %vm22712_vm15 = vmmov %vm22685_vm3  ;;  %v22714_v59 = vld [vmem:[#allocation194_spill] sm:$0xff] }
 0xba9   : > { %12345 = vmatpush3.bf16.msra.mxu0 %v12344_v41  ;;  %v10022_v36 = vsel %vm9996_vm6, %v9989_v43, %v22688_v39  ;;  %v22694_v41 = vld [vmem:[#allocation27_spill] sm:$0xff]  ;;  %v9927_v13 = vsel %vm22708_vm1, %v22707_v26, %v22706_v11  ;;  %v22715_v20 = vld [vmem:[#allocation21_spill] sm:$0xff]  ;;  %vm22718_vm2 = vmmov %vm22708_vm1 }
 0xbaa   : > { %v12346_v2 = vpack.c.bf16 %v10219_v5, %v10218_v52  ;;  %v9925_v40 = vsel %vm22695_vm7, %v22694_v41, %v22693_v14  ;;  %v9960_v29 = vsel %vm22710_vm9, %v9927_v13, %v22709_v23  ;;  %v22713_v52 = vld [vmem:[#allocation152_spill] sm:$0xff]  ;;  %v10025_v19 = vsel %vm9996_vm6, %v22715_v20, %v22714_v59  ;;  %v22717_v39 = vld [vmem:[#allocation167_spill] sm:$0xff]  ;;  %v22720_v24 = vld [vmem:[#allocation26_spill] sm:$0xff] }
 0xbab   : > { %v10164_v49 = vpop.permute.xlu1 %10163  ;;  %v10159_v9 = vpop.permute.xlu0 %10158  ;;  %v9958_v63 = vsel %vm22697_vm12, %v9925_v40, %v22696_v55  ;;  %v9993_v45 = vsel %vm22712_vm15, %v9960_v29, %v22711_v47  ;;  %vm22721_vm8 = vmmov %vm22708_vm1  ;;  %v22726_v56 = vld [vmem:[#allocation68_spill] sm:$0xff]  ;;  %v22727_v60 = vld [vmem:[#allocation59_spill] sm:$0xff] }
 0xbac   : > { %v10221_v51 = vmul.f32 %v10164_v49, %v10022_v36  ;;  %v10220_v6 = vmul.f32 %v10159_v9, %v10021_v8  ;;  %12347 = vmatprep.subr.bf16.mxu0 %v12346_v2  ;;  %v9991_v38 = vsel %vm22701_vm14, %v9958_v63, %v22700_v3  ;;  %v10026_v37 = vsel %vm9996_vm6, %v9993_v45, %v22713_v52  ;;  %v22716_v2 = vld [vmem:[#allocation113_spill] sm:$0xff]  ;;  %v22722_v9 = vld [vmem:[#allocation20_spill] sm:$0xff]  ;;  %vm22723_vm13 = vmmov %vm22710_vm9 }
 0xbad   : > { %12349 = vmatpush3.bf16.msra.mxu0 %v12348_v33  ;;  %v10024_v58 = vsel %vm9996_vm6, %v9991_v38, %v22704_v10  ;;  %v9928_v36 = vsel %vm22718_vm2, %v22717_v39, %v22716_v2  ;;  %v22719_v49 = vld [vmem:[#allocation61_spill] sm:$0xff]  ;;  %vm22725_vm3 = vmmov %vm22710_vm9  ;;  %v22732_v27 = vld [vmem:[#allocation198_spill] sm:$0xff]  ;;  %vm10299_vm14 = vcmask 354304  }
 0xbae   : > { %v12350_v53 = vpack.c.bf16 %v10221_v51, %v10220_v6  ;;  %v9929_v8 = vsel %vm22721_vm8, %v22720_v24, %v22719_v49  ;;  %vm22728_vm5 = vmmov %vm22687_vm4  ;;  %v22734_v3 = vld [vmem:[#allocation154_spill] sm:$0xff]  ;;  %v22736_v10 = vld [vmem:[#allocation131_spill] sm:$0xff] }
 0xbaf   : > { %v10174_v25 = vpop.permute.xlu1 %10173  ;;  %v10169_v17 = vpop.permute.xlu0 %10168  ;;  %v9962_v57 = vsel %vm22723_vm13, %v9929_v8, %v22722_v9  ;;  %vm22731_vm7 = vmmov %vm22708_vm1  ;;  %v10301_v11 = vld [vmem:[#allocation3] sm:$0x7] }
 0xbb0   : > { %v10223_v50 = vmul.f32 %v10174_v25, %v10024_v58  ;;  %v10222_v33 = vmul.f32 %v10169_v17, %v10023_v61  ;;  %12351 = vmatprep.subr.bf16.mxu0 %v12350_v53  ;;  %v9995_v34 = vsel %vm22687_vm4, %v9962_v57, %v22726_v56  ;;  %vm22733_vm12 = vmmov %vm22725_vm3 }
 0xbb1   : > { %12353 = vmatpush3.bf16.msra.mxu0 %v12352_v4  ;;  %vm22735_vm10 = vmmov %vm22687_vm4 }
 0xbb2   : > { %v12354_v5 = vpack.c.bf16 %v10223_v50, %v10222_v33  ;;  %v10302_v50 = vmul.f32 %v20217_v22, %v10301_v11 }
 0xbb3   : > { %v10184_v21 = vpop.permute.xlu1 %10183  ;;  %v10179_v43 = vpop.permute.xlu0 %10178 }
 0xbb4   : > { %v10225_v30 = vmul.f32 %v10184_v21, %v10026_v37  ;;  %v10224_v12 = vmul.f32 %v10179_v43, %v10025_v19  ;;  %12355 = vmatprep.subr.bf16.mxu0 %v12354_v5 }
 0xbb5   : > { %12357 = vmatpush3.bf16.msra.mxu0 %v12356_v28  ;;  %v9961_v28 = vsel %vm22725_vm3, %v9928_v36, %v22724_v44 }
 0xbb6   : > { %v12358_v31 = vpack.c.bf16 %v10225_v30, %v10224_v12  ;;  %v9994_v14 = vsel %vm22728_vm5, %v9961_v28, %v22727_v60 }
 0xbb7   : > { %v10194_v7 = vpop.permute.xlu1 %10193  ;;  %v10189_v4 = vpop.permute.xlu0 %10188 }
 0xbb8   : > { %12359 = vmatprep.subr.bf16.mxu0 %v12358_v31 }
 0xbb9   : > { %12361 = vmatpush3.bf16.msra.mxu0 %v12360_v32  ;;  %v9912_v32 = vsel %vm22731_vm7, %v22730_v15, %v22729_v54 }
 0xbba   : > { %v9945_v18 = vsel %vm22733_vm12, %v9912_v32, %v22732_v27 }
 0xbbb   : > { %v9865_v41 = vpop.permute.xlu1 %9864  ;;  %v9863_v40 = vpop.permute.xlu0 %9862  ;;  %v9978_v38 = vsel %vm22735_vm10, %v9945_v18, %v22734_v3 }
 0xbbc   : > { %v10028_v51 = vsel %vm9996_vm6, %v9995_v34, %v9865_v41  ;;  %v10027_v6 = vsel %vm9996_vm6, %v9994_v14, %v9863_v40 }
 0xbbd   : > { %v10227_v55 = vmul.f32 %v10194_v7, %v10028_v51  ;;  %v10226_v63 = vmul.f32 %v10189_v4, %v10027_v6 }
 0xbbf   : > { %v9833_v42 = vpop.permute.xlu1 %9832  ;;  %v9831_v16 = vpop.permute.xlu0 %9830  ;;  %v12362_v53 = vpack.c.bf16 %v10227_v55, %v10226_v63 }
 0xbc0   : > { %v10012_v58 = vsel %vm9996_vm6, %v22736_v10, %v9833_v42  ;;  %v10011_v25 = vsel %vm9996_vm6, %v9978_v38, %v9831_v16  ;;  %vm22737_vm6 = vcmask 2048  }
 0xbc1   : > { %v10211_v0 = vmul.f32 %v20380_v35, %v10012_v58  ;;  %v10210_v61 = vmul.f32 %v20390_v62, %v10011_v25  ;;  %12363 = vmatprep.subr.bf16.mxu0 %v12362_v53  ;;  %v10029_v35 = vld [vmem:[#allocation4] sm:$0x7] }
 0xbc3   : > { %v12364_v17 = vpack.c.bf16 %v10211_v0, %v10210_v61  ;;  %v10033_v29 = vpop.permute.xlu0 %10032 }
 0xbc4   : > { %v10035_v45 = vmul.f32 %v10033_v29, %v10029_v35 }
 0xbc5   : > { %12365 = vmatpush3.bf16.msra.mxu0 %v12364_v17 }
 0xbc8   : > { %11077 = vmatmul.mubr.msk.f32.vlgmr.msra.gmra.mrb[64].mxu0 %vm8302_vm0, %v22513_v1 }
 0xc10   : > { %v11625_v26 = vpop.f32.mrb[64].mxu1 }
 0xc11   : > { %v11626_v13 = vpop.f32.mrb[65].mxu1 }
 0xc12   : > { %v11627_v33 = vadd.f32 %v11626_v13, %v11625_v26 }
 0xc14   : > { %v10373_v23 = vadd.f32 %v11627_v33, %v10302_v50 }
 0xc16   : > { %10375 = vst.msk [vmem:[#allocation3] sm:$0x7] %vm22737_vm6, %v10373_v23 }
 0xc1d   : > { %v10381_v46 = vld [vmem:[#allocation3] sm:$0x7] (!%p11112_p11) }
 0xc1e   : > { %vm10382_vm0 = vcmp.gt.f32.partialorder (!%p11112_p11), %v10381_v46, 0.0 }
 0xc1f   : > { %v10383_v1 = vsel (!%p11112_p11), %vm10382_vm0, %v10381_v46, 1.0 }
 0xc20   : > { %13246 = vrcp.f32 (!%p11112_p11), %v10383_v1 }
 0xc2a   : > { %v13247_v22 = vpop.eup (!%p11112_p11), %13246 }
 0xc2b   : > { %10388 = vperm.xlu0 (!%p11112_p11), %13245, %v13247_v22  }
 0xc9b   : > { %v11590_v62 = vpop.f32.mrb[64].mxu0  ;;  %10380 = sbr.rel (%p11112_p11) target bundleno = 3246 (0xcae), region = 137 }
 0xc9c   : > { %v11591_v47 = vpop.f32.mrb[65].mxu0 }
 0xc9d   : > { %v11592_v5 = vadd.f32 %v11591_v47, %v11590_v62 }
 0xc9f   : > { %v10298_v52 = vadd.f32 %v11592_v5, %v10035_v45 }
 0xca1   : > { %10300 = vst.msk [vmem:[#allocation4] sm:$0x7] %vm10299_vm14, %v10298_v52 }
 0xca8   : > { %v10384_v37 = vld [vmem:[#allocation4] sm:$0x7] }
 0xcaa   : > { %v10389_v21 = vpop.permute.xlu0 %10388 }
 0xcab   : > { %v10391_v59 = vmul.f32 %v10389_v21, %v10384_v37 }
 0xcad   : > { %10392 = vst.msk [vmem:[#allocation6] sm:$0x7] %vm10299_vm14, %v10391_v59 }
 0xcae PF: > { %p12421_p12 = scmp.eq.s32.totalorder %s13423_s27, 3  ;;  %s13316_s13 = smov [#allocation6]  }
 0xcaf   : > { %s10400_s17 = sshll.u32 %s13316_s13, 4  ;;  %s10401_s17 = int_to_ptr.vmem [resolvable:$true] %s10400_s17 }
 0xcb0   : > { %s13248_s1 = scalar_lea.vmem %s10401_s17, 64  ;;  %p13255_p2 = scmp.lt.s32.totalorder %s10401_s17, %s10401_s17 }
 0xcb1   : > { %p13249_p13 = scmp.ne.s32.totalorder %s10401_s17, %s13248_s1  ;;  %p13256_p3 = scmp.lt.s32.totalorder %s13248_s1, %s13248_s1 }
 0xcb3   : > { %p13250_p0 = pnand %p13249_p13, %p12421_p12  ;;  %p13257_p4 = por %p13256_p3, %p13255_p2 }
 0xcb5   : > { %p13251_p1 = pneg %p13250_p0 }
 0xcb7   : > { %p13258_p5 = pnand %p13257_p4, %p13251_p1 }
 0xcb9   : > { %13261 = shalt.err (!%p13258_p5)
}
 0xcba   : > { %s22738_s28 = sld [smem:[#allocation218_spill]] }
 0xcc0   : > { %s13262_s15 = scalar_lea.hbm %s22738_s28, 64 }
 0xcc1   : > { %p13263_p6 = scmp.ne.s32.totalorder %s22738_s28, %s13262_s15  ;;  %p13268_p9 = scmp.lt.u32.totalorder %s13262_s15, %s22738_s28 }
 0xcc3   : > { %p13264_p7 = pnand %p13263_p6, %p12421_p12 }
 0xcc5   : > { %p13265_p8 = pneg %p13264_p7 }
 0xcc7   : > { %p13270_p10 = pnand %p13268_p9, %p13265_p8 }
 0xcc9   : > { %13273 = shalt.err (!%p13270_p10)
}
 0xcca   : > { %12418 = dma.vmem_to_hbm [thread:$0]  (%p12421_p12), %s10401_s17, 64, %s22738_s28, [#allocation7]  }
 0xccb   : > { %13287 = dma.done.wait (%p12421_p12), [#allocation7], 64  }
 0xccc   : > { %13289 = vsyncadd (%p12421_p12), [#allocation7], 4294967232 }
 0xccd PF: > { %s22739_s26 = sld [smem:[#allocation10_spill]]  ;;  %s22740_s24 = sld [smem:[#allocation9_spill]] }
 0xcce   : > { %s22741_s25 = sld [smem:[#allocation11_spill]] }
 0xcd3   : > { %p25_p11 = scmp.ge.s32.totalorder %s22739_s26, 6  }
 0xcd5   :  { %27 = sbr.rel (!%p25_p11) target bundleno = 9 (0x9), region = 183 }
 0xcdc   :  { %10413 = vsyncpa [#allocation7], 1 }
 0xcdd   :  { %10415 = vsyncpa [#allocation7 + $0x1], 1 }

</bundles_post_ra>
